<compile_context>
chip_gen: v6e
topology: v6e:2x2x1
jax: 0.10.0
libtpu: 0.0.40
codegen_flags: <defaults>
</compile_context>

<pallas_src>
import functools

import jax
import jax.numpy as jnp
from jax.experimental import pallas as pl
from jax.experimental.pallas import tpu as pltpu


# ---------------------------------------------------------------------------
# Pallas kernels
# ---------------------------------------------------------------------------
def _conv_tap_kernel(*refs, n_planes, taps, nv, relu):
    """Tap-accumulate conv: out[c_out, r] = b + sum_t W_t @ x[:, slice_t]."""
    x_refs = refs[:n_planes]
    w_ref, b_ref, o_ref = refs[n_planes:]
    cout = b_ref.shape[0]
    # bias folded into the accumulator init (f32)
    acc = jnp.broadcast_to(b_ref[...], (cout, nv)).astype(jnp.float32)
    for t, (plane, start) in enumerate(taps):
        xs = x_refs[plane][0, :, pl.ds(start, nv)]          # (Cin, nv)   bf16
        acc = acc + jnp.dot(w_ref[t], xs,                   # (Cout,Cin)@(Cin,nv)
                            preferred_element_type=jnp.float32)
    if relu:
        acc = jnp.maximum(acc, 0.0)
    o_ref[0] = acc.astype(o_ref.dtype)


def _tail_kernel(x_ref, w4_ref, b4_ref, wml_ref, bml_ref, eps_ref,
                 wdec_ref, bdec_ref, wd1_ref, bd1_ref, wd2_ref, bd2_ref,
                 mu_ref, logvar_ref, d2_ref, *, latent_dim):
    """enc4 + avg_pool + fc_mu/fc_logvar + reparam + fc_decode + dec1 + dec2."""
    # pool(conv(x)) == mean(im2col patches) @ W4   (both are linear)
    xm = jnp.mean(x_ref[...].astype(jnp.float32), axis=1)               # (B, 4C)
    feat = jnp.dot(xm.astype(jnp.bfloat16), w4_ref[...],
                   preferred_element_type=jnp.float32) + b4_ref[...]     # (B, 128)
    # fc_mu ++ fc_logvar as a single matmul (concatenated weights)
    ml = jnp.dot(feat.astype(jnp.bfloat16), wml_ref[...],
                 preferred_element_type=jnp.float32) + bml_ref[...]      # (B, 2L)
    mu = ml[:, :latent_dim]
    logvar = ml[:, latent_dim:]
    # reparameterize; eps is (1, L) shared across the batch, matching
    # torch.normal(0, torch.ones(latent_dim)).  Epilogue kept in f32.
    z = mu + jnp.exp(0.5 * logvar) * eps_ref[...]
    d0 = jnp.dot(z.astype(jnp.bfloat16), wdec_ref[...],
                 preferred_element_type=jnp.float32) + bdec_ref[...]     # (B, 128)
    # dec1 (ConvT 2x2 on a 1x1 map) and dec2 (ConvT 3x3 s2 on a 2x2 map) were
    # unrolled into dense matrices at pack time.
    d1 = jnp.maximum(jnp.dot(d0.astype(jnp.bfloat16), wd1_ref[...],
                             preferred_element_type=jnp.float32)
                     + bd1_ref[...], 0.0)                                # (B, 512)
    d2 = jnp.maximum(jnp.dot(d1.astype(jnp.bfloat16), wd2_ref[...],
                             preferred_element_type=jnp.float32)
                     + bd2_ref[...], 0.0)                                # (B, 2048)
    mu_ref[...] = mu
    logvar_ref[...] = logvar
    d2_ref[...] = d2.astype(d2_ref.dtype)


# ---------------------------------------------------------------------------
# Layer wrappers (light XLA glue: pad / reshape / parity-split only)
# ---------------------------------------------------------------------------
def conv_layer(x, layer, cfg, out_dtype=jnp.bfloat16):
    """x: (B, Cin, H, W) NCHW.  Returns (B, Cout, Ho, Wo) in `out_dtype`."""
    B, Cin, H, W = x.shape
    k, s, p = cfg["k"], cfg["stride"], cfg["pad"]

    if cfg["transpose"]:
        # ConvTranspose == dilate, pad, stride-1 conv with flipped kernel
        # (weights already flipped/transposed at pack time).
        Hd, Wd = (H - 1) * s + 1, (W - 1) * s + 1
        if s > 1:
            xd = jnp.pad(x[:, :, :, None, :, None],
                         ((0, 0), (0, 0), (0, 0), (0, s - 1), (0, 0), (0, s - 1)))
            xd = xd.reshape(B, Cin, H * s, W * s)[:, :, :Hd, :Wd]
        else:
            xd = x
        lo, hi = k - 1 - p, k - 1 - p + cfg["out_pad"]
        xp = jnp.pad(xd, ((0, 0), (0, 0), (lo, hi), (lo, hi)))
        s_eff = 1
    else:
        xp = jnp.pad(x, ((0, 0), (0, 0), (p, p), (p, p)))
        s_eff = s

    Hp, Wp = xp.shape[2], xp.shape[3]
    Ho = (Hp - k) // s_eff + 1
    Wo = (Wp - k) // s_eff + 1
    nv = Ho * Wp                      # virtual output rows are Wp wide (garbage
                                      # columns j >= Wo get sliced off below)

    cin_pad = layer["w_taps"].shape[2]
    cout = layer["w_taps"].shape[1]
    o_max = (k - 1) * Wp + (k - 1)
    needed = o_max + s_eff * (nv - 1) + 1
    extra = max(0, needed - Hp * Wp)
    if s_eff == 2:
        extra += (Hp * Wp + extra) % 2        # even flat length for parity split

    flat = xp.reshape(B, Cin, Hp * Wp)
    flat = jnp.pad(flat, ((0, 0), (0, cin_pad - Cin), (0, extra))).astype(jnp.bfloat16)

    if s_eff == 1:
        planes = (flat,)
        taps = tuple((0, di * Wp + dj) for di in range(k) for dj in range(k))
    else:  # stride 2: split by flat-index parity so taps stay contiguous slices
        planes = (flat[:, :, 0::2], flat[:, :, 1::2])
        taps = tuple((((di * Wp + dj) & 1), (di * Wp + dj) // 2)
                     for di in range(k) for dj in range(k))

    in_specs = [pl.BlockSpec((1,) + pln.shape[1:], lambda b: (b, 0, 0))
                for pln in planes]
    in_specs += [pl.BlockSpec(layer["w_taps"].shape, lambda b: (0, 0, 0)),
                 pl.BlockSpec(layer["b"].shape, lambda b: (0, 0))]

    out = pl.pallas_call(
        functools.partial(_conv_tap_kernel, n_planes=len(planes), taps=taps,
                          nv=nv, relu=cfg["relu"]),
        out_shape=jax.ShapeDtypeStruct((B, cout, nv), out_dtype),
        grid=(B,),
        in_specs=in_specs,
        out_specs=pl.BlockSpec((1, cout, nv), lambda b: (b, 0, 0)),
        compiler_params=pltpu.CompilerParams(dimension_semantics=("parallel",)),
    )(*planes, layer["w_taps"], layer["b"])

    # drop the (Wp - Wo) wrap-around columns of every virtual row
    return out.reshape(B, cout, Ho, Wp)[:, :, :, :Wo]


def latent_tail(h3, pk, eps):
    """h3: enc3 output (B, 128, H3, W3).  Returns (mu, logvar, d2_flat)."""
    B, C, H3, W3 = h3.shape
    L = pk["wdec"].shape[0]
    n_out = pk["wd2"].shape[1]
    # enc4 is a 2x2, stride-1, valid conv -> build its (tiny) patches here;
    # pool / matmuls / reparam / dec1 / dec2 all happen in the fused kernel.
    h = jnp.transpose(h3, (0, 2, 3, 1))                              # (B,H3,W3,C)
    ho, wo = H3 - 1, W3 - 1
    cols = [h[:, di:di + ho, dj:dj + wo, :] for di in range(2) for dj in range(2)]
    patches = jnp.concatenate(cols, axis=-1).reshape(B, ho * wo, 4 * C)
    patches = patches.astype(jnp.bfloat16)
    eps2 = eps.reshape(1, L).astype(jnp.float32)

    def spec_full(a):
        return pl.BlockSpec(a.shape, lambda i, n=a.ndim: (0,) * n)

    ops = [patches, pk["w4"], pk["b4"], pk["wml"], pk["bml"], eps2,
           pk["wdec"], pk["bdec"], pk["wd1"], pk["bd1"], pk["wd2"], pk["bd2"]]

    mu, logvar, d2 = pl.pallas_call(
        functools.partial(_tail_kernel, latent_dim=L),
        out_shape=(jax.ShapeDtypeStruct((B, L), jnp.float32),
                   jax.ShapeDtypeStruct((B, L), jnp.float32),
                   jax.ShapeDtypeStruct((B, n_out), jnp.bfloat16)),
        grid=(1,),
        in_specs=[spec_full(a) for a in ops],
        out_specs=[pl.BlockSpec((B, L), lambda i: (0, 0)),
                   pl.BlockSpec((B, L), lambda i: (0, 0)),
                   pl.BlockSpec((B, n_out), lambda i: (0, 0))],
    )(*ops)
    return mu, logvar, d2


# ---------------------------------------------------------------------------
# ConvVAE forward
# ---------------------------------------------------------------------------
ENC_CFG = (
    dict(k=3, stride=2, pad=1, transpose=False, relu=True),            # 1 -> 32
    dict(k=3, stride=2, pad=1, transpose=False, relu=True),            # 32 -> 64
    dict(k=3, stride=2, pad=1, transpose=False, relu=True),            # 64 -> 128
)
# dec1 / dec2 are fused (dense-unrolled) into the tail kernel; only these stay
# as tap kernels:
DEC_TAP_CFG = (
    dict(k=3, stride=2, pad=1, out_pad=0, transpose=True, relu=True),  # 128 -> 64
    dict(k=3, stride=2, pad=1, out_pad=1, transpose=True, relu=True),  # 64 -> 32
    dict(k=3, stride=2, pad=1, out_pad=1, transpose=True, relu=False), # 32 -> 1
)


def conv_vae_forward(pk, x_nchw, eps):
    h = x_nchw.astype(jnp.bfloat16)
    for cfg, lyr in zip(ENC_CFG, pk["enc"]):
        h = conv_layer(h, lyr, cfg)                              # bf16 intermediates
    mu, logvar, d2 = latent_tail(h, pk, eps)
    d = d2.reshape(d2.shape[0], 128, 4, 4)                       # after dec2+ReLU
    last = len(DEC_TAP_CFG) - 1
    for i, (cfg, lyr) in enumerate(zip(DEC_TAP_CFG, pk["dec"])):
        d = conv_layer(d, lyr, cfg,
                       out_dtype=jnp.float32 if i == last else jnp.bfloat16)
    return d, mu, logvar                                         # (B,1,28,28) NCHW


# ---------------------------------------------------------------------------
# Parameter init (torch-layout) + one-time packing into kernel operands
# ---------------------------------------------------------------------------
def _uniform(key, shape, fan_in):
    bound = 1.0 / jnp.sqrt(jnp.float32(fan_in))
    return jax.random.uniform(key, shape, jnp.float32, -bound, bound)


def init_params(key, latent_dim):
    keys = iter(jax.random.split(key, 24))

    def conv_p(cout, cin, k):
        fan = cin * k * k
        return (_uniform(next(keys), (cout, cin, k, k), fan),
                _uniform(next(keys), (cout,), fan))

    def convT_p(cin, cout, k):
        fan = cout * k * k
        return (_uniform(next(keys), (cin, cout, k, k), fan),
                _uniform(next(keys), (cout,), fan))

    def lin_p(out_f, in_f):
        return (_uniform(next(keys), (out_f, in_f), in_f),
                _uniform(next(keys), (out_f,), in_f))

    return {
        "enc1": conv_p(32, 1, 3), "enc2": conv_p(64, 32, 3),
        "enc3": conv_p(128, 64, 3), "enc4": conv_p(128, 128, 2),
        "fc_mu": lin_p(latent_dim, 128), "fc_logvar": lin_p(latent_dim, 128),
        "fc_decode": lin_p(128, latent_dim),
        "dec1": convT_p(128, 128, 2), "dec2": convT_p(128, 128, 3),
        "dec3": convT_p(128, 64, 3), "dec4": convT_p(64, 32, 3),
        "dec5": convT_p(32, 1, 3),
    }


def _convT_dense(w, b, *, hin, win, stride, pad, out_pad):
    """Pack-time unroll of a tiny ConvTranspose2d into one dense matmul.

    Returns Wd s.t. out_flat[ci-major NCHW] = in_flat @ Wd + b_rep, with
    row index ci*(Hin*Win)+hi*Win+wi and col index co*(Hout*Wout)+ho*Wout+wo.
    """
    cin, cout, kH, kW = w.shape
    hout = (hin - 1) * stride - 2 * pad + kH + out_pad
    wout = (win - 1) * stride - 2 * pad + kW + out_pad
    wd = jnp.zeros((cin * hin * win, cout * hout * wout), jnp.float32)
    for hi in range(hin):
        for wi in range(win):
            for kh in range(kH):
                for kw in range(kW):
                    ho = hi * stride - pad + kh
                    wo = wi * stride - pad + kw
                    if 0 <= ho < hout and 0 <= wo < wout:
                        rs = hi * win + wi
                        cs = ho * wout + wo
                        wd = wd.at[rs::hin * win, cs::hout * wout].add(w[:, :, kh, kw])
    b_rep = jnp.repeat(b, hout * wout).reshape(1, cout * hout * wout)
    return wd.astype(jnp.bfloat16), b_rep.astype(jnp.float32)


def pack_params(params, latent_dim):
    """All weight transposes/flips/concats/unrolls done ONCE, outside forward."""
    def pack_conv(wb, transpose):
        w, b = wb
        if transpose:   # torch (Cin, Cout, kH, kW): flip spatially, swap in/out
            w = w[:, :, ::-1, ::-1]
            taps = jnp.transpose(w, (2, 3, 1, 0))                # (kH,kW,Cout,Cin)
        else:           # torch (Cout, Cin, kH, kW)
            taps = jnp.transpose(w, (2, 3, 0, 1))                # (kH,kW,Cout,Cin)
        kH, kW, cout, cin = taps.shape
        cin_pad = max(8, ((cin + 7) // 8) * 8)                   # K-pad (enc1: 1->8)
        taps = jnp.pad(taps, ((0, 0), (0, 0), (0, 0), (0, cin_pad - cin)))
        return dict(w_taps=taps.reshape(kH * kW, cout, cin_pad).astype(jnp.bfloat16),
                    b=b.reshape(cout, 1).astype(jnp.float32))

    pk = {"enc": [pack_conv(params["enc1"], False),
                  pack_conv(params["enc2"], False),
                  pack_conv(params["enc3"], False)],
          "dec": [pack_conv(params["dec%d" % i], True) for i in range(3, 6)]}

    w4, b4 = params["enc4"]                                      # (128,128,2,2)
    pk["w4"] = jnp.transpose(w4, (2, 3, 1, 0)).reshape(4 * 128, 128).astype(jnp.bfloat16)
    pk["b4"] = b4.reshape(1, 128).astype(jnp.float32)
    (wmu, bmu), (wlv, blv) = params["fc_mu"], params["fc_logvar"]
    pk["wml"] = jnp.concatenate([wmu.T, wlv.T], axis=1).astype(jnp.bfloat16)   # (128,2L)
    pk["bml"] = jnp.concatenate([bmu, blv]).reshape(1, 2 * latent_dim).astype(jnp.float32)
    wd, bd = params["fc_decode"]
    pk["wdec"] = wd.T.astype(jnp.bfloat16)                       # (L, 128)
    pk["bdec"] = bd.reshape(1, 128).astype(jnp.float32)
    # dec1: ConvT(128,128,k=2) on a 1x1 map  -> dense (128, 512)
    pk["wd1"], pk["bd1"] = _convT_dense(*params["dec1"], hin=1, win=1,
                                        stride=1, pad=0, out_pad=0)
    # dec2: ConvT(128,128,k=3,s=2,p=1,op=1) on a 2x2 map -> dense (512, 2048)
    pk["wd2"], pk["bd2"] = _convT_dense(*params["dec2"], hin=2, win=2,
                                        stride=2, pad=1, out_pad=1)
    return pk


if __name__ == "__main__":
    LATENT_DIM = 32
    key = jax.random.PRNGKey(0)
    k_param, k_x, k_eps = jax.random.split(key, 3)

    params = init_params(k_param, LATENT_DIM)
    packed = pack_params(params, LATENT_DIM)                     # one-time packing

    x = jax.random.normal(k_x, (2, 1, 16, 16), jnp.float32)      # NCHW, 1 channel
    # torch.normal(0, torch.ones(latent_dim)) -> one (L,) draw shared over batch
    eps = jax.random.normal(k_eps, (LATENT_DIM,), jnp.float32)

    fwd = jax.jit(conv_vae_forward)
    recon_x, mu, logvar = fwd(packed, x, eps)
    jax.block_until_ready((recon_x, mu, logvar))

    assert recon_x.shape == (2, 1, 28, 28) and recon_x.dtype == jnp.float32
    assert mu.shape == (2, LATENT_DIM) and logvar.shape == (2, LATENT_DIM)
    assert bool(jnp.all(jnp.isfinite(recon_x)))
    print("KERNEL_OK")
</pallas_src>

<mosaic_0001>
module attributes {stable_mosaic.version = 11 : i64} {
  func.func @_conv_tap_kernel(%arg0: i32, %arg1: memref<1x8x163xbf16, #tpu.memory_space<vmem>>, %arg2: memref<1x8x163xbf16, #tpu.memory_space<vmem>>, %arg3: memref<9x32x8xbf16, #tpu.memory_space<vmem>>, %arg4: memref<32x1xf32, #tpu.memory_space<vmem>>, %arg5: memref<1x32x144xbf16, #tpu.memory_space<vmem>>) attributes {dimension_semantics = [#tpu.dimension_semantics<parallel>], iteration_bounds = array<i64: 2>, scalar_prefetch = 0 : i64, scratch_operands = 0 : i64, tpu.core_type = #tpu.core_type<tc>, window_params = [{transform_indices = @transform_0, window_bounds = array<i64: 1, 8, 163>}, {transform_indices = @transform_1, window_bounds = array<i64: 1, 8, 163>}, {pipeline_mode = #tpu.pipeline_mode<synchronous>, transform_indices = @transform_2, window_bounds = array<i64: 9, 32, 8>}, {pipeline_mode = #tpu.pipeline_mode<synchronous>, transform_indices = @transform_3, window_bounds = array<i64: 32, 1>}, {transform_indices = @transform_4, window_bounds = array<i64: 1, 32, 144>}]} {
    %c0 = arith.constant 0 : index
    %c0_0 = arith.constant 0 : index
    %0 = vector.load %arg4[%c0, %c0_0] : memref<32x1xf32, #tpu.memory_space<vmem>>, vector<32x1xf32>
    %1 = vector.shape_cast %0 : vector<32x1xf32> to vector<32x1xf32>
    %2 = vector.broadcast %1 : vector<32x1xf32> to vector<32x144xf32>
    %c0_1 = arith.constant 0 : index
    %c0_2 = arith.constant 0 : index
    %c0_3 = arith.constant 0 : index
    %3 = vector.load %arg1[%c0_1, %c0_2, %c0_3] : memref<1x8x163xbf16, #tpu.memory_space<vmem>>, vector<1x8x144xbf16>
    %4 = vector.shape_cast %3 : vector<1x8x144xbf16> to vector<8x144xbf16>
    %c0_4 = arith.constant 0 : index
    %c0_5 = arith.constant 0 : index
    %c0_6 = arith.constant 0 : index
    %5 = vector.load %arg3[%c0_4, %c0_5, %c0_6] : memref<9x32x8xbf16, #tpu.memory_space<vmem>>, vector<1x32x8xbf16>
    %6 = vector.shape_cast %5 : vector<1x32x8xbf16> to vector<32x8xbf16>
    %cst = arith.constant dense<0.000000e+00> : vector<32x144xf32>
    %7 = tpu.matmul %6, %4, %cst {dimension_numbers = #tpu.dot_dimension_numbers<[1], [0], [0], [1], [0, 0, 1, 1], [], []>} : vector<32x8xbf16>, vector<8x144xbf16>, vector<32x144xf32> -> vector<32x144xf32>
    %8 = arith.addf %2, %7 : vector<32x144xf32>
    %c0_7 = arith.constant 0 : index
    %c0_8 = arith.constant 0 : index
    %c0_9 = arith.constant 0 : index
    %9 = vector.load %arg2[%c0_7, %c0_8, %c0_9] : memref<1x8x163xbf16, #tpu.memory_space<vmem>>, vector<1x8x144xbf16>
    %10 = vector.shape_cast %9 : vector<1x8x144xbf16> to vector<8x144xbf16>
    %c1 = arith.constant 1 : index
    %c0_10 = arith.constant 0 : index
    %c0_11 = arith.constant 0 : index
    %11 = vector.load %arg3[%c1, %c0_10, %c0_11] : memref<9x32x8xbf16, #tpu.memory_space<vmem>>, vector<1x32x8xbf16>
    %12 = vector.shape_cast %11 : vector<1x32x8xbf16> to vector<32x8xbf16>
    %cst_12 = arith.constant dense<0.000000e+00> : vector<32x144xf32>
    %13 = tpu.matmul %12, %10, %cst_12 {dimension_numbers = #tpu.dot_dimension_numbers<[1], [0], [0], [1], [0, 0, 1, 1], [], []>} : vector<32x8xbf16>, vector<8x144xbf16>, vector<32x144xf32> -> vector<32x144xf32>
    %14 = arith.addf %8, %13 : vector<32x144xf32>
    %c0_13 = arith.constant 0 : index
    %c0_14 = arith.constant 0 : index
    %c1_15 = arith.constant 1 : index
    %15 = vector.load %arg1[%c0_13, %c0_14, %c1_15] : memref<1x8x163xbf16, #tpu.memory_space<vmem>>, vector<1x8x144xbf16>
    %16 = vector.shape_cast %15 : vector<1x8x144xbf16> to vector<8x144xbf16>
    %c2 = arith.constant 2 : index
    %c0_16 = arith.constant 0 : index
    %c0_17 = arith.constant 0 : index
    %17 = vector.load %arg3[%c2, %c0_16, %c0_17] : memref<9x32x8xbf16, #tpu.memory_space<vmem>>, vector<1x32x8xbf16>
    %18 = vector.shape_cast %17 : vector<1x32x8xbf16> to vector<32x8xbf16>
    %cst_18 = arith.constant dense<0.000000e+00> : vector<32x144xf32>
    %19 = tpu.matmul %18, %16, %cst_18 {dimension_numbers = #tpu.dot_dimension_numbers<[1], [0], [0], [1], [0, 0, 1, 1], [], []>} : vector<32x8xbf16>, vector<8x144xbf16>, vector<32x144xf32> -> vector<32x144xf32>
    %20 = arith.addf %14, %19 : vector<32x144xf32>
    %c0_19 = arith.constant 0 : index
    %c0_20 = arith.constant 0 : index
    %c9 = arith.constant 9 : index
    %21 = vector.load %arg1[%c0_19, %c0_20, %c9] : memref<1x8x163xbf16, #tpu.memory_space<vmem>>, vector<1x8x144xbf16>
    %22 = vector.shape_cast %21 : vector<1x8x144xbf16> to vector<8x144xbf16>
    %c3 = arith.constant 3 : index
    %c0_21 = arith.constant 0 : index
    %c0_22 = arith.constant 0 : index
    %23 = vector.load %arg3[%c3, %c0_21, %c0_22] : memref<9x32x8xbf16, #tpu.memory_space<vmem>>, vector<1x32x8xbf16>
    %24 = vector.shape_cast %23 : vector<1x32x8xbf16> to vector<32x8xbf16>
    %cst_23 = arith.constant dense<0.000000e+00> : vector<32x144xf32>
    %25 = tpu.matmul %24, %22, %cst_23 {dimension_numbers = #tpu.dot_dimension_numbers<[1], [0], [0], [1], [0, 0, 1, 1], [], []>} : vector<32x8xbf16>, vector<8x144xbf16>, vector<32x144xf32> -> vector<32x144xf32>
    %26 = arith.addf %20, %25 : vector<32x144xf32>
    %c0_24 = arith.constant 0 : index
    %c0_25 = arith.constant 0 : index
    %c9_26 = arith.constant 9 : index
    %27 = vector.load %arg2[%c0_24, %c0_25, %c9_26] : memref<1x8x163xbf16, #tpu.memory_space<vmem>>, vector<1x8x144xbf16>
    %28 = vector.shape_cast %27 : vector<1x8x144xbf16> to vector<8x144xbf16>
    %c4 = arith.constant 4 : index
    %c0_27 = arith.constant 0 : index
    %c0_28 = arith.constant 0 : index
    %29 = vector.load %arg3[%c4, %c0_27, %c0_28] : memref<9x32x8xbf16, #tpu.memory_space<vmem>>, vector<1x32x8xbf16>
    %30 = vector.shape_cast %29 : vector<1x32x8xbf16> to vector<32x8xbf16>
    %cst_29 = arith.constant dense<0.000000e+00> : vector<32x144xf32>
    %31 = tpu.matmul %30, %28, %cst_29 {dimension_numbers = #tpu.dot_dimension_numbers<[1], [0], [0], [1], [0, 0, 1, 1], [], []>} : vector<32x8xbf16>, vector<8x144xbf16>, vector<32x144xf32> -> vector<32x144xf32>
    %32 = arith.addf %26, %31 : vector<32x144xf32>
    %c0_30 = arith.constant 0 : index
    %c0_31 = arith.constant 0 : index
    %c10 = arith.constant 10 : index
    %33 = vector.load %arg1[%c0_30, %c0_31, %c10] : memref<1x8x163xbf16, #tpu.memory_space<vmem>>, vector<1x8x144xbf16>
    %34 = vector.shape_cast %33 : vector<1x8x144xbf16> to vector<8x144xbf16>
    %c5 = arith.constant 5 : index
    %c0_32 = arith.constant 0 : index
    %c0_33 = arith.constant 0 : index
    %35 = vector.load %arg3[%c5, %c0_32, %c0_33] : memref<9x32x8xbf16, #tpu.memory_space<vmem>>, vector<1x32x8xbf16>
    %36 = vector.shape_cast %35 : vector<1x32x8xbf16> to vector<32x8xbf16>
    %cst_34 = arith.constant dense<0.000000e+00> : vector<32x144xf32>
    %37 = tpu.matmul %36, %34, %cst_34 {dimension_numbers = #tpu.dot_dimension_numbers<[1], [0], [0], [1], [0, 0, 1, 1], [], []>} : vector<32x8xbf16>, vector<8x144xbf16>, vector<32x144xf32> -> vector<32x144xf32>
    %38 = arith.addf %32, %37 : vector<32x144xf32>
    %c0_35 = arith.constant 0 : index
    %c0_36 = arith.constant 0 : index
    %c18 = arith.constant 18 : index
    %39 = vector.load %arg1[%c0_35, %c0_36, %c18] : memref<1x8x163xbf16, #tpu.memory_space<vmem>>, vector<1x8x144xbf16>
    %40 = vector.shape_cast %39 : vector<1x8x144xbf16> to vector<8x144xbf16>
    %c6 = arith.constant 6 : index
    %c0_37 = arith.constant 0 : index
    %c0_38 = arith.constant 0 : index
    %41 = vector.load %arg3[%c6, %c0_37, %c0_38] : memref<9x32x8xbf16, #tpu.memory_space<vmem>>, vector<1x32x8xbf16>
    %42 = vector.shape_cast %41 : vector<1x32x8xbf16> to vector<32x8xbf16>
    %cst_39 = arith.constant dense<0.000000e+00> : vector<32x144xf32>
    %43 = tpu.matmul %42, %40, %cst_39 {dimension_numbers = #tpu.dot_dimension_numbers<[1], [0], [0], [1], [0, 0, 1, 1], [], []>} : vector<32x8xbf16>, vector<8x144xbf16>, vector<32x144xf32> -> vector<32x144xf32>
    %44 = arith.addf %38, %43 : vector<32x144xf32>
    %c0_40 = arith.constant 0 : index
    %c0_41 = arith.constant 0 : index
    %c18_42 = arith.constant 18 : index
    %45 = vector.load %arg2[%c0_40, %c0_41, %c18_42] : memref<1x8x163xbf16, #tpu.memory_space<vmem>>, vector<1x8x144xbf16>
    %46 = vector.shape_cast %45 : vector<1x8x144xbf16> to vector<8x144xbf16>
    %c7 = arith.constant 7 : index
    %c0_43 = arith.constant 0 : index
    %c0_44 = arith.constant 0 : index
    %47 = vector.load %arg3[%c7, %c0_43, %c0_44] : memref<9x32x8xbf16, #tpu.memory_space<vmem>>, vector<1x32x8xbf16>
    %48 = vector.shape_cast %47 : vector<1x32x8xbf16> to vector<32x8xbf16>
    %cst_45 = arith.constant dense<0.000000e+00> : vector<32x144xf32>
    %49 = tpu.matmul %48, %46, %cst_45 {dimension_numbers = #tpu.dot_dimension_numbers<[1], [0], [0], [1], [0, 0, 1, 1], [], []>} : vector<32x8xbf16>, vector<8x144xbf16>, vector<32x144xf32> -> vector<32x144xf32>
    %50 = arith.addf %44, %49 : vector<32x144xf32>
    %c0_46 = arith.constant 0 : index
    %c0_47 = arith.constant 0 : index
    %c19 = arith.constant 19 : index
    %51 = vector.load %arg1[%c0_46, %c0_47, %c19] : memref<1x8x163xbf16, #tpu.memory_space<vmem>>, vector<1x8x144xbf16>
    %52 = vector.shape_cast %51 : vector<1x8x144xbf16> to vector<8x144xbf16>
    %c8 = arith.constant 8 : index
    %c0_48 = arith.constant 0 : index
    %c0_49 = arith.constant 0 : index
    %53 = vector.load %arg3[%c8, %c0_48, %c0_49] : memref<9x32x8xbf16, #tpu.memory_space<vmem>>, vector<1x32x8xbf16>
    %54 = vector.shape_cast %53 : vector<1x32x8xbf16> to vector<32x8xbf16>
    %cst_50 = arith.constant dense<0.000000e+00> : vector<32x144xf32>
    %55 = tpu.matmul %54, %52, %cst_50 {dimension_numbers = #tpu.dot_dimension_numbers<[1], [0], [0], [1], [0, 0, 1, 1], [], []>} : vector<32x8xbf16>, vector<8x144xbf16>, vector<32x144xf32> -> vector<32x144xf32>
    %56 = arith.addf %50, %55 : vector<32x144xf32>
    %cst_51 = arith.constant 0.000000e+00 : f32
    %57 = vector.broadcast %cst_51 : f32 to vector<32x144xf32>
    %58 = arith.maximumf %56, %57 : vector<32x144xf32>
    %59 = arith.truncf %58 : vector<32x144xf32> to vector<32x144xbf16>
    %c0_52 = arith.constant 0 : index
    %c0_53 = arith.constant 0 : index
    %c0_54 = arith.constant 0 : index
    %60 = vector.load %arg5[%c0_52, %c0_53, %c0_54] : memref<1x32x144xbf16, #tpu.memory_space<vmem>>, vector<1x32x144xbf16>
    %61 = vector.shape_cast %60 : vector<1x32x144xbf16> to vector<32x144xbf16>
    %62 = vector.shape_cast %59 : vector<32x144xbf16> to vector<1x32x144xbf16>
    tpu.vector_store %arg5[%c0_52, %c0_53, %c0_54], %62 {strides = array<i32>} : memref<1x32x144xbf16, #tpu.memory_space<vmem>>, vector<1x32x144xbf16>,
    return
  }
  func.func @transform_0(%arg0: i32) -> (i32, i32, i32) {
    %c0_i32 = arith.constant 0 : i32
    %c0_i32_0 = arith.constant 0 : i32
    %c0_i32_1 = arith.constant 0 : i32
    return %arg0, %c0_i32, %c0_i32_0 : i32, i32, i32
  }
  func.func @transform_1(%arg0: i32) -> (i32, i32, i32) {
    %c0_i32 = arith.constant 0 : i32
    %c0_i32_0 = arith.constant 0 : i32
    %c0_i32_1 = arith.constant 0 : i32
    return %arg0, %c0_i32, %c0_i32_0 : i32, i32, i32
  }
  func.func @transform_2(%arg0: i32) -> (i32, i32, i32) {
    %c0_i32 = arith.constant 0 : i32
    %c0_i32_0 = arith.constant 0 : i32
    %c0_i32_1 = arith.constant 0 : i32
    %c0_i32_2 = arith.constant 0 : i32
    return %c0_i32, %c0_i32_0, %c0_i32_1 : i32, i32, i32
  }
  func.func @transform_3(%arg0: i32) -> (i32, i32) {
    %c0_i32 = arith.constant 0 : i32
    %c0_i32_0 = arith.constant 0 : i32
    %c0_i32_1 = arith.constant 0 : i32
    return %c0_i32, %c0_i32_0 : i32, i32
  }
  func.func @transform_4(%arg0: i32) -> (i32, i32, i32) {
    %c0_i32 = arith.constant 0 : i32
    %c0_i32_0 = arith.constant 0 : i32
    %c0_i32_1 = arith.constant 0 : i32
    return %arg0, %c0_i32, %c0_i32_0 : i32, i32, i32
  }
}

module attributes {stable_mosaic.version = 11 : i64} {
  func.func @_conv_tap_kernel(%arg0: i32, %arg1: memref<1x32x51xbf16, #tpu.memory_space<vmem>>, %arg2: memref<1x32x51xbf16, #tpu.memory_space<vmem>>, %arg3: memref<9x64x32xbf16, #tpu.memory_space<vmem>>, %arg4: memref<64x1xf32, #tpu.memory_space<vmem>>, %arg5: memref<1x64x40xbf16, #tpu.memory_space<vmem>>) attributes {dimension_semantics = [#tpu.dimension_semantics<parallel>], iteration_bounds = array<i64: 2>, scalar_prefetch = 0 : i64, scratch_operands = 0 : i64, tpu.core_type = #tpu.core_type<tc>, window_params = [{transform_indices = @transform_0, window_bounds = array<i64: 1, 32, 51>}, {transform_indices = @transform_1, window_bounds = array<i64: 1, 32, 51>}, {pipeline_mode = #tpu.pipeline_mode<synchronous>, transform_indices = @transform_2, window_bounds = array<i64: 9, 64, 32>}, {pipeline_mode = #tpu.pipeline_mode<synchronous>, transform_indices = @transform_3, window_bounds = array<i64: 64, 1>}, {transform_indices = @transform_4, window_bounds = array<i64: 1, 64, 40>}]} {
    %c0 = arith.constant 0 : index
    %c0_0 = arith.constant 0 : index
    %0 = vector.load %arg4[%c0, %c0_0] : memref<64x1xf32, #tpu.memory_space<vmem>>, vector<64x1xf32>
    %1 = vector.shape_cast %0 : vector<64x1xf32> to vector<64x1xf32>
    %2 = vector.broadcast %1 : vector<64x1xf32> to vector<64x40xf32>
    %c0_1 = arith.constant 0 : index
    %c0_2 = arith.constant 0 : index
    %c0_3 = arith.constant 0 : index
    %3 = vector.load %arg1[%c0_1, %c0_2, %c0_3] : memref<1x32x51xbf16, #tpu.memory_space<vmem>>, vector<1x32x40xbf16>
    %4 = vector.shape_cast %3 : vector<1x32x40xbf16> to vector<32x40xbf16>
    %c0_4 = arith.constant 0 : index
    %c0_5 = arith.constant 0 : index
    %c0_6 = arith.constant 0 : index
    %5 = vector.load %arg3[%c0_4, %c0_5, %c0_6] : memref<9x64x32xbf16, #tpu.memory_space<vmem>>, vector<1x64x32xbf16>
    %6 = vector.shape_cast %5 : vector<1x64x32xbf16> to vector<64x32xbf16>
    %cst = arith.constant dense<0.000000e+00> : vector<64x40xf32>
    %7 = tpu.matmul %6, %4, %cst {dimension_numbers = #tpu.dot_dimension_numbers<[1], [0], [0], [1], [0, 0, 1, 1], [], []>} : vector<64x32xbf16>, vector<32x40xbf16>, vector<64x40xf32> -> vector<64x40xf32>
    %8 = arith.addf %2, %7 : vector<64x40xf32>
    %c0_7 = arith.constant 0 : index
    %c0_8 = arith.constant 0 : index
    %c0_9 = arith.constant 0 : index
    %9 = vector.load %arg2[%c0_7, %c0_8, %c0_9] : memref<1x32x51xbf16, #tpu.memory_space<vmem>>, vector<1x32x40xbf16>
    %10 = vector.shape_cast %9 : vector<1x32x40xbf16> to vector<32x40xbf16>
    %c1 = arith.constant 1 : index
    %c0_10 = arith.constant 0 : index
    %c0_11 = arith.constant 0 : index
    %11 = vector.load %arg3[%c1, %c0_10, %c0_11] : memref<9x64x32xbf16, #tpu.memory_space<vmem>>, vector<1x64x32xbf16>
    %12 = vector.shape_cast %11 : vector<1x64x32xbf16> to vector<64x32xbf16>
    %cst_12 = arith.constant dense<0.000000e+00> : vector<64x40xf32>
    %13 = tpu.matmul %12, %10, %cst_12 {dimension_numbers = #tpu.dot_dimension_numbers<[1], [0], [0], [1], [0, 0, 1, 1], [], []>} : vector<64x32xbf16>, vector<32x40xbf16>, vector<64x40xf32> -> vector<64x40xf32>
    %14 = arith.addf %8, %13 : vector<64x40xf32>
    %c0_13 = arith.constant 0 : index
    %c0_14 = arith.constant 0 : index
    %c1_15 = arith.constant 1 : index
    %15 = vector.load %arg1[%c0_13, %c0_14, %c1_15] : memref<1x32x51xbf16, #tpu.memory_space<vmem>>, vector<1x32x40xbf16>
    %16 = vector.shape_cast %15 : vector<1x32x40xbf16> to vector<32x40xbf16>
    %c2 = arith.constant 2 : index
    %c0_16 = arith.constant 0 : index
    %c0_17 = arith.constant 0 : index
    %17 = vector.load %arg3[%c2, %c0_16, %c0_17] : memref<9x64x32xbf16, #tpu.memory_space<vmem>>, vector<1x64x32xbf16>
    %18 = vector.shape_cast %17 : vector<1x64x32xbf16> to vector<64x32xbf16>
    %cst_18 = arith.constant dense<0.000000e+00> : vector<64x40xf32>
    %19 = tpu.matmul %18, %16, %cst_18 {dimension_numbers = #tpu.dot_dimension_numbers<[1], [0], [0], [1], [0, 0, 1, 1], [], []>} : vector<64x32xbf16>, vector<32x40xbf16>, vector<64x40xf32> -> vector<64x40xf32>
    %20 = arith.addf %14, %19 : vector<64x40xf32>
    %c0_19 = arith.constant 0 : index
    %c0_20 = arith.constant 0 : index
    %c5 = arith.constant 5 : index
    %21 = vector.load %arg1[%c0_19, %c0_20, %c5] : memref<1x32x51xbf16, #tpu.memory_space<vmem>>, vector<1x32x40xbf16>
    %22 = vector.shape_cast %21 : vector<1x32x40xbf16> to vector<32x40xbf16>
    %c3 = arith.constant 3 : index
    %c0_21 = arith.constant 0 : index
    %c0_22 = arith.constant 0 : index
    %23 = vector.load %arg3[%c3, %c0_21, %c0_22] : memref<9x64x32xbf16, #tpu.memory_space<vmem>>, vector<1x64x32xbf16>
    %24 = vector.shape_cast %23 : vector<1x64x32xbf16> to vector<64x32xbf16>
    %cst_23 = arith.constant dense<0.000000e+00> : vector<64x40xf32>
    %25 = tpu.matmul %24, %22, %cst_23 {dimension_numbers = #tpu.dot_dimension_numbers<[1], [0], [0], [1], [0, 0, 1, 1], [], []>} : vector<64x32xbf16>, vector<32x40xbf16>, vector<64x40xf32> -> vector<64x40xf32>
    %26 = arith.addf %20, %25 : vector<64x40xf32>
    %c0_24 = arith.constant 0 : index
    %c0_25 = arith.constant 0 : index
    %c5_26 = arith.constant 5 : index
    %27 = vector.load %arg2[%c0_24, %c0_25, %c5_26] : memref<1x32x51xbf16, #tpu.memory_space<vmem>>, vector<1x32x40xbf16>
    %28 = vector.shape_cast %27 : vector<1x32x40xbf16> to vector<32x40xbf16>
    %c4 = arith.constant 4 : index
    %c0_27 = arith.constant 0 : index
    %c0_28 = arith.constant 0 : index
    %29 = vector.load %arg3[%c4, %c0_27, %c0_28] : memref<9x64x32xbf16, #tpu.memory_space<vmem>>, vector<1x64x32xbf16>
    %30 = vector.shape_cast %29 : vector<1x64x32xbf16> to vector<64x32xbf16>
    %cst_29 = arith.constant dense<0.000000e+00> : vector<64x40xf32>
    %31 = tpu.matmul %30, %28, %cst_29 {dimension_numbers = #tpu.dot_dimension_numbers<[1], [0], [0], [1], [0, 0, 1, 1], [], []>} : vector<64x32xbf16>, vector<32x40xbf16>, vector<64x40xf32> -> vector<64x40xf32>
    %32 = arith.addf %26, %31 : vector<64x40xf32>
    %c0_30 = arith.constant 0 : index
    %c0_31 = arith.constant 0 : index
    %c6 = arith.constant 6 : index
    %33 = vector.load %arg1[%c0_30, %c0_31, %c6] : memref<1x32x51xbf16, #tpu.memory_space<vmem>>, vector<1x32x40xbf16>
    %34 = vector.shape_cast %33 : vector<1x32x40xbf16> to vector<32x40xbf16>
    %c5_32 = arith.constant 5 : index
    %c0_33 = arith.constant 0 : index
    %c0_34 = arith.constant 0 : index
    %35 = vector.load %arg3[%c5_32, %c0_33, %c0_34] : memref<9x64x32xbf16, #tpu.memory_space<vmem>>, vector<1x64x32xbf16>
    %36 = vector.shape_cast %35 : vector<1x64x32xbf16> to vector<64x32xbf16>
    %cst_35 = arith.constant dense<0.000000e+00> : vector<64x40xf32>
    %37 = tpu.matmul %36, %34, %cst_35 {dimension_numbers = #tpu.dot_dimension_numbers<[1], [0], [0], [1], [0, 0, 1, 1], [], []>} : vector<64x32xbf16>, vector<32x40xbf16>, vector<64x40xf32> -> vector<64x40xf32>
    %38 = arith.addf %32, %37 : vector<64x40xf32>
    %c0_36 = arith.constant 0 : index
    %c0_37 = arith.constant 0 : index
    %c10 = arith.constant 10 : index
    %39 = vector.load %arg1[%c0_36, %c0_37, %c10] : memref<1x32x51xbf16, #tpu.memory_space<vmem>>, vector<1x32x40xbf16>
    %40 = vector.shape_cast %39 : vector<1x32x40xbf16> to vector<32x40xbf16>
    %c6_38 = arith.constant 6 : index
    %c0_39 = arith.constant 0 : index
    %c0_40 = arith.constant 0 : index
    %41 = vector.load %arg3[%c6_38, %c0_39, %c0_40] : memref<9x64x32xbf16, #tpu.memory_space<vmem>>, vector<1x64x32xbf16>
    %42 = vector.shape_cast %41 : vector<1x64x32xbf16> to vector<64x32xbf16>
    %cst_41 = arith.constant dense<0.000000e+00> : vector<64x40xf32>
    %43 = tpu.matmul %42, %40, %cst_41 {dimension_numbers = #tpu.dot_dimension_numbers<[1], [0], [0], [1], [0, 0, 1, 1], [], []>} : vector<64x32xbf16>, vector<32x40xbf16>, vector<64x40xf32> -> vector<64x40xf32>
    %44 = arith.addf %38, %43 : vector<64x40xf32>
    %c0_42 = arith.constant 0 : index
    %c0_43 = arith.constant 0 : index
    %c10_44 = arith.constant 10 : index
    %45 = vector.load %arg2[%c0_42, %c0_43, %c10_44] : memref<1x32x51xbf16, #tpu.memory_space<vmem>>, vector<1x32x40xbf16>
    %46 = vector.shape_cast %45 : vector<1x32x40xbf16> to vector<32x40xbf16>
    %c7 = arith.constant 7 : index
    %c0_45 = arith.constant 0 : index
    %c0_46 = arith.constant 0 : index
    %47 = vector.load %arg3[%c7, %c0_45, %c0_46] : memref<9x64x32xbf16, #tpu.memory_space<vmem>>, vector<1x64x32xbf16>
    %48 = vector.shape_cast %47 : vector<1x64x32xbf16> to vector<64x32xbf16>
    %cst_47 = arith.constant dense<0.000000e+00> : vector<64x40xf32>
    %49 = tpu.matmul %48, %46, %cst_47 {dimension_numbers = #tpu.dot_dimension_numbers<[1], [0], [0], [1], [0, 0, 1, 1], [], []>} : vector<64x32xbf16>, vector<32x40xbf16>, vector<64x40xf32> -> vector<64x40xf32>
    %50 = arith.addf %44, %49 : vector<64x40xf32>
    %c0_48 = arith.constant 0 : index
    %c0_49 = arith.constant 0 : index
    %c11 = arith.constant 11 : index
    %51 = vector.load %arg1[%c0_48, %c0_49, %c11] : memref<1x32x51xbf16, #tpu.memory_space<vmem>>, vector<1x32x40xbf16>
    %52 = vector.shape_cast %51 : vector<1x32x40xbf16> to vector<32x40xbf16>
    %c8 = arith.constant 8 : index
    %c0_50 = arith.constant 0 : index
    %c0_51 = arith.constant 0 : index
    %53 = vector.load %arg3[%c8, %c0_50, %c0_51] : memref<9x64x32xbf16, #tpu.memory_space<vmem>>, vector<1x64x32xbf16>
    %54 = vector.shape_cast %53 : vector<1x64x32xbf16> to vector<64x32xbf16>
    %cst_52 = arith.constant dense<0.000000e+00> : vector<64x40xf32>
    %55 = tpu.matmul %54, %52, %cst_52 {dimension_numbers = #tpu.dot_dimension_numbers<[1], [0], [0], [1], [0, 0, 1, 1], [], []>} : vector<64x32xbf16>, vector<32x40xbf16>, vector<64x40xf32> -> vector<64x40xf32>
    %56 = arith.addf %50, %55 : vector<64x40xf32>
    %cst_53 = arith.constant 0.000000e+00 : f32
    %57 = vector.broadcast %cst_53 : f32 to vector<64x40xf32>
    %58 = arith.maximumf %56, %57 : vector<64x40xf32>
    %59 = arith.truncf %58 : vector<64x40xf32> to vector<64x40xbf16>
    %c0_54 = arith.constant 0 : index
    %c0_55 = arith.constant 0 : index
    %c0_56 = arith.constant 0 : index
    %60 = vector.load %arg5[%c0_54, %c0_55, %c0_56] : memref<1x64x40xbf16, #tpu.memory_space<vmem>>, vector<1x64x40xbf16>
    %61 = vector.shape_cast %60 : vector<1x64x40xbf16> to vector<64x40xbf16>
    %62 = vector.shape_cast %59 : vector<64x40xbf16> to vector<1x64x40xbf16>
    tpu.vector_store %arg5[%c0_54, %c0_55, %c0_56], %62 {strides = array<i32>} : memref<1x64x40xbf16, #tpu.memory_space<vmem>>, vector<1x64x40xbf16>,
    return
  }
  func.func @transform_0(%arg0: i32) -> (i32, i32, i32) {
    %c0_i32 = arith.constant 0 : i32
    %c0_i32_0 = arith.constant 0 : i32
    %c0_i32_1 = arith.constant 0 : i32
    return %arg0, %c0_i32, %c0_i32_0 : i32, i32, i32
  }
  func.func @transform_1(%arg0: i32) -> (i32, i32, i32) {
    %c0_i32 = arith.constant 0 : i32
    %c0_i32_0 = arith.constant 0 : i32
    %c0_i32_1 = arith.constant 0 : i32
    return %arg0, %c0_i32, %c0_i32_0 : i32, i32, i32
  }
  func.func @transform_2(%arg0: i32) -> (i32, i32, i32) {
    %c0_i32 = arith.constant 0 : i32
    %c0_i32_0 = arith.constant 0 : i32
    %c0_i32_1 = arith.constant 0 : i32
    %c0_i32_2 = arith.constant 0 : i32
    return %c0_i32, %c0_i32_0, %c0_i32_1 : i32, i32, i32
  }
  func.func @transform_3(%arg0: i32) -> (i32, i32) {
    %c0_i32 = arith.constant 0 : i32
    %c0_i32_0 = arith.constant 0 : i32
    %c0_i32_1 = arith.constant 0 : i32
    return %c0_i32, %c0_i32_0 : i32, i32
  }
  func.func @transform_4(%arg0: i32) -> (i32, i32, i32) {
    %c0_i32 = arith.constant 0 : i32
    %c0_i32_0 = arith.constant 0 : i32
    %c0_i32_1 = arith.constant 0 : i32
    return %arg0, %c0_i32, %c0_i32_0 : i32, i32, i32
  }
}

module attributes {stable_mosaic.version = 11 : i64} {
  func.func @_conv_tap_kernel(%arg0: i32, %arg1: memref<1x64x19xbf16, #tpu.memory_space<vmem>>, %arg2: memref<1x64x19xbf16, #tpu.memory_space<vmem>>, %arg3: memref<9x128x64xbf16, #tpu.memory_space<vmem>>, %arg4: memref<128x1xf32, #tpu.memory_space<vmem>>, %arg5: memref<1x128x12xbf16, #tpu.memory_space<vmem>>) attributes {dimension_semantics = [#tpu.dimension_semantics<parallel>], iteration_bounds = array<i64: 2>, scalar_prefetch = 0 : i64, scratch_operands = 0 : i64, tpu.core_type = #tpu.core_type<tc>, window_params = [{transform_indices = @transform_0, window_bounds = array<i64: 1, 64, 19>}, {transform_indices = @transform_1, window_bounds = array<i64: 1, 64, 19>}, {pipeline_mode = #tpu.pipeline_mode<synchronous>, transform_indices = @transform_2, window_bounds = array<i64: 9, 128, 64>}, {pipeline_mode = #tpu.pipeline_mode<synchronous>, transform_indices = @transform_3, window_bounds = array<i64: 128, 1>}, {transform_indices = @transform_4, window_bounds = array<i64: 1, 128, 12>}]} {
    %c0 = arith.constant 0 : index
    %c0_0 = arith.constant 0 : index
    %0 = vector.load %arg4[%c0, %c0_0] : memref<128x1xf32, #tpu.memory_space<vmem>>, vector<128x1xf32>
    %1 = vector.shape_cast %0 : vector<128x1xf32> to vector<128x1xf32>
    %2 = vector.broadcast %1 : vector<128x1xf32> to vector<128x12xf32>
    %c0_1 = arith.constant 0 : index
    %c0_2 = arith.constant 0 : index
    %c0_3 = arith.constant 0 : index
    %3 = vector.load %arg1[%c0_1, %c0_2, %c0_3] : memref<1x64x19xbf16, #tpu.memory_space<vmem>>, vector<1x64x12xbf16>
    %4 = vector.shape_cast %3 : vector<1x64x12xbf16> to vector<64x12xbf16>
    %c0_4 = arith.constant 0 : index
    %c0_5 = arith.constant 0 : index
    %c0_6 = arith.constant 0 : index
    %5 = vector.load %arg3[%c0_4, %c0_5, %c0_6] : memref<9x128x64xbf16, #tpu.memory_space<vmem>>, vector<1x128x64xbf16>
    %6 = vector.shape_cast %5 : vector<1x128x64xbf16> to vector<128x64xbf16>
    %cst = arith.constant dense<0.000000e+00> : vector<128x12xf32>
    %7 = tpu.matmul %6, %4, %cst {dimension_numbers = #tpu.dot_dimension_numbers<[1], [0], [0], [1], [0, 0, 1, 1], [], []>} : vector<128x64xbf16>, vector<64x12xbf16>, vector<128x12xf32> -> vector<128x12xf32>
    %8 = arith.addf %2, %7 : vector<128x12xf32>
    %c0_7 = arith.constant 0 : index
    %c0_8 = arith.constant 0 : index
    %c0_9 = arith.constant 0 : index
    %9 = vector.load %arg2[%c0_7, %c0_8, %c0_9] : memref<1x64x19xbf16, #tpu.memory_space<vmem>>, vector<1x64x12xbf16>
    %10 = vector.shape_cast %9 : vector<1x64x12xbf16> to vector<64x12xbf16>
    %c1 = arith.constant 1 : index
    %c0_10 = arith.constant 0 : index
    %c0_11 = arith.constant 0 : index
    %11 = vector.load %arg3[%c1, %c0_10, %c0_11] : memref<9x128x64xbf16, #tpu.memory_space<vmem>>, vector<1x128x64xbf16>
    %12 = vector.shape_cast %11 : vector<1x128x64xbf16> to vector<128x64xbf16>
    %cst_12 = arith.constant dense<0.000000e+00> : vector<128x12xf32>
    %13 = tpu.matmul %12, %10, %cst_12 {dimension_numbers = #tpu.dot_dimension_numbers<[1], [0], [0], [1], [0, 0, 1, 1], [], []>} : vector<128x64xbf16>, vector<64x12xbf16>, vector<128x12xf32> -> vector<128x12xf32>
    %14 = arith.addf %8, %13 : vector<128x12xf32>
    %c0_13 = arith.constant 0 : index
    %c0_14 = arith.constant 0 : index
    %c1_15 = arith.constant 1 : index
    %15 = vector.load %arg1[%c0_13, %c0_14, %c1_15] : memref<1x64x19xbf16, #tpu.memory_space<vmem>>, vector<1x64x12xbf16>
    %16 = vector.shape_cast %15 : vector<1x64x12xbf16> to vector<64x12xbf16>
    %c2 = arith.constant 2 : index
    %c0_16 = arith.constant 0 : index
    %c0_17 = arith.constant 0 : index
    %17 = vector.load %arg3[%c2, %c0_16, %c0_17] : memref<9x128x64xbf16, #tpu.memory_space<vmem>>, vector<1x128x64xbf16>
    %18 = vector.shape_cast %17 : vector<1x128x64xbf16> to vector<128x64xbf16>
    %cst_18 = arith.constant dense<0.000000e+00> : vector<128x12xf32>
    %19 = tpu.matmul %18, %16, %cst_18 {dimension_numbers = #tpu.dot_dimension_numbers<[1], [0], [0], [1], [0, 0, 1, 1], [], []>} : vector<128x64xbf16>, vector<64x12xbf16>, vector<128x12xf32> -> vector<128x12xf32>
    %20 = arith.addf %14, %19 : vector<128x12xf32>
    %c0_19 = arith.constant 0 : index
    %c0_20 = arith.constant 0 : index
    %c3 = arith.constant 3 : index
    %21 = vector.load %arg1[%c0_19, %c0_20, %c3] : memref<1x64x19xbf16, #tpu.memory_space<vmem>>, vector<1x64x12xbf16>
    %22 = vector.shape_cast %21 : vector<1x64x12xbf16> to vector<64x12xbf16>
    %c3_21 = arith.constant 3 : index
    %c0_22 = arith.constant 0 : index
    %c0_23 = arith.constant 0 : index
    %23 = vector.load %arg3[%c3_21, %c0_22, %c0_23] : memref<9x128x64xbf16, #tpu.memory_space<vmem>>, vector<1x128x64xbf16>
    %24 = vector.shape_cast %23 : vector<1x128x64xbf16> to vector<128x64xbf16>
    %cst_24 = arith.constant dense<0.000000e+00> : vector<128x12xf32>
    %25 = tpu.matmul %24, %22, %cst_24 {dimension_numbers = #tpu.dot_dimension_numbers<[1], [0], [0], [1], [0, 0, 1, 1], [], []>} : vector<128x64xbf16>, vector<64x12xbf16>, vector<128x12xf32> -> vector<128x12xf32>
    %26 = arith.addf %20, %25 : vector<128x12xf32>
    %c0_25 = arith.constant 0 : index
    %c0_26 = arith.constant 0 : index
    %c3_27 = arith.constant 3 : index
    %27 = vector.load %arg2[%c0_25, %c0_26, %c3_27] : memref<1x64x19xbf16, #tpu.memory_space<vmem>>, vector<1x64x12xbf16>
    %28 = vector.shape_cast %27 : vector<1x64x12xbf16> to vector<64x12xbf16>
    %c4 = arith.constant 4 : index
    %c0_28 = arith.constant 0 : index
    %c0_29 = arith.constant 0 : index
    %29 = vector.load %arg3[%c4, %c0_28, %c0_29] : memref<9x128x64xbf16, #tpu.memory_space<vmem>>, vector<1x128x64xbf16>
    %30 = vector.shape_cast %29 : vector<1x128x64xbf16> to vector<128x64xbf16>
    %cst_30 = arith.constant dense<0.000000e+00> : vector<128x12xf32>
    %31 = tpu.matmul %30, %28, %cst_30 {dimension_numbers = #tpu.dot_dimension_numbers<[1], [0], [0], [1], [0, 0, 1, 1], [], []>} : vector<128x64xbf16>, vector<64x12xbf16>, vector<128x12xf32> -> vector<128x12xf32>
    %32 = arith.addf %26, %31 : vector<128x12xf32>
    %c0_31 = arith.constant 0 : index
    %c0_32 = arith.constant 0 : index
    %c4_33 = arith.constant 4 : index
    %33 = vector.load %arg1[%c0_31, %c0_32, %c4_33] : memref<1x64x19xbf16, #tpu.memory_space<vmem>>, vector<1x64x12xbf16>
    %34 = vector.shape_cast %33 : vector<1x64x12xbf16> to vector<64x12xbf16>
    %c5 = arith.constant 5 : index
    %c0_34 = arith.constant 0 : index
    %c0_35 = arith.constant 0 : index
    %35 = vector.load %arg3[%c5, %c0_34, %c0_35] : memref<9x128x64xbf16, #tpu.memory_space<vmem>>, vector<1x128x64xbf16>
    %36 = vector.shape_cast %35 : vector<1x128x64xbf16> to vector<128x64xbf16>
    %cst_36 = arith.constant dense<0.000000e+00> : vector<128x12xf32>
    %37 = tpu.matmul %36, %34, %cst_36 {dimension_numbers = #tpu.dot_dimension_numbers<[1], [0], [0], [1], [0, 0, 1, 1], [], []>} : vector<128x64xbf16>, vector<64x12xbf16>, vector<128x12xf32> -> vector<128x12xf32>
    %38 = arith.addf %32, %37 : vector<128x12xf32>
    %c0_37 = arith.constant 0 : index
    %c0_38 = arith.constant 0 : index
    %c6 = arith.constant 6 : index
    %39 = vector.load %arg1[%c0_37, %c0_38, %c6] : memref<1x64x19xbf16, #tpu.memory_space<vmem>>, vector<1x64x12xbf16>
    %40 = vector.shape_cast %39 : vector<1x64x12xbf16> to vector<64x12xbf16>
    %c6_39 = arith.constant 6 : index
    %c0_40 = arith.constant 0 : index
    %c0_41 = arith.constant 0 : index
    %41 = vector.load %arg3[%c6_39, %c0_40, %c0_41] : memref<9x128x64xbf16, #tpu.memory_space<vmem>>, vector<1x128x64xbf16>
    %42 = vector.shape_cast %41 : vector<1x128x64xbf16> to vector<128x64xbf16>
    %cst_42 = arith.constant dense<0.000000e+00> : vector<128x12xf32>
    %43 = tpu.matmul %42, %40, %cst_42 {dimension_numbers = #tpu.dot_dimension_numbers<[1], [0], [0], [1], [0, 0, 1, 1], [], []>} : vector<128x64xbf16>, vector<64x12xbf16>, vector<128x12xf32> -> vector<128x12xf32>
    %44 = arith.addf %38, %43 : vector<128x12xf32>
    %c0_43 = arith.constant 0 : index
    %c0_44 = arith.constant 0 : index
    %c6_45 = arith.constant 6 : index
    %45 = vector.load %arg2[%c0_43, %c0_44, %c6_45] : memref<1x64x19xbf16, #tpu.memory_space<vmem>>, vector<1x64x12xbf16>
    %46 = vector.shape_cast %45 : vector<1x64x12xbf16> to vector<64x12xbf16>
    %c7 = arith.constant 7 : index
    %c0_46 = arith.constant 0 : index
    %c0_47 = arith.constant 0 : index
    %47 = vector.load %arg3[%c7, %c0_46, %c0_47] : memref<9x128x64xbf16, #tpu.memory_space<vmem>>, vector<1x128x64xbf16>
    %48 = vector.shape_cast %47 : vector<1x128x64xbf16> to vector<128x64xbf16>
    %cst_48 = arith.constant dense<0.000000e+00> : vector<128x12xf32>
    %49 = tpu.matmul %48, %46, %cst_48 {dimension_numbers = #tpu.dot_dimension_numbers<[1], [0], [0], [1], [0, 0, 1, 1], [], []>} : vector<128x64xbf16>, vector<64x12xbf16>, vector<128x12xf32> -> vector<128x12xf32>
    %50 = arith.addf %44, %49 : vector<128x12xf32>
    %c0_49 = arith.constant 0 : index
    %c0_50 = arith.constant 0 : index
    %c7_51 = arith.constant 7 : index
    %51 = vector.load %arg1[%c0_49, %c0_50, %c7_51] : memref<1x64x19xbf16, #tpu.memory_space<vmem>>, vector<1x64x12xbf16>
    %52 = vector.shape_cast %51 : vector<1x64x12xbf16> to vector<64x12xbf16>
    %c8 = arith.constant 8 : index
    %c0_52 = arith.constant 0 : index
    %c0_53 = arith.constant 0 : index
    %53 = vector.load %arg3[%c8, %c0_52, %c0_53] : memref<9x128x64xbf16, #tpu.memory_space<vmem>>, vector<1x128x64xbf16>
    %54 = vector.shape_cast %53 : vector<1x128x64xbf16> to vector<128x64xbf16>
    %cst_54 = arith.constant dense<0.000000e+00> : vector<128x12xf32>
    %55 = tpu.matmul %54, %52, %cst_54 {dimension_numbers = #tpu.dot_dimension_numbers<[1], [0], [0], [1], [0, 0, 1, 1], [], []>} : vector<128x64xbf16>, vector<64x12xbf16>, vector<128x12xf32> -> vector<128x12xf32>
    %56 = arith.addf %50, %55 : vector<128x12xf32>
    %cst_55 = arith.constant 0.000000e+00 : f32
    %57 = vector.broadcast %cst_55 : f32 to vector<128x12xf32>
    %58 = arith.maximumf %56, %57 : vector<128x12xf32>
    %59 = arith.truncf %58 : vector<128x12xf32> to vector<128x12xbf16>
    %c0_56 = arith.constant 0 : index
    %c0_57 = arith.constant 0 : index
    %c0_58 = arith.constant 0 : index
    %60 = vector.load %arg5[%c0_56, %c0_57, %c0_58] : memref<1x128x12xbf16, #tpu.memory_space<vmem>>, vector<1x128x12xbf16>
    %61 = vector.shape_cast %60 : vector<1x128x12xbf16> to vector<128x12xbf16>
    %62 = vector.shape_cast %59 : vector<128x12xbf16> to vector<1x128x12xbf16>
    tpu.vector_store %arg5[%c0_56, %c0_57, %c0_58], %62 {strides = array<i32>} : memref<1x128x12xbf16, #tpu.memory_space<vmem>>, vector<1x128x12xbf16>,
    return
  }
  func.func @transform_0(%arg0: i32) -> (i32, i32, i32) {
    %c0_i32 = arith.constant 0 : i32
    %c0_i32_0 = arith.constant 0 : i32
    %c0_i32_1 = arith.constant 0 : i32
    return %arg0, %c0_i32, %c0_i32_0 : i32, i32, i32
  }
  func.func @transform_1(%arg0: i32) -> (i32, i32, i32) {
    %c0_i32 = arith.constant 0 : i32
    %c0_i32_0 = arith.constant 0 : i32
    %c0_i32_1 = arith.constant 0 : i32
    return %arg0, %c0_i32, %c0_i32_0 : i32, i32, i32
  }
  func.func @transform_2(%arg0: i32) -> (i32, i32, i32) {
    %c0_i32 = arith.constant 0 : i32
    %c0_i32_0 = arith.constant 0 : i32
    %c0_i32_1 = arith.constant 0 : i32
    %c0_i32_2 = arith.constant 0 : i32
    return %c0_i32, %c0_i32_0, %c0_i32_1 : i32, i32, i32
  }
  func.func @transform_3(%arg0: i32) -> (i32, i32) {
    %c0_i32 = arith.constant 0 : i32
    %c0_i32_0 = arith.constant 0 : i32
    %c0_i32_1 = arith.constant 0 : i32
    return %c0_i32, %c0_i32_0 : i32, i32
  }
  func.func @transform_4(%arg0: i32) -> (i32, i32, i32) {
    %c0_i32 = arith.constant 0 : i32
    %c0_i32_0 = arith.constant 0 : i32
    %c0_i32_1 = arith.constant 0 : i32
    return %arg0, %c0_i32, %c0_i32_0 : i32, i32, i32
  }
}

module attributes {stable_mosaic.version = 11 : i64} {
  func.func @_tail_kernel(%arg0: i32, %arg1: memref<2x1x512xbf16, #tpu.memory_space<vmem>>, %arg2: memref<512x128xbf16, #tpu.memory_space<vmem>>, %arg3: memref<1x128xf32, #tpu.memory_space<vmem>>, %arg4: memref<128x64xbf16, #tpu.memory_space<vmem>>, %arg5: memref<1x64xf32, #tpu.memory_space<vmem>>, %arg6: memref<1x32xf32, #tpu.memory_space<vmem>>, %arg7: memref<32x128xbf16, #tpu.memory_space<vmem>>, %arg8: memref<1x128xf32, #tpu.memory_space<vmem>>, %arg9: memref<128x512xbf16, #tpu.memory_space<vmem>>, %arg10: memref<1x512xf32, #tpu.memory_space<vmem>>, %arg11: memref<512x2048xbf16, #tpu.memory_space<vmem>>, %arg12: memref<1x2048xf32, #tpu.memory_space<vmem>>, %arg13: memref<2x32xf32, #tpu.memory_space<vmem>>, %arg14: memref<2x32xf32, #tpu.memory_space<vmem>>, %arg15: memref<2x2048xbf16, #tpu.memory_space<vmem>>) attributes {dimension_semantics = [#tpu.dimension_semantics<arbitrary>], iteration_bounds = array<i64: 1>, scalar_prefetch = 0 : i64, scratch_operands = 0 : i64, tpu.core_type = #tpu.core_type<tc>, window_params = [{pipeline_mode = #tpu.pipeline_mode<synchronous>, transform_indices = @transform_0, window_bounds = array<i64: 2, 1, 512>}, {pipeline_mode = #tpu.pipeline_mode<synchronous>, transform_indices = @transform_1, window_bounds = array<i64: 512, 128>}, {pipeline_mode = #tpu.pipeline_mode<synchronous>, transform_indices = @transform_2, window_bounds = array<i64: 1, 128>}, {pipeline_mode = #tpu.pipeline_mode<synchronous>, transform_indices = @transform_3, window_bounds = array<i64: 128, 64>}, {pipeline_mode = #tpu.pipeline_mode<synchronous>, transform_indices = @transform_4, window_bounds = array<i64: 1, 64>}, {pipeline_mode = #tpu.pipeline_mode<synchronous>, transform_indices = @transform_5, window_bounds = array<i64: 1, 32>}, {pipeline_mode = #tpu.pipeline_mode<synchronous>, transform_indices = @transform_6, window_bounds = array<i64: 32, 128>}, {pipeline_mode = #tpu.pipeline_mode<synchronous>, transform_indices = @transform_7, window_bounds = array<i64: 1, 128>}, {pipeline_mode = #tpu.pipeline_mode<synchronous>, transform_indices = @transform_8, window_bounds = array<i64: 128, 512>}, {pipeline_mode = #tpu.pipeline_mode<synchronous>, transform_indices = @transform_9, window_bounds = array<i64: 1, 512>}, {pipeline_mode = #tpu.pipeline_mode<synchronous>, transform_indices = @transform_10, window_bounds = array<i64: 512, 2048>}, {pipeline_mode = #tpu.pipeline_mode<synchronous>, transform_indices = @transform_11, window_bounds = array<i64: 1, 2048>}, {pipeline_mode = #tpu.pipeline_mode<synchronous>, transform_indices = @transform_12, window_bounds = array<i64: 2, 32>}, {pipeline_mode = #tpu.pipeline_mode<synchronous>, transform_indices = @transform_13, window_bounds = array<i64: 2, 32>}, {pipeline_mode = #tpu.pipeline_mode<synchronous>, transform_indices = @transform_14, window_bounds = array<i64: 2, 2048>}]} {
    %c0 = arith.constant 0 : index
    %c0_0 = arith.constant 0 : index
    %c0_1 = arith.constant 0 : index
    %0 = vector.load %arg1[%c0, %c0_0, %c0_1] : memref<2x1x512xbf16, #tpu.memory_space<vmem>>, vector<2x1x512xbf16>
    %1 = arith.extf %0 : vector<2x1x512xbf16> to vector<2x1x512xf32>
    %cst = arith.constant dense<0.000000e+00> : vector<2x512xf32>
    %2 = vector.multi_reduction <add>, %1, %cst [1] : vector<2x1x512xf32> to vector<2x512xf32>
    %cst_2 = arith.constant 1.000000e+00 : f32
    %3 = vector.broadcast %cst_2 : f32 to vector<2x512xf32>
    %4 = arith.divf %2, %3 : vector<2x512xf32>
    %5 = arith.truncf %4 : vector<2x512xf32> to vector<2x512xbf16>
    %c0_3 = arith.constant 0 : index
    %c0_4 = arith.constant 0 : index
    %6 = vector.load %arg2[%c0_3, %c0_4] : memref<512x128xbf16, #tpu.memory_space<vmem>>, vector<512x128xbf16>
    %cst_5 = arith.constant dense<0.000000e+00> : vector<2x128xf32>
    %7 = tpu.matmul %5, %6, %cst_5 {dimension_numbers = #tpu.dot_dimension_numbers<[1], [0], [0], [1], [0, 0, 1, 1], [], []>} : vector<2x512xbf16>, vector<512x128xbf16>, vector<2x128xf32> -> vector<2x128xf32>
    %c0_6 = arith.constant 0 : index
    %c0_7 = arith.constant 0 : index
    %8 = vector.load %arg3[%c0_6, %c0_7] : memref<1x128xf32, #tpu.memory_space<vmem>>, vector<1x128xf32>
    %9 = vector.broadcast %8 : vector<1x128xf32> to vector<2x128xf32>
    %10 = arith.addf %7, %9 : vector<2x128xf32>
    %11 = arith.truncf %10 : vector<2x128xf32> to vector<2x128xbf16>
    %c0_8 = arith.constant 0 : index
    %c0_9 = arith.constant 0 : index
    %12 = vector.load %arg4[%c0_8, %c0_9] : memref<128x64xbf16, #tpu.memory_space<vmem>>, vector<128x64xbf16>
    %cst_10 = arith.constant dense<0.000000e+00> : vector<2x64xf32>
    %13 = tpu.matmul %11, %12, %cst_10 {dimension_numbers = #tpu.dot_dimension_numbers<[1], [0], [0], [1], [0, 0, 1, 1], [], []>} : vector<2x128xbf16>, vector<128x64xbf16>, vector<2x64xf32> -> vector<2x64xf32>
    %c0_11 = arith.constant 0 : index
    %c0_12 = arith.constant 0 : index
    %14 = vector.load %arg5[%c0_11, %c0_12] : memref<1x64xf32, #tpu.memory_space<vmem>>, vector<1x64xf32>
    %15 = vector.broadcast %14 : vector<1x64xf32> to vector<2x64xf32>
    %16 = arith.addf %13, %15 : vector<2x64xf32>
    %17 = vector.extract_strided_slice %16 {offsets = [0, 0], sizes = [2, 32], strides = [1, 1]} : vector<2x64xf32> to vector<2x32xf32>
    %18 = vector.extract_strided_slice %16 {offsets = [0, 32], sizes = [2, 32], strides = [1, 1]} : vector<2x64xf32> to vector<2x32xf32>
    %cst_13 = arith.constant 5.000000e-01 : f32
    %19 = vector.broadcast %cst_13 : f32 to vector<2x32xf32>
    %20 = arith.mulf %19, %18 : vector<2x32xf32>
    %21 = math.exp %20 : vector<2x32xf32>
    %c0_14 = arith.constant 0 : index
    %c0_15 = arith.constant 0 : index
    %22 = vector.load %arg6[%c0_14, %c0_15] : memref<1x32xf32, #tpu.memory_space<vmem>>, vector<1x32xf32>
    %23 = vector.broadcast %22 : vector<1x32xf32> to vector<2x32xf32>
    %24 = arith.mulf %21, %23 : vector<2x32xf32>
    %25 = arith.addf %17, %24 : vector<2x32xf32>
    %26 = arith.truncf %25 : vector<2x32xf32> to vector<2x32xbf16>
    %c0_16 = arith.constant 0 : index
    %c0_17 = arith.constant 0 : index
    %27 = vector.load %arg7[%c0_16, %c0_17] : memref<32x128xbf16, #tpu.memory_space<vmem>>, vector<32x128xbf16>
    %cst_18 = arith.constant dense<0.000000e+00> : vector<2x128xf32>
    %28 = tpu.matmul %26, %27, %cst_18 {dimension_numbers = #tpu.dot_dimension_numbers<[1], [0], [0], [1], [0, 0, 1, 1], [], []>} : vector<2x32xbf16>, vector<32x128xbf16>, vector<2x128xf32> -> vector<2x128xf32>
    %c0_19 = arith.constant 0 : index
    %c0_20 = arith.constant 0 : index
    %29 = vector.load %arg8[%c0_19, %c0_20] : memref<1x128xf32, #tpu.memory_space<vmem>>, vector<1x128xf32>
    %30 = vector.broadcast %29 : vector<1x128xf32> to vector<2x128xf32>
    %31 = arith.addf %28, %30 : vector<2x128xf32>
    %32 = arith.truncf %31 : vector<2x128xf32> to vector<2x128xbf16>
    %c0_21 = arith.constant 0 : index
    %c0_22 = arith.constant 0 : index
    %33 = vector.load %arg9[%c0_21, %c0_22] : memref<128x512xbf16, #tpu.memory_space<vmem>>, vector<128x512xbf16>
    %cst_23 = arith.constant dense<0.000000e+00> : vector<2x512xf32>
    %34 = tpu.matmul %32, %33, %cst_23 {dimension_numbers = #tpu.dot_dimension_numbers<[1], [0], [0], [1], [0, 0, 1, 1], [], []>} : vector<2x128xbf16>, vector<128x512xbf16>, vector<2x512xf32> -> vector<2x512xf32>
    %c0_24 = arith.constant 0 : index
    %c0_25 = arith.constant 0 : index
    %35 = vector.load %arg10[%c0_24, %c0_25] : memref<1x512xf32, #tpu.memory_space<vmem>>, vector<1x512xf32>
    %36 = vector.broadcast %35 : vector<1x512xf32> to vector<2x512xf32>
    %37 = arith.addf %34, %36 : vector<2x512xf32>
    %cst_26 = arith.constant 0.000000e+00 : f32
    %38 = vector.broadcast %cst_26 : f32 to vector<2x512xf32>
    %39 = arith.maximumf %37, %38 : vector<2x512xf32>
    %40 = arith.truncf %39 : vector<2x512xf32> to vector<2x512xbf16>
    %c0_27 = arith.constant 0 : index
    %c0_28 = arith.constant 0 : index
    %41 = vector.load %arg11[%c0_27, %c0_28] : memref<512x2048xbf16, #tpu.memory_space<vmem>>, vector<512x2048xbf16>
    %cst_29 = arith.constant dense<0.000000e+00> : vector<2x2048xf32>
    %42 = tpu.matmul %40, %41, %cst_29 {dimension_numbers = #tpu.dot_dimension_numbers<[1], [0], [0], [1], [0, 0, 1, 1], [], []>} : vector<2x512xbf16>, vector<512x2048xbf16>, vector<2x2048xf32> -> vector<2x2048xf32>
    %c0_30 = arith.constant 0 : index
    %c0_31 = arith.constant 0 : index
    %43 = vector.load %arg12[%c0_30, %c0_31] : memref<1x2048xf32, #tpu.memory_space<vmem>>, vector<1x2048xf32>
    %44 = vector.broadcast %43 : vector<1x2048xf32> to vector<2x2048xf32>
    %45 = arith.addf %42, %44 : vector<2x2048xf32>
    %cst_32 = arith.constant 0.000000e+00 : f32
    %46 = vector.broadcast %cst_32 : f32 to vector<2x2048xf32>
    %47 = arith.maximumf %45, %46 : vector<2x2048xf32>
    %c0_33 = arith.constant 0 : index
    %c0_34 = arith.constant 0 : index
    %48 = vector.load %arg13[%c0_33, %c0_34] : memref<2x32xf32, #tpu.memory_space<vmem>>, vector<2x32xf32>
    tpu.vector_store %arg13[%c0_33, %c0_34], %17 {strides = array<i32>} : memref<2x32xf32, #tpu.memory_space<vmem>>, vector<2x32xf32>,
    %c0_35 = arith.constant 0 : index
    %c0_36 = arith.constant 0 : index
    %49 = vector.load %arg14[%c0_35, %c0_36] : memref<2x32xf32, #tpu.memory_space<vmem>>, vector<2x32xf32>
    tpu.vector_store %arg14[%c0_35, %c0_36], %18 {strides = array<i32>} : memref<2x32xf32, #tpu.memory_space<vmem>>, vector<2x32xf32>,
    %50 = arith.truncf %47 : vector<2x2048xf32> to vector<2x2048xbf16>
    %c0_37 = arith.constant 0 : index
    %c0_38 = arith.constant 0 : index
    %51 = vector.load %arg15[%c0_37, %c0_38] : memref<2x2048xbf16, #tpu.memory_space<vmem>>, vector<2x2048xbf16>
    tpu.vector_store %arg15[%c0_37, %c0_38], %50 {strides = array<i32>} : memref<2x2048xbf16, #tpu.memory_space<vmem>>, vector<2x2048xbf16>,
    return
  }
  func.func @transform_0(%arg0: i32) -> (i32, i32, i32) {
    %c0_i32 = arith.constant 0 : i32
    %c0_i32_0 = arith.constant 0 : i32
    %c0_i32_1 = arith.constant 0 : i32
    %c0_i32_2 = arith.constant 0 : i32
    return %c0_i32, %c0_i32_0, %c0_i32_1 : i32, i32, i32
  }
  func.func @transform_1(%arg0: i32) -> (i32, i32) {
    %c0_i32 = arith.constant 0 : i32
    %c0_i32_0 = arith.constant 0 : i32
    %c0_i32_1 = arith.constant 0 : i32
    return %c0_i32, %c0_i32_0 : i32, i32
  }
  func.func @transform_2(%arg0: i32) -> (i32, i32) {
    %c0_i32 = arith.constant 0 : i32
    %c0_i32_0 = arith.constant 0 : i32
    %c0_i32_1 = arith.constant 0 : i32
    return %c0_i32, %c0_i32_0 : i32, i32
  }
  func.func @transform_3(%arg0: i32) -> (i32, i32) {
    %c0_i32 = arith.constant 0 : i32
    %c0_i32_0 = arith.constant 0 : i32
    %c0_i32_1 = arith.constant 0 : i32
    return %c0_i32, %c0_i32_0 : i32, i32
  }
  func.func @transform_4(%arg0: i32) -> (i32, i32) {
    %c0_i32 = arith.constant 0 : i32
    %c0_i32_0 = arith.constant 0 : i32
    %c0_i32_1 = arith.constant 0 : i32
    return %c0_i32, %c0_i32_0 : i32, i32
  }
  func.func @transform_5(%arg0: i32) -> (i32, i32) {
    %c0_i32 = arith.constant 0 : i32
    %c0_i32_0 = arith.constant 0 : i32
    %c0_i32_1 = arith.constant 0 : i32
    return %c0_i32, %c0_i32_0 : i32, i32
  }
  func.func @transform_6(%arg0: i32) -> (i32, i32) {
    %c0_i32 = arith.constant 0 : i32
    %c0_i32_0 = arith.constant 0 : i32
    %c0_i32_1 = arith.constant 0 : i32
    return %c0_i32, %c0_i32_0 : i32, i32
  }
  func.func @transform_7(%arg0: i32) -> (i32, i32) {
    %c0_i32 = arith.constant 0 : i32
    %c0_i32_0 = arith.constant 0 : i32
    %c0_i32_1 = arith.constant 0 : i32
    return %c0_i32, %c0_i32_0 : i32, i32
  }
  func.func @transform_8(%arg0: i32) -> (i32, i32) {
    %c0_i32 = arith.constant 0 : i32
    %c0_i32_0 = arith.constant 0 : i32
    %c0_i32_1 = arith.constant 0 : i32
    return %c0_i32, %c0_i32_0 : i32, i32
  }
  func.func @transform_9(%arg0: i32) -> (i32, i32) {
    %c0_i32 = arith.constant 0 : i32
    %c0_i32_0 = arith.constant 0 : i32
    %c0_i32_1 = arith.constant 0 : i32
    return %c0_i32, %c0_i32_0 : i32, i32
  }
  func.func @transform_10(%arg0: i32) -> (i32, i32) {
    %c0_i32 = arith.constant 0 : i32
    %c0_i32_0 = arith.constant 0 : i32
    %c0_i32_1 = arith.constant 0 : i32
    return %c0_i32, %c0_i32_0 : i32, i32
  }
  func.func @transform_11(%arg0: i32) -> (i32, i32) {
    %c0_i32 = arith.constant 0 : i32
    %c0_i32_0 = arith.constant 0 : i32
    %c0_i32_1 = arith.constant 0 : i32
    return %c0_i32, %c0_i32_0 : i32, i32
  }
  func.func @transform_12(%arg0: i32) -> (i32, i32) {
    %c0_i32 = arith.constant 0 : i32
    %c0_i32_0 = arith.constant 0 : i32
    %c0_i32_1 = arith.constant 0 : i32
    return %c0_i32, %c0_i32_0 : i32, i32
  }
  func.func @transform_13(%arg0: i32) -> (i32, i32) {
    %c0_i32 = arith.constant 0 : i32
    %c0_i32_0 = arith.constant 0 : i32
    %c0_i32_1 = arith.constant 0 : i32
    return %c0_i32, %c0_i32_0 : i32, i32
  }
  func.func @transform_14(%arg0: i32) -> (i32, i32) {
    %c0_i32 = arith.constant 0 : i32
    %c0_i32_0 = arith.constant 0 : i32
    %c0_i32_1 = arith.constant 0 : i32
    return %c0_i32, %c0_i32_0 : i32, i32
  }
}

module attributes {stable_mosaic.version = 11 : i64} {
  func.func @_conv_tap_kernel(%arg0: i32, %arg1: memref<1x128x83xbf16, #tpu.memory_space<vmem>>, %arg2: memref<9x64x128xbf16, #tpu.memory_space<vmem>>, %arg3: memref<64x1xf32, #tpu.memory_space<vmem>>, %arg4: memref<1x64x63xbf16, #tpu.memory_space<vmem>>) attributes {dimension_semantics = [#tpu.dimension_semantics<parallel>], iteration_bounds = array<i64: 2>, scalar_prefetch = 0 : i64, scratch_operands = 0 : i64, tpu.core_type = #tpu.core_type<tc>, window_params = [{transform_indices = @transform_0, window_bounds = array<i64: 1, 128, 83>}, {pipeline_mode = #tpu.pipeline_mode<synchronous>, transform_indices = @transform_1, window_bounds = array<i64: 9, 64, 128>}, {pipeline_mode = #tpu.pipeline_mode<synchronous>, transform_indices = @transform_2, window_bounds = array<i64: 64, 1>}, {transform_indices = @transform_3, window_bounds = array<i64: 1, 64, 63>}]} {
    %c0 = arith.constant 0 : index
    %c0_0 = arith.constant 0 : index
    %0 = vector.load %arg3[%c0, %c0_0] : memref<64x1xf32, #tpu.memory_space<vmem>>, vector<64x1xf32>
    %1 = vector.shape_cast %0 : vector<64x1xf32> to vector<64x1xf32>
    %2 = vector.broadcast %1 : vector<64x1xf32> to vector<64x63xf32>
    %c0_1 = arith.constant 0 : index
    %c0_2 = arith.constant 0 : index
    %c0_3 = arith.constant 0 : index
    %3 = vector.load %arg1[%c0_1, %c0_2, %c0_3] : memref<1x128x83xbf16, #tpu.memory_space<vmem>>, vector<1x128x63xbf16>
    %4 = vector.shape_cast %3 : vector<1x128x63xbf16> to vector<128x63xbf16>
    %c0_4 = arith.constant 0 : index
    %c0_5 = arith.constant 0 : index
    %c0_6 = arith.constant 0 : index
    %5 = vector.load %arg2[%c0_4, %c0_5, %c0_6] : memref<9x64x128xbf16, #tpu.memory_space<vmem>>, vector<1x64x128xbf16>
    %6 = vector.shape_cast %5 : vector<1x64x128xbf16> to vector<64x128xbf16>
    %cst = arith.constant dense<0.000000e+00> : vector<64x63xf32>
    %7 = tpu.matmul %6, %4, %cst {dimension_numbers = #tpu.dot_dimension_numbers<[1], [0], [0], [1], [0, 0, 1, 1], [], []>} : vector<64x128xbf16>, vector<128x63xbf16>, vector<64x63xf32> -> vector<64x63xf32>
    %8 = arith.addf %2, %7 : vector<64x63xf32>
    %c0_7 = arith.constant 0 : index
    %c0_8 = arith.constant 0 : index
    %c1 = arith.constant 1 : index
    %9 = vector.load %arg1[%c0_7, %c0_8, %c1] : memref<1x128x83xbf16, #tpu.memory_space<vmem>>, vector<1x128x63xbf16>
    %10 = vector.shape_cast %9 : vector<1x128x63xbf16> to vector<128x63xbf16>
    %c1_9 = arith.constant 1 : index
    %c0_10 = arith.constant 0 : index
    %c0_11 = arith.constant 0 : index
    %11 = vector.load %arg2[%c1_9, %c0_10, %c0_11] : memref<9x64x128xbf16, #tpu.memory_space<vmem>>, vector<1x64x128xbf16>
    %12 = vector.shape_cast %11 : vector<1x64x128xbf16> to vector<64x128xbf16>
    %cst_12 = arith.constant dense<0.000000e+00> : vector<64x63xf32>
    %13 = tpu.matmul %12, %10, %cst_12 {dimension_numbers = #tpu.dot_dimension_numbers<[1], [0], [0], [1], [0, 0, 1, 1], [], []>} : vector<64x128xbf16>, vector<128x63xbf16>, vector<64x63xf32> -> vector<64x63xf32>
    %14 = arith.addf %8, %13 : vector<64x63xf32>
    %c0_13 = arith.constant 0 : index
    %c0_14 = arith.constant 0 : index
    %c2 = arith.constant 2 : index
    %15 = vector.load %arg1[%c0_13, %c0_14, %c2] : memref<1x128x83xbf16, #tpu.memory_space<vmem>>, vector<1x128x63xbf16>
    %16 = vector.shape_cast %15 : vector<1x128x63xbf16> to vector<128x63xbf16>
    %c2_15 = arith.constant 2 : index
    %c0_16 = arith.constant 0 : index
    %c0_17 = arith.constant 0 : index
    %17 = vector.load %arg2[%c2_15, %c0_16, %c0_17] : memref<9x64x128xbf16, #tpu.memory_space<vmem>>, vector<1x64x128xbf16>
    %18 = vector.shape_cast %17 : vector<1x64x128xbf16> to vector<64x128xbf16>
    %cst_18 = arith.constant dense<0.000000e+00> : vector<64x63xf32>
    %19 = tpu.matmul %18, %16, %cst_18 {dimension_numbers = #tpu.dot_dimension_numbers<[1], [0], [0], [1], [0, 0, 1, 1], [], []>} : vector<64x128xbf16>, vector<128x63xbf16>, vector<64x63xf32> -> vector<64x63xf32>
    %20 = arith.addf %14, %19 : vector<64x63xf32>
    %c0_19 = arith.constant 0 : index
    %c0_20 = arith.constant 0 : index
    %c9 = arith.constant 9 : index
    %21 = vector.load %arg1[%c0_19, %c0_20, %c9] : memref<1x128x83xbf16, #tpu.memory_space<vmem>>, vector<1x128x63xbf16>
    %22 = vector.shape_cast %21 : vector<1x128x63xbf16> to vector<128x63xbf16>
    %c3 = arith.constant 3 : index
    %c0_21 = arith.constant 0 : index
    %c0_22 = arith.constant 0 : index
    %23 = vector.load %arg2[%c3, %c0_21, %c0_22] : memref<9x64x128xbf16, #tpu.memory_space<vmem>>, vector<1x64x128xbf16>
    %24 = vector.shape_cast %23 : vector<1x64x128xbf16> to vector<64x128xbf16>
    %cst_23 = arith.constant dense<0.000000e+00> : vector<64x63xf32>
    %25 = tpu.matmul %24, %22, %cst_23 {dimension_numbers = #tpu.dot_dimension_numbers<[1], [0], [0], [1], [0, 0, 1, 1], [], []>} : vector<64x128xbf16>, vector<128x63xbf16>, vector<64x63xf32> -> vector<64x63xf32>
    %26 = arith.addf %20, %25 : vector<64x63xf32>
    %c0_24 = arith.constant 0 : index
    %c0_25 = arith.constant 0 : index
    %c10 = arith.constant 10 : index
    %27 = vector.load %arg1[%c0_24, %c0_25, %c10] : memref<1x128x83xbf16, #tpu.memory_space<vmem>>, vector<1x128x63xbf16>
    %28 = vector.shape_cast %27 : vector<1x128x63xbf16> to vector<128x63xbf16>
    %c4 = arith.constant 4 : index
    %c0_26 = arith.constant 0 : index
    %c0_27 = arith.constant 0 : index
    %29 = vector.load %arg2[%c4, %c0_26, %c0_27] : memref<9x64x128xbf16, #tpu.memory_space<vmem>>, vector<1x64x128xbf16>
    %30 = vector.shape_cast %29 : vector<1x64x128xbf16> to vector<64x128xbf16>
    %cst_28 = arith.constant dense<0.000000e+00> : vector<64x63xf32>
    %31 = tpu.matmul %30, %28, %cst_28 {dimension_numbers = #tpu.dot_dimension_numbers<[1], [0], [0], [1], [0, 0, 1, 1], [], []>} : vector<64x128xbf16>, vector<128x63xbf16>, vector<64x63xf32> -> vector<64x63xf32>
    %32 = arith.addf %26, %31 : vector<64x63xf32>
    %c0_29 = arith.constant 0 : index
    %c0_30 = arith.constant 0 : index
    %c11 = arith.constant 11 : index
    %33 = vector.load %arg1[%c0_29, %c0_30, %c11] : memref<1x128x83xbf16, #tpu.memory_space<vmem>>, vector<1x128x63xbf16>
    %34 = vector.shape_cast %33 : vector<1x128x63xbf16> to vector<128x63xbf16>
    %c5 = arith.constant 5 : index
    %c0_31 = arith.constant 0 : index
    %c0_32 = arith.constant 0 : index
    %35 = vector.load %arg2[%c5, %c0_31, %c0_32] : memref<9x64x128xbf16, #tpu.memory_space<vmem>>, vector<1x64x128xbf16>
    %36 = vector.shape_cast %35 : vector<1x64x128xbf16> to vector<64x128xbf16>
    %cst_33 = arith.constant dense<0.000000e+00> : vector<64x63xf32>
    %37 = tpu.matmul %36, %34, %cst_33 {dimension_numbers = #tpu.dot_dimension_numbers<[1], [0], [0], [1], [0, 0, 1, 1], [], []>} : vector<64x128xbf16>, vector<128x63xbf16>, vector<64x63xf32> -> vector<64x63xf32>
    %38 = arith.addf %32, %37 : vector<64x63xf32>
    %c0_34 = arith.constant 0 : index
    %c0_35 = arith.constant 0 : index
    %c18 = arith.constant 18 : index
    %39 = vector.load %arg1[%c0_34, %c0_35, %c18] : memref<1x128x83xbf16, #tpu.memory_space<vmem>>, vector<1x128x63xbf16>
    %40 = vector.shape_cast %39 : vector<1x128x63xbf16> to vector<128x63xbf16>
    %c6 = arith.constant 6 : index
    %c0_36 = arith.constant 0 : index
    %c0_37 = arith.constant 0 : index
    %41 = vector.load %arg2[%c6, %c0_36, %c0_37] : memref<9x64x128xbf16, #tpu.memory_space<vmem>>, vector<1x64x128xbf16>
    %42 = vector.shape_cast %41 : vector<1x64x128xbf16> to vector<64x128xbf16>
    %cst_38 = arith.constant dense<0.000000e+00> : vector<64x63xf32>
    %43 = tpu.matmul %42, %40, %cst_38 {dimension_numbers = #tpu.dot_dimension_numbers<[1], [0], [0], [1], [0, 0, 1, 1], [], []>} : vector<64x128xbf16>, vector<128x63xbf16>, vector<64x63xf32> -> vector<64x63xf32>
    %44 = arith.addf %38, %43 : vector<64x63xf32>
    %c0_39 = arith.constant 0 : index
    %c0_40 = arith.constant 0 : index
    %c19 = arith.constant 19 : index
    %45 = vector.load %arg1[%c0_39, %c0_40, %c19] : memref<1x128x83xbf16, #tpu.memory_space<vmem>>, vector<1x128x63xbf16>
    %46 = vector.shape_cast %45 : vector<1x128x63xbf16> to vector<128x63xbf16>
    %c7 = arith.constant 7 : index
    %c0_41 = arith.constant 0 : index
    %c0_42 = arith.constant 0 : index
    %47 = vector.load %arg2[%c7, %c0_41, %c0_42] : memref<9x64x128xbf16, #tpu.memory_space<vmem>>, vector<1x64x128xbf16>
    %48 = vector.shape_cast %47 : vector<1x64x128xbf16> to vector<64x128xbf16>
    %cst_43 = arith.constant dense<0.000000e+00> : vector<64x63xf32>
    %49 = tpu.matmul %48, %46, %cst_43 {dimension_numbers = #tpu.dot_dimension_numbers<[1], [0], [0], [1], [0, 0, 1, 1], [], []>} : vector<64x128xbf16>, vector<128x63xbf16>, vector<64x63xf32> -> vector<64x63xf32>
    %50 = arith.addf %44, %49 : vector<64x63xf32>
    %c0_44 = arith.constant 0 : index
    %c0_45 = arith.constant 0 : index
    %c20 = arith.constant 20 : index
    %51 = vector.load %arg1[%c0_44, %c0_45, %c20] : memref<1x128x83xbf16, #tpu.memory_space<vmem>>, vector<1x128x63xbf16>
    %52 = vector.shape_cast %51 : vector<1x128x63xbf16> to vector<128x63xbf16>
    %c8 = arith.constant 8 : index
    %c0_46 = arith.constant 0 : index
    %c0_47 = arith.constant 0 : index
    %53 = vector.load %arg2[%c8, %c0_46, %c0_47] : memref<9x64x128xbf16, #tpu.memory_space<vmem>>, vector<1x64x128xbf16>
    %54 = vector.shape_cast %53 : vector<1x64x128xbf16> to vector<64x128xbf16>
    %cst_48 = arith.constant dense<0.000000e+00> : vector<64x63xf32>
    %55 = tpu.matmul %54, %52, %cst_48 {dimension_numbers = #tpu.dot_dimension_numbers<[1], [0], [0], [1], [0, 0, 1, 1], [], []>} : vector<64x128xbf16>, vector<128x63xbf16>, vector<64x63xf32> -> vector<64x63xf32>
    %56 = arith.addf %50, %55 : vector<64x63xf32>
    %cst_49 = arith.constant 0.000000e+00 : f32
    %57 = vector.broadcast %cst_49 : f32 to vector<64x63xf32>
    %58 = arith.maximumf %56, %57 : vector<64x63xf32>
    %59 = arith.truncf %58 : vector<64x63xf32> to vector<64x63xbf16>
    %c0_50 = arith.constant 0 : index
    %c0_51 = arith.constant 0 : index
    %c0_52 = arith.constant 0 : index
    %60 = vector.load %arg4[%c0_50, %c0_51, %c0_52] : memref<1x64x63xbf16, #tpu.memory_space<vmem>>, vector<1x64x63xbf16>
    %61 = vector.shape_cast %60 : vector<1x64x63xbf16> to vector<64x63xbf16>
    %62 = vector.shape_cast %59 : vector<64x63xbf16> to vector<1x64x63xbf16>
    tpu.vector_store %arg4[%c0_50, %c0_51, %c0_52], %62 {strides = array<i32>} : memref<1x64x63xbf16, #tpu.memory_space<vmem>>, vector<1x64x63xbf16>,
    return
  }
  func.func @transform_0(%arg0: i32) -> (i32, i32, i32) {
    %c0_i32 = arith.constant 0 : i32
    %c0_i32_0 = arith.constant 0 : i32
    %c0_i32_1 = arith.constant 0 : i32
    return %arg0, %c0_i32, %c0_i32_0 : i32, i32, i32
  }
  func.func @transform_1(%arg0: i32) -> (i32, i32, i32) {
    %c0_i32 = arith.constant 0 : i32
    %c0_i32_0 = arith.constant 0 : i32
    %c0_i32_1 = arith.constant 0 : i32
    %c0_i32_2 = arith.constant 0 : i32
    return %c0_i32, %c0_i32_0, %c0_i32_1 : i32, i32, i32
  }
  func.func @transform_2(%arg0: i32) -> (i32, i32) {
    %c0_i32 = arith.constant 0 : i32
    %c0_i32_0 = arith.constant 0 : i32
    %c0_i32_1 = arith.constant 0 : i32
    return %c0_i32, %c0_i32_0 : i32, i32
  }
  func.func @transform_3(%arg0: i32) -> (i32, i32, i32) {
    %c0_i32 = arith.constant 0 : i32
    %c0_i32_0 = arith.constant 0 : i32
    %c0_i32_1 = arith.constant 0 : i32
    return %arg0, %c0_i32, %c0_i32_0 : i32, i32, i32
  }
}

module attributes {stable_mosaic.version = 11 : i64} {
  func.func @_conv_tap_kernel(%arg0: i32, %arg1: memref<1x64x258xbf16, #tpu.memory_space<vmem>>, %arg2: memref<9x32x64xbf16, #tpu.memory_space<vmem>>, %arg3: memref<32x1xf32, #tpu.memory_space<vmem>>, %arg4: memref<1x32x224xbf16, #tpu.memory_space<vmem>>) attributes {dimension_semantics = [#tpu.dimension_semantics<parallel>], iteration_bounds = array<i64: 2>, scalar_prefetch = 0 : i64, scratch_operands = 0 : i64, tpu.core_type = #tpu.core_type<tc>, window_params = [{transform_indices = @transform_0, window_bounds = array<i64: 1, 64, 258>}, {pipeline_mode = #tpu.pipeline_mode<synchronous>, transform_indices = @transform_1, window_bounds = array<i64: 9, 32, 64>}, {pipeline_mode = #tpu.pipeline_mode<synchronous>, transform_indices = @transform_2, window_bounds = array<i64: 32, 1>}, {transform_indices = @transform_3, window_bounds = array<i64: 1, 32, 224>}]} {
    %c0 = arith.constant 0 : index
    %c0_0 = arith.constant 0 : index
    %0 = vector.load %arg3[%c0, %c0_0] : memref<32x1xf32, #tpu.memory_space<vmem>>, vector<32x1xf32>
    %1 = vector.shape_cast %0 : vector<32x1xf32> to vector<32x1xf32>
    %2 = vector.broadcast %1 : vector<32x1xf32> to vector<32x224xf32>
    %c0_1 = arith.constant 0 : index
    %c0_2 = arith.constant 0 : index
    %c0_3 = arith.constant 0 : index
    %3 = vector.load %arg1[%c0_1, %c0_2, %c0_3] : memref<1x64x258xbf16, #tpu.memory_space<vmem>>, vector<1x64x224xbf16>
    %4 = vector.shape_cast %3 : vector<1x64x224xbf16> to vector<64x224xbf16>
    %c0_4 = arith.constant 0 : index
    %c0_5 = arith.constant 0 : index
    %c0_6 = arith.constant 0 : index
    %5 = vector.load %arg2[%c0_4, %c0_5, %c0_6] : memref<9x32x64xbf16, #tpu.memory_space<vmem>>, vector<1x32x64xbf16>
    %6 = vector.shape_cast %5 : vector<1x32x64xbf16> to vector<32x64xbf16>
    %cst = arith.constant dense<0.000000e+00> : vector<32x224xf32>
    %7 = tpu.matmul %6, %4, %cst {dimension_numbers = #tpu.dot_dimension_numbers<[1], [0], [0], [1], [0, 0, 1, 1], [], []>} : vector<32x64xbf16>, vector<64x224xbf16>, vector<32x224xf32> -> vector<32x224xf32>
    %8 = arith.addf %2, %7 : vector<32x224xf32>
    %c0_7 = arith.constant 0 : index
    %c0_8 = arith.constant 0 : index
    %c1 = arith.constant 1 : index
    %9 = vector.load %arg1[%c0_7, %c0_8, %c1] : memref<1x64x258xbf16, #tpu.memory_space<vmem>>, vector<1x64x224xbf16>
    %10 = vector.shape_cast %9 : vector<1x64x224xbf16> to vector<64x224xbf16>
    %c1_9 = arith.constant 1 : index
    %c0_10 = arith.constant 0 : index
    %c0_11 = arith.constant 0 : index
    %11 = vector.load %arg2[%c1_9, %c0_10, %c0_11] : memref<9x32x64xbf16, #tpu.memory_space<vmem>>, vector<1x32x64xbf16>
    %12 = vector.shape_cast %11 : vector<1x32x64xbf16> to vector<32x64xbf16>
    %cst_12 = arith.constant dense<0.000000e+00> : vector<32x224xf32>
    %13 = tpu.matmul %12, %10, %cst_12 {dimension_numbers = #tpu.dot_dimension_numbers<[1], [0], [0], [1], [0, 0, 1, 1], [], []>} : vector<32x64xbf16>, vector<64x224xbf16>, vector<32x224xf32> -> vector<32x224xf32>
    %14 = arith.addf %8, %13 : vector<32x224xf32>
    %c0_13 = arith.constant 0 : index
    %c0_14 = arith.constant 0 : index
    %c2 = arith.constant 2 : index
    %15 = vector.load %arg1[%c0_13, %c0_14, %c2] : memref<1x64x258xbf16, #tpu.memory_space<vmem>>, vector<1x64x224xbf16>
    %16 = vector.shape_cast %15 : vector<1x64x224xbf16> to vector<64x224xbf16>
    %c2_15 = arith.constant 2 : index
    %c0_16 = arith.constant 0 : index
    %c0_17 = arith.constant 0 : index
    %17 = vector.load %arg2[%c2_15, %c0_16, %c0_17] : memref<9x32x64xbf16, #tpu.memory_space<vmem>>, vector<1x32x64xbf16>
    %18 = vector.shape_cast %17 : vector<1x32x64xbf16> to vector<32x64xbf16>
    %cst_18 = arith.constant dense<0.000000e+00> : vector<32x224xf32>
    %19 = tpu.matmul %18, %16, %cst_18 {dimension_numbers = #tpu.dot_dimension_numbers<[1], [0], [0], [1], [0, 0, 1, 1], [], []>} : vector<32x64xbf16>, vector<64x224xbf16>, vector<32x224xf32> -> vector<32x224xf32>
    %20 = arith.addf %14, %19 : vector<32x224xf32>
    %c0_19 = arith.constant 0 : index
    %c0_20 = arith.constant 0 : index
    %c16 = arith.constant 16 : index
    %21 = vector.load %arg1[%c0_19, %c0_20, %c16] : memref<1x64x258xbf16, #tpu.memory_space<vmem>>, vector<1x64x224xbf16>
    %22 = vector.shape_cast %21 : vector<1x64x224xbf16> to vector<64x224xbf16>
    %c3 = arith.constant 3 : index
    %c0_21 = arith.constant 0 : index
    %c0_22 = arith.constant 0 : index
    %23 = vector.load %arg2[%c3, %c0_21, %c0_22] : memref<9x32x64xbf16, #tpu.memory_space<vmem>>, vector<1x32x64xbf16>
    %24 = vector.shape_cast %23 : vector<1x32x64xbf16> to vector<32x64xbf16>
    %cst_23 = arith.constant dense<0.000000e+00> : vector<32x224xf32>
    %25 = tpu.matmul %24, %22, %cst_23 {dimension_numbers = #tpu.dot_dimension_numbers<[1], [0], [0], [1], [0, 0, 1, 1], [], []>} : vector<32x64xbf16>, vector<64x224xbf16>, vector<32x224xf32> -> vector<32x224xf32>
    %26 = arith.addf %20, %25 : vector<32x224xf32>
    %c0_24 = arith.constant 0 : index
    %c0_25 = arith.constant 0 : index
    %c17 = arith.constant 17 : index
    %27 = vector.load %arg1[%c0_24, %c0_25, %c17] : memref<1x64x258xbf16, #tpu.memory_space<vmem>>, vector<1x64x224xbf16>
    %28 = vector.shape_cast %27 : vector<1x64x224xbf16> to vector<64x224xbf16>
    %c4 = arith.constant 4 : index
    %c0_26 = arith.constant 0 : index
    %c0_27 = arith.constant 0 : index
    %29 = vector.load %arg2[%c4, %c0_26, %c0_27] : memref<9x32x64xbf16, #tpu.memory_space<vmem>>, vector<1x32x64xbf16>
    %30 = vector.shape_cast %29 : vector<1x32x64xbf16> to vector<32x64xbf16>
    %cst_28 = arith.constant dense<0.000000e+00> : vector<32x224xf32>
    %31 = tpu.matmul %30, %28, %cst_28 {dimension_numbers = #tpu.dot_dimension_numbers<[1], [0], [0], [1], [0, 0, 1, 1], [], []>} : vector<32x64xbf16>, vector<64x224xbf16>, vector<32x224xf32> -> vector<32x224xf32>
    %32 = arith.addf %26, %31 : vector<32x224xf32>
    %c0_29 = arith.constant 0 : index
    %c0_30 = arith.constant 0 : index
    %c18 = arith.constant 18 : index
    %33 = vector.load %arg1[%c0_29, %c0_30, %c18] : memref<1x64x258xbf16, #tpu.memory_space<vmem>>, vector<1x64x224xbf16>
    %34 = vector.shape_cast %33 : vector<1x64x224xbf16> to vector<64x224xbf16>
    %c5 = arith.constant 5 : index
    %c0_31 = arith.constant 0 : index
    %c0_32 = arith.constant 0 : index
    %35 = vector.load %arg2[%c5, %c0_31, %c0_32] : memref<9x32x64xbf16, #tpu.memory_space<vmem>>, vector<1x32x64xbf16>
    %36 = vector.shape_cast %35 : vector<1x32x64xbf16> to vector<32x64xbf16>
    %cst_33 = arith.constant dense<0.000000e+00> : vector<32x224xf32>
    %37 = tpu.matmul %36, %34, %cst_33 {dimension_numbers = #tpu.dot_dimension_numbers<[1], [0], [0], [1], [0, 0, 1, 1], [], []>} : vector<32x64xbf16>, vector<64x224xbf16>, vector<32x224xf32> -> vector<32x224xf32>
    %38 = arith.addf %32, %37 : vector<32x224xf32>
    %c0_34 = arith.constant 0 : index
    %c0_35 = arith.constant 0 : index
    %c32 = arith.constant 32 : index
    %39 = vector.load %arg1[%c0_34, %c0_35, %c32] : memref<1x64x258xbf16, #tpu.memory_space<vmem>>, vector<1x64x224xbf16>
    %40 = vector.shape_cast %39 : vector<1x64x224xbf16> to vector<64x224xbf16>
    %c6 = arith.constant 6 : index
    %c0_36 = arith.constant 0 : index
    %c0_37 = arith.constant 0 : index
    %41 = vector.load %arg2[%c6, %c0_36, %c0_37] : memref<9x32x64xbf16, #tpu.memory_space<vmem>>, vector<1x32x64xbf16>
    %42 = vector.shape_cast %41 : vector<1x32x64xbf16> to vector<32x64xbf16>
    %cst_38 = arith.constant dense<0.000000e+00> : vector<32x224xf32>
    %43 = tpu.matmul %42, %40, %cst_38 {dimension_numbers = #tpu.dot_dimension_numbers<[1], [0], [0], [1], [0, 0, 1, 1], [], []>} : vector<32x64xbf16>, vector<64x224xbf16>, vector<32x224xf32> -> vector<32x224xf32>
    %44 = arith.addf %38, %43 : vector<32x224xf32>
    %c0_39 = arith.constant 0 : index
    %c0_40 = arith.constant 0 : index
    %c33 = arith.constant 33 : index
    %45 = vector.load %arg1[%c0_39, %c0_40, %c33] : memref<1x64x258xbf16, #tpu.memory_space<vmem>>, vector<1x64x224xbf16>
    %46 = vector.shape_cast %45 : vector<1x64x224xbf16> to vector<64x224xbf16>
    %c7 = arith.constant 7 : index
    %c0_41 = arith.constant 0 : index
    %c0_42 = arith.constant 0 : index
    %47 = vector.load %arg2[%c7, %c0_41, %c0_42] : memref<9x32x64xbf16, #tpu.memory_space<vmem>>, vector<1x32x64xbf16>
    %48 = vector.shape_cast %47 : vector<1x32x64xbf16> to vector<32x64xbf16>
    %cst_43 = arith.constant dense<0.000000e+00> : vector<32x224xf32>
    %49 = tpu.matmul %48, %46, %cst_43 {dimension_numbers = #tpu.dot_dimension_numbers<[1], [0], [0], [1], [0, 0, 1, 1], [], []>} : vector<32x64xbf16>, vector<64x224xbf16>, vector<32x224xf32> -> vector<32x224xf32>
    %50 = arith.addf %44, %49 : vector<32x224xf32>
    %c0_44 = arith.constant 0 : index
    %c0_45 = arith.constant 0 : index
    %c34 = arith.constant 34 : index
    %51 = vector.load %arg1[%c0_44, %c0_45, %c34] : memref<1x64x258xbf16, #tpu.memory_space<vmem>>, vector<1x64x224xbf16>
    %52 = vector.shape_cast %51 : vector<1x64x224xbf16> to vector<64x224xbf16>
    %c8 = arith.constant 8 : index
    %c0_46 = arith.constant 0 : index
    %c0_47 = arith.constant 0 : index
    %53 = vector.load %arg2[%c8, %c0_46, %c0_47] : memref<9x32x64xbf16, #tpu.memory_space<vmem>>, vector<1x32x64xbf16>
    %54 = vector.shape_cast %53 : vector<1x32x64xbf16> to vector<32x64xbf16>
    %cst_48 = arith.constant dense<0.000000e+00> : vector<32x224xf32>
    %55 = tpu.matmul %54, %52, %cst_48 {dimension_numbers = #tpu.dot_dimension_numbers<[1], [0], [0], [1], [0, 0, 1, 1], [], []>} : vector<32x64xbf16>, vector<64x224xbf16>, vector<32x224xf32> -> vector<32x224xf32>
    %56 = arith.addf %50, %55 : vector<32x224xf32>
    %cst_49 = arith.constant 0.000000e+00 : f32
    %57 = vector.broadcast %cst_49 : f32 to vector<32x224xf32>
    %58 = arith.maximumf %56, %57 : vector<32x224xf32>
    %59 = arith.truncf %58 : vector<32x224xf32> to vector<32x224xbf16>
    %c0_50 = arith.constant 0 : index
    %c0_51 = arith.constant 0 : index
    %c0_52 = arith.constant 0 : index
    %60 = vector.load %arg4[%c0_50, %c0_51, %c0_52] : memref<1x32x224xbf16, #tpu.memory_space<vmem>>, vector<1x32x224xbf16>
    %61 = vector.shape_cast %60 : vector<1x32x224xbf16> to vector<32x224xbf16>
    %62 = vector.shape_cast %59 : vector<32x224xbf16> to vector<1x32x224xbf16>
    tpu.vector_store %arg4[%c0_50, %c0_51, %c0_52], %62 {strides = array<i32>} : memref<1x32x224xbf16, #tpu.memory_space<vmem>>, vector<1x32x224xbf16>,
    return
  }
  func.func @transform_0(%arg0: i32) -> (i32, i32, i32) {
    %c0_i32 = arith.constant 0 : i32
    %c0_i32_0 = arith.constant 0 : i32
    %c0_i32_1 = arith.constant 0 : i32
    return %arg0, %c0_i32, %c0_i32_0 : i32, i32, i32
  }
  func.func @transform_1(%arg0: i32) -> (i32, i32, i32) {
    %c0_i32 = arith.constant 0 : i32
    %c0_i32_0 = arith.constant 0 : i32
    %c0_i32_1 = arith.constant 0 : i32
    %c0_i32_2 = arith.constant 0 : i32
    return %c0_i32, %c0_i32_0, %c0_i32_1 : i32, i32, i32
  }
  func.func @transform_2(%arg0: i32) -> (i32, i32) {
    %c0_i32 = arith.constant 0 : i32
    %c0_i32_0 = arith.constant 0 : i32
    %c0_i32_1 = arith.constant 0 : i32
    return %c0_i32, %c0_i32_0 : i32, i32
  }
  func.func @transform_3(%arg0: i32) -> (i32, i32, i32) {
    %c0_i32 = arith.constant 0 : i32
    %c0_i32_0 = arith.constant 0 : i32
    %c0_i32_1 = arith.constant 0 : i32
    return %arg0, %c0_i32, %c0_i32_0 : i32, i32, i32
  }
}

module attributes {stable_mosaic.version = 11 : i64} {
  func.func @_conv_tap_kernel(%arg0: i32, %arg1: memref<1x32x902xbf16, #tpu.memory_space<vmem>>, %arg2: memref<9x1x32xbf16, #tpu.memory_space<vmem>>, %arg3: memref<1x1xf32, #tpu.memory_space<vmem>>, %arg4: memref<1x1x840xf32, #tpu.memory_space<vmem>>) attributes {dimension_semantics = [#tpu.dimension_semantics<parallel>], iteration_bounds = array<i64: 2>, scalar_prefetch = 0 : i64, scratch_operands = 0 : i64, tpu.core_type = #tpu.core_type<tc>, window_params = [{transform_indices = @transform_0, window_bounds = array<i64: 1, 32, 902>}, {pipeline_mode = #tpu.pipeline_mode<synchronous>, transform_indices = @transform_1, window_bounds = array<i64: 9, 1, 32>}, {pipeline_mode = #tpu.pipeline_mode<synchronous>, transform_indices = @transform_2, window_bounds = array<i64: 1, 1>}, {transform_indices = @transform_3, window_bounds = array<i64: 1, 1, 840>}]} {
    %c0 = arith.constant 0 : index
    %c0_0 = arith.constant 0 : index
    %0 = vector.load %arg3[%c0, %c0_0] : memref<1x1xf32, #tpu.memory_space<vmem>>, vector<1x1xf32>
    %1 = vector.shape_cast %0 : vector<1x1xf32> to vector<1x1xf32>
    %2 = vector.broadcast %1 : vector<1x1xf32> to vector<1x840xf32>
    %c0_1 = arith.constant 0 : index
    %c0_2 = arith.constant 0 : index
    %c0_3 = arith.constant 0 : index
    %3 = vector.load %arg1[%c0_1, %c0_2, %c0_3] : memref<1x32x902xbf16, #tpu.memory_space<vmem>>, vector<1x32x840xbf16>
    %4 = vector.shape_cast %3 : vector<1x32x840xbf16> to vector<32x840xbf16>
    %c0_4 = arith.constant 0 : index
    %c0_5 = arith.constant 0 : index
    %c0_6 = arith.constant 0 : index
    %5 = vector.load %arg2[%c0_4, %c0_5, %c0_6] : memref<9x1x32xbf16, #tpu.memory_space<vmem>>, vector<1x1x32xbf16>
    %6 = vector.shape_cast %5 : vector<1x1x32xbf16> to vector<1x32xbf16>
    %cst = arith.constant dense<0.000000e+00> : vector<1x840xf32>
    %7 = tpu.matmul %6, %4, %cst {dimension_numbers = #tpu.dot_dimension_numbers<[1], [0], [0], [1], [0, 0, 1, 1], [], []>} : vector<1x32xbf16>, vector<32x840xbf16>, vector<1x840xf32> -> vector<1x840xf32>
    %8 = arith.addf %2, %7 : vector<1x840xf32>
    %c0_7 = arith.constant 0 : index
    %c0_8 = arith.constant 0 : index
    %c1 = arith.constant 1 : index
    %9 = vector.load %arg1[%c0_7, %c0_8, %c1] : memref<1x32x902xbf16, #tpu.memory_space<vmem>>, vector<1x32x840xbf16>
    %10 = vector.shape_cast %9 : vector<1x32x840xbf16> to vector<32x840xbf16>
    %c1_9 = arith.constant 1 : index
    %c0_10 = arith.constant 0 : index
    %c0_11 = arith.constant 0 : index
    %11 = vector.load %arg2[%c1_9, %c0_10, %c0_11] : memref<9x1x32xbf16, #tpu.memory_space<vmem>>, vector<1x1x32xbf16>
    %12 = vector.shape_cast %11 : vector<1x1x32xbf16> to vector<1x32xbf16>
    %cst_12 = arith.constant dense<0.000000e+00> : vector<1x840xf32>
    %13 = tpu.matmul %12, %10, %cst_12 {dimension_numbers = #tpu.dot_dimension_numbers<[1], [0], [0], [1], [0, 0, 1, 1], [], []>} : vector<1x32xbf16>, vector<32x840xbf16>, vector<1x840xf32> -> vector<1x840xf32>
    %14 = arith.addf %8, %13 : vector<1x840xf32>
    %c0_13 = arith.constant 0 : index
    %c0_14 = arith.constant 0 : index
    %c2 = arith.constant 2 : index
    %15 = vector.load %arg1[%c0_13, %c0_14, %c2] : memref<1x32x902xbf16, #tpu.memory_space<vmem>>, vector<1x32x840xbf16>
    %16 = vector.shape_cast %15 : vector<1x32x840xbf16> to vector<32x840xbf16>
    %c2_15 = arith.constant 2 : index
    %c0_16 = arith.constant 0 : index
    %c0_17 = arith.constant 0 : index
    %17 = vector.load %arg2[%c2_15, %c0_16, %c0_17] : memref<9x1x32xbf16, #tpu.memory_space<vmem>>, vector<1x1x32xbf16>
    %18 = vector.shape_cast %17 : vector<1x1x32xbf16> to vector<1x32xbf16>
    %cst_18 = arith.constant dense<0.000000e+00> : vector<1x840xf32>
    %19 = tpu.matmul %18, %16, %cst_18 {dimension_numbers = #tpu.dot_dimension_numbers<[1], [0], [0], [1], [0, 0, 1, 1], [], []>} : vector<1x32xbf16>, vector<32x840xbf16>, vector<1x840xf32> -> vector<1x840xf32>
    %20 = arith.addf %14, %19 : vector<1x840xf32>
    %c0_19 = arith.constant 0 : index
    %c0_20 = arith.constant 0 : index
    %c30 = arith.constant 30 : index
    %21 = vector.load %arg1[%c0_19, %c0_20, %c30] : memref<1x32x902xbf16, #tpu.memory_space<vmem>>, vector<1x32x840xbf16>
    %22 = vector.shape_cast %21 : vector<1x32x840xbf16> to vector<32x840xbf16>
    %c3 = arith.constant 3 : index
    %c0_21 = arith.constant 0 : index
    %c0_22 = arith.constant 0 : index
    %23 = vector.load %arg2[%c3, %c0_21, %c0_22] : memref<9x1x32xbf16, #tpu.memory_space<vmem>>, vector<1x1x32xbf16>
    %24 = vector.shape_cast %23 : vector<1x1x32xbf16> to vector<1x32xbf16>
    %cst_23 = arith.constant dense<0.000000e+00> : vector<1x840xf32>
    %25 = tpu.matmul %24, %22, %cst_23 {dimension_numbers = #tpu.dot_dimension_numbers<[1], [0], [0], [1], [0, 0, 1, 1], [], []>} : vector<1x32xbf16>, vector<32x840xbf16>, vector<1x840xf32> -> vector<1x840xf32>
    %26 = arith.addf %20, %25 : vector<1x840xf32>
    %c0_24 = arith.constant 0 : index
    %c0_25 = arith.constant 0 : index
    %c31 = arith.constant 31 : index
    %27 = vector.load %arg1[%c0_24, %c0_25, %c31] : memref<1x32x902xbf16, #tpu.memory_space<vmem>>, vector<1x32x840xbf16>
    %28 = vector.shape_cast %27 : vector<1x32x840xbf16> to vector<32x840xbf16>
    %c4 = arith.constant 4 : index
    %c0_26 = arith.constant 0 : index
    %c0_27 = arith.constant 0 : index
    %29 = vector.load %arg2[%c4, %c0_26, %c0_27] : memref<9x1x32xbf16, #tpu.memory_space<vmem>>, vector<1x1x32xbf16>
    %30 = vector.shape_cast %29 : vector<1x1x32xbf16> to vector<1x32xbf16>
    %cst_28 = arith.constant dense<0.000000e+00> : vector<1x840xf32>
    %31 = tpu.matmul %30, %28, %cst_28 {dimension_numbers = #tpu.dot_dimension_numbers<[1], [0], [0], [1], [0, 0, 1, 1], [], []>} : vector<1x32xbf16>, vector<32x840xbf16>, vector<1x840xf32> -> vector<1x840xf32>
    %32 = arith.addf %26, %31 : vector<1x840xf32>
    %c0_29 = arith.constant 0 : index
    %c0_30 = arith.constant 0 : index
    %c32 = arith.constant 32 : index
    %33 = vector.load %arg1[%c0_29, %c0_30, %c32] : memref<1x32x902xbf16, #tpu.memory_space<vmem>>, vector<1x32x840xbf16>
    %34 = vector.shape_cast %33 : vector<1x32x840xbf16> to vector<32x840xbf16>
    %c5 = arith.constant 5 : index
    %c0_31 = arith.constant 0 : index
    %c0_32 = arith.constant 0 : index
    %35 = vector.load %arg2[%c5, %c0_31, %c0_32] : memref<9x1x32xbf16, #tpu.memory_space<vmem>>, vector<1x1x32xbf16>
    %36 = vector.shape_cast %35 : vector<1x1x32xbf16> to vector<1x32xbf16>
    %cst_33 = arith.constant dense<0.000000e+00> : vector<1x840xf32>
    %37 = tpu.matmul %36, %34, %cst_33 {dimension_numbers = #tpu.dot_dimension_numbers<[1], [0], [0], [1], [0, 0, 1, 1], [], []>} : vector<1x32xbf16>, vector<32x840xbf16>, vector<1x840xf32> -> vector<1x840xf32>
    %38 = arith.addf %32, %37 : vector<1x840xf32>
    %c0_34 = arith.constant 0 : index
    %c0_35 = arith.constant 0 : index
    %c60 = arith.constant 60 : index
    %39 = vector.load %arg1[%c0_34, %c0_35, %c60] : memref<1x32x902xbf16, #tpu.memory_space<vmem>>, vector<1x32x840xbf16>
    %40 = vector.shape_cast %39 : vector<1x32x840xbf16> to vector<32x840xbf16>
    %c6 = arith.constant 6 : index
    %c0_36 = arith.constant 0 : index
    %c0_37 = arith.constant 0 : index
    %41 = vector.load %arg2[%c6, %c0_36, %c0_37] : memref<9x1x32xbf16, #tpu.memory_space<vmem>>, vector<1x1x32xbf16>
    %42 = vector.shape_cast %41 : vector<1x1x32xbf16> to vector<1x32xbf16>
    %cst_38 = arith.constant dense<0.000000e+00> : vector<1x840xf32>
    %43 = tpu.matmul %42, %40, %cst_38 {dimension_numbers = #tpu.dot_dimension_numbers<[1], [0], [0], [1], [0, 0, 1, 1], [], []>} : vector<1x32xbf16>, vector<32x840xbf16>, vector<1x840xf32> -> vector<1x840xf32>
    %44 = arith.addf %38, %43 : vector<1x840xf32>
    %c0_39 = arith.constant 0 : index
    %c0_40 = arith.constant 0 : index
    %c61 = arith.constant 61 : index
    %45 = vector.load %arg1[%c0_39, %c0_40, %c61] : memref<1x32x902xbf16, #tpu.memory_space<vmem>>, vector<1x32x840xbf16>
    %46 = vector.shape_cast %45 : vector<1x32x840xbf16> to vector<32x840xbf16>
    %c7 = arith.constant 7 : index
    %c0_41 = arith.constant 0 : index
    %c0_42 = arith.constant 0 : index
    %47 = vector.load %arg2[%c7, %c0_41, %c0_42] : memref<9x1x32xbf16, #tpu.memory_space<vmem>>, vector<1x1x32xbf16>
    %48 = vector.shape_cast %47 : vector<1x1x32xbf16> to vector<1x32xbf16>
    %cst_43 = arith.constant dense<0.000000e+00> : vector<1x840xf32>
    %49 = tpu.matmul %48, %46, %cst_43 {dimension_numbers = #tpu.dot_dimension_numbers<[1], [0], [0], [1], [0, 0, 1, 1], [], []>} : vector<1x32xbf16>, vector<32x840xbf16>, vector<1x840xf32> -> vector<1x840xf32>
    %50 = arith.addf %44, %49 : vector<1x840xf32>
    %c0_44 = arith.constant 0 : index
    %c0_45 = arith.constant 0 : index
    %c62 = arith.constant 62 : index
    %51 = vector.load %arg1[%c0_44, %c0_45, %c62] : memref<1x32x902xbf16, #tpu.memory_space<vmem>>, vector<1x32x840xbf16>
    %52 = vector.shape_cast %51 : vector<1x32x840xbf16> to vector<32x840xbf16>
    %c8 = arith.constant 8 : index
    %c0_46 = arith.constant 0 : index
    %c0_47 = arith.constant 0 : index
    %53 = vector.load %arg2[%c8, %c0_46, %c0_47] : memref<9x1x32xbf16, #tpu.memory_space<vmem>>, vector<1x1x32xbf16>
    %54 = vector.shape_cast %53 : vector<1x1x32xbf16> to vector<1x32xbf16>
    %cst_48 = arith.constant dense<0.000000e+00> : vector<1x840xf32>
    %55 = tpu.matmul %54, %52, %cst_48 {dimension_numbers = #tpu.dot_dimension_numbers<[1], [0], [0], [1], [0, 0, 1, 1], [], []>} : vector<1x32xbf16>, vector<32x840xbf16>, vector<1x840xf32> -> vector<1x840xf32>
    %56 = arith.addf %50, %55 : vector<1x840xf32>
    %c0_49 = arith.constant 0 : index
    %c0_50 = arith.constant 0 : index
    %c0_51 = arith.constant 0 : index
    %57 = vector.load %arg4[%c0_49, %c0_50, %c0_51] : memref<1x1x840xf32, #tpu.memory_space<vmem>>, vector<1x1x840xf32>
    %58 = vector.shape_cast %57 : vector<1x1x840xf32> to vector<1x840xf32>
    %59 = vector.shape_cast %56 : vector<1x840xf32> to vector<1x1x840xf32>
    tpu.vector_store %arg4[%c0_49, %c0_50, %c0_51], %59 {strides = array<i32>} : memref<1x1x840xf32, #tpu.memory_space<vmem>>, vector<1x1x840xf32>,
    return
  }
  func.func @transform_0(%arg0: i32) -> (i32, i32, i32) {
    %c0_i32 = arith.constant 0 : i32
    %c0_i32_0 = arith.constant 0 : i32
    %c0_i32_1 = arith.constant 0 : i32
    return %arg0, %c0_i32, %c0_i32_0 : i32, i32, i32
  }
  func.func @transform_1(%arg0: i32) -> (i32, i32, i32) {
    %c0_i32 = arith.constant 0 : i32
    %c0_i32_0 = arith.constant 0 : i32
    %c0_i32_1 = arith.constant 0 : i32
    %c0_i32_2 = arith.constant 0 : i32
    return %c0_i32, %c0_i32_0, %c0_i32_1 : i32, i32, i32
  }
  func.func @transform_2(%arg0: i32) -> (i32, i32) {
    %c0_i32 = arith.constant 0 : i32
    %c0_i32_0 = arith.constant 0 : i32
    %c0_i32_1 = arith.constant 0 : i32
    return %c0_i32, %c0_i32_0 : i32, i32
  }
  func.func @transform_3(%arg0: i32) -> (i32, i32, i32) {
    %c0_i32 = arith.constant 0 : i32
    %c0_i32_0 = arith.constant 0 : i32
    %c0_i32_1 = arith.constant 0 : i32
    return %arg0, %c0_i32, %c0_i32_0 : i32, i32, i32
  }
}

</mosaic_0001>

<bundles_post_ra>
// kernel: conv_vae_forward.7
= control target key start
LH: loop header
LB: loop body
LE: loop exit
PB: predicated region body
PF: predicated region fallthrough
CT: control target
= control target key end

     0   :  { %s1377_s15 = smov 0   ;;  %s1608_s0 = inlined_call_operand.vmem [shape: bf16[2,8,163], index: 0, kind: input, shape index: {}]   ;;  %s1609_s1 = inlined_call_operand.vmem [shape: bf16[2,8,163], index: 1, kind: input, shape index: {}]   ;;  %s1610_s2 = inlined_call_operand.vmem [shape: bf16[9,32,8], index: 2, kind: input, shape index: {}]   ;;  %s1611_s3 = inlined_call_operand.vmem [shape: f32[32,1], index: 3, kind: input, shape index: {}]   ;;  %s1612_s4 = inlined_call_operand.vmem [shape: bf16[2,32,144], index: 4, kind: output, shape index: {}]  }
   0x1 LB: > { %s1193_s16 = sadd.s32 4294967295, %s1344_s15   ;;  %p1197_p0 = scmp.ge.s32.totalorder %s1344_s15, 1  ;;  %s1344_s15 = sphi %s1377_s15, %s14_s15  }
   0x2   : > { %p172_p1 = scmp.lt.s32.totalorder %s1344_s15, 3 }
   0x4   : > { %p173_p2 = pnand %p1197_p0, %p172_p1 }
   0x6   : > { %176 = sbr.rel (%p173_p2) target bundleno = 405 (0x195), region = 36 }
   0xb   : > { %p203_p3 = scmp.lt.s32.totalorder %s1193_s16, 1  ;;  %v1346_v0 = vmov 0   ;;  %vm270_vm0 = vcmask 1043456   ;;  %v1320_v6 = vld [vmem:[%s1610_s2 + $0x8] sm:$0xff]   ;;  %vm263_vm1 = vcmask 64512   ;;  %v1322_v7 = vld [vmem:[%s1610_s2] sm:$0xff]  }
   0xc   : > { %319 = vmatprep.mubr.bf16.mxu1 %v1346_v0  ;;  %309 = vmatprep.mubr.bf16.mxu0 %v1346_v0  ;;  %s1347_s28 = smov 119   ;;  %s1348_s29 = smov 127   ;;  %v1321_v11 = vld [vmem:[%s1610_s2 + $0x10] sm:$0xff]   ;;  %v1323_v12 = vld [vmem:[%s1610_s2 + $0x18] sm:$0xff]   ;;  %v220_v13 = vld [vmem:[%s1611_s3 + $0x8] sm:$0xff]  ;;  %vm545_vm2 = vcmask 973824  }
   0xd   : > { %s1622_s16 = smov (!%p203_p3, %s1193_s16), 1  ;;  %1315 = vset.pattern.permute.xlu1 %v1346_v0  ;;  %1314 = vset.pattern.permute.xlu0 %v1346_v0  ;;  %s1349_s6 = smov 118   ;;  %v219_v14 = vld [vmem:[%s1611_s3] sm:$0xff]  ;;  %v221_v15 = vld [vmem:[%s1611_s3 + $0x10] sm:$0xff]  ;;  %v222_v16 = vld [vmem:[%s1611_s3 + $0x18] sm:$0xff]  ;;  %vm451_vm3 = vcmask 1039360  }
   0xe   : > { %s1291_s17 = sshll.u32 %s1622_s16, 3  ;;  %s1350_s7 = smov 110   ;;  %v1324_v25 = vld [vmem:[%s1610_s2 + $0x20] sm:$0xff]   ;;  %v1325_v26 = vld [vmem:[%s1610_s2 + $0x30] sm:$0xff]   ;;  %vm732_vm4 = vcmask 965632   ;;  %v1326_v34 = vld [vmem:[%s1610_s2 + $0x28] sm:$0xff]  }
   0xf   : > { %s207_s20 = scalar_lea.vmem %s1608_s0, %s1291_s17  ;;  %s212_s23 = scalar_lea.vmem %s1609_s1, %s1291_s17  ;;  %v1327_v35 = vld [vmem:[%s1610_s2 + $0x38] sm:$0xff]   ;;  %vm826_vm5 = vcmask 900096   ;;  %v1328_v42 = vld [vmem:[%s1610_s2 + $0x40] sm:$0xff]   ;;  %v1329_v43 = vld [vmem:[%s1610_s2 + $0x50] sm:$0xff]   ;;  %vm1013_vm6 = vcmask 891904   ;;  %vm1120_vm7 = vcmask 130052  }
  0x10   : > { %v243_v1 = vld [vmem:[%s207_s20] sm:$0xff]  ;;  %s1351_s10 = smov 109   ;;  %v1330_v48 = vld [vmem:[%s1610_s2 + $0x48] sm:$0xff]   ;;  %v1331_v49 = vld [vmem:[%s1610_s2 + $0x58] sm:$0xff]   ;;  %s1293_s25 = sshll.u32 %s1622_s16, 5 }
  0x11   : > { %v338_v2 = vld [vmem:[%s212_s23] sm:$0xff]  ;;  %v1206_v3 = vcombine.low %v243_v1, %v243_v1  ;;  %v1207_v5 = vcombine.high %v243_v1, %v243_v1  ;;  %v1333_v53 = vld [vmem:[%s1610_s2 + $0x70] sm:$0xff]   ;;  %v1334_v55 = vld [vmem:[%s1610_s2 + $0x68] sm:$0xff]  }
  0x12   : > { %v1217_v4 = vcombine.low %v338_v2, %v338_v2  ;;  %v1218_v10 = vcombine.high %v338_v2, %v338_v2  ;;  %v1332_v52 = vld [vmem:[%s1610_s2 + $0x60] sm:$0xff]   ;;  %v1335_v56 = vld [vmem:[%s1610_s2 + $0x78] sm:$0xff]   ;;  %v1337_v58 = vld [vmem:[%s1610_s2 + $0x88] sm:$0xff]  }
  0x13   : > { %541 = vrot.lane.b32.xlu1 %v1206_v3, %s1347_s28  ;;  %447 = vrot.lane.b32.xlu0 %v1206_v3, %s1348_s29  ;;  %v272_v8 = vsel %vm270_vm0, %v1206_v3, 0  ;;  %v1336_v57 = vld [vmem:[%s1610_s2 + $0x80] sm:$0xff]   ;;  %vm1589_vm8 = vmor %vm1120_vm7, %vm270_vm0 }
  0x14   : > { %v366_v9 = vsel %vm270_vm0, %v1217_v4, 0  ;;  %1298 = vmatprep.subr.msk.bf16.mxu1 %vm270_vm0, %v1207_v5  ;;  %1208 = vmatprep.subr.msk.bf16.mxu0 %vm270_vm0, %v1207_v5 }
  0x15   : > { %1299 = vmatpush1.bf16.msra.mxu1 %v272_v8  ;;  %292 = vmatpush1.bf16.msra.mxu0 %v272_v8 }
  0x16   : > { %1219 = vmatprep.subr.msk.bf16.mxu1 %vm270_vm0, %v1218_v10 }
  0x17   : > { %543 = vrot.lane.b32.xlu1 %v1207_v5, %s1347_s28  ;;  %449 = vrot.lane.b32.xlu0 %v1207_v5, %s1348_s29 }
  0x18   : > { %1210 = vmatmul.mubr.msk.bf16.vlgmr.msra.gmra.mxu1 %vm263_vm1, %v1320_v6  ;;  %1209 = vmatmul.mubr.msk.bf16.vlgmr.msra.gmra.mxu0 %vm263_vm1, %v1322_v7 }
  0x19   : > { %386 = vmatpush1.bf16.msra.mxu1 %v366_v9  ;;  %403 = vmatprep.mubr.bf16.mxu1 %v1346_v0 }
  0x1a   : > { %497 = vmatprep.mubr.bf16.mxu0 %v1346_v0 }
  0x1b   : > { %637 = vrot.lane.b32.xlu1 %v1218_v10, %s1347_s28  ;;  %635 = vrot.lane.b32.xlu0 %v1217_v4, %s1347_s28  ;;  %s1586_s28 = scalar_lea.vmem %s1612_s4, %s1293_s25 }
  0x1f   : > { %730 = vrot.lane.b32.xlu1 %v1207_v5, %s1349_s6  ;;  %728 = vrot.lane.b32.xlu0 %v1206_v3, %s1349_s6 }
  0x20   : > { %1220 = vmatmul.mubr.msk.bf16.vlgmr.msra.gmra.mxu1 %vm263_vm1, %v1321_v11 }
  0x21   : > { %413 = vmatprep.mubr.bf16.mxu1 %v1346_v0 }
  0x23   : > { %824 = vrot.lane.b32.xlu1 %v1207_v5, %s1350_s7  ;;  %822 = vrot.lane.b32.xlu0 %v1206_v3, %s1350_s7 }
  0x27   : > { %918 = vrot.lane.b32.xlu1 %v1218_v10, %s1350_s7  ;;  %916 = vrot.lane.b32.xlu0 %v1217_v4, %s1350_s7 }
  0x28   : > { %1221 = vmatmul.mubr.msk.bf16.gmra.mxu1 %vm263_vm1, %v1323_v12 }
  0x29   : > { %591 = vmatprep.mubr.bf16.mxu1 %v1346_v0 }
  0x2b   : > { %1011 = vrot.lane.b32.xlu1 %v1207_v5, %s1351_s10  ;;  %1009 = vrot.lane.b32.xlu0 %v1206_v3, %s1351_s10 }
  0x2f   : > { %230 = vperm.xlu1 %1315, %v220_v13   ;;  %225 = vperm.xlu0 %1314, %v219_v14  }
  0x33   : > { %235 = vperm.xlu1 %1315, %v221_v15   ;;  %240 = vperm.xlu0 %1314, %v222_v16  }
  0x85   : > { %v542_v17 = vpop.permute.xlu1 %541  ;;  %v448_v18 = vpop.permute.xlu0 %447 }
  0x89   : > { %v544_v19 = vpop.permute.xlu1 %543  ;;  %v450_v20 = vpop.permute.xlu0 %449 }
  0x8a   : > { %v546_v21 = vsel %vm545_vm2, %v542_v17, %v544_v19  ;;  %v452_v22 = vsel %vm451_vm3, %v448_v18, %v450_v20  ;;  %1228 = vmatprep.subr.msk.bf16.mxu0 %vm270_vm0, %v450_v20  ;;  %1237 = vmatprep.subr.msk.bf16.mxu1 %vm270_vm0, %v544_v19 }
  0x8b   : > { %v554_v23 = vsel %vm270_vm0, %v546_v21, 0  ;;  %v460_v24 = vsel %vm270_vm0, %v452_v22, 0 }
  0x8c   : > { %480 = vmatpush1.bf16.msra.mxu0 %v460_v24  ;;  %574 = vmatpush1.bf16.msra.mxu1 %v554_v23 }
  0x8d   : > { %v638_v27 = vpop.permute.xlu1 %637  ;;  %v636_v28 = vpop.permute.xlu0 %635 }
  0x8e   : > { %v639_v29 = vsel %vm545_vm2, %v636_v28, %v638_v27  ;;  %1246 = vmatprep.subr.msk.bf16.mxu0 %vm270_vm0, %v638_v27 }
  0x8f   : > { %1229 = vmatmul.mubr.msk.bf16.vlgmr.msra.gmra.mxu0 %vm263_vm1, %v1324_v25  ;;  %v647_v30 = vsel %vm270_vm0, %v639_v29, 0  ;;  %1238 = vmatmul.mubr.msk.bf16.vlgmr.msra.gmra.mxu1 %vm263_vm1, %v1325_v26 }
  0x90   : > { %667 = vmatpush1.bf16.msra.mxu0 %v647_v30  ;;  %507 = vmatprep.mubr.bf16.mxu0 %v1346_v0 }
  0x91   : > { %601 = vmatprep.mubr.bf16.mxu1 %v1346_v0  ;;  %v731_v31 = vpop.permute.xlu1 %730  ;;  %v729_v32 = vpop.permute.xlu0 %728 }
  0x92   : > { %v733_v33 = vsel %vm732_vm4, %v729_v32, %v731_v31  ;;  %1255 = vmatprep.subr.msk.bf16.mxu1 %vm270_vm0, %v731_v31 }
  0x93   : > { %v741_v36 = vsel %vm270_vm0, %v733_v33, 0 }
  0x94   : > { %761 = vmatpush1.bf16.msra.mxu1 %v741_v36 }
  0x95   : > { %v825_v37 = vpop.permute.xlu1 %824  ;;  %v823_v38 = vpop.permute.xlu0 %822 }
  0x96   : > { %1264 = vmatprep.subr.msk.bf16.mxu0 %vm270_vm0, %v825_v37  ;;  %v827_v41 = vsel %vm826_vm5, %v823_v38, %v825_v37 }
  0x97   : > { %1230 = vmatmul.mubr.msk.bf16.gmra.mxu0 %vm263_vm1, %v1326_v34  ;;  %1239 = vmatmul.mubr.msk.bf16.gmra.mxu1 %vm263_vm1, %v1327_v35  ;;  %v835_v45 = vsel %vm270_vm0, %v827_v41, 0 }
  0x98   : > { %684 = vmatprep.mubr.bf16.mxu0 %v1346_v0  ;;  %778 = vmatprep.mubr.bf16.mxu1 %v1346_v0 }
  0x99   : > { %v919_v39 = vpop.permute.xlu1 %918  ;;  %v917_v40 = vpop.permute.xlu0 %916 }
  0x9a   : > { %1273 = vmatprep.subr.msk.bf16.mxu1 %vm270_vm0, %v919_v39  ;;  %v920_v44 = vsel %vm826_vm5, %v917_v40, %v919_v39 }
  0x9b   : > { %v928_v46 = vsel %vm270_vm0, %v920_v44, 0 }
  0x9d   : > { %v1012_v47 = vpop.permute.xlu1 %1011  ;;  %v1010_v50 = vpop.permute.xlu0 %1009 }
  0x9e   : > { %v1014_v51 = vsel %vm1013_vm6, %v1010_v50, %v1012_v47 }
  0x9f   : > { %1247 = vmatmul.mubr.msk.bf16.vlgmr.msra.gmra.mxu0 %vm263_vm1, %v1328_v42  ;;  %1256 = vmatmul.mubr.msk.bf16.vlgmr.msra.gmra.mxu1 %vm263_vm1, %v1329_v43  ;;  %v1022_v54 = vsel %vm270_vm0, %v1014_v51, 0 }
  0xa0   : > { %855 = vmatpush1.bf16.msra.mxu0 %v835_v45  ;;  %694 = vmatprep.mubr.bf16.mxu0 %v1346_v0 }
  0xa1   : > { %788 = vmatprep.mubr.bf16.mxu1 %v1346_v0  ;;  %948 = vmatpush1.bf16.msra.mxu1 %v928_v46 }
  0xa2   : > { %1282 = vmatprep.subr.msk.bf16.mxu0 %vm270_vm0, %v1012_v47 }
  0xa7   : > { %1248 = vmatmul.mubr.msk.bf16.gmra.mxu0 %vm263_vm1, %v1330_v48  ;;  %1257 = vmatmul.mubr.msk.bf16.gmra.mxu1 %vm263_vm1, %v1331_v49 }
  0xa8   : > { %872 = vmatprep.mubr.bf16.mxu0 %v1346_v0  ;;  %965 = vmatprep.mubr.bf16.mxu1 %v1346_v0 }
  0xaa   : > { %v231_v35 = vpop.permute.xlu1 %230  ;;  %v226_v36 = vpop.permute.xlu0 %225 }
  0xae   : > { %v236_v45 = vpop.permute.xlu1 %235 }
  0xaf   : > { %1265 = vmatmul.mubr.msk.bf16.vlgmr.msra.gmra.mxu0 %vm263_vm1, %v1332_v52  ;;  %1274 = vmatmul.mubr.msk.bf16.vlgmr.msra.gmra.mxu1 %vm263_vm1, %v1333_v53 }
  0xb0   : > { %1042 = vmatpush1.bf16.msra.mxu0 %v1022_v54  ;;  %882 = vmatprep.mubr.bf16.mxu0 %v1346_v0 }
  0xb1   : > { %975 = vmatprep.mubr.bf16.mxu1 %v1346_v0 }
  0xb7   : > { %1266 = vmatmul.mubr.msk.bf16.gmra.mxu0 %vm263_vm1, %v1334_v55  ;;  %1275 = vmatmul.mubr.msk.bf16.gmra.mxu1 %vm263_vm1, %v1335_v56  ;;  %v241_v56 = vpop.permute.xlu0 %240 }
  0xb8   : > { %1059 = vmatprep.mubr.bf16.mxu0 %v1346_v0 }
  0xbf   : > { %1283 = vmatmul.mubr.msk.bf16.vlgmr.msra.gmra.mxu0 %vm263_vm1, %v1336_v57 }
  0xc0   : > { %1069 = vmatprep.mubr.bf16.mxu0 %v1346_v0 }
  0xc7   : > { %1284 = vmatmul.mubr.msk.bf16.gmra.mxu0 %vm263_vm1, %v1337_v58 }
  0xd8   : > { %v321_v59 = vpop.f32.mrf.mxu1  ;;  %v311_v4 = vpop.f32.mrf.mxu0 }
  0xd9   : > { %v330_v39 = vadd.f32 %v311_v4, %v226_v36  ;;  %v334_v55 = vadd.f32 %v321_v59, %v236_v45 }
  0xda   : > { %v1519_v60 = vpop.f32.mrf.mxu1  ;;  %v313_v0 = vpop.f32.mrf.mxu0 }
  0xdb   : > { %v331_v42 = vadd.f32 %v313_v0, %v226_v36  ;;  %v335_v4 = vadd.f32 %v1519_v60, %v236_v45 }
  0xdc   : > { %v1521_v61 = vpop.f32.mrf.mxu1  ;;  %v315_v7 = vpop.f32.mrf.mxu0 }
  0xdd   : > { %v332_v46 = vadd.f32 %v315_v7, %v231_v35 }
  0xde   : > { %v1523_v62 = vpop.f32.mrf.mxu1  ;;  %v317_v9 = vpop.f32.mrf.mxu0 }
  0xdf   : > { %v333_v50 = vadd.f32 %v317_v9, %v231_v35  ;;  %v337_v59 = vadd.f32 %v1523_v62, %v241_v56 }
  0xe0   : > { %v405_v63 = vpop.f32.mrf.mxu1 }
  0xe1   : > { %v424_v47 = vadd.f32 %v405_v63, %v330_v39  ;;  %v336_v39 = vadd.f32 %v1521_v61, %v241_v56 }
  0xe2   : > { %v407_v1 = vpop.f32.mrf.mxu1 }
  0xe3   : > { %v425_v52 = vadd.f32 %v407_v1, %v331_v42 }
  0xe4   : > { %v409_v2 = vpop.f32.mrf.mxu1 }
  0xe5   : > { %v426_v58 = vadd.f32 %v409_v2, %v332_v46 }
  0xe6   : > { %v411_v3 = vpop.f32.mrf.mxu1 }
  0xe7   : > { %v427_v63 = vadd.f32 %v411_v3, %v333_v50 }
  0xe8   : > { %v1525_v5 = vpop.f32.mrf.mxu1 }
  0xe9   : > { %v428_v1 = vadd.f32 %v1525_v5, %v334_v55 }
  0xea   : > { %v1527_v6 = vpop.f32.mrf.mxu1 }
  0xec   : > { %v1529_v8 = vpop.f32.mrf.mxu1 }
  0xee   : > { %v1531_v10 = vpop.f32.mrf.mxu1 }
  0xef   : > { %v431_v5 = vadd.f32 %v1531_v10, %v337_v59 }
 0x14f   : > { %v499_v11 = vpop.f32.mrf.mxu0  ;;  %v593_v12 = vpop.f32.mrf.mxu1 }
 0x150   : > { %v518_v51 = vadd.f32 %v499_v11, %v424_v47 }
 0x151   : > { %v501_v13 = vpop.f32.mrf.mxu0  ;;  %v595_v14 = vpop.f32.mrf.mxu1 }
 0x152   : > { %v519_v57 = vadd.f32 %v501_v13, %v425_v52  ;;  %v429_v13 = vadd.f32 %v1527_v6, %v335_v4 }
 0x153   : > { %v503_v15 = vpop.f32.mrf.mxu0  ;;  %v597_v16 = vpop.f32.mrf.mxu1 }
 0x154   : > { %v520_v7 = vadd.f32 %v503_v15, %v426_v58 }
 0x155   : > { %v505_v17 = vpop.f32.mrf.mxu0  ;;  %v1533_v18 = vpop.f32.mrf.mxu1 }
 0x156   : > { %v521_v9 = vadd.f32 %v505_v17, %v427_v63  ;;  %v614_v60 = vadd.f32 %v597_v16, %v520_v7 }
 0x157   : > { %v509_v19 = vpop.f32.mrf.mxu0  ;;  %v1535_v20 = vpop.f32.mrf.mxu1 }
 0x158   : > { %v522_v42 = vadd.f32 %v509_v19, %v428_v1  ;;  %v615_v61 = vadd.f32 %v1533_v18, %v521_v9 }
 0x159   : > { %v511_v21 = vpop.f32.mrf.mxu0  ;;  %v1537_v22 = vpop.f32.mrf.mxu1 }
 0x15a   : > { %v523_v3 = vadd.f32 %v511_v21, %v429_v13  ;;  %v616_v6 = vadd.f32 %v1535_v20, %v522_v42 }
 0x15b   : > { %v513_v23 = vpop.f32.mrf.mxu0  ;;  %v1539_v24 = vpop.f32.mrf.mxu1 }
 0x15c   : > { %v617_v19 = vadd.f32 %v1537_v22, %v523_v3 }
 0x15d   : > { %v1541_v25 = vpop.f32.mrf.mxu0  ;;  %v1543_v26 = vpop.f32.mrf.mxu1 }
 0x15f   : > { %v686_v27 = vpop.f32.mrf.mxu0  ;;  %v780_v28 = vpop.f32.mrf.mxu1 }
 0x161   : > { %v688_v29 = vpop.f32.mrf.mxu0  ;;  %v782_v30 = vpop.f32.mrf.mxu1 }
 0x163   : > { %v690_v31 = vpop.f32.mrf.mxu0  ;;  %v1545_v32 = vpop.f32.mrf.mxu1 }
 0x164   : > { %v707_v17 = vadd.f32 %v690_v31, %v614_v60 }
 0x165   : > { %v692_v33 = vpop.f32.mrf.mxu0  ;;  %v1547_v34 = vpop.f32.mrf.mxu1 }
 0x166   : > { %v708_v47 = vadd.f32 %v692_v33, %v615_v61 }
 0x167   : > { %v696_v37 = vpop.f32.mrf.mxu0  ;;  %v1549_v38 = vpop.f32.mrf.mxu1 }
 0x168   : > { %v709_v18 = vadd.f32 %v696_v37, %v616_v6  ;;  %v802_v50 = vadd.f32 %v1547_v34, %v708_v47 }
 0x169   : > { %v698_v40 = vpop.f32.mrf.mxu0  ;;  %v1551_v41 = vpop.f32.mrf.mxu1 }
 0x16a   : > { %v710_v10 = vadd.f32 %v698_v40, %v617_v19 }
 0x16b   : > { %v1553_v43 = vpop.f32.mrf.mxu0  ;;  %v1555_v44 = vpop.f32.mrf.mxu1 }
 0x16c   : > { %1613 = vst [vmem:[#allocation2_spill] sm:$0xff] %v1555_v44  ;;  %v612_v44 = vadd.f32 %v593_v12, %v518_v51  ;;  %v430_v12 = vadd.f32 %v1529_v8, %v336_v39  ;;  %v525_v8 = vadd.f32 %v1541_v25, %v431_v5  ;;  %v803_v51 = vadd.f32 %v1549_v38, %v709_v18 }
 0x16d   : > { %v1557_v48 = vpop.f32.mrf.mxu0  ;;  %v1559_v49 = vpop.f32.mrf.mxu1 }
 0x16e   : > { %1614 = vst [vmem:[#allocation3_spill] sm:$0xff] %v1557_v48  ;;  %1615 = vst [vmem:[#allocation4_spill] sm:$0xff] %v1559_v49  ;;  %v613_v49 = vadd.f32 %v595_v14, %v519_v57  ;;  %v705_v11 = vadd.f32 %v686_v27, %v612_v44  ;;  %v524_v27 = vadd.f32 %v513_v23, %v430_v12 }
 0x16f   : > { %v874_v53 = vpop.f32.mrf.mxu0  ;;  %v967_v54 = vpop.f32.mrf.mxu1  ;;  %v619_v33 = vadd.f32 %v1543_v26, %v525_v8 }
 0x170   : > { %v706_v45 = vadd.f32 %v688_v29, %v613_v49  ;;  %v799_v14 = vadd.f32 %v780_v28, %v705_v11  ;;  %v801_v29 = vadd.f32 %v1545_v32, %v707_v17  ;;  %v618_v31 = vadd.f32 %v1539_v24, %v524_v27 }
 0x171   : > { %v876_v0 = vpop.f32.mrf.mxu0  ;;  %v969_v36 = vpop.f32.mrf.mxu1  ;;  %v804_v24 = vadd.f32 %v1551_v41, %v710_v10 }
 0x172   : > { %v800_v46 = vadd.f32 %v782_v30, %v706_v45  ;;  %v893_v16 = vadd.f32 %v874_v53, %v799_v14  ;;  %v711_v22 = vadd.f32 %v1553_v43, %v618_v31 }
 0x173   : > { %v878_v48 = vpop.f32.mrf.mxu0  ;;  %v971_v35 = vpop.f32.mrf.mxu1  ;;  %v1617_v26 = vld [vmem:[#allocation2_spill] sm:$0xff] }
 0x174   : > { %v894_v28 = vadd.f32 %v876_v0, %v800_v46  ;;  %v986_v20 = vadd.f32 %v967_v54, %v893_v16  ;;  %v895_v30 = vadd.f32 %v878_v48, %v801_v29  ;;  %v805_v54 = vadd.f32 %v1617_v26, %v711_v22 }
 0x175   : > { %v880_v2 = vpop.f32.mrf.mxu0  ;;  %v973_v44 = vpop.f32.mrf.mxu1  ;;  %v1616_v40 = vld [vmem:[#allocation3_spill] sm:$0xff]  ;;  %v1618_v7 = vld [vmem:[#allocation4_spill] sm:$0xff] }
 0x176   : > { %v987_v32 = vadd.f32 %v969_v36, %v894_v28  ;;  %v896_v37 = vadd.f32 %v880_v2, %v802_v50  ;;  %v712_v53 = vadd.f32 %v1616_v40, %v619_v33  ;;  %v988_v34 = vadd.f32 %v971_v35, %v895_v30 }
 0x177   : > { %v884_v15 = vpop.f32.mrf.mxu0  ;;  %v977_v23 = vpop.f32.mrf.mxu1 }
 0x178   : > { %v897_v57 = vadd.f32 %v884_v15, %v803_v51  ;;  %v989_v4 = vadd.f32 %v973_v44, %v896_v37  ;;  %v806_v63 = vadd.f32 %v1618_v7, %v712_v53 }
 0x179   : > { %v886_v62 = vpop.f32.mrf.mxu0  ;;  %v979_v55 = vpop.f32.mrf.mxu1 }
 0x17a   : > { %v898_v43 = vadd.f32 %v886_v62, %v804_v24  ;;  %v990_v1 = vadd.f32 %v977_v23, %v897_v57 }
 0x17b   : > { %v888_v21 = vpop.f32.mrf.mxu0  ;;  %v981_v41 = vpop.f32.mrf.mxu1 }
 0x17c   : > { %v899_v11 = vadd.f32 %v888_v21, %v805_v54  ;;  %v991_v2 = vadd.f32 %v979_v55, %v898_v43 }
 0x17d   : > { %v890_v49 = vpop.f32.mrf.mxu0  ;;  %v983_v3 = vpop.f32.mrf.mxu1 }
 0x17e   : > { %v900_v60 = vadd.f32 %v890_v49, %v806_v63  ;;  %v992_v61 = vadd.f32 %v981_v41, %v899_v11 }
 0x17f   : > { %v1061_v25 = vpop.f32.mrf.mxu0 }
 0x180   : > { %v1080_v52 = vadd.f32 %v1061_v25, %v986_v20  ;;  %v993_v27 = vadd.f32 %v983_v3, %v900_v60 }
 0x181   : > { %v1063_v56 = vpop.f32.mrf.mxu0 }
 0x182   : > { %v1081_v48 = vadd.f32 %v1063_v56, %v987_v32  ;;  %v1088_v38 = vmax.f32 %v1080_v52, 0.0 }
 0x183   : > { %v1065_v58 = vpop.f32.mrf.mxu0 }
 0x184   : > { %v1089_v0 = vmax.f32 %v1081_v48, 0.0  ;;  %v1082_v36 = vadd.f32 %v1065_v58, %v988_v34 }
 0x185   : > { %v1067_v9 = vpop.f32.mrf.mxu0 }
 0x186   : > { %v1294_v59 = vpack.c.bf16 %v1089_v0, %v1088_v38  ;;  %v1083_v13 = vadd.f32 %v1067_v9, %v989_v4  ;;  %v1090_v42 = vmax.f32 %v1082_v36, 0.0 }
 0x187   : > { %v1071_v35 = vpop.f32.mrf.mxu0 }
 0x188   : > { %1122 = vst.msk [vmem:[%s1586_s28] sm:$0xff] %vm1589_vm8, %v1294_v59  ;;  %v1091_v45 = vmax.f32 %v1083_v13, 0.0  ;;  %v1084_v12 = vadd.f32 %v1071_v35, %v990_v1 }
 0x189   : > { %v1073_v15 = vpop.f32.mrf.mxu0 }
 0x18a   : > { %v1295_v14 = vpack.c.bf16 %v1091_v45, %v1090_v42  ;;  %v1085_v17 = vadd.f32 %v1073_v15, %v991_v2  ;;  %v1092_v44 = vmax.f32 %v1084_v12, 0.0 }
 0x18b   : > { %v1075_v5 = vpop.f32.mrf.mxu0 }
 0x18c   : > { %1123 = vst.msk [vmem:[%s1586_s28 + $0x8] sm:$0xff] %vm1589_vm8, %v1295_v14  ;;  %v1093_v62 = vmax.f32 %v1085_v17, 0.0  ;;  %v1086_v6 = vadd.f32 %v1075_v5, %v992_v61 }
 0x18d   : > { %v1077_v46 = vpop.f32.mrf.mxu0 }
 0x18e   : > { %v1296_v47 = vpack.c.bf16 %v1093_v62, %v1092_v44  ;;  %v1087_v16 = vadd.f32 %v1077_v46, %v993_v27  ;;  %v1094_v19 = vmax.f32 %v1086_v6, 0.0 }
 0x190   : > { %1124 = vst.msk [vmem:[%s1586_s28 + $0x10] sm:$0xff] %vm1589_vm8, %v1296_v47  ;;  %v1095_v8 = vmax.f32 %v1087_v16, 0.0 }
 0x192   : > { %v1297_v21 = vpack.c.bf16 %v1095_v8, %v1094_v19 }
 0x194   : > { %1125 = vst.msk [vmem:[%s1586_s28 + $0x18] sm:$0xff] %vm1589_vm8, %v1297_v21 }
 0x195 PF: > { %s14_s15 = sadd.s32 1, %s1344_s15  }
 0x196   : > { %p11_p4 = scmp.ge.s32.totalorder %s14_s15, 4  }
 0x198   :  { %13 = sbr.rel (!%p11_p4) target bundleno = 1 (0x1), region = 77 }

// kernel: conv_vae_forward.8
= control target key start
LH: loop header
LB: loop body
LE: loop exit
PB: predicated region body
PF: predicated region fallthrough
CT: control target
= control target key end

     0   :  { %s1916_s15 = smov 0   ;;  %s2219_s0 = inlined_call_operand.vmem [shape: bf16[2,32,51], index: 0, kind: input, shape index: {}]   ;;  %s2220_s1 = inlined_call_operand.vmem [shape: bf16[2,32,51], index: 1, kind: input, shape index: {}]   ;;  %s2221_s2 = inlined_call_operand.vmem [shape: bf16[9,64,32], index: 2, kind: input, shape index: {}]   ;;  %s2222_s3 = inlined_call_operand.vmem [shape: f32[64,1], index: 3, kind: input, shape index: {}]   ;;  %s2223_s4 = inlined_call_operand.vmem [shape: bf16[2,64,40], index: 4, kind: output, shape index: {}]  }
   0x1 LB: > { %s1483_s16 = sadd.s32 4294967295, %s1883_s15   ;;  %p1487_p0 = scmp.ge.s32.totalorder %s1883_s15, 1  ;;  %s1883_s15 = sphi %s1916_s15, %s14_s15  }
   0x2   : > { %p172_p1 = scmp.lt.s32.totalorder %s1883_s15, 3 }
   0x4   : > { %p173_p2 = pnand %p1487_p0, %p172_p1 }
   0x6   : > { %176 = sbr.rel (%p173_p2) target bundleno = 402 (0x192), region = 36 }
   0xb   : > { %p203_p3 = scmp.lt.s32.totalorder %s1483_s16, 1  ;;  %v1841_v0 = vld [vmem:[%s2221_s2 + $0x10] sm:$0xff]   ;;  %vm311_vm0 = vcmask 261120   ;;  %v1845_v1 = vld [vmem:[%s2221_s2] sm:$0xff]   ;;  %s1885_s28 = smov 127   ;;  %v1842_v6 = vld [vmem:[%s2221_s2 + $0x18] sm:$0xff]  }
   0xc   : > { %1717 = vmatprep.mubr.msk.bf16.mxu1 %vm311_vm0, %v1841_v0  ;;  %1713 = vmatprep.mubr.msk.bf16.mxu0 %vm311_vm0, %v1845_v1  ;;  %s1886_s29 = smov 123   ;;  %v1847_v7 = vld [vmem:[%s2221_s2 + $0x8] sm:$0xff]   ;;  %v1843_v8 = vld [vmem:[%s2221_s2 + $0x20] sm:$0xff]   ;;  %s1887_s12 = smov 122   ;;  %v1846_v11 = vld [vmem:[%s2221_s2 + $0x30] sm:$0xff]   ;;  %v1890_v16 = vmov 0  }
   0xd   : > { %s2241_s16 = smov (!%p203_p3, %s1483_s16), 1  ;;  %v1849_v9 = vld [vmem:[%s2221_s2 + $0x40] sm:$0xff]   ;;  %s1888_s13 = smov 118   ;;  %v1844_v10 = vld [vmem:[%s2221_s2 + $0x28] sm:$0xff]   ;;  %v1848_v12 = vld [vmem:[%s2221_s2 + $0x38] sm:$0xff]   ;;  %1836 = vset.pattern.permute.xlu1 %v1890_v16  ;;  %1835 = vset.pattern.permute.xlu0 %v1890_v16  ;;  %vm1407_vm1 = vcmask 322560  }
   0xe   : > { %s1644_s19 = sshll.u32 %s2241_s16, 4  ;;  %s1889_s20 = smov 117   ;;  %v1851_v13 = vld [vmem:[%s2221_s2 + $0x60] sm:$0xff]   ;;  %v220_v14 = vld [vmem:[%s2222_s3 + $0x8] sm:$0xff]  ;;  %v221_v17 = vld [vmem:[%s2222_s3 + $0x10] sm:$0xff] }
   0xf   : > { %s207_s24 = scalar_lea.vmem %s2219_s0, %s1644_s19  ;;  %s212_s27 = scalar_lea.vmem %s2220_s1, %s1644_s19  ;;  %v219_v15 = vld [vmem:[%s2222_s3] sm:$0xff]  ;;  %v222_v18 = vld [vmem:[%s2222_s3 + $0x18] sm:$0xff]  ;;  %v224_v20 = vld [vmem:[%s2222_s3 + $0x28] sm:$0xff] }
  0x10   : > { %v1837_v2 = vld [vmem:[%s207_s24 + $0x8] sm:$0xff]   ;;  %v1838_v3 = vld [vmem:[%s207_s24] sm:$0xff]   ;;  %v225_v21 = vld [vmem:[%s2222_s3 + $0x30] sm:$0xff]  ;;  %s1646_s21 = sshll.u32 %s2241_s16, 5 }
  0x11   : > { %558 = vrot.lane.b32.xlu0 %v1837_v2, %s1885_s28  ;;  %678 = vrot.lane.b32.xlu1 %v1837_v2, %s1886_s29  ;;  %v1839_v4 = vld [vmem:[%s212_s27 + $0x8] sm:$0xff]   ;;  %v1840_v5 = vld [vmem:[%s212_s27] sm:$0xff]   ;;  %s2195_s23 = scalar_lea.vmem %s2223_s4, %s1646_s21 }
  0x12   : > { %1817 = vmatprep.subr.bf16.mxu1 %v1837_v2  ;;  %1709 = vmatprep.subr.bf16.mxu0 %v1837_v2  ;;  %v223_v19 = vld [vmem:[%s2222_s3 + $0x20] sm:$0xff]  ;;  %v226_v22 = vld [vmem:[%s2222_s3 + $0x38] sm:$0xff]  ;;  %v1850_v27 = vld [vmem:[%s2221_s2 + $0x48] sm:$0xff]  }
  0x13   : > { %1819 = vmatpush3.bf16.msra.mxu1 %v1837_v2  ;;  %1710 = vmatpush3.bf16.msra.mxu0 %v1837_v2  ;;  %v1853_v28 = vld [vmem:[%s2221_s2 + $0x50] sm:$0xff]   ;;  %v1852_v31 = vld [vmem:[%s2221_s2 + $0x68] sm:$0xff]   ;;  %v1854_v35 = vld [vmem:[%s2221_s2 + $0x58] sm:$0xff]  }
  0x14   : > { %1818 = vmatprep.subr.bf16.mxu1 %v1838_v3  ;;  %1711 = vmatprep.subr.bf16.mxu0 %v1838_v3  ;;  %v1855_v32 = vld [vmem:[%s2221_s2 + $0x70] sm:$0xff]   ;;  %v1857_v36 = vld [vmem:[%s2221_s2 + $0x80] sm:$0xff]   ;;  %v1856_v38 = vld [vmem:[%s2221_s2 + $0x78] sm:$0xff]  }
  0x15   : > { %556 = vrot.lane.b32.xlu0 %v1838_v3, %s1885_s28  ;;  %798 = vrot.lane.b32.xlu1 %v1839_v4, %s1886_s29  ;;  %v1859_v39 = vld [vmem:[%s2221_s2 + $0xa0] sm:$0xff]   ;;  %v1858_v41 = vld [vmem:[%s2221_s2 + $0x88] sm:$0xff]  }
  0x16   : > { %v1861_v42 = vld [vmem:[%s2221_s2 + $0x90] sm:$0xff]   ;;  %v1860_v44 = vld [vmem:[%s2221_s2 + $0xa8] sm:$0xff]   ;;  %v1862_v47 = vld [vmem:[%s2221_s2 + $0x98] sm:$0xff]  }
  0x17   : > { %1820 = vmatpush3.bf16.msra.mxu1 %v1838_v3  ;;  %1712 = vmatpush3.bf16.msra.mxu0 %v1838_v3  ;;  %v1863_v45 = vld [vmem:[%s2221_s2 + $0xb0] sm:$0xff]   ;;  %v1865_v49 = vld [vmem:[%s2221_s2 + $0xc0] sm:$0xff]   ;;  %v1864_v50 = vld [vmem:[%s2221_s2 + $0xb8] sm:$0xff]  }
  0x18   : > { %1721 = vmatprep.subr.bf16.mxu1 %v1839_v4  ;;  %v1867_v51 = vld [vmem:[%s2221_s2 + $0xe0] sm:$0xff]   ;;  %v1866_v52 = vld [vmem:[%s2221_s2 + $0xc8] sm:$0xff]   ;;  %v1869_v53 = vld [vmem:[%s2221_s2 + $0xd0] sm:$0xff]  }
  0x19   : > { %676 = vrot.lane.b32.xlu0 %v1838_v3, %s1886_s29  ;;  %796 = vrot.lane.b32.xlu1 %v1840_v5, %s1886_s29  ;;  %v1868_v55 = vld [vmem:[%s2221_s2 + $0xe8] sm:$0xff]   ;;  %v1871_v56 = vld [vmem:[%s2221_s2 + $0xf0] sm:$0xff]  }
  0x1a   : > { %1718 = vmatmul.mubr.msk.bf16.vlgmr.msra.gmra.mxu1 %vm311_vm0, %v1842_v6  ;;  %1714 = vmatmul.mubr.msk.bf16.vlgmr.msra.gmra.mxu0 %vm311_vm0, %v1847_v7  ;;  %v1870_v57 = vld [vmem:[%s2221_s2 + $0xd8] sm:$0xff]   ;;  %v1873_v58 = vld [vmem:[%s2221_s2 + $0x100] sm:$0xff]   ;;  %v1874_v60 = vld [vmem:[%s2221_s2 + $0x108] sm:$0xff]  }
  0x1b   : > { %1722 = vmatpush3.bf16.msra.mxu1 %v1839_v4  ;;  %1725 = vmatprep.mubr.msk.bf16.mxu1 %vm311_vm0, %v1843_v8  ;;  %v1872_v59 = vld [vmem:[%s2221_s2 + $0xf8] sm:$0xff]   ;;  %v1875_v61 = vld [vmem:[%s2221_s2 + $0x110] sm:$0xff]  }
  0x1c   : > { %1723 = vmatprep.subr.bf16.mxu1 %v1840_v5  ;;  %1737 = vmatprep.mubr.msk.bf16.mxu0 %vm311_vm0, %v1849_v9  ;;  %v1876_v62 = vld [vmem:[%s2221_s2 + $0x118] sm:$0xff]  }
  0x1d   : > { %918 = vrot.lane.b32.xlu0 %v1837_v2, %s1887_s12  ;;  %1038 = vrot.lane.b32.xlu1 %v1837_v2, %s1888_s13 }
  0x1f   : > { %1724 = vmatpush3.bf16.msra.mxu1 %v1840_v5 }
  0x21   : > { %916 = vrot.lane.b32.xlu0 %v1838_v3, %s1887_s12  ;;  %1036 = vrot.lane.b32.xlu1 %v1838_v3, %s1888_s13 }
  0x22   : > { %1726 = vmatmul.mubr.msk.bf16.vlgmr.msra.gmra.mxu1 %vm311_vm0, %v1844_v10 }
  0x23   : > { %1729 = vmatprep.mubr.msk.bf16.mxu1 %vm311_vm0, %v1846_v11 }
  0x25   : > { %1158 = vrot.lane.b32.xlu0 %v1839_v4, %s1888_s13  ;;  %1278 = vrot.lane.b32.xlu1 %v1837_v2, %s1889_s20 }
  0x29   : > { %1156 = vrot.lane.b32.xlu0 %v1840_v5, %s1888_s13  ;;  %1276 = vrot.lane.b32.xlu1 %v1838_v3, %s1889_s20 }
  0x2a   : > { %1730 = vmatmul.mubr.msk.bf16.gmra.mxu1 %vm311_vm0, %v1848_v12 }
  0x2b   : > { %1749 = vmatprep.mubr.msk.bf16.mxu1 %vm311_vm0, %v1851_v13 }
  0x2d   : > { %234 = vperm.xlu1 %1836, %v220_v14   ;;  %229 = vperm.xlu0 %1835, %v219_v15  }
  0x31   : > { %239 = vperm.xlu1 %1836, %v221_v17   ;;  %244 = vperm.xlu0 %1835, %v222_v18  }
  0x35   : > { %249 = vperm.xlu1 %1836, %v223_v19   ;;  %254 = vperm.xlu0 %1835, %v224_v20  }
  0x39   : > { %259 = vperm.xlu1 %1836, %v225_v21   ;;  %264 = vperm.xlu0 %1835, %v226_v22  }
  0x83   : > { %v559_v23 = vpop.permute.xlu0 %558  ;;  %v679_v24 = vpop.permute.xlu1 %678 }
  0x84   : > { %1733 = vmatprep.subr.bf16.mxu0 %v559_v23  ;;  %1745 = vmatprep.subr.bf16.mxu1 %v679_v24 }
  0x85   : > { %1734 = vmatpush3.bf16.msra.mxu0 %v559_v23  ;;  %1746 = vmatpush3.bf16.msra.mxu1 %v679_v24 }
  0x87   : > { %v557_v25 = vpop.permute.xlu0 %556  ;;  %v799_v26 = vpop.permute.xlu1 %798 }
  0x88   : > { %1735 = vmatprep.subr.bf16.mxu0 %v557_v25 }
  0x89   : > { %1736 = vmatpush3.bf16.msra.mxu0 %v557_v25 }
  0x8a   : > { %1757 = vmatprep.subr.bf16.mxu0 %v799_v26 }
  0x8b   : > { %v677_v29 = vpop.permute.xlu0 %676  ;;  %v797_v30 = vpop.permute.xlu1 %796 }
  0x8c   : > { %1738 = vmatmul.mubr.msk.bf16.vlgmr.msra.gmra.mxu0 %vm311_vm0, %v1850_v27  ;;  %1747 = vmatprep.subr.bf16.mxu1 %v677_v29 }
  0x8d   : > { %1748 = vmatpush3.bf16.msra.mxu1 %v677_v29  ;;  %1758 = vmatpush3.bf16.msra.mxu0 %v799_v26 }
  0x8e   : > { %1741 = vmatprep.mubr.msk.bf16.mxu0 %vm311_vm0, %v1853_v28  ;;  %1759 = vmatprep.subr.bf16.mxu0 %v797_v30 }
  0x8f   : > { %v919_v33 = vpop.permute.xlu0 %918  ;;  %v1039_v34 = vpop.permute.xlu1 %1038 }
  0x90   : > { %1750 = vmatmul.mubr.msk.bf16.vlgmr.msra.gmra.mxu1 %vm311_vm0, %v1852_v31  ;;  %1769 = vmatprep.subr.bf16.mxu1 %v919_v33 }
  0x91   : > { %1760 = vmatpush3.bf16.msra.mxu0 %v797_v30  ;;  %1753 = vmatprep.mubr.msk.bf16.mxu1 %vm311_vm0, %v1855_v32 }
  0x92   : > { %1770 = vmatpush3.bf16.msra.mxu1 %v919_v33  ;;  %1781 = vmatprep.subr.bf16.mxu0 %v1039_v34 }
  0x93   : > { %v917_v37 = vpop.permute.xlu0 %916  ;;  %v1037_v43 = vpop.permute.xlu1 %1036 }
  0x94   : > { %1742 = vmatmul.mubr.msk.bf16.gmra.mxu0 %vm311_vm0, %v1854_v35  ;;  %1771 = vmatprep.subr.bf16.mxu1 %v917_v37 }
  0x95   : > { %1761 = vmatprep.mubr.msk.bf16.mxu0 %vm311_vm0, %v1857_v36 }
  0x96   : > { %1772 = vmatpush3.bf16.msra.mxu1 %v917_v37 }
  0x97   : > { %v1159_v40 = vpop.permute.xlu0 %1158  ;;  %v1279_v46 = vpop.permute.xlu1 %1278 }
  0x98   : > { %1754 = vmatmul.mubr.msk.bf16.gmra.mxu1 %vm311_vm0, %v1856_v38  ;;  %1793 = vmatprep.subr.bf16.mxu1 %v1159_v40 }
  0x99   : > { %1773 = vmatprep.mubr.msk.bf16.mxu1 %vm311_vm0, %v1859_v39 }
  0x9b   : > { %v1157_v48 = vpop.permute.xlu0 %1156  ;;  %v1277_v54 = vpop.permute.xlu1 %1276 }
  0x9c   : > { %1762 = vmatmul.mubr.msk.bf16.vlgmr.msra.gmra.mxu0 %vm311_vm0, %v1858_v41 }
  0x9d   : > { %1782 = vmatpush3.bf16.msra.mxu0 %v1039_v34  ;;  %1765 = vmatprep.mubr.msk.bf16.mxu0 %vm311_vm0, %v1861_v42 }
  0x9e   : > { %1783 = vmatprep.subr.bf16.mxu0 %v1037_v43 }
  0xa0   : > { %1774 = vmatmul.mubr.msk.bf16.vlgmr.msra.gmra.mxu1 %vm311_vm0, %v1860_v44 }
  0xa1   : > { %1784 = vmatpush3.bf16.msra.mxu0 %v1037_v43  ;;  %1777 = vmatprep.mubr.msk.bf16.mxu1 %vm311_vm0, %v1863_v45 }
  0xa2   : > { %1794 = vmatpush3.bf16.msra.mxu1 %v1159_v40  ;;  %1805 = vmatprep.subr.bf16.mxu0 %v1279_v46 }
  0xa3   : > { %1795 = vmatprep.subr.bf16.mxu1 %v1157_v48 }
  0xa4   : > { %1766 = vmatmul.mubr.msk.bf16.gmra.mxu0 %vm311_vm0, %v1862_v47 }
  0xa5   : > { %1785 = vmatprep.mubr.msk.bf16.mxu0 %vm311_vm0, %v1865_v49 }
  0xa6   : > { %1796 = vmatpush3.bf16.msra.mxu1 %v1157_v48 }
  0xa8   : > { %1778 = vmatmul.mubr.msk.bf16.gmra.mxu1 %vm311_vm0, %v1864_v50  ;;  %v235_v31 = vpop.permute.xlu1 %234  ;;  %v230_v36 = vpop.permute.xlu0 %229 }
  0xa9   : > { %1797 = vmatprep.mubr.msk.bf16.mxu1 %vm311_vm0, %v1867_v51 }
  0xac   : > { %1786 = vmatmul.mubr.msk.bf16.vlgmr.msra.gmra.mxu0 %vm311_vm0, %v1866_v52  ;;  %v240_v39 = vpop.permute.xlu1 %239  ;;  %v245_v44 = vpop.permute.xlu0 %244 }
  0xad   : > { %1806 = vmatpush3.bf16.msra.mxu0 %v1279_v46  ;;  %1789 = vmatprep.mubr.msk.bf16.mxu0 %vm311_vm0, %v1869_v53 }
  0xae   : > { %1807 = vmatprep.subr.bf16.mxu0 %v1277_v54 }
  0xb0   : > { %1798 = vmatmul.mubr.msk.bf16.vlgmr.msra.gmra.mxu1 %vm311_vm0, %v1868_v55  ;;  %v250_v47 = vpop.permute.xlu1 %249  ;;  %v255_v53 = vpop.permute.xlu0 %254 }
  0xb1   : > { %1808 = vmatpush3.bf16.msra.mxu0 %v1277_v54  ;;  %1801 = vmatprep.mubr.msk.bf16.mxu1 %vm311_vm0, %v1871_v56 }
  0xb4   : > { %1790 = vmatmul.mubr.msk.bf16.gmra.mxu0 %vm311_vm0, %v1870_v57  ;;  %v260_v57 = vpop.permute.xlu1 %259 }
  0xb5   : > { %1809 = vmatprep.mubr.msk.bf16.mxu0 %vm311_vm0, %v1873_v58 }
  0xb8   : > { %1802 = vmatmul.mubr.msk.bf16.gmra.mxu1 %vm311_vm0, %v1872_v59 }
  0xbc   : > { %1810 = vmatmul.mubr.msk.bf16.vlgmr.msra.gmra.mxu0 %vm311_vm0, %v1874_v60 }
  0xbd   : > { %1813 = vmatprep.mubr.msk.bf16.mxu0 %vm311_vm0, %v1875_v61 }
  0xc4   : > { %1814 = vmatmul.mubr.msk.bf16.gmra.mxu0 %vm311_vm0, %v1876_v62 }
  0xda   : > { %v2101_v63 = vpop.f32.mrf.mxu1  ;;  %v1715_v7 = vpop.f32.mrf.mxu0 }
  0xdb   : > { %v391_v50 = vadd.f32 %v1715_v7, %v240_v39  ;;  %v265_v39 = vpop.permute.xlu0 %264 }
  0xdc   : > { %v2103_v0 = vpop.f32.mrf.mxu1  ;;  %v358_v9 = vpop.f32.mrf.mxu0 }
  0xdd   : > { %v389_v54 = vadd.f32 %v358_v9, %v230_v36  ;;  %v393_v36 = vadd.f32 %v2103_v0, %v250_v47 }
  0xde   : > { %v2105_v1 = vpop.f32.mrf.mxu1  ;;  %v1716_v11 = vpop.f32.mrf.mxu0 }
  0xdf   : > { %v392_v58 = vadd.f32 %v1716_v11, %v245_v44 }
  0xe0   : > { %v2107_v2 = vpop.f32.mrf.mxu1  ;;  %v361_v13 = vpop.f32.mrf.mxu0 }
  0xe1   : > { %v390_v62 = vadd.f32 %v361_v13, %v235_v31 }
  0xe2   : > { %v1727_v3 = vpop.f32.mrf.mxu1 }
  0xe3   : > { %v521_v59 = vadd.f32 %v1727_v3, %v391_v50 }
  0xe4   : > { %v488_v4 = vpop.f32.mrf.mxu1 }
  0xe6   : > { %v2109_v5 = vpop.f32.mrf.mxu1 }
  0xe8   : > { %v2111_v6 = vpop.f32.mrf.mxu1 }
  0xe9   : > { %v520_v3 = vadd.f32 %v2111_v6, %v390_v62 }
  0xea   : > { %v2113_v8 = vpop.f32.mrf.mxu1 }
  0xec   : > { %v2115_v10 = vpop.f32.mrf.mxu1 }
  0xee   : > { %v2117_v12 = vpop.f32.mrf.mxu1 }
  0xf0   : > { %v2119_v15 = vpop.f32.mrf.mxu1 }
 0x14c   : > { %v1739_v14 = vpop.f32.mrf.mxu0 }
 0x14e   : > { %v608_v16 = vpop.f32.mrf.mxu0 }
 0x150   : > { %v1740_v17 = vpop.f32.mrf.mxu0  ;;  %v1751_v18 = vpop.f32.mrf.mxu1 }
 0x152   : > { %v2121_v19 = vpop.f32.mrf.mxu0  ;;  %v728_v20 = vpop.f32.mrf.mxu1 }
 0x154   : > { %v2123_v21 = vpop.f32.mrf.mxu0  ;;  %v2125_v22 = vpop.f32.mrf.mxu1 }
 0x156   : > { %v2127_v23 = vpop.f32.mrf.mxu0  ;;  %v2129_v24 = vpop.f32.mrf.mxu1 }
 0x158   : > { %v2131_v25 = vpop.f32.mrf.mxu0  ;;  %v2133_v26 = vpop.f32.mrf.mxu1 }
 0x15a   : > { %v2135_v27 = vpop.f32.mrf.mxu0  ;;  %v2137_v28 = vpop.f32.mrf.mxu1 }
 0x15c   : > { %v2139_v29 = vpop.f32.mrf.mxu1  ;;  %v1763_v30 = vpop.f32.mrf.mxu0 }
 0x15e   : > { %v2141_v32 = vpop.f32.mrf.mxu1  ;;  %v848_v33 = vpop.f32.mrf.mxu0 }
 0x15f   : > { %2224 = vst [vmem:[#allocation2_spill] sm:$0xff] %v2141_v32  ;;  %v519_v32 = vadd.f32 %v488_v4, %v389_v54  ;;  %v394_v4 = vadd.f32 %v2107_v2, %v255_v53 }
 0x160   : > { %v1764_v34 = vpop.f32.mrf.mxu0  ;;  %v1775_v35 = vpop.f32.mrf.mxu1 }
 0x162   : > { %v2143_v37 = vpop.f32.mrf.mxu0  ;;  %v968_v38 = vpop.f32.mrf.mxu1 }
 0x164   : > { %v2145_v40 = vpop.f32.mrf.mxu0  ;;  %v1776_v41 = vpop.f32.mrf.mxu1 }
 0x166   : > { %v2147_v42 = vpop.f32.mrf.mxu0  ;;  %v2149_v43 = vpop.f32.mrf.mxu1 }
 0x167   : > { %2225 = vst [vmem:[#allocation3_spill] sm:$0xff] %v2147_v42 }
 0x168   : > { %v2151_v45 = vpop.f32.mrf.mxu0  ;;  %v2153_v46 = vpop.f32.mrf.mxu1 }
 0x169   : > { %2226 = vst [vmem:[#allocation4_spill] sm:$0xff] %v2151_v45  ;;  %2227 = vst [vmem:[#allocation5_spill] sm:$0xff] %v2153_v46  ;;  %v641_v45 = vadd.f32 %v1739_v14, %v521_v59  ;;  %v522_v46 = vadd.f32 %v2109_v5, %v392_v58  ;;  %v640_v5 = vadd.f32 %v2121_v19, %v520_v3  ;;  %v2234_v59 = vld [vmem:[#allocation2_spill] sm:$0xff] }
 0x16a   : > { %v2155_v48 = vpop.f32.mrf.mxu0  ;;  %v2157_v49 = vpop.f32.mrf.mxu1 }
 0x16b   : > { %2228 = vst [vmem:[#allocation6_spill] sm:$0xff] %v2155_v48  ;;  %2229 = vst [vmem:[#allocation7_spill] sm:$0xff] %v2157_v49  ;;  %v395_v48 = vadd.f32 %v2101_v63, %v260_v57  ;;  %v761_v9 = vadd.f32 %v1751_v18, %v641_v45  ;;  %v642_v11 = vadd.f32 %v1740_v17, %v522_v46 }
 0x16c   : > { %v2159_v51 = vpop.f32.mrf.mxu1  ;;  %v1787_v52 = vpop.f32.mrf.mxu0  ;;  %v396_v63 = vadd.f32 %v2105_v1, %v265_v39  ;;  %v523_v17 = vadd.f32 %v2115_v10, %v393_v36  ;;  %v524_v46 = vadd.f32 %v2119_v15, %v394_v4 }
 0x16d   : > { %2230 = vst [vmem:[#allocation8_spill] sm:$0xff] %v2159_v51  ;;  %v639_v51 = vadd.f32 %v608_v16, %v519_v32  ;;  %v881_v13 = vadd.f32 %v1763_v30, %v761_v9  ;;  %v525_v14 = vadd.f32 %v2113_v8, %v395_v48  ;;  %v762_v18 = vadd.f32 %v2125_v22, %v642_v11 }
 0x16e   : > { %v2161_v55 = vpop.f32.mrf.mxu1  ;;  %v1088_v56 = vpop.f32.mrf.mxu0  ;;  %v760_v30 = vadd.f32 %v2129_v24, %v640_v5  ;;  %v526_v8 = vadd.f32 %v2117_v12, %v396_v63  ;;  %v643_v19 = vadd.f32 %v2127_v23, %v523_v17 }
 0x16f   : > { %2231 = vst [vmem:[#allocation9_spill] sm:$0xff] %v2161_v55  ;;  %v759_v44 = vadd.f32 %v728_v20, %v639_v51  ;;  %v1001_v32 = vadd.f32 %v1775_v35, %v881_v13  ;;  %v645_v6 = vadd.f32 %v2123_v21, %v525_v14  ;;  %v882_v2 = vadd.f32 %v1764_v34, %v762_v18 }
 0x170   : > { %v1788_v60 = vpop.f32.mrf.mxu0  ;;  %v1799_v61 = vpop.f32.mrf.mxu1  ;;  %v880_v10 = vadd.f32 %v2143_v37, %v760_v30  ;;  %v646_v24 = vadd.f32 %v2131_v25, %v526_v8  ;;  %v763_v34 = vadd.f32 %v2137_v28, %v643_v19  ;;  %v644_v51 = vadd.f32 %v2135_v27, %v524_v46  ;;  %v2233_v53 = vld [vmem:[#allocation5_spill] sm:$0xff] }
 0x171   : > { %v879_v0 = vadd.f32 %v848_v33, %v759_v44  ;;  %v1121_v1 = vadd.f32 %v1787_v52, %v1001_v32  ;;  %v765_v22 = vadd.f32 %v2133_v26, %v645_v6  ;;  %v1002_v21 = vadd.f32 %v1776_v41, %v882_v2  ;;  %v2232_v41 = vld [vmem:[#allocation3_spill] sm:$0xff] }
 0x172   : > { %v1091_v49 = vpop.f32.mrf.mxu0  ;;  %v1208_v7 = vpop.f32.mrf.mxu1  ;;  %v1000_v15 = vadd.f32 %v2149_v43, %v880_v10  ;;  %v766_v37 = vadd.f32 %v2139_v29, %v646_v24  ;;  %v883_v52 = vadd.f32 %v2232_v41, %v763_v34  ;;  %v764_v43 = vadd.f32 %v2234_v59, %v644_v51  ;;  %v2236_v62 = vld [vmem:[#allocation7_spill] sm:$0xff]  ;;  %v2237_v36 = vld [vmem:[#allocation6_spill] sm:$0xff] }
 0x173   : > { %v999_v45 = vadd.f32 %v968_v38, %v879_v0  ;;  %v1241_v48 = vadd.f32 %v1799_v61, %v1121_v1  ;;  %v885_v12 = vadd.f32 %v2145_v40, %v765_v22  ;;  %v1122_v23 = vadd.f32 %v1788_v60, %v1002_v21  ;;  %v2235_v60 = vld [vmem:[#allocation4_spill] sm:$0xff] }
 0x174   : > { %v1791_v55 = vpop.f32.mrf.mxu0  ;;  %v1800_v42 = vpop.f32.mrf.mxu1  ;;  %v886_v61 = vadd.f32 %v2235_v60, %v766_v37  ;;  %v884_v11 = vadd.f32 %v2237_v36, %v764_v43  ;;  %v2238_v3 = vld [vmem:[#allocation8_spill] sm:$0xff] }
 0x175   : > { %v1119_v47 = vadd.f32 %v1088_v56, %v999_v45  ;;  %v1005_v25 = vadd.f32 %v2233_v53, %v885_v12  ;;  %v1120_v56 = vadd.f32 %v1091_v49, %v1000_v15  ;;  %v1242_v40 = vadd.f32 %v1800_v42, %v1122_v23 }
 0x176   : > { %v1104_v31 = vpop.f32.mrf.mxu0  ;;  %v1211_v16 = vpop.f32.mrf.mxu1  ;;  %v1006_v44 = vadd.f32 %v2238_v3, %v886_v61  ;;  %v2239_v0 = vld [vmem:[#allocation9_spill] sm:$0xff] }
 0x177   : > { %v1239_v50 = vadd.f32 %v1208_v7, %v1119_v47  ;;  %v1003_v7 = vadd.f32 %v2236_v62, %v883_v52  ;;  %v1125_v39 = vadd.f32 %v1791_v55, %v1005_v25  ;;  %v1240_v29 = vadd.f32 %v1211_v16, %v1120_v56 }
 0x178   : > { %v1792_v20 = vpop.f32.mrf.mxu0  ;;  %v1803_v33 = vpop.f32.mrf.mxu1  ;;  %v1004_v16 = vadd.f32 %v2239_v0, %v884_v11 }
 0x179   : > { %v1123_v13 = vadd.f32 %v1104_v31, %v1003_v7  ;;  %v1245_v55 = vadd.f32 %v1803_v33, %v1125_v39  ;;  %v1126_v32 = vadd.f32 %v1792_v20, %v1006_v44 }
 0x17a   : > { %v1107_v35 = vpop.f32.mrf.mxu0  ;;  %v1224_v54 = vpop.f32.mrf.mxu1 }
 0x17b   : > { %v1243_v6 = vadd.f32 %v1224_v54, %v1123_v13  ;;  %v1124_v45 = vadd.f32 %v1107_v35, %v1004_v16 }
 0x17c   : > { %v1811_v38 = vpop.f32.mrf.mxu0  ;;  %v1804_v4 = vpop.f32.mrf.mxu1 }
 0x17d   : > { %v1361_v26 = vadd.f32 %v1811_v38, %v1241_v48  ;;  %v1246_v46 = vadd.f32 %v1804_v4, %v1126_v32 }
 0x17e   : > { %v1328_v28 = vpop.f32.mrf.mxu0  ;;  %v1227_v1 = vpop.f32.mrf.mxu1 }
 0x17f   : > { %v1369_v57 = vmax.f32 %v1361_v26, 0.0  ;;  %v1359_v58 = vadd.f32 %v1328_v28, %v1239_v50  ;;  %v1244_v10 = vadd.f32 %v1227_v1, %v1124_v45 }
 0x180   : > { %v1812_v27 = vpop.f32.mrf.mxu0 }
 0x181   : > { %v1649_v9 = vpack.c.bf16 %v1369_v57, %v1369_v57  ;;  %v1367_v49 = vmax.f32 %v1359_v58, 0.0  ;;  %v1362_v42 = vadd.f32 %v1812_v27, %v1242_v40 }
 0x182   : > { %v1331_v63 = vpop.f32.mrf.mxu0 }
 0x183   : > { %1410 = vst.msk [vmem:[%s2195_s23 + $0x8] sm:$0xf] %vm1407_vm1, %v1649_v9  ;;  %v1647_v14 = vpack.c.bf16 %v1367_v49, %v1367_v49  ;;  %v1370_v5 = vmax.f32 %v1362_v42, 0.0  ;;  %v1360_v18 = vadd.f32 %v1331_v63, %v1240_v29 }
 0x184   : > { %v1815_v17 = vpop.f32.mrf.mxu0 }
 0x185   : > { %1408 = vst.msk [vmem:[%s2195_s23] sm:$0xf] %vm1407_vm1, %v1647_v14  ;;  %v1650_v30 = vpack.c.bf16 %v1370_v5, %v1370_v5  ;;  %v1368_v2 = vmax.f32 %v1360_v18, 0.0  ;;  %v1365_v31 = vadd.f32 %v1815_v17, %v1245_v55 }
 0x186   : > { %v1344_v8 = vpop.f32.mrf.mxu0 }
 0x187   : > { %1411 = vst.msk [vmem:[%s2195_s23 + $0xc] sm:$0xf] %vm1407_vm1, %v1650_v30  ;;  %v1648_v19 = vpack.c.bf16 %v1368_v2, %v1368_v2  ;;  %v1373_v22 = vmax.f32 %v1365_v31, 0.0  ;;  %v1363_v20 = vadd.f32 %v1344_v8, %v1243_v6 }
 0x188   : > { %v1816_v33 = vpop.f32.mrf.mxu0 }
 0x189   : > { %1409 = vst.msk [vmem:[%s2195_s23 + $0x4] sm:$0xf] %vm1407_vm1, %v1648_v19  ;;  %v1653_v21 = vpack.c.bf16 %v1373_v22, %v1373_v22  ;;  %v1371_v47 = vmax.f32 %v1363_v20, 0.0  ;;  %v1366_v48 = vadd.f32 %v1816_v33, %v1246_v46 }
 0x18a   : > { %v1347_v24 = vpop.f32.mrf.mxu0 }
 0x18b   : > { %1414 = vst.msk [vmem:[%s2195_s23 + $0x18] sm:$0xf] %vm1407_vm1, %v1653_v21  ;;  %v1651_v35 = vpack.c.bf16 %v1371_v47, %v1371_v47  ;;  %v1374_v34 = vmax.f32 %v1366_v48, 0.0  ;;  %v1364_v12 = vadd.f32 %v1347_v24, %v1244_v10 }
 0x18d   : > { %1412 = vst.msk [vmem:[%s2195_s23 + $0x10] sm:$0xf] %vm1407_vm1, %v1651_v35  ;;  %v1654_v38 = vpack.c.bf16 %v1374_v34, %v1374_v34  ;;  %v1372_v15 = vmax.f32 %v1364_v12, 0.0 }
 0x18f   : > { %1415 = vst.msk [vmem:[%s2195_s23 + $0x1c] sm:$0xf] %vm1407_vm1, %v1654_v38  ;;  %v1652_v23 = vpack.c.bf16 %v1372_v15, %v1372_v15 }
 0x191   : > { %1413 = vst.msk [vmem:[%s2195_s23 + $0x14] sm:$0xf] %vm1407_vm1, %v1652_v23 }
 0x192 PF: > { %s14_s15 = sadd.s32 1, %s1883_s15  }
 0x193   : > { %p11_p4 = scmp.ge.s32.totalorder %s14_s15, 4  }
 0x195   :  { %13 = sbr.rel (!%p11_p4) target bundleno = 1 (0x1), region = 77 }

// kernel: conv_vae_forward.9
= control target key start
LH: loop header
LB: loop body
LE: loop exit
PB: predicated region body
PF: predicated region fallthrough
CT: control target
= control target key end

     0   :  { %s3168_s15 = smov 0   ;;  %s3892_s0 = inlined_call_operand.vmem [shape: bf16[2,64,19], index: 0, kind: input, shape index: {}]   ;;  %s3893_s1 = inlined_call_operand.vmem [shape: bf16[2,64,19], index: 1, kind: input, shape index: {}]   ;;  %s3894_s2 = inlined_call_operand.vmem [shape: bf16[9,128,64], index: 2, kind: input, shape index: {}]   ;;  %s3895_s3 = inlined_call_operand.vmem [shape: f32[128,1], index: 3, kind: input, shape index: {}]   ;;  %s3896_s4 = inlined_call_operand.vmem [shape: bf16[2,128,12], index: 4, kind: output, shape index: {}]  }
   0x1 LB: > { %s2373_s16 = sadd.s32 4294967295, %s3135_s15   ;;  %p2377_p0 = scmp.ge.s32.totalorder %s3135_s15, 1  ;;  %s3135_s15 = sphi %s3168_s15, %s14_s15  }
   0x2   : > { %p172_p1 = scmp.lt.s32.totalorder %s3135_s15, 3 }
   0x4   : > { %p173_p2 = pnand %p2377_p0, %p172_p1 }
   0x6   : > { %176 = sbr.rel (%p173_p2) target bundleno = 474 (0x1da), region = 36 }
   0xb   : > { %p203_p3 = scmp.lt.s32.totalorder %s2373_s16, 1  ;;  %v3057_v0 = vld [vmem:[%s3894_s2 + $0x20] sm:$0xff]   ;;  %vm403_vm0 = vcmask 523264   ;;  %s3137_s23 = smov 127   ;;  %v3058_v8 = vld [vmem:[%s3894_s2 + $0x28] sm:$0xff]   ;;  %v3059_v9 = vld [vmem:[%s3894_s2 + $0x30] sm:$0xff]  }
   0xc   : > { %2825 = vmatprep.mubr.msk.bf16.mxu1 %vm403_vm0, %v3057_v0  ;;  %s3138_s27 = smov 125   ;;  %v3065_v6 = vld [vmem:[%s3894_s2] sm:$0xff]   ;;  %v3067_v11 = vld [vmem:[%s3894_s2 + $0x8] sm:$0xff]   ;;  %v3069_v12 = vld [vmem:[%s3894_s2 + $0x10] sm:$0xff]   ;;  %s3139_s20 = smov 124   ;;  %v3141_v20 = vmov 0  }
   0xd   : > { %s3960_s16 = smov (!%p203_p3, %s2373_s16), 1  ;;  %2817 = vmatprep.mubr.msk.bf16.mxu0 %vm403_vm0, %v3065_v6  ;;  %v3060_v14 = vld [vmem:[%s3894_s2 + $0x38] sm:$0xff]   ;;  %v3061_v15 = vld [vmem:[%s3894_s2 + $0x40] sm:$0xff]   ;;  %v3062_v18 = vld [vmem:[%s3894_s2 + $0x48] sm:$0xff]   ;;  %3048 = vset.pattern.permute.xlu1 %v3141_v20  ;;  %s3142_s6 = smov 121   ;;  %vm2289_vm1 = vcmask 93184  }
   0xe   : > { %s2682_s19 = sshll.u32 %s3960_s16, 5  ;;  %v3071_v16 = vld [vmem:[%s3894_s2 + $0x18] sm:$0xff]   ;;  %v3073_v17 = vld [vmem:[%s3894_s2 + $0x80] sm:$0xff]   ;;  %v3063_v19 = vld [vmem:[%s3894_s2 + $0x50] sm:$0xff]   ;;  %3047 = vset.pattern.permute.xlu0 %v3141_v20  ;;  %s2684_s11 = sshll.u32 %s3960_s16, 6 }
   0xf   : > { %s207_s22 = scalar_lea.vmem %s3892_s0, %s2682_s19  ;;  %s3197_s26 = scalar_lea.vmem %s3893_s1, %s2682_s19  ;;  %v3064_v21 = vld [vmem:[%s3894_s2 + $0x58] sm:$0xff]   ;;  %v3066_v22 = vld [vmem:[%s3894_s2 + $0x60] sm:$0xff]   ;;  %v3068_v23 = vld [vmem:[%s3894_s2 + $0x68] sm:$0xff]  }
  0x10   : > { %v3186_v1 = vld [vmem:[%s207_s22 + $0x18] sm:$0xff]   ;;  %v3188_v2 = vld [vmem:[%s207_s22 + $0x10] sm:$0xff]   ;;  %v3191_v3 = vld [vmem:[%s207_s22 + $0x8] sm:$0xff]   ;;  %s3797_s13 = scalar_lea.vmem %s3896_s4, %s2684_s11 }
  0x11   : > { %830 = vrot.lane.b32.xlu0 %v3186_v1, %s3137_s23  ;;  %3025 = vmatprep.subr.bf16.mxu1 %v3186_v1  ;;  %v3202_v4 = vld [vmem:[%s207_s22] sm:$0xff]   ;;  %v3211_v5 = vld [vmem:[%s3197_s26 + $0x18] sm:$0xff]   ;;  %v3054_v7 = vld [vmem:[%s3197_s26 + $0x10] sm:$0xff]  }
  0x12   : > { %3029 = vmatpush3.bf16.msra.mxu1 %v3186_v1  ;;  %2809 = vmatprep.subr.bf16.mxu0 %v3186_v1  ;;  %v3055_v10 = vld [vmem:[%s3197_s26 + $0x8] sm:$0xff]   ;;  %v3056_v13 = vld [vmem:[%s3197_s26] sm:$0xff]   ;;  %v3070_v24 = vld [vmem:[%s3894_s2 + $0x70] sm:$0xff]  }
  0x13   : > { %826 = vrot.lane.b32.xlu1 %v3191_v3, %s3137_s23  ;;  %3026 = vmatprep.subr.bf16.mxu1 %v3188_v2  ;;  %v3072_v25 = vld [vmem:[%s3894_s2 + $0x78] sm:$0xff]   ;;  %v3076_v26 = vld [vmem:[%s3894_s2 + $0xc0] sm:$0xff]   ;;  %v220_v28 = vld [vmem:[%s3895_s3 + $0x8] sm:$0xff] }
  0x14   : > { %2810 = vmatpush3.bf16.msra.mxu0 %v3186_v1  ;;  %v219_v27 = vld [vmem:[%s3895_s3] sm:$0xff]  ;;  %v222_v29 = vld [vmem:[%s3895_s3 + $0x18] sm:$0xff]  ;;  %v221_v30 = vld [vmem:[%s3895_s3 + $0x10] sm:$0xff] }
  0x15   : > { %828 = vrot.lane.b32.xlu0 %v3188_v2, %s3137_s23  ;;  %2811 = vmatprep.subr.bf16.mxu0 %v3188_v2  ;;  %v224_v31 = vld [vmem:[%s3895_s3 + $0x28] sm:$0xff]  ;;  %v223_v32 = vld [vmem:[%s3895_s3 + $0x20] sm:$0xff]  ;;  %v226_v33 = vld [vmem:[%s3895_s3 + $0x38] sm:$0xff] }
  0x16   : > { %3030 = vmatpush3.bf16.msra.mxu1 %v3188_v2  ;;  %v225_v34 = vld [vmem:[%s3895_s3 + $0x30] sm:$0xff]  ;;  %v228_v35 = vld [vmem:[%s3895_s3 + $0x48] sm:$0xff]  ;;  %v227_v36 = vld [vmem:[%s3895_s3 + $0x40] sm:$0xff] }
  0x17   : > { %824 = vrot.lane.b32.xlu1 %v3202_v4, %s3137_s23  ;;  %3027 = vmatprep.subr.bf16.mxu1 %v3191_v3  ;;  %s3140_s23 = smov 122   ;;  %v230_v37 = vld [vmem:[%s3895_s3 + $0x58] sm:$0xff]  ;;  %v229_v38 = vld [vmem:[%s3895_s3 + $0x50] sm:$0xff]  ;;  %v232_v39 = vld [vmem:[%s3895_s3 + $0x68] sm:$0xff] }
  0x18   : > { %2812 = vmatpush3.bf16.msra.mxu0 %v3188_v2  ;;  %v231_v40 = vld [vmem:[%s3895_s3 + $0x60] sm:$0xff]  ;;  %v234_v41 = vld [vmem:[%s3895_s3 + $0x78] sm:$0xff]  ;;  %v233_v42 = vld [vmem:[%s3895_s3 + $0x70] sm:$0xff] }
  0x19   : > { %1036 = vrot.lane.b32.xlu0 %v3186_v1, %s3138_s27  ;;  %2813 = vmatprep.subr.bf16.mxu0 %v3191_v3  ;;  %v3074_v50 = vld [vmem:[%s3894_s2 + $0x88] sm:$0xff]   ;;  %v3075_v52 = vld [vmem:[%s3894_s2 + $0x90] sm:$0xff]   ;;  %v3077_v56 = vld [vmem:[%s3894_s2 + $0x98] sm:$0xff]  }
  0x1a   : > { %3031 = vmatpush3.bf16.msra.mxu1 %v3191_v3  ;;  %v3078_v57 = vld [vmem:[%s3894_s2 + $0xc8] sm:$0xff]   ;;  %v3079_v58 = vld [vmem:[%s3894_s2 + $0xa0] sm:$0xff]   ;;  %v3080_v59 = vld [vmem:[%s3894_s2 + $0xd0] sm:$0xff]  }
  0x1b   : > { %1242 = vrot.lane.b32.xlu1 %v3211_v5, %s3138_s27  ;;  %3028 = vmatprep.subr.bf16.mxu1 %v3202_v4  ;;  %v3081_v63 = vld [vmem:[%s3894_s2 + $0xa8] sm:$0xff]   ;;  %v3082_v0 = vld [vmem:[%s3894_s2 + $0xd8] sm:$0xff]   ;;  %v3095_v20 = vld [vmem:[%s3894_s2 + $0x120] sm:$0xff]  }
  0x1c   : > { %2814 = vmatpush3.bf16.msra.mxu0 %v3191_v3  ;;  %v3085_v6 = vld [vmem:[%s3894_s2 + $0xb8] sm:$0xff]  }
  0x1d   : > { %1034 = vrot.lane.b32.xlu0 %v3188_v2, %s3138_s27  ;;  %2815 = vmatprep.subr.bf16.mxu0 %v3202_v4 }
  0x1e   : > { %3032 = vmatpush3.bf16.msra.mxu1 %v3202_v4 }
  0x1f   : > { %1240 = vrot.lane.b32.xlu1 %v3054_v7, %s3138_s27  ;;  %2833 = vmatprep.subr.bf16.mxu1 %v3211_v5 }
  0x20   : > { %2816 = vmatpush3.bf16.msra.mxu0 %v3202_v4 }
  0x21   : > { %1032 = vrot.lane.b32.xlu0 %v3191_v3, %s3138_s27  ;;  %2826 = vmatmul.mubr.msk.bf16.vlgmr.msra.gmra.mxu1 %vm403_vm0, %v3058_v8  ;;  %v3087_v8 = vld [vmem:[%s3894_s2 + $0xf0] sm:$0xff]  }
  0x22   : > { %2834 = vmatpush3.bf16.msra.mxu1 %v3211_v5  ;;  %2829 = vmatprep.mubr.msk.bf16.mxu1 %vm403_vm0, %v3059_v9  ;;  %v3088_v9 = vld [vmem:[%s3894_s2 + $0x100] sm:$0xff]  }
  0x23   : > { %1238 = vrot.lane.b32.xlu1 %v3055_v10, %s3138_s27  ;;  %2835 = vmatprep.subr.bf16.mxu1 %v3054_v7 }
  0x24   : > { %2818 = vmatmul.mubr.msk.bf16.vlgmr.msra.gmra.mxu0 %vm403_vm0, %v3067_v11  ;;  %v3089_v11 = vld [vmem:[%s3894_s2 + $0xf8] sm:$0xff]  }
  0x25   : > { %1030 = vrot.lane.b32.xlu0 %v3202_v4, %s3138_s27  ;;  %2821 = vmatprep.mubr.msk.bf16.mxu0 %vm403_vm0, %v3069_v12  ;;  %v3090_v12 = vld [vmem:[%s3894_s2 + $0x108] sm:$0xff]  }
  0x26   : > { %2836 = vmatpush3.bf16.msra.mxu1 %v3054_v7 }
  0x27   : > { %1236 = vrot.lane.b32.xlu1 %v3056_v13, %s3138_s27  ;;  %2837 = vmatprep.subr.bf16.mxu1 %v3055_v10 }
  0x29   : > { %1448 = vrot.lane.b32.xlu0 %v3186_v1, %s3139_s20  ;;  %2830 = vmatmul.mubr.msk.bf16.gmra.mxu1 %vm403_vm0, %v3060_v14  ;;  %v3091_v14 = vld [vmem:[%s3894_s2 + $0x110] sm:$0xff]  }
  0x2a   : > { %2838 = vmatpush3.bf16.msra.mxu1 %v3055_v10  ;;  %2841 = vmatprep.mubr.msk.bf16.mxu1 %vm403_vm0, %v3061_v15  ;;  %v3092_v15 = vld [vmem:[%s3894_s2 + $0x140] sm:$0xff]  }
  0x2b   : > { %1654 = vrot.lane.b32.xlu1 %v3186_v1, %s3140_s23  ;;  %2839 = vmatprep.subr.bf16.mxu1 %v3056_v13 }
  0x2c   : > { %2822 = vmatmul.mubr.msk.bf16.gmra.mxu0 %vm403_vm0, %v3071_v16 }
  0x2d   : > { %1446 = vrot.lane.b32.xlu0 %v3188_v2, %s3139_s20  ;;  %2865 = vmatprep.mubr.msk.bf16.mxu0 %vm403_vm0, %v3073_v17  ;;  %v3093_v17 = vld [vmem:[%s3894_s2 + $0x118] sm:$0xff]  }
  0x2e   : > { %2840 = vmatpush3.bf16.msra.mxu1 %v3056_v13 }
  0x2f   : > { %1652 = vrot.lane.b32.xlu1 %v3188_v2, %s3140_s23 }
  0x31   : > { %1444 = vrot.lane.b32.xlu0 %v3191_v3, %s3139_s20  ;;  %2842 = vmatmul.mubr.msk.bf16.vlgmr.msra.gmra.mxu1 %vm403_vm0, %v3062_v18  ;;  %v3094_v18 = vld [vmem:[%s3894_s2 + $0x148] sm:$0xff]  }
  0x32   : > { %2845 = vmatprep.mubr.msk.bf16.mxu1 %vm403_vm0, %v3063_v19 }
  0x33   : > { %1650 = vrot.lane.b32.xlu1 %v3191_v3, %s3140_s23 }
  0x35   : > { %1442 = vrot.lane.b32.xlu0 %v3202_v4, %s3139_s20 }
  0x37   : > { %1648 = vrot.lane.b32.xlu1 %v3202_v4, %s3140_s23 }
  0x39   : > { %1860 = vrot.lane.b32.xlu0 %v3211_v5, %s3140_s23  ;;  %2846 = vmatmul.mubr.msk.bf16.gmra.mxu1 %vm403_vm0, %v3064_v21  ;;  %v3096_v21 = vld [vmem:[%s3894_s2 + $0x150] sm:$0xff]  }
  0x3a   : > { %2849 = vmatprep.mubr.msk.bf16.mxu1 %vm403_vm0, %v3066_v22 }
  0x3b   : > { %2066 = vrot.lane.b32.xlu1 %v3186_v1, %s3142_s6 }
  0x3d   : > { %1858 = vrot.lane.b32.xlu0 %v3054_v7, %s3140_s23  ;;  %v3086_v7 = vld [vmem:[%s3894_s2 + $0xe8] sm:$0xff]  }
  0x3f   : > { %2064 = vrot.lane.b32.xlu1 %v3188_v2, %s3142_s6  ;;  %v3083_v2 = vld [vmem:[%s3894_s2 + $0xb0] sm:$0xff]  }
  0x41   : > { %1856 = vrot.lane.b32.xlu0 %v3055_v10, %s3140_s23  ;;  %2850 = vmatmul.mubr.msk.bf16.gmra.mxu1 %vm403_vm0, %v3068_v23 }
  0x42   : > { %2853 = vmatprep.mubr.msk.bf16.mxu1 %vm403_vm0, %v3070_v24  ;;  %v3097_v24 = vld [vmem:[%s3894_s2 + $0x128] sm:$0xff]  }
  0x43   : > { %2062 = vrot.lane.b32.xlu1 %v3191_v3, %s3142_s6  ;;  %v3084_v3 = vld [vmem:[%s3894_s2 + $0xe0] sm:$0xff]  }
  0x45   : > { %1854 = vrot.lane.b32.xlu0 %v3056_v13, %s3140_s23 }
  0x47   : > { %2060 = vrot.lane.b32.xlu1 %v3202_v4, %s3142_s6 }
  0x49   : > { %2854 = vmatmul.mubr.msk.bf16.gmra.mxu1 %vm403_vm0, %v3072_v25  ;;  %237 = vperm.xlu0 %3047, %v219_v27   ;;  %v3098_v25 = vld [vmem:[%s3894_s2 + $0x158] sm:$0xff]   ;;  %v3099_v27 = vld [vmem:[%s3894_s2 + $0x130] sm:$0xff]  }
  0x4a   : > { %2889 = vmatprep.mubr.msk.bf16.mxu1 %vm403_vm0, %v3076_v26 }
  0x4b   : > { %242 = vperm.xlu1 %3048, %v220_v28   ;;  %v3100_v28 = vld [vmem:[%s3894_s2 + $0x160] sm:$0xff]  }
  0x4d   : > { %252 = vperm.xlu0 %3047, %v222_v29  }
  0x4f   : > { %247 = vperm.xlu1 %3048, %v221_v30   ;;  %v3101_v30 = vld [vmem:[%s3894_s2 + $0x138] sm:$0xff]  }
  0x51   : > { %262 = vperm.xlu0 %3047, %v224_v31   ;;  %v3102_v31 = vld [vmem:[%s3894_s2 + $0x168] sm:$0xff]  }
  0x53   : > { %257 = vperm.xlu1 %3048, %v223_v32  }
  0x55   : > { %272 = vperm.xlu0 %3047, %v226_v33   ;;  %v3103_v33 = vld [vmem:[%s3894_s2 + $0x170] sm:$0xff]  }
  0x57   : > { %267 = vperm.xlu1 %3048, %v225_v34   ;;  %v3104_v34 = vld [vmem:[%s3894_s2 + $0x180] sm:$0xff]  }
  0x59   : > { %282 = vperm.xlu0 %3047, %v228_v35  }
  0x5b   : > { %277 = vperm.xlu1 %3048, %v227_v36   ;;  %v3105_v36 = vld [vmem:[%s3894_s2 + $0x178] sm:$0xff]  }
  0x5d   : > { %292 = vperm.xlu0 %3047, %v230_v37   ;;  %v3106_v37 = vld [vmem:[%s3894_s2 + $0x188] sm:$0xff]  }
  0x5f   : > { %287 = vperm.xlu1 %3048, %v229_v38   ;;  %v3107_v38 = vld [vmem:[%s3894_s2 + $0x190] sm:$0xff]  }
  0x61   : > { %302 = vperm.xlu0 %3047, %v232_v39   ;;  %v3108_v39 = vld [vmem:[%s3894_s2 + $0x1c0] sm:$0xff]  }
  0x63   : > { %297 = vperm.xlu1 %3048, %v231_v40  }
  0x65   : > { %312 = vperm.xlu0 %3047, %v234_v41   ;;  %v3109_v41 = vld [vmem:[%s3894_s2 + $0x198] sm:$0xff]  }
  0x67   : > { %307 = vperm.xlu1 %3048, %v233_v42   ;;  %v3110_v42 = vld [vmem:[%s3894_s2 + $0x1c8] sm:$0xff]  }
  0x83   : > { %v831_v43 = vpop.permute.xlu0 %830 }
  0x84   : > { %2857 = vmatprep.subr.bf16.mxu0 %v831_v43 }
  0x85   : > { %2858 = vmatpush3.bf16.msra.mxu0 %v831_v43  ;;  %v827_v44 = vpop.permute.xlu1 %826 }
  0x87   : > { %v829_v45 = vpop.permute.xlu0 %828 }
  0x88   : > { %2859 = vmatprep.subr.bf16.mxu0 %v829_v45 }
  0x89   : > { %2860 = vmatpush3.bf16.msra.mxu0 %v829_v45  ;;  %v825_v46 = vpop.permute.xlu1 %824  ;;  %v3112_v45 = vld [vmem:[%s3894_s2 + $0x1d0] sm:$0xff]  }
  0x8a   : > { %2861 = vmatprep.subr.bf16.mxu0 %v827_v44 }
  0x8b   : > { %v1037_v47 = vpop.permute.xlu0 %1036 }
  0x8c   : > { %2881 = vmatprep.subr.bf16.mxu1 %v1037_v47 }
  0x8d   : > { %2862 = vmatpush3.bf16.msra.mxu0 %v827_v44  ;;  %2882 = vmatpush3.bf16.msra.mxu1 %v1037_v47  ;;  %v1243_v48 = vpop.permute.xlu1 %1242  ;;  %v3111_v44 = vld [vmem:[%s3894_s2 + $0x1a0] sm:$0xff]  }
  0x8e   : > { %2863 = vmatprep.subr.bf16.mxu0 %v825_v46 }
  0x8f   : > { %v1035_v49 = vpop.permute.xlu0 %1034 }
  0x90   : > { %2883 = vmatprep.subr.bf16.mxu1 %v1035_v49 }
  0x91   : > { %2864 = vmatpush3.bf16.msra.mxu0 %v825_v46  ;;  %2884 = vmatpush3.bf16.msra.mxu1 %v1035_v49  ;;  %v1241_v51 = vpop.permute.xlu1 %1240  ;;  %v3114_v49 = vld [vmem:[%s3894_s2 + $0x1d8] sm:$0xff]  }
  0x92   : > { %2905 = vmatprep.subr.bf16.mxu0 %v1243_v48 }
  0x93   : > { %v1033_v53 = vpop.permute.xlu0 %1032 }
  0x94   : > { %2866 = vmatmul.mubr.msk.bf16.vlgmr.msra.gmra.mxu0 %vm403_vm0, %v3074_v50  ;;  %2885 = vmatprep.subr.bf16.mxu1 %v1033_v53  ;;  %v3115_v50 = vld [vmem:[%s3894_s2 + $0x1b0] sm:$0xff]  }
  0x95   : > { %2886 = vmatpush3.bf16.msra.mxu1 %v1033_v53  ;;  %2906 = vmatpush3.bf16.msra.mxu0 %v1243_v48  ;;  %v1239_v54 = vpop.permute.xlu1 %1238  ;;  %v3113_v48 = vld [vmem:[%s3894_s2 + $0x1a8] sm:$0xff]  }
  0x96   : > { %2869 = vmatprep.mubr.msk.bf16.mxu0 %vm403_vm0, %v3075_v52  ;;  %2907 = vmatprep.subr.bf16.mxu0 %v1241_v51 }
  0x97   : > { %v1031_v55 = vpop.permute.xlu0 %1030 }
  0x98   : > { %2887 = vmatprep.subr.bf16.mxu1 %v1031_v55 }
  0x99   : > { %2888 = vmatpush3.bf16.msra.mxu1 %v1031_v55  ;;  %2908 = vmatpush3.bf16.msra.mxu0 %v1241_v51  ;;  %v1237_v61 = vpop.permute.xlu1 %1236  ;;  %v3116_v51 = vld [vmem:[%s3894_s2 + $0x1e0] sm:$0xff]  }
  0x9a   : > { %2909 = vmatprep.subr.bf16.mxu0 %v1239_v54 }
  0x9b   : > { %v1449_v60 = vpop.permute.xlu0 %1448 }
  0x9c   : > { %2870 = vmatmul.mubr.msk.bf16.gmra.mxu0 %vm403_vm0, %v3077_v56  ;;  %2890 = vmatmul.mubr.msk.bf16.vlgmr.msra.gmra.mxu1 %vm403_vm0, %v3078_v57 }
  0x9d   : > { %2873 = vmatprep.mubr.msk.bf16.mxu0 %vm403_vm0, %v3079_v58  ;;  %2893 = vmatprep.mubr.msk.bf16.mxu1 %vm403_vm0, %v3080_v59  ;;  %v1655_v1 = vpop.permute.xlu1 %1654 }
  0x9e   : > { %2910 = vmatpush3.bf16.msra.mxu0 %v1239_v54  ;;  %2929 = vmatprep.subr.bf16.mxu1 %v1449_v60 }
  0x9f   : > { %2911 = vmatprep.subr.bf16.mxu0 %v1237_v61  ;;  %2930 = vmatpush3.bf16.msra.mxu1 %v1449_v60  ;;  %v1447_v62 = vpop.permute.xlu0 %1446  ;;  %v3117_v60 = vld [vmem:[%s3894_s2 + $0x1b8] sm:$0xff]  }
  0xa0   : > { %2931 = vmatprep.subr.bf16.mxu1 %v1447_v62 }
  0xa1   : > { %v1653_v13 = vpop.permute.xlu1 %1652 }
  0xa2   : > { %2912 = vmatpush3.bf16.msra.mxu0 %v1237_v61  ;;  %v3118_v61 = vld [vmem:[%s3894_s2 + $0x1e8] sm:$0xff]  }
  0xa3   : > { %2932 = vmatpush3.bf16.msra.mxu1 %v1447_v62  ;;  %v1445_v4 = vpop.permute.xlu0 %1444  ;;  %2953 = vmatprep.subr.bf16.mxu0 %v1655_v1 }
  0xa4   : > { %2874 = vmatmul.mubr.msk.bf16.gmra.mxu0 %vm403_vm0, %v3081_v63  ;;  %2894 = vmatmul.mubr.msk.bf16.gmra.mxu1 %vm403_vm0, %v3082_v0  ;;  %v3119_v63 = vld [vmem:[%s3894_s2 + $0x1f0] sm:$0xff]   ;;  %v3120_v0 = vld [vmem:[%s3894_s2 + $0x200] sm:$0xff]  }
  0xa5   : > { %2877 = vmatprep.mubr.msk.bf16.mxu0 %vm403_vm0, %v3083_v2  ;;  %2897 = vmatprep.mubr.msk.bf16.mxu1 %vm403_vm0, %v3084_v3  ;;  %v1651_v16 = vpop.permute.xlu1 %1650 }
  0xa6   : > { %2933 = vmatprep.subr.bf16.mxu1 %v1445_v4 }
  0xa7   : > { %2934 = vmatpush3.bf16.msra.mxu1 %v1445_v4  ;;  %v1443_v5 = vpop.permute.xlu0 %1442 }
  0xa8   : > { %2935 = vmatprep.subr.bf16.mxu1 %v1443_v5 }
  0xa9   : > { %v1649_v22 = vpop.permute.xlu1 %1648 }
  0xab   : > { %2936 = vmatpush3.bf16.msra.mxu1 %v1443_v5  ;;  %v1861_v10 = vpop.permute.xlu0 %1860 }
  0xac   : > { %2878 = vmatmul.mubr.msk.bf16.gmra.mxu0 %vm403_vm0, %v3085_v6  ;;  %2898 = vmatmul.mubr.msk.bf16.gmra.mxu1 %vm403_vm0, %v3086_v7 }
  0xad   : > { %2901 = vmatprep.mubr.msk.bf16.mxu1 %vm403_vm0, %v3087_v8  ;;  %2913 = vmatprep.mubr.msk.bf16.mxu0 %vm403_vm0, %v3088_v9  ;;  %v2067_v26 = vpop.permute.xlu1 %2066 }
  0xae   : > { %2977 = vmatprep.subr.bf16.mxu1 %v1861_v10 }
  0xaf   : > { %v1859_v19 = vpop.permute.xlu0 %1858 }
  0xb1   : > { %v2065_v32 = vpop.permute.xlu1 %2064 }
  0xb3   : > { %v1857_v23 = vpop.permute.xlu0 %1856 }
  0xb4   : > { %2902 = vmatmul.mubr.msk.bf16.gmra.mxu1 %vm403_vm0, %v3089_v11  ;;  %2914 = vmatmul.mubr.msk.bf16.vlgmr.msra.gmra.mxu0 %vm403_vm0, %v3090_v12  ;;  %v3122_v11 = vld [vmem:[%s3894_s2 + $0x208] sm:$0xff]  }
  0xb5   : > { %2954 = vmatpush3.bf16.msra.mxu0 %v1655_v1  ;;  %2917 = vmatprep.mubr.msk.bf16.mxu0 %vm403_vm0, %v3091_v14  ;;  %v2063_v35 = vpop.permute.xlu1 %2062  ;;  %v3123_v14 = vld [vmem:[%s3894_s2 + $0x210] sm:$0xff]  }
  0xb6   : > { %2937 = vmatprep.mubr.msk.bf16.mxu1 %vm403_vm0, %v3092_v15  ;;  %2955 = vmatprep.subr.bf16.mxu0 %v1653_v13 }
  0xb7   : > { %v1855_v29 = vpop.permute.xlu0 %1854 }
  0xb9   : > { %2956 = vmatpush3.bf16.msra.mxu0 %v1653_v13  ;;  %v2061_v40 = vpop.permute.xlu1 %2060 }
  0xba   : > { %2957 = vmatprep.subr.bf16.mxu0 %v1651_v16 }
  0xbc   : > { %2918 = vmatmul.mubr.msk.bf16.gmra.mxu0 %vm403_vm0, %v3093_v17  ;;  %2938 = vmatmul.mubr.msk.bf16.vlgmr.msra.gmra.mxu1 %vm403_vm0, %v3094_v18 }
  0xbd   : > { %2921 = vmatprep.mubr.msk.bf16.mxu0 %vm403_vm0, %v3095_v20  ;;  %2941 = vmatprep.mubr.msk.bf16.mxu1 %vm403_vm0, %v3096_v21 }
  0xbe   : > { %2958 = vmatpush3.bf16.msra.mxu0 %v1651_v16  ;;  %2978 = vmatpush3.bf16.msra.mxu1 %v1861_v10  ;;  %v3121_v10 = vld [vmem:[%s3894_s2 + $0x1f8] sm:$0xff]  }
  0xbf   : > { %2959 = vmatprep.subr.bf16.mxu0 %v1649_v22  ;;  %2979 = vmatprep.subr.bf16.mxu1 %v1859_v19 }
  0xc2   : > { %2960 = vmatpush3.bf16.msra.mxu0 %v1649_v22  ;;  %2980 = vmatpush3.bf16.msra.mxu1 %v1859_v19 }
  0xc3   : > { %3001 = vmatprep.subr.bf16.mxu0 %v2067_v26  ;;  %2981 = vmatprep.subr.bf16.mxu1 %v1857_v23 }
  0xc4   : > { %2922 = vmatmul.mubr.msk.bf16.gmra.mxu0 %vm403_vm0, %v3097_v24  ;;  %2942 = vmatmul.mubr.msk.bf16.gmra.mxu1 %vm403_vm0, %v3098_v25  ;;  %v238_v46 = vpop.permute.xlu0 %237 }
  0xc5   : > { %2925 = vmatprep.mubr.msk.bf16.mxu0 %vm403_vm0, %v3099_v27  ;;  %2945 = vmatprep.mubr.msk.bf16.mxu1 %vm403_vm0, %v3100_v28 }
  0xc6   : > { %2982 = vmatpush3.bf16.msra.mxu1 %v1857_v23  ;;  %v243_v43 = vpop.permute.xlu1 %242 }
  0xc7   : > { %2983 = vmatprep.subr.bf16.mxu1 %v1855_v29 }
  0xc8   : > { %v253_v53 = vpop.permute.xlu0 %252 }
  0xca   : > { %2984 = vmatpush3.bf16.msra.mxu1 %v1855_v29  ;;  %v248_v47 = vpop.permute.xlu1 %247  ;;  %v3124_v29 = vld [vmem:[%s3894_s2 + $0x218] sm:$0xff]  }
  0xcc   : > { %2926 = vmatmul.mubr.msk.bf16.gmra.mxu0 %vm403_vm0, %v3101_v30  ;;  %2946 = vmatmul.mubr.msk.bf16.gmra.mxu1 %vm403_vm0, %v3102_v31  ;;  %v3559_v62 = vpop.permute.xlu0 %262 }
  0xcd   : > { %2949 = vmatprep.mubr.msk.bf16.mxu1 %vm403_vm0, %v3103_v33  ;;  %2961 = vmatprep.mubr.msk.bf16.mxu0 %vm403_vm0, %v3104_v34 }
  0xce   : > { %v258_v55 = vpop.permute.xlu1 %257 }
  0xd0   : > { %v273_v7 = vpop.permute.xlu0 %272 }
  0xd2   : > { %v268_v3 = vpop.permute.xlu1 %267 }
  0xd4   : > { %2950 = vmatmul.mubr.msk.bf16.gmra.mxu1 %vm403_vm0, %v3105_v36  ;;  %2962 = vmatmul.mubr.msk.bf16.vlgmr.msra.gmra.mxu0 %vm403_vm0, %v3106_v37  ;;  %v283_v20 = vpop.permute.xlu0 %282 }
  0xd5   : > { %3002 = vmatpush3.bf16.msra.mxu0 %v2067_v26  ;;  %2965 = vmatprep.mubr.msk.bf16.mxu0 %vm403_vm0, %v3107_v38 }
  0xd6   : > { %2985 = vmatprep.mubr.msk.bf16.mxu1 %vm403_vm0, %v3108_v39  ;;  %3003 = vmatprep.subr.bf16.mxu0 %v2065_v32  ;;  %v278_v12 = vpop.permute.xlu1 %277 }
  0xd8   : > { %v293_v38 = vpop.permute.xlu0 %292 }
  0xd9   : > { %3004 = vmatpush3.bf16.msra.mxu0 %v2065_v32  ;;  %v3125_v32 = vld [vmem:[%s3894_s2 + $0x220] sm:$0xff]  }
  0xda   : > { %3005 = vmatprep.subr.bf16.mxu0 %v2063_v35  ;;  %v288_v28 = vpop.permute.xlu1 %287 }
  0xdc   : > { %2966 = vmatmul.mubr.msk.bf16.gmra.mxu0 %vm403_vm0, %v3109_v41  ;;  %2986 = vmatmul.mubr.msk.bf16.vlgmr.msra.gmra.mxu1 %vm403_vm0, %v3110_v42 }
  0xdd   : > { %2969 = vmatprep.mubr.msk.bf16.mxu0 %vm403_vm0, %v3111_v44  ;;  %2989 = vmatprep.mubr.msk.bf16.mxu1 %vm403_vm0, %v3112_v45  ;;  %v3126_v45 = vld [vmem:[%s3894_s2 + $0x228] sm:$0xff]  }
  0xde   : > { %3006 = vmatpush3.bf16.msra.mxu0 %v2063_v35  ;;  %v298_v41 = vpop.permute.xlu1 %297 }
  0xdf   : > { %3007 = vmatprep.subr.bf16.mxu0 %v2061_v40 }
  0xe1   : > { %v3541_v52 = vpop.f32.mrf.mxu1 }
  0xe2   : > { %3008 = vmatpush3.bf16.msra.mxu0 %v2061_v40  ;;  %v535_v42 = vadd.f32 %v3541_v52, %v288_v28  ;;  %v308_v52 = vpop.permute.xlu1 %307 }
  0xe3   : > { %v3543_v54 = vpop.f32.mrf.mxu1 }
  0xe4   : > { %2970 = vmatmul.mubr.msk.bf16.gmra.mxu0 %vm403_vm0, %v3113_v48  ;;  %2990 = vmatmul.mubr.msk.bf16.gmra.mxu1 %vm403_vm0, %v3114_v49  ;;  %v2819_v56 = vpop.f32.mrf.mxu0  ;;  %v3609_v49 = vpop.permute.xlu0 %302 }
  0xe5   : > { %2973 = vmatprep.mubr.msk.bf16.mxu0 %vm403_vm0, %v3115_v50  ;;  %2993 = vmatprep.mubr.msk.bf16.mxu1 %vm403_vm0, %v3116_v51  ;;  %v3549_v57 = vpop.f32.mrf.mxu1  ;;  %v527_v8 = vadd.f32 %v2819_v56, %v248_v47  ;;  %v3127_v47 = vld [vmem:[%s3894_s2 + $0x230] sm:$0xff]  }
  0xe6   : > { %v462_v58 = vpop.f32.mrf.mxu0  ;;  %v536_v50 = vadd.f32 %v3549_v57, %v293_v38  ;;  %v3128_v57 = vld [vmem:[%s3894_s2 + $0x238] sm:$0xff]  }
  0xe7   : > { %v3551_v59 = vpop.f32.mrf.mxu1  ;;  %v525_v13 = vadd.f32 %v462_v58, %v238_v46  ;;  %v533_v46 = vadd.f32 %v3543_v54, %v278_v12 }
  0xe8   : > { %v2820_v2 = vpop.f32.mrf.mxu0 }
  0xe9   : > { %v3567_v1 = vpop.f32.mrf.mxu1  ;;  %v528_v17 = vadd.f32 %v2820_v2, %v253_v53 }
  0xea   : > { %v465_v6 = vpop.f32.mrf.mxu0 }
  0xeb   : > { %v3569_v4 = vpop.f32.mrf.mxu1  ;;  %v526_v21 = vadd.f32 %v465_v6, %v243_v43 }
  0xec   : > { %2974 = vmatmul.mubr.msk.bf16.gmra.mxu0 %vm403_vm0, %v3117_v60  ;;  %2994 = vmatmul.mubr.msk.bf16.gmra.mxu1 %vm403_vm0, %v3118_v61  ;;  %v2823_v16 = vpop.f32.mrf.mxu0  ;;  %v539_v60 = vadd.f32 %v3567_v1, %v308_v52  ;;  %v537_v2 = vadd.f32 %v3569_v4, %v298_v41 }
  0xed   : > { %2997 = vmatprep.mubr.msk.bf16.mxu1 %vm403_vm0, %v3119_v63  ;;  %3009 = vmatprep.mubr.msk.bf16.mxu0 %vm403_vm0, %v3120_v0  ;;  %v3575_v5 = vpop.f32.mrf.mxu1  ;;  %v531_v25 = vadd.f32 %v2823_v16, %v268_v3  ;;  %v313_v63 = vpop.permute.xlu0 %312 }
  0xee   : > { %v478_v24 = vpop.f32.mrf.mxu0  ;;  %v540_v6 = vadd.f32 %v3575_v5, %v313_v63 }
  0xef   : > { %v3577_v9 = vpop.f32.mrf.mxu1  ;;  %v529_v30 = vadd.f32 %v478_v24, %v258_v55  ;;  %v534_v55 = vadd.f32 %v3551_v59, %v283_v20 }
  0xf0   : > { %v2824_v34 = vpop.f32.mrf.mxu0 }
  0xf1   : > { %v2843_v15 = vpop.f32.mrf.mxu1  ;;  %v532_v35 = vadd.f32 %v2824_v34, %v273_v7 }
  0xf2   : > { %v3588_v18 = vadd.f32 %v2843_v15, %v527_v8  ;;  %v481_v1 = vpop.f32.mrf.mxu0 }
  0xf3   : > { %v688_v19 = vpop.f32.mrf.mxu1 }
  0xf4   : > { %2998 = vmatmul.mubr.msk.bf16.gmra.mxu1 %vm403_vm0, %v3121_v10  ;;  %3010 = vmatmul.mubr.msk.bf16.vlgmr.msra.gmra.mxu0 %vm403_vm0, %v3122_v11  ;;  %v751_v22 = vadd.f32 %v688_v19, %v525_v13 }
  0xf5   : > { %3013 = vmatprep.mubr.msk.bf16.mxu0 %vm403_vm0, %v3123_v14  ;;  %v2844_v23 = vpop.f32.mrf.mxu1 }
  0xf6   : > { %v754_v26 = vadd.f32 %v2844_v23, %v528_v17  ;;  %v530_v23 = vadd.f32 %v481_v1, %v3559_v62 }
  0xf7   : > { %v691_v27 = vpop.f32.mrf.mxu1 }
  0xf8   : > { %v752_v31 = vadd.f32 %v691_v27, %v526_v21 }
  0xf9   : > { %v2847_v33 = vpop.f32.mrf.mxu1 }
  0xfa   : > { %v757_v36 = vadd.f32 %v2847_v33, %v531_v25 }
  0xfb   : > { %v704_v37 = vpop.f32.mrf.mxu1 }
  0xfc   : > { %3014 = vmatmul.mubr.msk.bf16.gmra.mxu0 %vm403_vm0, %v3124_v29  ;;  %v755_v39 = vadd.f32 %v704_v37, %v529_v30 }
  0xfd   : > { %3017 = vmatprep.mubr.msk.bf16.mxu0 %vm403_vm0, %v3125_v32  ;;  %v2848_v40 = vpop.f32.mrf.mxu1 }
  0xfe   : > { %v758_v43 = vadd.f32 %v2848_v40, %v532_v35 }
  0xff   : > { %v707_v44 = vpop.f32.mrf.mxu1 }
 0x100   : > { %v756_v29 = vadd.f32 %v707_v44, %v530_v23 }
 0x101   : > { %v2851_v48 = vpop.f32.mrf.mxu1 }
 0x102   : > { %v761_v51 = vadd.f32 %v2851_v48, %v535_v42 }
 0x103   : > { %v720_v53 = vpop.f32.mrf.mxu1 }
 0x104   : > { %3018 = vmatmul.mubr.msk.bf16.gmra.mxu0 %vm403_vm0, %v3126_v45  ;;  %v759_v56 = vadd.f32 %v720_v53, %v533_v46  ;;  %v538_v46 = vadd.f32 %v3577_v9, %v3609_v49 }
 0x105   : > { %3021 = vmatprep.mubr.msk.bf16.mxu0 %vm403_vm0, %v3127_v47  ;;  %v2852_v54 = vpop.f32.mrf.mxu1 }
 0x106   : > { %v762_v58 = vadd.f32 %v2852_v54, %v536_v50 }
 0x107   : > { %v723_v61 = vpop.f32.mrf.mxu1 }
 0x108   : > { %v760_v0 = vadd.f32 %v723_v61, %v534_v55 }
 0x109   : > { %v2855_v3 = vpop.f32.mrf.mxu1 }
 0x10a   : > { %v765_v59 = vadd.f32 %v2855_v3, %v539_v60 }
 0x10b   : > { %v736_v7 = vpop.f32.mrf.mxu1 }
 0x10c   : > { %3022 = vmatmul.mubr.msk.bf16.gmra.mxu0 %vm403_vm0, %v3128_v57  ;;  %v763_v8 = vadd.f32 %v736_v7, %v537_v2 }
 0x10d   : > { %v2856_v10 = vpop.f32.mrf.mxu1 }
 0x10e   : > { %v766_v11 = vadd.f32 %v2856_v10, %v540_v6 }
 0x10f   : > { %v739_v17 = vpop.f32.mrf.mxu1 }
 0x110   : > { %v764_v55 = vadd.f32 %v739_v17, %v538_v46 }
 0x154   : > { %v2867_v12 = vpop.f32.mrf.mxu0 }
 0x155   : > { %v3623_v13 = vadd.f32 %v2867_v12, %v3588_v18 }
 0x156   : > { %v894_v14 = vpop.f32.mrf.mxu0 }
 0x157   : > { %v3625_v15 = vadd.f32 %v894_v14, %v751_v22 }
 0x158   : > { %v2868_v16 = vpop.f32.mrf.mxu0 }
 0x159   : > { %v3627_v4 = vadd.f32 %v2868_v16, %v754_v26 }
 0x15a   : > { %v897_v5 = vpop.f32.mrf.mxu0 }
 0x15b   : > { %v3629_v19 = vadd.f32 %v897_v5, %v752_v31 }
 0x15c   : > { %v2871_v20 = vpop.f32.mrf.mxu0  ;;  %v3631_v21 = vpop.f32.mrf.mxu1 }
 0x15d   : > { %v3634_v24 = vadd.f32 %v2871_v20, %v757_v36 }
 0x15e   : > { %v910_v25 = vpop.f32.mrf.mxu0  ;;  %v3636_v18 = vpop.f32.mrf.mxu1 }
 0x15f   : > { %v3638_v27 = vadd.f32 %v910_v25, %v755_v39 }
 0x160   : > { %v2872_v22 = vpop.f32.mrf.mxu0  ;;  %v3640_v28 = vpop.f32.mrf.mxu1 }
 0x161   : > { %v3642_v26 = vadd.f32 %v2872_v22, %v758_v43 }
 0x162   : > { %v913_v30 = vpop.f32.mrf.mxu0  ;;  %v3644_v31 = vpop.f32.mrf.mxu1 }
 0x163   : > { %v3646_v32 = vadd.f32 %v913_v30, %v756_v29 }
 0x164   : > { %v2875_v33 = vpop.f32.mrf.mxu0  ;;  %v3648_v62 = vpop.f32.mrf.mxu1 }
 0x165   : > { %v3650_v34 = vadd.f32 %v2875_v33, %v761_v51 }
 0x166   : > { %v926_v35 = vpop.f32.mrf.mxu0  ;;  %v3652_v36 = vpop.f32.mrf.mxu1 }
 0x167   : > { %v3654_v37 = vadd.f32 %v926_v35, %v759_v56 }
 0x168   : > { %v2876_v38 = vpop.f32.mrf.mxu0  ;;  %v3656_v39 = vpop.f32.mrf.mxu1 }
 0x169   : > { %v3658_v40 = vadd.f32 %v2876_v38, %v762_v58 }
 0x16a   : > { %v929_v41 = vpop.f32.mrf.mxu0  ;;  %v3660_v42 = vpop.f32.mrf.mxu1 }
 0x16b   : > { %v3662_v43 = vadd.f32 %v929_v41, %v760_v0 }
 0x16c   : > { %v2879_v44 = vpop.f32.mrf.mxu0  ;;  %v3664_v45 = vpop.f32.mrf.mxu1 }
 0x16d   : > { %3897 = vst [vmem:[#allocation2_spill] sm:$0xff] %v3662_v43  ;;  %v3668_v47 = vadd.f32 %v2879_v44, %v765_v59 }
 0x16e   : > { %v942_v48 = vpop.f32.mrf.mxu0  ;;  %v3670_v50 = vpop.f32.mrf.mxu1 }
 0x16f   : > { %3898 = vst [vmem:[#allocation3_spill] sm:$0xff] %v3668_v47  ;;  %v3672_v51 = vadd.f32 %v942_v48, %v763_v8 }
 0x170   : > { %v2880_v53 = vpop.f32.mrf.mxu0  ;;  %v3674_v52 = vpop.f32.mrf.mxu1 }
 0x171   : > { %3899 = vst [vmem:[#allocation4_spill] sm:$0xff] %v3672_v51  ;;  %v3676_v56 = vadd.f32 %v2880_v53, %v766_v11 }
 0x172   : > { %v945_v54 = vpop.f32.mrf.mxu0  ;;  %v3678_v58 = vpop.f32.mrf.mxu1 }
 0x173   : > { %3900 = vst [vmem:[#allocation5_spill] sm:$0xff] %v3676_v56  ;;  %3901 = vst [vmem:[#allocation6_spill] sm:$0xff] %v3678_v58  ;;  %v3680_v60 = vadd.f32 %v945_v54, %v764_v55  ;;  %v1163_v58 = vadd.f32 %v3636_v18, %v3625_v15  ;;  %v1169_v15 = vadd.f32 %v3648_v62, %v3634_v24 }
 0x174   : > { %v3682_v61 = vpop.f32.mrf.mxu1  ;;  %v2915_v9 = vpop.f32.mrf.mxu0 }
 0x175   : > { %3902 = vst [vmem:[#allocation7_spill] sm:$0xff] %v3680_v60  ;;  %3903 = vst [vmem:[#allocation8_spill] sm:$0xff] %v3682_v61 }
 0x176   : > { %v3684_v49 = vpop.f32.mrf.mxu1  ;;  %v1306_v63 = vpop.f32.mrf.mxu0 }
 0x177   : > { %3904 = vst [vmem:[#allocation9_spill] sm:$0xff] %v3684_v49 }
 0x178   : > { %v3686_v57 = vpop.f32.mrf.mxu1  ;;  %v2916_v0 = vpop.f32.mrf.mxu0 }
 0x179   : > { %3905 = vst [vmem:[#allocation10_spill] sm:$0xff] %v3686_v57 }
 0x17a   : > { %v3688_v2 = vpop.f32.mrf.mxu1  ;;  %v3690_v3 = vpop.f32.mrf.mxu0 }
 0x17b   : > { %3906 = vst [vmem:[#allocation11_spill] sm:$0xff] %v3688_v2 }
 0x17c   : > { %v3692_v6 = vpop.f32.mrf.mxu0  ;;  %v2939_v59 = vpop.f32.mrf.mxu1 }
 0x17e   : > { %v3694_v7 = vpop.f32.mrf.mxu0  ;;  %v1512_v8 = vpop.f32.mrf.mxu1 }
 0x180   : > { %v3696_v10 = vpop.f32.mrf.mxu0  ;;  %v2940_v11 = vpop.f32.mrf.mxu1 }
 0x182   : > { %v3698_v1 = vpop.f32.mrf.mxu0  ;;  %v3700_v12 = vpop.f32.mrf.mxu1 }
 0x184   : > { %v3702_v14 = vpop.f32.mrf.mxu0  ;;  %v3704_v16 = vpop.f32.mrf.mxu1 }
 0x186   : > { %v3706_v17 = vpop.f32.mrf.mxu0  ;;  %v3708_v5 = vpop.f32.mrf.mxu1 }
 0x188   : > { %v3710_v20 = vpop.f32.mrf.mxu0  ;;  %v3712_v23 = vpop.f32.mrf.mxu1 }
 0x189   : > { %3907 = vst [vmem:[#allocation12_spill] sm:$0xff] %v3710_v20 }
 0x18a   : > { %v3714_v25 = vpop.f32.mrf.mxu0  ;;  %v3716_v22 = vpop.f32.mrf.mxu1 }
 0x18b   : > { %3908 = vst [vmem:[#allocation13_spill] sm:$0xff] %v3714_v25 }
 0x18c   : > { %v3718_v29 = vpop.f32.mrf.mxu0  ;;  %v3720_v30 = vpop.f32.mrf.mxu1 }
 0x18d   : > { %3909 = vst [vmem:[#allocation14_spill] sm:$0xff] %v3718_v29  ;;  %3910 = vst [vmem:[#allocation15_spill] sm:$0xff] %v3720_v30 }
 0x18e   : > { %v3722_v33 = vpop.f32.mrf.mxu0  ;;  %v3724_v35 = vpop.f32.mrf.mxu1 }
 0x18f   : > { %3911 = vst [vmem:[#allocation16_spill] sm:$0xff] %v3722_v33  ;;  %3912 = vst [vmem:[#allocation17_spill] sm:$0xff] %v3724_v35  ;;  %v1165_v35 = vadd.f32 %v3631_v21, %v3623_v13  ;;  %v1164_v13 = vadd.f32 %v3644_v31, %v3629_v19  ;;  %v1375_v19 = vadd.f32 %v3692_v6, %v1169_v15 }
 0x190   : > { %v3726_v38 = vpop.f32.mrf.mxu0  ;;  %v3728_v41 = vpop.f32.mrf.mxu1 }
 0x191   : > { %3913 = vst [vmem:[#allocation18_spill] sm:$0xff] %v3726_v38  ;;  %3914 = vst [vmem:[#allocation19_spill] sm:$0xff] %v3728_v41 }
 0x192   : > { %v3730_v44 = vpop.f32.mrf.mxu0  ;;  %v3732_v46 = vpop.f32.mrf.mxu1 }
 0x193   : > { %3915 = vst [vmem:[#allocation20_spill] sm:$0xff] %v3730_v44  ;;  %3916 = vst [vmem:[#allocation21_spill] sm:$0xff] %v3732_v46 }
 0x194   : > { %v3734_v48 = vpop.f32.mrf.mxu1  ;;  %v2963_v53 = vpop.f32.mrf.mxu0 }
 0x195   : > { %3917 = vst [vmem:[#allocation22_spill] sm:$0xff] %v3734_v48 }
 0x196   : > { %v3736_v55 = vpop.f32.mrf.mxu1  ;;  %v1718_v54 = vpop.f32.mrf.mxu0 }
 0x197   : > { %3918 = vst [vmem:[#allocation23_spill] sm:$0xff] %v3736_v55 }
 0x198   : > { %v3738_v2 = vpop.f32.mrf.mxu1  ;;  %v2964_v60 = vpop.f32.mrf.mxu0 }
 0x199   : > { %3919 = vst [vmem:[#allocation24_spill] sm:$0xff] %v3738_v2 }
 0x19a   : > { %v3740_v33 = vpop.f32.mrf.mxu1  ;;  %v1721_v57 = vpop.f32.mrf.mxu0 }
 0x19b   : > { %3920 = vst [vmem:[#allocation25_spill] sm:$0xff] %v3740_v33 }
 0x19c   : > { %v2967_v56 = vpop.f32.mrf.mxu0  ;;  %v2987_v38 = vpop.f32.mrf.mxu1 }
 0x19e   : > { %v3742_v29 = vpop.f32.mrf.mxu0  ;;  %v1924_v49 = vpop.f32.mrf.mxu1 }
 0x1a0   : > { %v3744_v44 = vpop.f32.mrf.mxu0  ;;  %v2988_v46 = vpop.f32.mrf.mxu1 }
 0x1a2   : > { %v3746_v51 = vpop.f32.mrf.mxu0  ;;  %v1927_v48 = vpop.f32.mrf.mxu1 }
 0x1a3   : > { %3921 = vst [vmem:[#allocation26_spill] sm:$0xff] %v3746_v51  ;;  %v1369_v51 = vadd.f32 %v1306_v63, %v1163_v58 }
 0x1a4   : > { %v3748_v41 = vpop.f32.mrf.mxu0  ;;  %v2991_v55 = vpop.f32.mrf.mxu1 }
 0x1a5   : > { %3922 = vst [vmem:[#allocation27_spill] sm:$0xff] %v3748_v41  ;;  %v1371_v41 = vadd.f32 %v2915_v9, %v1165_v35  ;;  %v1173_v35 = vadd.f32 %v3664_v45, %v3650_v34 }
 0x1a6   : > { %v3750_v25 = vpop.f32.mrf.mxu0  ;;  %v3752_v2 = vpop.f32.mrf.mxu1 }
 0x1a7   : > { %3923 = vst [vmem:[#allocation28_spill] sm:$0xff] %v3750_v25  ;;  %v1379_v34 = vadd.f32 %v3702_v14, %v1173_v35 }
 0x1a8   : > { %v3754_v33 = vpop.f32.mrf.mxu0  ;;  %v3756_v61 = vpop.f32.mrf.mxu1 }
 0x1a9   : > { %3924 = vst [vmem:[#allocation29_spill] sm:$0xff] %v3754_v33  ;;  %3925 = vst [vmem:[#allocation30_spill] sm:$0xff] %v3756_v61  ;;  %v1166_v33 = vadd.f32 %v3640_v28, %v3627_v4  ;;  %v1577_v61 = vadd.f32 %v2939_v59, %v1371_v41  ;;  %v1370_v4 = vadd.f32 %v3690_v3, %v1164_v13 }
 0x1aa   : > { %v3758_v47 = vpop.f32.mrf.mxu0  ;;  %v3766_v43 = vpop.f32.mrf.mxu1  ;;  %v1167_v59 = vadd.f32 %v3652_v36, %v3638_v27  ;;  %v3929_v15 = vld [vmem:[#allocation26_spill] sm:$0xff] }
 0x1ab   : > { %3926 = vst [vmem:[#allocation31_spill] sm:$0xff] %v3758_v47  ;;  %v1372_v21 = vadd.f32 %v2916_v0, %v1166_v33  ;;  %v1783_v30 = vadd.f32 %v2963_v53, %v1577_v61  ;;  %v1170_v0 = vadd.f32 %v3656_v39, %v3642_v26  ;;  %v1168_v26 = vadd.f32 %v3660_v42, %v3646_v32 }
 0x1ac   : > { %v3762_v20 = vpop.f32.mrf.mxu0  ;;  %v3778_v18 = vpop.f32.mrf.mxu1  ;;  %v1373_v3 = vadd.f32 %v3694_v7, %v1167_v59  ;;  %v1171_v53 = vadd.f32 %v3670_v50, %v3654_v37  ;;  %v3928_v50 = vld [vmem:[#allocation15_spill] sm:$0xff] }
 0x1ad   : > { %3927 = vst [vmem:[#allocation32_spill] sm:$0xff] %v3762_v20  ;;  %v1575_v20 = vadd.f32 %v1512_v8, %v1369_v51  ;;  %v1578_v28 = vadd.f32 %v2940_v11, %v1372_v21  ;;  %v1989_v63 = vadd.f32 %v2987_v38, %v1783_v30  ;;  %v1576_v51 = vadd.f32 %v3700_v12, %v1370_v4 }
 0x1ae   : > { %v3768_v25 = vpop.f32.mrf.mxu0  ;;  %v1581_v8 = vadd.f32 %v3704_v16, %v1375_v19  ;;  %v3792_v11 = vpop.f32.mrf.mxu1  ;;  %v1376_v39 = vadd.f32 %v3696_v10, %v1170_v0  ;;  %v1374_v38 = vadd.f32 %v3698_v1, %v1168_v26  ;;  %v1174_v21 = vadd.f32 %v3674_v52, %v3658_v40  ;;  %v3931_v19 = vld [vmem:[#allocation2_spill] sm:$0xff]  ;;  %v3933_v40 = vld [vmem:[#allocation12_spill] sm:$0xff]  ;;  %v3938_v26 = vld [vmem:[#allocation13_spill] sm:$0xff] }
 0x1af   : > { %v1781_v58 = vadd.f32 %v1718_v54, %v1575_v20  ;;  %v1784_v61 = vadd.f32 %v2964_v60, %v1578_v28  ;;  %v1782_v36 = vadd.f32 %v1721_v57, %v1576_v51  ;;  %v1579_v60 = vadd.f32 %v3708_v5, %v1373_v3 }
 0x1b0   : > { %v3772_v47 = vpop.f32.mrf.mxu0  ;;  %v1582_v41 = vadd.f32 %v3712_v23, %v1376_v39  ;;  %v3808_v42 = vpop.f32.mrf.mxu1  ;;  %v1580_v45 = vadd.f32 %v3716_v22, %v1374_v38  ;;  %v1377_v37 = vadd.f32 %v3706_v17, %v1171_v53  ;;  %v1585_v14 = vadd.f32 %v3928_v50, %v1379_v34  ;;  %v3930_v28 = vld [vmem:[#allocation30_spill] sm:$0xff]  ;;  %v3934_v17 = vld [vmem:[#allocation17_spill] sm:$0xff] }
 0x1b1   : > { %v1987_v24 = vadd.f32 %v1924_v49, %v1781_v58  ;;  %v1990_v6 = vadd.f32 %v2988_v46, %v1784_v61  ;;  %v1787_v49 = vadd.f32 %v2967_v56, %v1581_v8  ;;  %v1988_v12 = vadd.f32 %v1927_v48, %v1782_v36  ;;  %v3945_v53 = vld [vmem:[#allocation29_spill] sm:$0xff]  ;;  %v3949_v50 = vld [vmem:[#allocation22_spill] sm:$0xff] }
 0x1b2   : > { %v3780_v9 = vpop.f32.mrf.mxu0  ;;  %v1785_v32 = vadd.f32 %v3742_v29, %v1579_v60  ;;  %v1788_v1 = vadd.f32 %v3744_v44, %v1582_v41  ;;  %v1786_v22 = vadd.f32 %v3929_v15, %v1580_v45  ;;  %v1959_v4 = vpop.f32.mrf.mxu1  ;;  %v1380_v52 = vadd.f32 %v3933_v40, %v1174_v21  ;;  %v3939_v60 = vld [vmem:[#allocation19_spill] sm:$0xff]  ;;  %v3941_v41 = vld [vmem:[#allocation4_spill] sm:$0xff] }
 0x1b3   : > { %v1993_v5 = vadd.f32 %v2991_v55, %v1787_v49  ;;  %v1583_v61 = vadd.f32 %v3934_v17, %v1377_v37  ;;  %v3948_v21 = vld [vmem:[#allocation16_spill] sm:$0xff]  ;;  %v3950_v15 = vld [vmem:[#allocation31_spill] sm:$0xff] }
 0x1b4   : > { %v3011_v31 = vpop.f32.mrf.mxu0  ;;  %v1991_v29 = vadd.f32 %v3752_v2, %v1785_v32  ;;  %v1994_v58 = vadd.f32 %v3930_v28, %v1788_v1  ;;  %v1992_v3 = vadd.f32 %v3766_v43, %v1786_v22  ;;  %v1586_v49 = vadd.f32 %v3939_v60, %v1380_v52  ;;  %v3942_v32 = vld [vmem:[#allocation9_spill] sm:$0xff]  ;;  %v3954_v52 = vld [vmem:[#allocation23_spill] sm:$0xff] }
 0x1b5   : > { %v2195_v62 = vadd.f32 %v3011_v31, %v1989_v63  ;;  %v3932_v31 = vld [vmem:[#allocation6_spill] sm:$0xff] }
 0x1b6   : > { %v2130_v27 = vpop.f32.mrf.mxu0  ;;  %v1172_v51 = vadd.f32 %v3932_v31, %v3931_v19  ;;  %v1792_v34 = vadd.f32 %v3945_v53, %v1586_v49  ;;  %v3952_v19 = vld [vmem:[#allocation11_spill] sm:$0xff] }
 0x1b7   : > { %v2211_v20 = vmax.f32 %v2195_v62, 0.0  ;;  %v2193_v30 = vadd.f32 %v2130_v27, %v1987_v24  ;;  %v3935_v24 = vld [vmem:[#allocation27_spill] sm:$0xff] }
 0x1b8   : > { %v3012_v7 = vpop.f32.mrf.mxu0  ;;  %v1791_v62 = vadd.f32 %v3935_v24, %v1585_v14  ;;  %v1378_v39 = vadd.f32 %v3938_v26, %v1172_v51  ;;  %v3953_v51 = vld [vmem:[#allocation18_spill] sm:$0xff] }
 0x1b9   : > { %v2687_v57 = vpack.c.bf16 %v2211_v20, %v2211_v20  ;;  %v2209_v16 = vmax.f32 %v2193_v30, 0.0  ;;  %v2196_v33 = vadd.f32 %v3012_v7, %v1990_v6  ;;  %v3936_v6 = vld [vmem:[#allocation3_spill] sm:$0xff]  ;;  %v3937_v20 = vld [vmem:[#allocation8_spill] sm:$0xff] }
 0x1ba   : > { %v2133_v10 = vpop.f32.mrf.mxu0  ;;  %v1177_v30 = vadd.f32 %v3937_v20, %v3936_v6  ;;  %v3940_v7 = vld [vmem:[#allocation28_spill] sm:$0xff] }
 0x1bb   : > { %2292 = vst.msk [vmem:[%s3797_s13 + $0x8] sm:$0xf] %vm2289_vm1, %v2687_v57  ;;  %v2685_v56 = vpack.c.bf16 %v2209_v16, %v2209_v16  ;;  %v2212_v46 = vmax.f32 %v2196_v33, 0.0  ;;  %v2194_v48 = vadd.f32 %v2133_v10, %v1988_v12  ;;  %v1789_v12 = vadd.f32 %v3940_v7, %v1583_v61  ;;  %v2999_v57 = vpop.f32.mrf.mxu1  ;;  %v3955_v61 = vld [vmem:[#allocation32_spill] sm:$0xff] }
 0x1bc   : > { %v3015_v23 = vpop.f32.mrf.mxu0  ;;  %v1997_v33 = vadd.f32 %v3778_v18, %v1791_v62  ;;  %v1175_v10 = vadd.f32 %v3942_v32, %v3941_v41  ;;  %v3957_v6 = vld [vmem:[#allocation24_spill] sm:$0xff] }
 0x1bd   : > { %2290 = vst.msk [vmem:[%s3797_s13] sm:$0xf] %vm2289_vm1, %v2685_v56  ;;  %v2688_v55 = vpack.c.bf16 %v2212_v46, %v2212_v46  ;;  %v2210_v54 = vmax.f32 %v2194_v48, 0.0  ;;  %v2199_v13 = vadd.f32 %v3015_v23, %v1993_v5  ;;  %v3943_v5 = vld [vmem:[#allocation14_spill] sm:$0xff]  ;;  %v3944_v46 = vld [vmem:[#allocation21_spill] sm:$0xff]  ;;  %v1995_v1 = vadd.f32 %v3792_v11, %v1789_v12 }
 0x1be   : > { %v2146_v44 = vpop.f32.mrf.mxu0  ;;  %v1383_v56 = vadd.f32 %v3943_v5, %v1177_v30  ;;  %v1584_v48 = vadd.f32 %v3944_v46, %v1378_v39  ;;  %v1381_v37 = vadd.f32 %v3948_v21, %v1175_v10  ;;  %v3958_v12 = vld [vmem:[#allocation25_spill] sm:$0xff] }
 0x1bf   : > { %2293 = vst.msk [vmem:[%s3797_s13 + $0xc] sm:$0xf] %vm2289_vm1, %v2688_v55  ;;  %v2686_v2 = vpack.c.bf16 %v2210_v54, %v2210_v54  ;;  %v2215_v63 = vmax.f32 %v2199_v13, 0.0  ;;  %v2197_v59 = vadd.f32 %v2146_v44, %v1991_v29  ;;  %v3946_v55 = vld [vmem:[#allocation5_spill] sm:$0xff]  ;;  %v3947_v54 = vld [vmem:[#allocation10_spill] sm:$0xff]  ;;  %v1972_v44 = vpop.f32.mrf.mxu1 }
 0x1c0   : > { %v3016_v0 = vpop.f32.mrf.mxu0  ;;  %v1178_v13 = vadd.f32 %v3947_v54, %v3946_v55  ;;  %v1589_v14 = vadd.f32 %v3949_v50, %v1383_v56  ;;  %v1790_v22 = vadd.f32 %v3950_v15, %v1584_v48  ;;  %v1587_v17 = vadd.f32 %v3954_v52, %v1381_v37 }
 0x1c1   : > { %2291 = vst.msk [vmem:[%s3797_s13 + $0x4] sm:$0xf] %vm2289_vm1, %v2686_v2  ;;  %v2691_v8 = vpack.c.bf16 %v2215_v63, %v2215_v63  ;;  %v2213_v27 = vmax.f32 %v2197_v59, 0.0  ;;  %v2200_v36 = vadd.f32 %v3016_v0, %v1994_v58  ;;  %v1998_v58 = vadd.f32 %v3808_v42, %v1792_v34  ;;  %v3951_v59 = vld [vmem:[#allocation7_spill] sm:$0xff]  ;;  %v3000_v26 = vpop.f32.mrf.mxu1 }
 0x1c2   : > { %v2149_v16 = vpop.f32.mrf.mxu0  ;;  %v1176_v31 = vadd.f32 %v3952_v19, %v3951_v59  ;;  %v1384_v40 = vadd.f32 %v3953_v51, %v1178_v13  ;;  %v1795_v24 = vadd.f32 %v3955_v61, %v1589_v14  ;;  %v1996_v0 = vadd.f32 %v1959_v4, %v1790_v22 }
 0x1c3   : > { %2296 = vst.msk [vmem:[%s3797_s13 + $0x18] sm:$0xf] %vm2289_vm1, %v2691_v8  ;;  %v2689_v43 = vpack.c.bf16 %v2213_v27, %v2213_v27  ;;  %v2216_v35 = vmax.f32 %v2200_v36, 0.0  ;;  %v2198_v38 = vadd.f32 %v2149_v16, %v1992_v3  ;;  %v3956_v27 = vld [vmem:[#allocation20_spill] sm:$0xff]  ;;  %v1793_v30 = vadd.f32 %v3768_v25, %v1587_v17  ;;  %v1975_v32 = vpop.f32.mrf.mxu1 }
 0x1c4   : > { %v3019_v45 = vpop.f32.mrf.mxu0  ;;  %v1382_v36 = vadd.f32 %v3956_v27, %v1176_v31  ;;  %v1590_v20 = vadd.f32 %v3957_v6, %v1384_v40  ;;  %v2001_v60 = vadd.f32 %v2999_v57, %v1795_v24 }
 0x1c5   : > { %2294 = vst.msk [vmem:[%s3797_s13 + $0x10] sm:$0xf] %vm2289_vm1, %v2689_v43  ;;  %v2692_v18 = vpack.c.bf16 %v2216_v35, %v2216_v35  ;;  %v2214_v23 = vmax.f32 %v2198_v38, 0.0  ;;  %v2203_v29 = vadd.f32 %v3019_v45, %v1997_v33  ;;  %v1999_v35 = vadd.f32 %v1972_v44, %v1793_v30 }
 0x1c6   : > { %v2162_v28 = vpop.f32.mrf.mxu0  ;;  %v1588_v16 = vadd.f32 %v3958_v12, %v1382_v36  ;;  %v1796_v33 = vadd.f32 %v3772_v47, %v1590_v20 }
 0x1c7   : > { %2297 = vst.msk [vmem:[%s3797_s13 + $0x1c] sm:$0xf] %vm2289_vm1, %v2692_v18  ;;  %v2690_v11 = vpack.c.bf16 %v2214_v23, %v2214_v23  ;;  %v2219_v2 = vmax.f32 %v2203_v29, 0.0  ;;  %v2201_v63 = vadd.f32 %v2162_v28, %v1995_v1 }
 0x1c8   : > { %v3020_v62 = vpop.f32.mrf.mxu0  ;;  %v1794_v57 = vadd.f32 %v3780_v9, %v1588_v16  ;;  %v2002_v5 = vadd.f32 %v3000_v26, %v1796_v33 }
 0x1c9   : > { %2295 = vst.msk [vmem:[%s3797_s13 + $0x14] sm:$0xf] %vm2289_vm1, %v2690_v11  ;;  %v2695_v42 = vpack.c.bf16 %v2219_v2, %v2219_v2  ;;  %v2217_v3 = vmax.f32 %v2201_v63, 0.0  ;;  %v2204_v8 = vadd.f32 %v3020_v62, %v1998_v58 }
 0x1ca   : > { %v2165_v39 = vpop.f32.mrf.mxu0  ;;  %v2000_v53 = vadd.f32 %v1975_v32, %v1794_v57 }
 0x1cb   : > { %2300 = vst.msk [vmem:[%s3797_s13 + $0x28] sm:$0xf] %vm2289_vm1, %v2695_v42  ;;  %v2693_v49 = vpack.c.bf16 %v2217_v3, %v2217_v3  ;;  %v2220_v4 = vmax.f32 %v2204_v8, 0.0  ;;  %v2202_v7 = vadd.f32 %v2165_v39, %v1996_v0 }
 0x1cc   : > { %v3023_v43 = vpop.f32.mrf.mxu0 }
 0x1cd   : > { %2298 = vst.msk [vmem:[%s3797_s13 + $0x20] sm:$0xf] %vm2289_vm1, %v2693_v49  ;;  %v2696_v38 = vpack.c.bf16 %v2220_v4, %v2220_v4  ;;  %v2218_v25 = vmax.f32 %v2202_v7, 0.0  ;;  %v2207_v41 = vadd.f32 %v3023_v43, %v2001_v60 }
 0x1ce   : > { %v2178_v10 = vpop.f32.mrf.mxu0 }
 0x1cf   : > { %2301 = vst.msk [vmem:[%s3797_s13 + $0x2c] sm:$0xf] %vm2289_vm1, %v2696_v38  ;;  %v2694_v56 = vpack.c.bf16 %v2218_v25, %v2218_v25  ;;  %v2223_v46 = vmax.f32 %v2207_v41, 0.0  ;;  %v2205_v47 = vadd.f32 %v2178_v10, %v1999_v35 }
 0x1d0   : > { %v3024_v48 = vpop.f32.mrf.mxu0 }
 0x1d1   : > { %2299 = vst.msk [vmem:[%s3797_s13 + $0x24] sm:$0xf] %vm2289_vm1, %v2694_v56  ;;  %v2699_v34 = vpack.c.bf16 %v2223_v46, %v2223_v46  ;;  %v2221_v45 = vmax.f32 %v2205_v47, 0.0  ;;  %v2208_v1 = vadd.f32 %v3024_v48, %v2002_v5 }
 0x1d2   : > { %v2181_v18 = vpop.f32.mrf.mxu0 }
 0x1d3   : > { %2304 = vst.msk [vmem:[%s3797_s13 + $0x38] sm:$0xf] %vm2289_vm1, %v2699_v34  ;;  %v2697_v9 = vpack.c.bf16 %v2221_v45, %v2221_v45  ;;  %v2224_v23 = vmax.f32 %v2208_v1, 0.0  ;;  %v2206_v29 = vadd.f32 %v2181_v18, %v2000_v53 }
 0x1d5   : > { %2302 = vst.msk [vmem:[%s3797_s13 + $0x30] sm:$0xf] %vm2289_vm1, %v2697_v9  ;;  %v2700_v55 = vpack.c.bf16 %v2224_v23, %v2224_v23  ;;  %v2222_v54 = vmax.f32 %v2206_v29, 0.0 }
 0x1d7   : > { %2305 = vst.msk [vmem:[%s3797_s13 + $0x3c] sm:$0xf] %vm2289_vm1, %v2700_v55  ;;  %v2698_v13 = vpack.c.bf16 %v2222_v54, %v2222_v54 }
 0x1d9   : > { %2303 = vst.msk [vmem:[%s3797_s13 + $0x34] sm:$0xf] %vm2289_vm1, %v2698_v13 }
 0x1da PF: > { %s14_s15 = sadd.s32 1, %s3135_s15  }
 0x1db   : > { %p11_p4 = scmp.ge.s32.totalorder %s14_s15, 4  }
 0x1dd   :  { %13 = sbr.rel (!%p11_p4) target bundleno = 1 (0x1), region = 77 }

// kernel: conv_vae_forward.11
= control target key start
LH: loop header
LB: loop body
LE: loop exit
PB: predicated region body
PF: predicated region fallthrough
CT: control target
= control target key end

     0   :  { %s2110_s12 = smov 0   ;;  %s2480_s0 = inlined_call_operand.vmem [shape: bf16[2,128,83], index: 0, kind: input, shape index: {}]   ;;  %s2481_s1 = inlined_call_operand.vmem [shape: bf16[9,64,128], index: 1, kind: input, shape index: {}]   ;;  %s2482_s2 = inlined_call_operand.vmem [shape: f32[64,1], index: 2, kind: input, shape index: {}]   ;;  %s2483_s3 = inlined_call_operand.vmem [shape: bf16[2,64,63], index: 3, kind: output, shape index: {}]  }
   0x1 LB: > { %s1533_s13 = sadd.s32 4294967295, %s2079_s12   ;;  %p1537_p0 = scmp.ge.s32.totalorder %s2079_s12, 1  ;;  %s2079_s12 = sphi %s2110_s12, %s13_s12  }
   0x2   : > { %p137_p1 = scmp.lt.s32.totalorder %s2079_s12, 3 }
   0x4   : > { %p138_p2 = pnand %p1537_p0, %p137_p1 }
   0x6   : > { %141 = sbr.rel (%p138_p2) target bundleno = 498 (0x1f2), region = 32 }
   0xb   : > { %p161_p3 = scmp.lt.s32.totalorder %s1533_s13, 1  ;;  %s2081_s18 = smov 127   ;;  %v2037_v7 = vld [vmem:[%s2481_s1] sm:$0xff]   ;;  %v2038_v10 = vld [vmem:[%s2481_s1 + $0x8] sm:$0xff]   ;;  %v2041_v11 = vld [vmem:[%s2481_s1 + $0x10] sm:$0xff]   ;;  %v2087_v14 = vmov 0  }
   0xc   : > { %1794 = vmatprep.mubr.bf16.mxu0 %v2037_v7  ;;  %s2082_s21 = smov 126   ;;  %v2039_v9 = vld [vmem:[%s2481_s1 + $0x20] sm:$0xff]   ;;  %s2083_s24 = smov 119   ;;  %v2042_v12 = vld [vmem:[%s2481_s1 + $0x18] sm:$0xff]   ;;  %2028 = vset.pattern.permute.xlu1 %v2087_v14  ;;  %v173_v23 = vld [vmem:[%s2482_s2 + $0x8] sm:$0xff]  ;;  %vm1469_vm0 = vcmask 510976  }
   0xd   : > { %s2505_s13 = smov (!%p161_p3, %s1533_s13), 1  ;;  %1818 = vmatprep.mubr.bf16.mxu1 %v2039_v9  ;;  %v2043_v13 = vld [vmem:[%s2481_s1 + $0x40] sm:$0xff]   ;;  %s2084_s6 = smov 118   ;;  %2027 = vset.pattern.permute.xlu0 %v2087_v14  ;;  %v175_v26 = vld [vmem:[%s2482_s2 + $0x18] sm:$0xff]  ;;  %v174_v27 = vld [vmem:[%s2482_s2 + $0x10] sm:$0xff] }
   0xe   : > { %s1660_s14 = sshll.u32 %s2505_s13, 6  ;;  %s2085_s7 = smov 117   ;;  %v172_v21 = vld [vmem:[%s2482_s2] sm:$0xff]  ;;  %v177_v30 = vld [vmem:[%s2482_s2 + $0x28] sm:$0xff]  ;;  %v179_v34 = vld [vmem:[%s2482_s2 + $0x38] sm:$0xff] }
   0xf   : > { %s165_s17 = scalar_lea.vmem %s2480_s0, %s1660_s14  ;;  %s2086_s8 = smov 110   ;;  %v176_v31 = vld [vmem:[%s2482_s2 + $0x20] sm:$0xff]  ;;  %v178_v35 = vld [vmem:[%s2482_s2 + $0x30] sm:$0xff]  ;;  %v2040_v38 = vld [vmem:[%s2481_s1 + $0x28] sm:$0xff]  }
  0x10   : > { %v2124_v0 = vld [vmem:[%s165_s17 + $0x38] sm:$0xff]   ;;  %v2126_v1 = vld [vmem:[%s165_s17 + $0x30] sm:$0xff]   ;;  %v2129_v2 = vld [vmem:[%s165_s17 + $0x28] sm:$0xff]   ;;  %s2088_s9 = smov 109   ;;  %s2089_s10 = smov 108  }
  0x11   : > { %436 = vrot.lane.b32.xlu0 %v2124_v0, %s2081_s18  ;;  %1778 = vmatprep.subr.bf16.mxu0 %v2124_v0  ;;  %v2134_v3 = vld [vmem:[%s165_s17 + $0x20] sm:$0xff]   ;;  %v2138_v4 = vld [vmem:[%s165_s17 + $0x18] sm:$0xff]   ;;  %v2140_v5 = vld [vmem:[%s165_s17 + $0x10] sm:$0xff]   ;;  %s1661_s14 = sshll.u32 %s2505_s13, 5 }
  0x12   : > { %1779 = vmatpush3.bf16.msra.mxu0 %v2124_v0  ;;  %432 = vrot.lane.b32.xlu1 %v2129_v2, %s2081_s18  ;;  %v2144_v6 = vld [vmem:[%s165_s17 + $0x8] sm:$0xff]   ;;  %v2151_v8 = vld [vmem:[%s165_s17] sm:$0xff]   ;;  %v2045_v40 = vld [vmem:[%s2481_s1 + $0x30] sm:$0xff]   ;;  %s2439_s17 = scalar_lea.vmem %s2483_s3, %s1661_s14 }
  0x13   : > { %1780 = vmatprep.subr.bf16.mxu0 %v2126_v1  ;;  %v2046_v44 = vld [vmem:[%s2481_s1 + $0x38] sm:$0xff]   ;;  %v2049_v46 = vld [vmem:[%s2481_s1 + $0x60] sm:$0xff]   ;;  %v2044_v50 = vld [vmem:[%s2481_s1 + $0x48] sm:$0xff]  }
  0x14   : > { %v2047_v52 = vld [vmem:[%s2481_s1 + $0x50] sm:$0xff]   ;;  %v2048_v56 = vld [vmem:[%s2481_s1 + $0x58] sm:$0xff]   ;;  %v2053_v58 = vld [vmem:[%s2481_s1 + $0x80] sm:$0xff]  }
  0x15   : > { %434 = vrot.lane.b32.xlu0 %v2126_v1, %s2081_s18  ;;  %v2050_v62 = vld [vmem:[%s2481_s1 + $0x68] sm:$0xff]  }
  0x16   : > { %1781 = vmatpush3.bf16.msra.mxu0 %v2126_v1  ;;  %430 = vrot.lane.b32.xlu1 %v2134_v3, %s2081_s18 }
  0x17   : > { %1782 = vmatprep.subr.bf16.mxu0 %v2129_v2 }
  0x19   : > { %428 = vrot.lane.b32.xlu0 %v2138_v4, %s2081_s18 }
  0x1a   : > { %1783 = vmatpush3.bf16.msra.mxu0 %v2129_v2  ;;  %426 = vrot.lane.b32.xlu1 %v2140_v5, %s2081_s18 }
  0x1b   : > { %1784 = vmatprep.subr.bf16.mxu0 %v2134_v3 }
  0x1d   : > { %424 = vrot.lane.b32.xlu0 %v2144_v6, %s2081_s18 }
  0x1e   : > { %1785 = vmatpush3.bf16.msra.mxu0 %v2134_v3  ;;  %422 = vrot.lane.b32.xlu1 %v2151_v8, %s2081_s18 }
  0x1f   : > { %1786 = vmatprep.subr.bf16.mxu0 %v2138_v4 }
  0x21   : > { %566 = vrot.lane.b32.xlu0 %v2124_v0, %s2082_s21 }
  0x22   : > { %1787 = vmatpush3.bf16.msra.mxu0 %v2138_v4  ;;  %696 = vrot.lane.b32.xlu1 %v2124_v0, %s2083_s24 }
  0x23   : > { %1788 = vmatprep.subr.bf16.mxu0 %v2140_v5 }
  0x25   : > { %564 = vrot.lane.b32.xlu0 %v2126_v1, %s2082_s21 }
  0x26   : > { %1789 = vmatpush3.bf16.msra.mxu0 %v2140_v5  ;;  %694 = vrot.lane.b32.xlu1 %v2126_v1, %s2083_s24 }
  0x27   : > { %1790 = vmatprep.subr.bf16.mxu0 %v2144_v6 }
  0x29   : > { %562 = vrot.lane.b32.xlu0 %v2129_v2, %s2082_s21 }
  0x2a   : > { %1791 = vmatpush3.bf16.msra.mxu0 %v2144_v6  ;;  %692 = vrot.lane.b32.xlu1 %v2129_v2, %s2083_s24 }
  0x2b   : > { %1792 = vmatprep.subr.bf16.mxu0 %v2151_v8 }
  0x2d   : > { %560 = vrot.lane.b32.xlu0 %v2134_v3, %s2082_s21 }
  0x2e   : > { %1793 = vmatpush3.bf16.msra.mxu0 %v2151_v8  ;;  %690 = vrot.lane.b32.xlu1 %v2134_v3, %s2083_s24 }
  0x31   : > { %558 = vrot.lane.b32.xlu0 %v2138_v4, %s2082_s21  ;;  %1795 = vmatmul.mubr.bf16.vlgmr.msra.gmra.mxu0 %v2038_v10  ;;  %v2054_v10 = vld [vmem:[%s2481_s1 + $0x88] sm:$0xff]  }
  0x32   : > { %1798 = vmatprep.mubr.bf16.mxu0 %v2041_v11  ;;  %688 = vrot.lane.b32.xlu1 %v2138_v4, %s2083_s24 }
  0x35   : > { %556 = vrot.lane.b32.xlu0 %v2140_v5, %s2082_s21 }
  0x36   : > { %686 = vrot.lane.b32.xlu1 %v2140_v5, %s2083_s24 }
  0x39   : > { %554 = vrot.lane.b32.xlu0 %v2144_v6, %s2082_s21  ;;  %1799 = vmatmul.mubr.bf16.gmra.mxu0 %v2042_v12  ;;  %v2055_v12 = vld [vmem:[%s2481_s1 + $0x90] sm:$0xff]  }
  0x3a   : > { %1842 = vmatprep.mubr.bf16.mxu0 %v2043_v13  ;;  %684 = vrot.lane.b32.xlu1 %v2144_v6, %s2083_s24 }
  0x3d   : > { %552 = vrot.lane.b32.xlu0 %v2151_v8, %s2082_s21 }
  0x3e   : > { %682 = vrot.lane.b32.xlu1 %v2151_v8, %s2083_s24 }
  0x41   : > { %826 = vrot.lane.b32.xlu0 %v2124_v0, %s2084_s6 }
  0x42   : > { %956 = vrot.lane.b32.xlu1 %v2124_v0, %s2085_s7 }
  0x45   : > { %824 = vrot.lane.b32.xlu0 %v2126_v1, %s2084_s6 }
  0x46   : > { %954 = vrot.lane.b32.xlu1 %v2126_v1, %s2085_s7 }
  0x49   : > { %822 = vrot.lane.b32.xlu0 %v2129_v2, %s2084_s6 }
  0x4a   : > { %952 = vrot.lane.b32.xlu1 %v2129_v2, %s2085_s7 }
  0x4d   : > { %820 = vrot.lane.b32.xlu0 %v2134_v3, %s2084_s6 }
  0x4e   : > { %950 = vrot.lane.b32.xlu1 %v2134_v3, %s2085_s7 }
  0x51   : > { %818 = vrot.lane.b32.xlu0 %v2138_v4, %s2084_s6 }
  0x52   : > { %948 = vrot.lane.b32.xlu1 %v2138_v4, %s2085_s7 }
  0x55   : > { %816 = vrot.lane.b32.xlu0 %v2140_v5, %s2084_s6 }
  0x56   : > { %946 = vrot.lane.b32.xlu1 %v2140_v5, %s2085_s7 }
  0x59   : > { %814 = vrot.lane.b32.xlu0 %v2144_v6, %s2084_s6 }
  0x5a   : > { %944 = vrot.lane.b32.xlu1 %v2144_v6, %s2085_s7 }
  0x5d   : > { %812 = vrot.lane.b32.xlu0 %v2151_v8, %s2084_s6 }
  0x5e   : > { %942 = vrot.lane.b32.xlu1 %v2151_v8, %s2085_s7 }
  0x61   : > { %1086 = vrot.lane.b32.xlu0 %v2124_v0, %s2086_s8 }
  0x62   : > { %1216 = vrot.lane.b32.xlu1 %v2124_v0, %s2088_s9 }
  0x65   : > { %1084 = vrot.lane.b32.xlu0 %v2126_v1, %s2086_s8 }
  0x66   : > { %1214 = vrot.lane.b32.xlu1 %v2126_v1, %s2088_s9 }
  0x69   : > { %1082 = vrot.lane.b32.xlu0 %v2129_v2, %s2086_s8 }
  0x6a   : > { %1212 = vrot.lane.b32.xlu1 %v2129_v2, %s2088_s9 }
  0x6d   : > { %1080 = vrot.lane.b32.xlu0 %v2134_v3, %s2086_s8 }
  0x6e   : > { %1210 = vrot.lane.b32.xlu1 %v2134_v3, %s2088_s9 }
  0x71   : > { %1078 = vrot.lane.b32.xlu0 %v2138_v4, %s2086_s8 }
  0x72   : > { %1208 = vrot.lane.b32.xlu1 %v2138_v4, %s2088_s9 }
  0x75   : > { %1076 = vrot.lane.b32.xlu0 %v2140_v5, %s2086_s8 }
  0x76   : > { %1206 = vrot.lane.b32.xlu1 %v2140_v5, %s2088_s9 }
  0x79   : > { %1074 = vrot.lane.b32.xlu0 %v2144_v6, %s2086_s8 }
  0x7a   : > { %1204 = vrot.lane.b32.xlu1 %v2144_v6, %s2088_s9 }
  0x7d   : > { %1072 = vrot.lane.b32.xlu0 %v2151_v8, %s2086_s8 }
  0x7e   : > { %1202 = vrot.lane.b32.xlu1 %v2151_v8, %s2088_s9 }
  0x81   : > { %1346 = vrot.lane.b32.xlu0 %v2124_v0, %s2089_s10  ;;  %v2051_v0 = vld [vmem:[%s2481_s1 + $0x70] sm:$0xff]  }
  0x82   : > { %1344 = vrot.lane.b32.xlu1 %v2126_v1, %s2089_s10 }
  0x83   : > { %v437_v15 = vpop.permute.xlu0 %436 }
  0x84   : > { %1802 = vmatprep.subr.bf16.mxu1 %v437_v15  ;;  %v433_v16 = vpop.permute.xlu1 %432 }
  0x85   : > { %1803 = vmatpush3.bf16.msra.mxu1 %v437_v15  ;;  %1342 = vrot.lane.b32.xlu0 %v2129_v2, %s2089_s10 }
  0x86   : > { %1340 = vrot.lane.b32.xlu1 %v2134_v3, %s2089_s10 }
  0x87   : > { %v435_v17 = vpop.permute.xlu0 %434 }
  0x88   : > { %1804 = vmatprep.subr.bf16.mxu1 %v435_v17  ;;  %v431_v18 = vpop.permute.xlu1 %430 }
  0x89   : > { %1805 = vmatpush3.bf16.msra.mxu1 %v435_v17  ;;  %1338 = vrot.lane.b32.xlu0 %v2138_v4, %s2089_s10  ;;  %v2052_v4 = vld [vmem:[%s2481_s1 + $0x78] sm:$0xff]  }
  0x8a   : > { %1806 = vmatprep.subr.bf16.mxu1 %v433_v16  ;;  %1336 = vrot.lane.b32.xlu1 %v2140_v5, %s2089_s10 }
  0x8b   : > { %v429_v19 = vpop.permute.xlu0 %428 }
  0x8c   : > { %v427_v20 = vpop.permute.xlu1 %426 }
  0x8d   : > { %1807 = vmatpush3.bf16.msra.mxu1 %v433_v16  ;;  %1334 = vrot.lane.b32.xlu0 %v2144_v6, %s2089_s10  ;;  %v2057_v6 = vld [vmem:[%s2481_s1 + $0xa0] sm:$0xff]   ;;  %v2056_v16 = vld [vmem:[%s2481_s1 + $0x98] sm:$0xff]  }
  0x8e   : > { %1808 = vmatprep.subr.bf16.mxu1 %v431_v18  ;;  %1332 = vrot.lane.b32.xlu1 %v2151_v8, %s2089_s10 }
  0x8f   : > { %v425_v22 = vpop.permute.xlu0 %424 }
  0x90   : > { %v423_v24 = vpop.permute.xlu1 %422 }
  0x91   : > { %1809 = vmatpush3.bf16.msra.mxu1 %v431_v18  ;;  %182 = vperm.xlu0 %2027, %v172_v21   ;;  %v2061_v18 = vld [vmem:[%s2481_s1 + $0xc0] sm:$0xff]  }
  0x92   : > { %1810 = vmatprep.subr.bf16.mxu1 %v429_v19  ;;  %187 = vperm.xlu1 %2028, %v173_v23  }
  0x93   : > { %v567_v25 = vpop.permute.xlu0 %566 }
  0x94   : > { %1826 = vmatprep.subr.bf16.mxu0 %v567_v25  ;;  %v697_v28 = vpop.permute.xlu1 %696 }
  0x95   : > { %1811 = vmatpush3.bf16.msra.mxu1 %v429_v19  ;;  %1827 = vmatpush3.bf16.msra.mxu0 %v567_v25 }
  0x96   : > { %1812 = vmatprep.subr.bf16.mxu1 %v427_v20  ;;  %197 = vperm.xlu0 %2027, %v175_v26  }
  0x97   : > { %v565_v29 = vpop.permute.xlu0 %564  ;;  %192 = vperm.xlu1 %2028, %v174_v27  }
  0x98   : > { %1828 = vmatprep.subr.bf16.mxu0 %v565_v29  ;;  %v695_v32 = vpop.permute.xlu1 %694 }
  0x99   : > { %1813 = vmatpush3.bf16.msra.mxu1 %v427_v20  ;;  %1829 = vmatpush3.bf16.msra.mxu0 %v565_v29 }
  0x9a   : > { %1814 = vmatprep.subr.bf16.mxu1 %v425_v22  ;;  %207 = vperm.xlu0 %2027, %v177_v30   ;;  %v2065_v30 = vld [vmem:[%s2481_s1 + $0xe0] sm:$0xff]  }
  0x9b   : > { %v563_v33 = vpop.permute.xlu0 %562  ;;  %202 = vperm.xlu1 %2028, %v176_v31  }
  0x9c   : > { %1830 = vmatprep.subr.bf16.mxu0 %v563_v33  ;;  %v693_v36 = vpop.permute.xlu1 %692 }
  0x9d   : > { %1815 = vmatpush3.bf16.msra.mxu1 %v425_v22  ;;  %1831 = vmatpush3.bf16.msra.mxu0 %v563_v33  ;;  %v2058_v22 = vld [vmem:[%s2481_s1 + $0xa8] sm:$0xff]  }
  0x9e   : > { %1816 = vmatprep.subr.bf16.mxu1 %v423_v24  ;;  %217 = vperm.xlu0 %2027, %v179_v34   ;;  %v2062_v34 = vld [vmem:[%s2481_s1 + $0xc8] sm:$0xff]  }
  0x9f   : > { %v561_v37 = vpop.permute.xlu0 %560  ;;  %212 = vperm.xlu1 %2028, %v178_v35  }
  0xa0   : > { %1832 = vmatprep.subr.bf16.mxu0 %v561_v37  ;;  %v691_v39 = vpop.permute.xlu1 %690 }
  0xa1   : > { %1817 = vmatpush3.bf16.msra.mxu1 %v423_v24  ;;  %1833 = vmatpush3.bf16.msra.mxu0 %v561_v37  ;;  %v2059_v24 = vld [vmem:[%s2481_s1 + $0xb0] sm:$0xff]  }
  0xa2   : > { %1850 = vmatprep.subr.bf16.mxu1 %v697_v28  ;;  %v2063_v37 = vld [vmem:[%s2481_s1 + $0xd0] sm:$0xff]  }
  0xa3   : > { %v559_v41 = vpop.permute.xlu0 %558 }
  0xa4   : > { %1819 = vmatmul.mubr.bf16.vlgmr.msra.gmra.mxu1 %v2040_v38  ;;  %1834 = vmatprep.subr.bf16.mxu0 %v559_v41  ;;  %v689_v42 = vpop.permute.xlu1 %688 }
  0xa5   : > { %1835 = vmatpush3.bf16.msra.mxu0 %v559_v41  ;;  %1851 = vmatpush3.bf16.msra.mxu1 %v697_v28  ;;  %v2060_v28 = vld [vmem:[%s2481_s1 + $0xb8] sm:$0xff]  }
  0xa6   : > { %1852 = vmatprep.subr.bf16.mxu1 %v695_v32  ;;  %1822 = vmatprep.mubr.bf16.mxu1 %v2045_v40  ;;  %v2064_v40 = vld [vmem:[%s2481_s1 + $0xd8] sm:$0xff]  }
  0xa7   : > { %v557_v43 = vpop.permute.xlu0 %556 }
  0xa8   : > { %1836 = vmatprep.subr.bf16.mxu0 %v557_v43  ;;  %v687_v45 = vpop.permute.xlu1 %686 }
  0xa9   : > { %1837 = vmatpush3.bf16.msra.mxu0 %v557_v43  ;;  %1853 = vmatpush3.bf16.msra.mxu1 %v695_v32 }
  0xaa   : > { %1854 = vmatprep.subr.bf16.mxu1 %v693_v36 }
  0xab   : > { %v555_v47 = vpop.permute.xlu0 %554 }
  0xac   : > { %1838 = vmatprep.subr.bf16.mxu0 %v555_v47  ;;  %1823 = vmatmul.mubr.bf16.gmra.mxu1 %v2046_v44  ;;  %v685_v48 = vpop.permute.xlu1 %684  ;;  %v2066_v44 = vld [vmem:[%s2481_s1 + $0xe8] sm:$0xff]  }
  0xad   : > { %1839 = vmatpush3.bf16.msra.mxu0 %v555_v47  ;;  %1855 = vmatpush3.bf16.msra.mxu1 %v693_v36 }
  0xae   : > { %1856 = vmatprep.subr.bf16.mxu1 %v691_v39  ;;  %1866 = vmatprep.mubr.bf16.mxu1 %v2049_v46  ;;  %v2067_v46 = vld [vmem:[%s2481_s1 + $0xf0] sm:$0xff]  }
  0xaf   : > { %v553_v49 = vpop.permute.xlu0 %552 }
  0xb0   : > { %1840 = vmatprep.subr.bf16.mxu0 %v553_v49  ;;  %v683_v51 = vpop.permute.xlu1 %682 }
  0xb1   : > { %1841 = vmatpush3.bf16.msra.mxu0 %v553_v49  ;;  %1857 = vmatpush3.bf16.msra.mxu1 %v691_v39 }
  0xb2   : > { %1858 = vmatprep.subr.bf16.mxu1 %v689_v42 }
  0xb3   : > { %v827_v53 = vpop.permute.xlu0 %826 }
  0xb4   : > { %1843 = vmatmul.mubr.bf16.vlgmr.msra.gmra.mxu0 %v2044_v50  ;;  %1874 = vmatprep.subr.bf16.mxu0 %v827_v53  ;;  %v957_v54 = vpop.permute.xlu1 %956  ;;  %v2071_v50 = vld [vmem:[%s2481_s1 + $0x110] sm:$0xff]  }
  0xb5   : > { %1859 = vmatpush3.bf16.msra.mxu1 %v689_v42  ;;  %1875 = vmatpush3.bf16.msra.mxu0 %v827_v53  ;;  %v2069_v42 = vld [vmem:[%s2481_s1 + $0x100] sm:$0xff]  }
  0xb6   : > { %1860 = vmatprep.subr.bf16.mxu1 %v687_v45  ;;  %1846 = vmatprep.mubr.bf16.mxu0 %v2047_v52  ;;  %v2072_v52 = vld [vmem:[%s2481_s1 + $0x118] sm:$0xff]  }
  0xb7   : > { %v825_v55 = vpop.permute.xlu0 %824 }
  0xb8   : > { %1876 = vmatprep.subr.bf16.mxu0 %v825_v55  ;;  %v955_v57 = vpop.permute.xlu1 %954 }
  0xb9   : > { %1861 = vmatpush3.bf16.msra.mxu1 %v687_v45  ;;  %1877 = vmatpush3.bf16.msra.mxu0 %v825_v55 }
  0xba   : > { %1862 = vmatprep.subr.bf16.mxu1 %v685_v48 }
  0xbb   : > { %v823_v59 = vpop.permute.xlu0 %822 }
  0xbc   : > { %1847 = vmatmul.mubr.bf16.gmra.mxu0 %v2048_v56  ;;  %1878 = vmatprep.subr.bf16.mxu0 %v823_v59  ;;  %v953_v60 = vpop.permute.xlu1 %952 }
  0xbd   : > { %1863 = vmatpush3.bf16.msra.mxu1 %v685_v48  ;;  %1879 = vmatpush3.bf16.msra.mxu0 %v823_v59  ;;  %v2068_v48 = vld [vmem:[%s2481_s1 + $0xf8] sm:$0xff]  }
  0xbe   : > { %1864 = vmatprep.subr.bf16.mxu1 %v683_v51  ;;  %1890 = vmatprep.mubr.bf16.mxu0 %v2053_v58 }
  0xbf   : > { %v821_v61 = vpop.permute.xlu0 %820 }
  0xc0   : > { %1880 = vmatprep.subr.bf16.mxu0 %v821_v61  ;;  %v951_v63 = vpop.permute.xlu1 %950 }
  0xc1   : > { %1865 = vmatpush3.bf16.msra.mxu1 %v683_v51  ;;  %1881 = vmatpush3.bf16.msra.mxu0 %v821_v61  ;;  %v2070_v51 = vld [vmem:[%s2481_s1 + $0x108] sm:$0xff]  }
  0xc2   : > { %1898 = vmatprep.subr.bf16.mxu1 %v957_v54 }
  0xc3   : > { %v819_v1 = vpop.permute.xlu0 %818 }
  0xc4   : > { %1867 = vmatmul.mubr.bf16.vlgmr.msra.gmra.mxu1 %v2050_v62  ;;  %1882 = vmatprep.subr.bf16.mxu0 %v819_v1  ;;  %v949_v2 = vpop.permute.xlu1 %948 }
  0xc5   : > { %1883 = vmatpush3.bf16.msra.mxu0 %v819_v1  ;;  %1899 = vmatpush3.bf16.msra.mxu1 %v957_v54 }
  0xc6   : > { %1900 = vmatprep.subr.bf16.mxu1 %v955_v57  ;;  %1870 = vmatprep.mubr.bf16.mxu1 %v2051_v0 }
  0xc7   : > { %v817_v3 = vpop.permute.xlu0 %816 }
  0xc8   : > { %1884 = vmatprep.subr.bf16.mxu0 %v817_v3  ;;  %v947_v5 = vpop.permute.xlu1 %946 }
  0xc9   : > { %1885 = vmatpush3.bf16.msra.mxu0 %v817_v3  ;;  %1901 = vmatpush3.bf16.msra.mxu1 %v955_v57 }
  0xca   : > { %1902 = vmatprep.subr.bf16.mxu1 %v953_v60 }
  0xcb   : > { %v815_v7 = vpop.permute.xlu0 %814 }
  0xcc   : > { %1871 = vmatmul.mubr.bf16.gmra.mxu1 %v2052_v4  ;;  %1886 = vmatprep.subr.bf16.mxu0 %v815_v7  ;;  %v945_v8 = vpop.permute.xlu1 %944 }
  0xcd   : > { %1887 = vmatpush3.bf16.msra.mxu0 %v815_v7  ;;  %1903 = vmatpush3.bf16.msra.mxu1 %v953_v60 }
  0xce   : > { %1904 = vmatprep.subr.bf16.mxu1 %v951_v63  ;;  %1914 = vmatprep.mubr.bf16.mxu1 %v2057_v6 }
  0xcf   : > { %v813_v9 = vpop.permute.xlu0 %812 }
  0xd0   : > { %1888 = vmatprep.subr.bf16.mxu0 %v813_v9  ;;  %v943_v11 = vpop.permute.xlu1 %942 }
  0xd1   : > { %1889 = vmatpush3.bf16.msra.mxu0 %v813_v9  ;;  %1905 = vmatpush3.bf16.msra.mxu1 %v951_v63 }
  0xd2   : > { %1906 = vmatprep.subr.bf16.mxu1 %v949_v2 }
  0xd3   : > { %v1087_v13 = vpop.permute.xlu0 %1086 }
  0xd4   : > { %1891 = vmatmul.mubr.bf16.vlgmr.msra.gmra.mxu0 %v2054_v10  ;;  %1922 = vmatprep.subr.bf16.mxu0 %v1087_v13  ;;  %v1217_v14 = vpop.permute.xlu1 %1216 }
  0xd5   : > { %1907 = vmatpush3.bf16.msra.mxu1 %v949_v2  ;;  %1923 = vmatpush3.bf16.msra.mxu0 %v1087_v13 }
  0xd6   : > { %1908 = vmatprep.subr.bf16.mxu1 %v947_v5  ;;  %1894 = vmatprep.mubr.bf16.mxu0 %v2055_v12 }
  0xd7   : > { %v1085_v15 = vpop.permute.xlu0 %1084 }
  0xd8   : > { %1924 = vmatprep.subr.bf16.mxu0 %v1085_v15  ;;  %v1215_v17 = vpop.permute.xlu1 %1214 }
  0xd9   : > { %1909 = vmatpush3.bf16.msra.mxu1 %v947_v5  ;;  %1925 = vmatpush3.bf16.msra.mxu0 %v1085_v15 }
  0xda   : > { %1910 = vmatprep.subr.bf16.mxu1 %v945_v8 }
  0xdb   : > { %v1083_v19 = vpop.permute.xlu0 %1082 }
  0xdc   : > { %1895 = vmatmul.mubr.bf16.gmra.mxu0 %v2056_v16  ;;  %1926 = vmatprep.subr.bf16.mxu0 %v1083_v19  ;;  %v1213_v20 = vpop.permute.xlu1 %1212 }
  0xdd   : > { %1911 = vmatpush3.bf16.msra.mxu1 %v945_v8  ;;  %1927 = vmatpush3.bf16.msra.mxu0 %v1083_v19 }
  0xde   : > { %1912 = vmatprep.subr.bf16.mxu1 %v943_v11  ;;  %1938 = vmatprep.mubr.bf16.mxu0 %v2061_v18 }
  0xdf   : > { %v1081_v21 = vpop.permute.xlu0 %1080 }
  0xe0   : > { %1928 = vmatprep.subr.bf16.mxu0 %v1081_v21  ;;  %v1211_v23 = vpop.permute.xlu1 %1210 }
  0xe1   : > { %1913 = vmatpush3.bf16.msra.mxu1 %v943_v11  ;;  %1929 = vmatpush3.bf16.msra.mxu0 %v1081_v21 }
  0xe2   : > { %1946 = vmatprep.subr.bf16.mxu1 %v1217_v14 }
  0xe3   : > { %v1079_v25 = vpop.permute.xlu0 %1078 }
  0xe4   : > { %1915 = vmatmul.mubr.bf16.vlgmr.msra.gmra.mxu1 %v2058_v22  ;;  %1930 = vmatprep.subr.bf16.mxu0 %v1079_v25  ;;  %v1209_v26 = vpop.permute.xlu1 %1208 }
  0xe5   : > { %1931 = vmatpush3.bf16.msra.mxu0 %v1079_v25  ;;  %1947 = vmatpush3.bf16.msra.mxu1 %v1217_v14 }
  0xe6   : > { %1948 = vmatprep.subr.bf16.mxu1 %v1215_v17  ;;  %1918 = vmatprep.mubr.bf16.mxu1 %v2059_v24 }
  0xe7   : > { %v1077_v27 = vpop.permute.xlu0 %1076 }
  0xe8   : > { %1932 = vmatprep.subr.bf16.mxu0 %v1077_v27  ;;  %v1207_v29 = vpop.permute.xlu1 %1206 }
  0xe9   : > { %1933 = vmatpush3.bf16.msra.mxu0 %v1077_v27  ;;  %1949 = vmatpush3.bf16.msra.mxu1 %v1215_v17 }
  0xea   : > { %1950 = vmatprep.subr.bf16.mxu1 %v1213_v20 }
  0xeb   : > { %v1075_v31 = vpop.permute.xlu0 %1074 }
  0xec   : > { %1919 = vmatmul.mubr.bf16.gmra.mxu1 %v2060_v28  ;;  %1934 = vmatprep.subr.bf16.mxu0 %v1075_v31  ;;  %v1205_v32 = vpop.permute.xlu1 %1204 }
  0xed   : > { %1935 = vmatpush3.bf16.msra.mxu0 %v1075_v31  ;;  %1951 = vmatpush3.bf16.msra.mxu1 %v1213_v20 }
  0xee   : > { %1952 = vmatprep.subr.bf16.mxu1 %v1211_v23  ;;  %1962 = vmatprep.mubr.bf16.mxu1 %v2065_v30 }
  0xef   : > { %v1073_v33 = vpop.permute.xlu0 %1072 }
  0xf0   : > { %1936 = vmatprep.subr.bf16.mxu0 %v1073_v33  ;;  %v1203_v35 = vpop.permute.xlu1 %1202 }
  0xf1   : > { %1937 = vmatpush3.bf16.msra.mxu0 %v1073_v33  ;;  %1953 = vmatpush3.bf16.msra.mxu1 %v1211_v23  ;;  %v1796_v53 = vpop.f32.mrf.mxu0 }
  0xf2   : > { %1954 = vmatprep.subr.bf16.mxu1 %v1209_v26 }
  0xf3   : > { %v1347_v36 = vpop.permute.xlu0 %1346  ;;  %v350_v54 = vpop.f32.mrf.mxu0 }
  0xf4   : > { %1939 = vmatmul.mubr.bf16.vlgmr.msra.gmra.mxu0 %v2062_v34  ;;  %1970 = vmatprep.subr.bf16.mxu0 %v1347_v36  ;;  %v1345_v38 = vpop.permute.xlu1 %1344 }
  0xf5   : > { %1955 = vmatpush3.bf16.msra.mxu1 %v1209_v26  ;;  %1971 = vmatpush3.bf16.msra.mxu0 %v1347_v36  ;;  %v1797_v55 = vpop.f32.mrf.mxu0 }
  0xf6   : > { %1956 = vmatprep.subr.bf16.mxu1 %v1207_v29  ;;  %1972 = vmatprep.subr.bf16.mxu0 %v1345_v38 }
  0xf7   : > { %v1343_v39 = vpop.permute.xlu0 %1342  ;;  %1942 = vmatprep.mubr.bf16.mxu0 %v2063_v37  ;;  %v2368_v56 = vpop.f32.mrf.mxu0 }
  0xf8   : > { %v1341_v41 = vpop.permute.xlu1 %1340 }
  0xf9   : > { %1957 = vmatpush3.bf16.msra.mxu1 %v1207_v29  ;;  %1973 = vmatpush3.bf16.msra.mxu0 %v1345_v38  ;;  %v2370_v57 = vpop.f32.mrf.mxu0 }
  0xfa   : > { %1958 = vmatprep.subr.bf16.mxu1 %v1205_v32  ;;  %1974 = vmatprep.subr.bf16.mxu0 %v1343_v39 }
  0xfb   : > { %v1339_v43 = vpop.permute.xlu0 %1338  ;;  %v2372_v59 = vpop.f32.mrf.mxu0 }
  0xfc   : > { %1943 = vmatmul.mubr.bf16.gmra.mxu0 %v2064_v40  ;;  %v1337_v45 = vpop.permute.xlu1 %1336 }
  0xfd   : > { %1959 = vmatpush3.bf16.msra.mxu1 %v1205_v32  ;;  %1975 = vmatpush3.bf16.msra.mxu0 %v1343_v39  ;;  %v2374_v61 = vpop.f32.mrf.mxu0 }
  0xfe   : > { %1960 = vmatprep.subr.bf16.mxu1 %v1203_v35  ;;  %1976 = vmatprep.subr.bf16.mxu0 %v1341_v41 }
  0xff   : > { %1986 = vmatprep.mubr.bf16.mxu0 %v2069_v42  ;;  %v1335_v47 = vpop.permute.xlu0 %1334  ;;  %v2376_v63 = vpop.f32.mrf.mxu0 }
 0x100   : > { %v1333_v49 = vpop.permute.xlu1 %1332 }
 0x101   : > { %1961 = vmatpush3.bf16.msra.mxu1 %v1203_v35  ;;  %1977 = vmatpush3.bf16.msra.mxu0 %v1341_v41 }
 0x102   : > { %1994 = vmatprep.subr.bf16.mxu1 %v1347_v36  ;;  %1978 = vmatprep.subr.bf16.mxu0 %v1339_v43 }
 0x104   : > { %1963 = vmatmul.mubr.bf16.vlgmr.msra.gmra.mxu1 %v2066_v44 }
 0x105   : > { %2002 = vmatpush3.bf16.msra.mxu1 %v1347_v36  ;;  %1979 = vmatpush3.bf16.msra.mxu0 %v1339_v43 }
 0x106   : > { %1995 = vmatprep.subr.bf16.mxu1 %v1345_v38  ;;  %1980 = vmatprep.subr.bf16.mxu0 %v1337_v45 }
 0x107   : > { %1966 = vmatprep.mubr.bf16.mxu1 %v2067_v46 }
 0x109   : > { %2003 = vmatpush3.bf16.msra.mxu1 %v1345_v38  ;;  %1981 = vmatpush3.bf16.msra.mxu0 %v1337_v45 }
 0x10a   : > { %1996 = vmatprep.subr.bf16.mxu1 %v1343_v39  ;;  %1982 = vmatprep.subr.bf16.mxu0 %v1335_v47 }
 0x10c   : > { %1967 = vmatmul.mubr.bf16.gmra.mxu1 %v2068_v48  ;;  %v183_v38 = vpop.permute.xlu0 %182 }
 0x10d   : > { %2004 = vmatpush3.bf16.msra.mxu1 %v1343_v39  ;;  %1983 = vmatpush3.bf16.msra.mxu0 %v1335_v47  ;;  %v188_v35 = vpop.permute.xlu1 %187  ;;  %v381_v46 = vadd.f32 %v350_v54, %v183_v38 }
 0x10e   : > { %1997 = vmatprep.subr.bf16.mxu1 %v1341_v41  ;;  %1984 = vmatprep.subr.bf16.mxu0 %v1333_v49 }
 0x10f   : > { %1990 = vmatprep.mubr.bf16.mxu1 %v2071_v50 }
 0x111   : > { %2005 = vmatpush3.bf16.msra.mxu1 %v1341_v41  ;;  %1985 = vmatpush3.bf16.msra.mxu0 %v1333_v49  ;;  %v198_v44 = vpop.permute.xlu0 %197 }
 0x112   : > { %1998 = vmatprep.subr.bf16.mxu1 %v1339_v43  ;;  %v193_v40 = vpop.permute.xlu1 %192  ;;  %v384_v50 = vadd.f32 %v1797_v55, %v198_v44 }
 0x114   : > { %1987 = vmatmul.mubr.bf16.vlgmr.msra.gmra.mxu0 %v2070_v51 }
 0x115   : > { %2006 = vmatpush3.bf16.msra.mxu1 %v1339_v43  ;;  %v383_v43 = vadd.f32 %v1796_v53, %v193_v40  ;;  %v208_v53 = vpop.permute.xlu0 %207 }
 0x116   : > { %1999 = vmatprep.subr.bf16.mxu1 %v1337_v45  ;;  %v203_v51 = vpop.permute.xlu1 %202 }
 0x119   : > { %2007 = vmatpush3.bf16.msra.mxu1 %v1337_v45 }
 0x11a   : > { %2000 = vmatprep.subr.bf16.mxu1 %v1335_v47  ;;  %v213_v54 = vpop.permute.xlu1 %212 }
 0x11b   : > { %v387_v44 = vadd.f32 %v2370_v57, %v213_v54 }
 0x11d   : > { %2008 = vmatpush3.bf16.msra.mxu1 %v1335_v47 }
 0x11e   : > { %2001 = vmatprep.subr.bf16.mxu1 %v1333_v49 }
 0x121   : > { %2009 = vmatpush3.bf16.msra.mxu1 %v1333_v49 }
 0x124   : > { %1991 = vmatmul.mubr.bf16.vlgmr.msra.gmra.mxu1 %v2072_v52 }
 0x164   : > { %v1820_v58 = vpop.f32.mrf.mxu1 }
 0x165   : > { %v513_v49 = vadd.f32 %v1820_v58, %v383_v43 }
 0x166   : > { %v480_v60 = vpop.f32.mrf.mxu1 }
 0x167   : > { %v511_v52 = vadd.f32 %v480_v60, %v381_v46  ;;  %v218_v46 = vpop.permute.xlu0 %217 }
 0x168   : > { %v1821_v62 = vpop.f32.mrf.mxu1 }
 0x16a   : > { %v483_v0 = vpop.f32.mrf.mxu1 }
 0x16c   : > { %v2378_v2 = vpop.f32.mrf.mxu1 }
 0x16e   : > { %v2380_v4 = vpop.f32.mrf.mxu1 }
 0x170   : > { %v2382_v6 = vpop.f32.mrf.mxu1 }
 0x172   : > { %v2384_v8 = vpop.f32.mrf.mxu1 }
 0x174   : > { %v1844_v1 = vpop.f32.mrf.mxu0 }
 0x176   : > { %v610_v3 = vpop.f32.mrf.mxu0 }
 0x178   : > { %v1845_v5 = vpop.f32.mrf.mxu0 }
 0x17a   : > { %v613_v7 = vpop.f32.mrf.mxu0 }
 0x17c   : > { %v2386_v9 = vpop.f32.mrf.mxu0 }
 0x17e   : > { %v2388_v11 = vpop.f32.mrf.mxu0 }
 0x180   : > { %v2390_v13 = vpop.f32.mrf.mxu0 }
 0x182   : > { %v2392_v15 = vpop.f32.mrf.mxu0 }
 0x184   : > { %v1868_v10 = vpop.f32.mrf.mxu1 }
 0x186   : > { %v740_v12 = vpop.f32.mrf.mxu1 }
 0x188   : > { %v1869_v14 = vpop.f32.mrf.mxu1 }
 0x18a   : > { %v743_v16 = vpop.f32.mrf.mxu1 }
 0x18c   : > { %v2394_v18 = vpop.f32.mrf.mxu1 }
 0x18e   : > { %v2396_v20 = vpop.f32.mrf.mxu1 }
 0x190   : > { %v2398_v22 = vpop.f32.mrf.mxu1 }
 0x191   : > { %2484 = vst [vmem:[#allocation2_spill] sm:$0xff] %v2398_v22 }
 0x192   : > { %v2400_v24 = vpop.f32.mrf.mxu1 }
 0x193   : > { %2485 = vst [vmem:[#allocation3_spill] sm:$0xff] %v2400_v24  ;;  %v382_v24 = vadd.f32 %v2368_v56, %v188_v35 }
 0x194   : > { %v1892_v17 = vpop.f32.mrf.mxu0 }
 0x196   : > { %v870_v19 = vpop.f32.mrf.mxu0 }
 0x198   : > { %v1893_v21 = vpop.f32.mrf.mxu0  ;;  %v2494_v54 = vld [vmem:[#allocation2_spill] sm:$0xff] }
 0x19a   : > { %v873_v23 = vpop.f32.mrf.mxu0 }
 0x19c   : > { %v2402_v25 = vpop.f32.mrf.mxu0 }
 0x19e   : > { %v2404_v27 = vpop.f32.mrf.mxu0 }
 0x19f   : > { %2486 = vst [vmem:[#allocation4_spill] sm:$0xff] %v2404_v27  ;;  %v512_v27 = vadd.f32 %v483_v0, %v382_v24  ;;  %v385_v0 = vadd.f32 %v2372_v59, %v203_v51 }
 0x1a0   : > { %v2406_v29 = vpop.f32.mrf.mxu0 }
 0x1a1   : > { %2487 = vst [vmem:[#allocation5_spill] sm:$0xff] %v2406_v29  ;;  %v642_v58 = vadd.f32 %v613_v7, %v512_v27 }
 0x1a2   : > { %v2408_v31 = vpop.f32.mrf.mxu0 }
 0x1a3   : > { %2488 = vst [vmem:[#allocation6_spill] sm:$0xff] %v2408_v31  ;;  %v643_v31 = vadd.f32 %v1844_v1, %v513_v49  ;;  %v772_v56 = vadd.f32 %v743_v16, %v642_v58 }
 0x1a4   : > { %v1916_v26 = vpop.f32.mrf.mxu1 }
 0x1a5   : > { %v773_v40 = vadd.f32 %v1868_v10, %v643_v31 }
 0x1a6   : > { %v1000_v28 = vpop.f32.mrf.mxu1 }
 0x1a8   : > { %v1917_v30 = vpop.f32.mrf.mxu1 }
 0x1aa   : > { %v1003_v32 = vpop.f32.mrf.mxu1 }
 0x1ac   : > { %v2410_v34 = vpop.f32.mrf.mxu1 }
 0x1ad   : > { %2489 = vst [vmem:[#allocation7_spill] sm:$0xff] %v2410_v34  ;;  %v641_v34 = vadd.f32 %v610_v3, %v511_v52 }
 0x1ae   : > { %v2412_v37 = vpop.f32.mrf.mxu1 }
 0x1af   : > { %2490 = vst [vmem:[#allocation8_spill] sm:$0xff] %v2412_v37  ;;  %v771_v38 = vadd.f32 %v740_v12, %v641_v34 }
 0x1b0   : > { %v2414_v41 = vpop.f32.mrf.mxu1 }
 0x1b1   : > { %2491 = vst [vmem:[#allocation9_spill] sm:$0xff] %v2414_v41  ;;  %v514_v41 = vadd.f32 %v1821_v62, %v384_v50  ;;  %v901_v1 = vadd.f32 %v870_v19, %v771_v38  ;;  %v517_v19 = vadd.f32 %v2378_v2, %v387_v44 }
 0x1b2   : > { %v2416_v45 = vpop.f32.mrf.mxu1 }
 0x1b3   : > { %2492 = vst [vmem:[#allocation10_spill] sm:$0xff] %v2416_v45  ;;  %v644_v45 = vadd.f32 %v1845_v5, %v514_v41  ;;  %v1031_v3 = vadd.f32 %v1000_v28, %v901_v1  ;;  %v515_v28 = vadd.f32 %v2380_v4, %v385_v0  ;;  %v647_v2 = vadd.f32 %v2386_v9, %v517_v19 }
 0x1b4   : > { %v1940_v33 = vpop.f32.mrf.mxu0 }
 0x1b5   : > { %v774_v60 = vadd.f32 %v1869_v14, %v644_v45  ;;  %v388_v14 = vadd.f32 %v2374_v61, %v218_v46 }
 0x1b6   : > { %v1130_v36 = vpop.f32.mrf.mxu0  ;;  %v2499_v44 = vld [vmem:[#allocation8_spill] sm:$0xff] }
 0x1b7   : > { %v904_v62 = vadd.f32 %v1893_v21, %v774_v60  ;;  %v1161_v31 = vadd.f32 %v1130_v36, %v1031_v3  ;;  %v386_v36 = vadd.f32 %v2376_v63, %v208_v53  ;;  %v518_v61 = vadd.f32 %v2382_v6, %v388_v14  ;;  %v2496_v60 = vld [vmem:[#allocation7_spill] sm:$0xff]  ;;  %v2501_v3 = vld [vmem:[#allocation6_spill] sm:$0xff] }
 0x1b8   : > { %v1941_v39 = vpop.f32.mrf.mxu0  ;;  %v777_v6 = vadd.f32 %v2394_v18, %v647_v2  ;;  %v2502_v0 = vld [vmem:[#allocation9_spill] sm:$0xff] }
 0x1b9   : > { %v1034_v24 = vadd.f32 %v1917_v30, %v904_v62  ;;  %v516_v49 = vadd.f32 %v2384_v8, %v386_v36  ;;  %v648_v50 = vadd.f32 %v2390_v13, %v518_v61 }
 0x1ba   : > { %v1133_v42 = vpop.f32.mrf.mxu0  ;;  %v907_v52 = vadd.f32 %v2402_v25, %v777_v6 }
 0x1bb   : > { %v1164_v16 = vadd.f32 %v1941_v39, %v1034_v24  ;;  %v646_v18 = vadd.f32 %v2392_v15, %v516_v49  ;;  %v778_v38 = vadd.f32 %v2494_v54, %v648_v50 }
 0x1bc   : > { %v2418_v47 = vpop.f32.mrf.mxu0  ;;  %v1037_v8 = vadd.f32 %v2496_v60, %v907_v52 }
 0x1bd   : > { %2493 = vst [vmem:[#allocation11_spill] sm:$0xff] %v2418_v47  ;;  %v903_v47 = vadd.f32 %v1892_v17, %v773_v40  ;;  %v902_v17 = vadd.f32 %v873_v23, %v772_v56 }
 0x1be   : > { %v2420_v37 = vpop.f32.mrf.mxu0 }
 0x1bf   : > { %v1033_v43 = vadd.f32 %v1916_v26, %v903_v47  ;;  %v1032_v26 = vadd.f32 %v1003_v32, %v902_v17 }
 0x1c0   : > { %v2423_v22 = vpop.f32.mrf.mxu0 }
 0x1c1   : > { %v1163_v10 = vadd.f32 %v1940_v33, %v1033_v43  ;;  %v1162_v34 = vadd.f32 %v1133_v42, %v1032_v26  ;;  %v645_v42 = vadd.f32 %v2388_v11, %v515_v28  ;;  %v2498_v43 = vld [vmem:[#allocation5_spill] sm:$0xff] }
 0x1c2   : > { %v2427_v5 = vpop.f32.mrf.mxu0  ;;  %v908_v25 = vadd.f32 %v2498_v43, %v778_v38 }
 0x1c3   : > { %v775_v51 = vadd.f32 %v2396_v20, %v645_v42  ;;  %v2497_v20 = vld [vmem:[#allocation3_spill] sm:$0xff] }
 0x1c4   : > { %v1964_v48 = vpop.f32.mrf.mxu1  ;;  %v776_v1 = vadd.f32 %v2497_v20, %v646_v18  ;;  %v2500_v56 = vld [vmem:[#allocation11_spill] sm:$0xff] }
 0x1c5   : > { %v1293_v7 = vadd.f32 %v1964_v48, %v1163_v10  ;;  %v1167_v62 = vadd.f32 %v2500_v56, %v1037_v8 }
 0x1c6   : > { %v1260_v29 = vpop.f32.mrf.mxu1  ;;  %v906_v10 = vadd.f32 %v2501_v3, %v776_v1 }
 0x1c7   : > { %v1291_v21 = vadd.f32 %v1260_v29, %v1161_v31 }
 0x1c8   : > { %v1965_v55 = vpop.f32.mrf.mxu1 }
 0x1c9   : > { %v1294_v35 = vadd.f32 %v1965_v55, %v1164_v16  ;;  %v2495_v55 = vld [vmem:[#allocation4_spill] sm:$0xff] }
 0x1ca   : > { %v1263_v12 = vpop.f32.mrf.mxu1  ;;  %v905_v58 = vadd.f32 %v2495_v55, %v775_v51 }
 0x1cb   : > { %v1292_v29 = vadd.f32 %v1263_v12, %v1162_v34  ;;  %v1038_v12 = vadd.f32 %v2502_v0, %v908_v25 }
 0x1cc   : > { %v1968_v59 = vpop.f32.mrf.mxu1  ;;  %v1035_v46 = vadd.f32 %v2499_v44, %v905_v58 }
 0x1cd   : > { %v1297_v24 = vadd.f32 %v1968_v59, %v1167_v62  ;;  %v1168_v19 = vadd.f32 %v2423_v22, %v1038_v12 }
 0x1ce   : > { %v1276_v63 = vpop.f32.mrf.mxu1  ;;  %v1165_v17 = vadd.f32 %v2420_v37, %v1035_v46 }
 0x1d0   : > { %v1969_v40 = vpop.f32.mrf.mxu1 }
 0x1d2   : > { %v1279_v15 = vpop.f32.mrf.mxu1 }
 0x1d4   : > { %v1988_v57 = vpop.f32.mrf.mxu0 }
 0x1d5   : > { %v1423_v27 = vadd.f32 %v1988_v57, %v1293_v7  ;;  %v2503_v7 = vld [vmem:[#allocation10_spill] sm:$0xff]  ;;  %v1295_v57 = vadd.f32 %v1276_v63, %v1165_v17 }
 0x1d6   : > { %v1390_v33 = vpop.f32.mrf.mxu0  ;;  %v1036_v14 = vadd.f32 %v2503_v7, %v906_v10 }
 0x1d7   : > { %v1431_v23 = vmax.f32 %v1423_v27, 0.0  ;;  %v1421_v30 = vadd.f32 %v1390_v33, %v1291_v21  ;;  %v1298_v27 = vadd.f32 %v1969_v40, %v1168_v19 }
 0x1d8   : > { %v1989_v4 = vpop.f32.mrf.mxu0  ;;  %v1166_v21 = vadd.f32 %v2427_v5, %v1036_v14 }
 0x1d9   : > { %v1664_v32 = vpack.c.bf16 %v1431_v23, %v1431_v23  ;;  %v1429_v39 = vmax.f32 %v1421_v30, 0.0  ;;  %v1424_v41 = vadd.f32 %v1989_v4, %v1294_v35 }
 0x1da   : > { %v1393_v45 = vpop.f32.mrf.mxu0  ;;  %v1296_v37 = vadd.f32 %v1279_v15, %v1166_v21 }
 0x1db   : > { %1472 = vst.msk [vmem:[%s2439_s17 + $0x8] sm:$0xf] %vm1469_vm0, %v1664_v32  ;;  %v1662_v9 = vpack.c.bf16 %v1429_v39, %v1429_v39  ;;  %v1432_v47 = vmax.f32 %v1424_v41, 0.0  ;;  %v1422_v48 = vadd.f32 %v1393_v45, %v1292_v29 }
 0x1dd   : > { %1470 = vst.msk [vmem:[%s2439_s17] sm:$0xf] %vm1469_vm0, %v1662_v9  ;;  %v1665_v11 = vpack.c.bf16 %v1432_v47, %v1432_v47  ;;  %v1430_v53 = vmax.f32 %v1422_v48, 0.0 }
 0x1df   : > { %1473 = vst.msk [vmem:[%s2439_s17 + $0xc] sm:$0xf] %vm1469_vm0, %v1665_v11  ;;  %v1663_v13 = vpack.c.bf16 %v1430_v53, %v1430_v53 }
 0x1e1   : > { %1471 = vst.msk [vmem:[%s2439_s17 + $0x4] sm:$0xf] %vm1469_vm0, %v1663_v13 }
 0x1e4   : > { %v1992_v31 = vpop.f32.mrf.mxu1 }
 0x1e5   : > { %v1427_v26 = vadd.f32 %v1992_v31, %v1297_v24 }
 0x1e6   : > { %v1406_v16 = vpop.f32.mrf.mxu1 }
 0x1e7   : > { %v1435_v28 = vmax.f32 %v1427_v26, 0.0  ;;  %v1425_v33 = vadd.f32 %v1406_v16, %v1295_v57 }
 0x1e8   : > { %v1993_v34 = vpop.f32.mrf.mxu1 }
 0x1e9   : > { %v1668_v59 = vpack.c.bf16 %v1435_v28, %v1435_v28  ;;  %v1433_v35 = vmax.f32 %v1425_v33, 0.0  ;;  %v1428_v23 = vadd.f32 %v1993_v34, %v1298_v27 }
 0x1ea   : > { %v1409_v30 = vpop.f32.mrf.mxu1 }
 0x1eb   : > { %1476 = vst.msk [vmem:[%s2439_s17 + $0x18] sm:$0xf] %vm1469_vm0, %v1668_v59  ;;  %v1666_v22 = vpack.c.bf16 %v1433_v35, %v1433_v35  ;;  %v1436_v36 = vmax.f32 %v1428_v23, 0.0  ;;  %v1426_v61 = vadd.f32 %v1409_v30, %v1296_v37 }
 0x1ed   : > { %1474 = vst.msk [vmem:[%s2439_s17 + $0x10] sm:$0xf] %vm1469_vm0, %v1666_v22  ;;  %v1669_v2 = vpack.c.bf16 %v1436_v36, %v1436_v36  ;;  %v1434_v5 = vmax.f32 %v1426_v61, 0.0 }
 0x1ef   : > { %1477 = vst.msk [vmem:[%s2439_s17 + $0x1c] sm:$0xf] %vm1469_vm0, %v1669_v2  ;;  %v1667_v4 = vpack.c.bf16 %v1434_v5, %v1434_v5 }
 0x1f1   : > { %1475 = vst.msk [vmem:[%s2439_s17 + $0x14] sm:$0xf] %vm1469_vm0, %v1667_v4 }
 0x1f2 PF: > { %s13_s12 = sadd.s32 1, %s2079_s12  }
 0x1f3   : > { %p10_p4 = scmp.ge.s32.totalorder %s13_s12, 4  }
 0x1f5   :  { %12 = sbr.rel (!%p10_p4) target bundleno = 1 (0x1), region = 70 }

// kernel: conv_vae_forward.12
= control target key start
LH: loop header
LB: loop body
LE: loop exit
PB: predicated region body
PF: predicated region fallthrough
CT: control target
= control target key end

     0   :  { %s1606_s12 = smov 0   ;;  %s1963_s0 = inlined_call_operand.vmem [shape: bf16[2,64,258], index: 0, kind: input, shape index: {}]   ;;  %s1964_s1 = inlined_call_operand.vmem [shape: bf16[9,32,64], index: 1, kind: input, shape index: {}]   ;;  %s1965_s2 = inlined_call_operand.vmem [shape: f32[32,1], index: 2, kind: input, shape index: {}]   ;;  %s1966_s3 = inlined_call_operand.vmem [shape: bf16[2,32,224], index: 3, kind: output, shape index: {}]  }
   0x1 LB: > { %s1400_s13 = sadd.s32 4294967295, %s1575_s12   ;;  %p1404_p0 = scmp.ge.s32.totalorder %s1575_s12, 1  ;;  %s1575_s12 = sphi %s1606_s12, %s13_s12  }
   0x2   : > { %p137_p1 = scmp.lt.s32.totalorder %s1575_s12, 3 }
   0x4   : > { %p138_p2 = pnand %p1404_p0, %p137_p1 }
   0x6   : > { %141 = sbr.rel (%p138_p2) target bundleno = 484 (0x1e4), region = 32 }
   0xb   : > { %p161_p3 = scmp.lt.s32.totalorder %s1400_s13, 1  ;;  %s1577_s18 = smov 127   ;;  %v1578_v8 = vmov 0   ;;  %v1551_v9 = vld [vmem:[%s1964_s1] sm:$0xff]   ;;  %vm258_vm0 = vcmask 523264   ;;  %v1553_v10 = vld [vmem:[%s1964_s1 + $0x8] sm:$0xff]  }
   0xc   : > { %297 = vmatprep.mubr.bf16.mxu0 %v1578_v8  ;;  %408 = vmatprep.mubr.bf16.mxu1 %v1578_v8  ;;  %s1579_s21 = smov 126   ;;  %s1580_s22 = smov 112   ;;  %vm357_vm1 = vcmask 1039360   ;;  %vm468_vm2 = vcmask 1031168   ;;  %vm579_vm3 = vcmask 916480   ;;  %v1552_v30 = vld [vmem:[%s1964_s1 + $0x10] sm:$0xff]  }
   0xd   : > { %s1980_s13 = smov (!%p161_p3, %s1400_s13), 1  ;;  %1534 = vset.pattern.permute.xlu1 %v1578_v8  ;;  %1533 = vset.pattern.permute.xlu0 %v1578_v8  ;;  %s1581_s25 = smov 111   ;;  %v172_v37 = vld [vmem:[%s1965_s2] sm:$0xff]  ;;  %v1554_v39 = vld [vmem:[%s1964_s1 + $0x18] sm:$0xff]   ;;  %v173_v40 = vld [vmem:[%s1965_s2 + $0x8] sm:$0xff]  ;;  %vm690_vm4 = vcmask 908288  }
   0xe   : > { %s1515_s14 = smul.u32 96, %s1980_s13  ;;  %s1582_s26 = smov 110   ;;  %v175_v43 = vld [vmem:[%s1965_s2 + $0x18] sm:$0xff]  ;;  %v174_v45 = vld [vmem:[%s1965_s2 + $0x10] sm:$0xff]  ;;  %v1555_v54 = vld [vmem:[%s1964_s1 + $0x20] sm:$0xff]   ;;  %vm801_vm5 = vcmask 900096  }
   0xf   : > { %s1583_s27 = smov 95   ;;  %s1584_s28 = smov 96   ;;  %v1556_v58 = vld [vmem:[%s1964_s1 + $0x30] sm:$0xff]   ;;  %v1557_v62 = vld [vmem:[%s1964_s1 + $0x28] sm:$0xff]   ;;  %vm1099_vm6 = vcmask 777216   ;;  %vm912_vm7 = vcmask 785408  }
  0x10   : > { %s1620_s17 = scalar_lea.vmem %s1963_s0, %s1515_s14  ;;  %s1585_s29 = smov 94   ;;  %vm1222_vm8 = vcmask 769024   ;;  %vm1338_vm9 = vcmask 1043456   ;;  %vm1339_vm10 = vcmask 785412  }
  0x11   : > { %v1623_v0 = vld [vmem:[%s1620_s17 + $0x48] ss:$12 sps:$4 sm:$0xff]   ;;  %v1626_v1 = vld [vmem:[%s1620_s17 + $0x30] ss:$12 sps:$4 sm:$0xff]   ;;  %v1630_v2 = vld [vmem:[%s1620_s17 + $0x4c] ss:$12 sps:$4 sm:$0xff]  }
  0x12   : > { %353 = vrot.lane.b32.xlu0 %v1623_v0, %s1577_s18  ;;  %349 = vrot.lane.b32.xlu1 %v1626_v1, %s1577_s18  ;;  %v1634_v3 = vld [vmem:[%s1620_s17 + $0x34] ss:$12 sps:$4 sm:$0xff]   ;;  %v1640_v4 = vld [vmem:[%s1620_s17 + $0x18] ss:$12 sps:$4 sm:$0xff]   ;;  %s1502_s20 = sshll.u32 %s1980_s13, 5  ;;  %vm1948_vm11 = vmor %vm1339_vm10, %vm1338_vm9 }
  0x13   : > { %273 = vmatprep.subr.bf16.mxu0 %v1630_v2  ;;  %v1645_v5 = vld [vmem:[%s1620_s17 + $0x1c] ss:$12 sps:$4 sm:$0xff]   ;;  %v1648_v6 = vld [vmem:[%s1620_s17 + $0x4] ss:$12 sps:$4 sm:$0xff]   ;;  %v1653_v7 = vld [vmem:[%s1620_s17] ss:$12 sps:$4 sm:$0xff]   ;;  %s170_s13 = scalar_lea.vmem %s1966_s3, %s1502_s20 }
  0x14   : > { %274 = vmatpush1.bf16.msra.mxu0 %v1623_v0  ;;  %v1547_v11 = vld [vmem:[%s1620_s17 + $0x50] ss:$12 sps:$4 sm:$0xff]   ;;  %v1548_v12 = vld [vmem:[%s1620_s17 + $0x38] ss:$12 sps:$4 sm:$0xff]   ;;  %v1549_v13 = vld [vmem:[%s1620_s17 + $0x20] ss:$12 sps:$4 sm:$0xff]  }
  0x15   : > { %275 = vmatprep.subr.bf16.mxu0 %v1634_v3  ;;  %v1550_v14 = vld [vmem:[%s1620_s17 + $0x8] ss:$12 sps:$4 sm:$0xff]  }
  0x16   : > { %355 = vrot.lane.b32.xlu0 %v1630_v2, %s1577_s18  ;;  %351 = vrot.lane.b32.xlu1 %v1634_v3, %s1577_s18 }
  0x18   : > { %276 = vmatpush1.bf16.msra.mxu0 %v1626_v1 }
  0x19   : > { %277 = vmatprep.subr.bf16.mxu0 %v1645_v5 }
  0x1a   : > { %345 = vrot.lane.b32.xlu0 %v1640_v4, %s1577_s18  ;;  %347 = vrot.lane.b32.xlu1 %v1645_v5, %s1577_s18 }
  0x1c   : > { %278 = vmatpush1.bf16.msra.mxu0 %v1640_v4 }
  0x1d   : > { %279 = vmatprep.subr.bf16.mxu0 %v1648_v6 }
  0x1e   : > { %341 = vrot.lane.b32.xlu0 %v1653_v7, %s1577_s18  ;;  %343 = vrot.lane.b32.xlu1 %v1648_v6, %s1577_s18 }
  0x20   : > { %280 = vmatpush1.bf16.msra.mxu0 %v1653_v7 }
  0x22   : > { %464 = vrot.lane.b32.xlu0 %v1623_v0, %s1579_s21  ;;  %466 = vrot.lane.b32.xlu1 %v1630_v2, %s1579_s21 }
  0x23   : > { %1418 = vmatmul.mubr.msk.bf16.vlgmr.msra.gmra.mxu0 %vm258_vm0, %v1551_v9 }
  0x24   : > { %307 = vmatprep.mubr.bf16.mxu0 %v1578_v8 }
  0x26   : > { %575 = vrot.lane.b32.xlu0 %v1623_v0, %s1580_s22  ;;  %577 = vrot.lane.b32.xlu1 %v1630_v2, %s1580_s22 }
  0x2a   : > { %460 = vrot.lane.b32.xlu0 %v1626_v1, %s1579_s21  ;;  %462 = vrot.lane.b32.xlu1 %v1634_v3, %s1579_s21 }
  0x2b   : > { %1419 = vmatmul.mubr.msk.bf16.gmra.mxu0 %vm258_vm0, %v1553_v10 }
  0x2c   : > { %519 = vmatprep.mubr.bf16.mxu0 %v1578_v8 }
  0x2e   : > { %571 = vrot.lane.b32.xlu0 %v1626_v1, %s1580_s22  ;;  %573 = vrot.lane.b32.xlu1 %v1634_v3, %s1580_s22 }
  0x32   : > { %456 = vrot.lane.b32.xlu0 %v1640_v4, %s1579_s21  ;;  %458 = vrot.lane.b32.xlu1 %v1645_v5, %s1579_s21 }
  0x36   : > { %567 = vrot.lane.b32.xlu0 %v1640_v4, %s1580_s22  ;;  %569 = vrot.lane.b32.xlu1 %v1645_v5, %s1580_s22 }
  0x3a   : > { %452 = vrot.lane.b32.xlu0 %v1653_v7, %s1579_s21  ;;  %454 = vrot.lane.b32.xlu1 %v1648_v6, %s1579_s21 }
  0x3e   : > { %563 = vrot.lane.b32.xlu0 %v1653_v7, %s1580_s22  ;;  %565 = vrot.lane.b32.xlu1 %v1648_v6, %s1580_s22 }
  0x42   : > { %686 = vrot.lane.b32.xlu0 %v1623_v0, %s1581_s25  ;;  %688 = vrot.lane.b32.xlu1 %v1630_v2, %s1581_s25 }
  0x46   : > { %797 = vrot.lane.b32.xlu0 %v1623_v0, %s1582_s26  ;;  %799 = vrot.lane.b32.xlu1 %v1630_v2, %s1582_s26 }
  0x4a   : > { %682 = vrot.lane.b32.xlu0 %v1626_v1, %s1581_s25  ;;  %684 = vrot.lane.b32.xlu1 %v1634_v3, %s1581_s25 }
  0x4e   : > { %793 = vrot.lane.b32.xlu0 %v1626_v1, %s1582_s26  ;;  %795 = vrot.lane.b32.xlu1 %v1634_v3, %s1582_s26 }
  0x52   : > { %678 = vrot.lane.b32.xlu0 %v1640_v4, %s1581_s25  ;;  %680 = vrot.lane.b32.xlu1 %v1645_v5, %s1581_s25 }
  0x56   : > { %789 = vrot.lane.b32.xlu0 %v1640_v4, %s1582_s26  ;;  %791 = vrot.lane.b32.xlu1 %v1645_v5, %s1582_s26 }
  0x5a   : > { %674 = vrot.lane.b32.xlu0 %v1653_v7, %s1581_s25  ;;  %676 = vrot.lane.b32.xlu1 %v1648_v6, %s1581_s25 }
  0x5e   : > { %785 = vrot.lane.b32.xlu0 %v1653_v7, %s1582_s26  ;;  %787 = vrot.lane.b32.xlu1 %v1648_v6, %s1582_s26 }
  0x62   : > { %1095 = vrot.lane.b32.xlu0 %v1630_v2, %s1583_s27  ;;  %1097 = vrot.lane.b32.xlu1 %v1547_v11, %s1583_s27 }
  0x66   : > { %908 = vrot.lane.b32.xlu0 %v1623_v0, %s1584_s28  ;;  %910 = vrot.lane.b32.xlu1 %v1630_v2, %s1584_s28 }
  0x6a   : > { %1093 = vrot.lane.b32.xlu0 %v1623_v0, %s1583_s27  ;;  %1089 = vrot.lane.b32.xlu1 %v1634_v3, %s1583_s27 }
  0x6e   : > { %1091 = vrot.lane.b32.xlu0 %v1548_v12, %s1583_s27  ;;  %904 = vrot.lane.b32.xlu1 %v1626_v1, %s1584_s28 }
  0x72   : > { %906 = vrot.lane.b32.xlu0 %v1634_v3, %s1584_s28  ;;  %1087 = vrot.lane.b32.xlu1 %v1626_v1, %s1583_s27 }
  0x76   : > { %1083 = vrot.lane.b32.xlu0 %v1645_v5, %s1583_s27  ;;  %1085 = vrot.lane.b32.xlu1 %v1549_v13, %s1583_s27 }
  0x7a   : > { %900 = vrot.lane.b32.xlu0 %v1640_v4, %s1584_s28  ;;  %902 = vrot.lane.b32.xlu1 %v1645_v5, %s1584_s28 }
  0x7e   : > { %1081 = vrot.lane.b32.xlu0 %v1640_v4, %s1583_s27  ;;  %1077 = vrot.lane.b32.xlu1 %v1648_v6, %s1583_s27 }
  0x82   : > { %1079 = vrot.lane.b32.xlu0 %v1550_v14, %s1583_s27  ;;  %896 = vrot.lane.b32.xlu1 %v1653_v7, %s1584_s28 }
  0x84   : > { %v354_v15 = vpop.permute.xlu0 %353  ;;  %v350_v16 = vpop.permute.xlu1 %349 }
  0x86   : > { %898 = vrot.lane.b32.xlu0 %v1648_v6, %s1584_s28  ;;  %1075 = vrot.lane.b32.xlu1 %v1653_v7, %s1583_s27 }
  0x88   : > { %v356_v17 = vpop.permute.xlu0 %355  ;;  %v352_v18 = vpop.permute.xlu1 %351 }
  0x89   : > { %384 = vmatprep.subr.bf16.mxu1 %v356_v17  ;;  %v361_v19 = vsel %vm357_vm1, %v354_v15, %v356_v17  ;;  %v360_v22 = vsel %vm357_vm1, %v350_v16, %v352_v18 }
  0x8a   : > { %385 = vmatpush1.bf16.msra.mxu1 %v361_v19  ;;  %1218 = vrot.lane.b32.xlu0 %v1630_v2, %s1585_s29  ;;  %v1558_v2 = vld [vmem:[%s1964_s1 + $0x38] sm:$0xff]   ;;  %v1559_v19 = vld [vmem:[%s1964_s1 + $0x40] sm:$0xff]  }
  0x8b   : > { %1220 = vrot.lane.b32.xlu1 %v1547_v11, %s1585_s29  ;;  %386 = vmatprep.subr.bf16.mxu1 %v352_v18 }
  0x8c   : > { %v346_v20 = vpop.permute.xlu0 %345  ;;  %v348_v21 = vpop.permute.xlu1 %347 }
  0x8d   : > { %v359_v25 = vsel %vm357_vm1, %v346_v20, %v348_v21 }
  0x8e   : > { %387 = vmatpush1.bf16.msra.mxu1 %v360_v22  ;;  %1216 = vrot.lane.b32.xlu0 %v1623_v0, %s1585_s29 }
  0x8f   : > { %1212 = vrot.lane.b32.xlu1 %v1634_v3, %s1585_s29  ;;  %388 = vmatprep.subr.bf16.mxu1 %v348_v21 }
  0x90   : > { %v342_v23 = vpop.permute.xlu0 %341  ;;  %v344_v24 = vpop.permute.xlu1 %343 }
  0x91   : > { %v358_v29 = vsel %vm357_vm1, %v342_v23, %v344_v24  ;;  %v1560_v23 = vld [vmem:[%s1964_s1 + $0x50] sm:$0xff]  }
  0x92   : > { %389 = vmatpush1.bf16.msra.mxu1 %v359_v25  ;;  %1214 = vrot.lane.b32.xlu0 %v1548_v12, %s1585_s29 }
  0x93   : > { %1210 = vrot.lane.b32.xlu1 %v1626_v1, %s1585_s29  ;;  %390 = vmatprep.subr.bf16.mxu1 %v344_v24 }
  0x94   : > { %v465_v26 = vpop.permute.xlu0 %464  ;;  %v467_v27 = vpop.permute.xlu1 %466 }
  0x95   : > { %v472_v28 = vsel %vm468_vm2, %v465_v26, %v467_v27  ;;  %495 = vmatprep.subr.bf16.mxu0 %v467_v27  ;;  %v1561_v27 = vld [vmem:[%s1964_s1 + $0x48] sm:$0xff]  }
  0x96   : > { %1206 = vrot.lane.b32.xlu0 %v1645_v5, %s1585_s29  ;;  %391 = vmatpush1.bf16.msra.mxu1 %v358_v29 }
  0x97   : > { %1208 = vrot.lane.b32.xlu1 %v1549_v13, %s1585_s29  ;;  %496 = vmatpush1.bf16.msra.mxu0 %v472_v28 }
  0x98   : > { %v576_v31 = vpop.permute.xlu0 %575  ;;  %v578_v32 = vpop.permute.xlu1 %577 }
  0x99   : > { %v583_v33 = vsel %vm579_vm3, %v576_v31, %v578_v32  ;;  %606 = vmatprep.subr.bf16.mxu1 %v578_v32  ;;  %1426 = vmatmul.mubr.msk.bf16.vlgmr.msra.gmra.mxu1 %vm258_vm0, %v1552_v30  ;;  %v1562_v31 = vld [vmem:[%s1964_s1 + $0x58] sm:$0xff]  }
  0x9a   : > { %1204 = vrot.lane.b32.xlu0 %v1640_v4, %s1585_s29  ;;  %607 = vmatpush1.bf16.msra.mxu1 %v583_v33 }
  0x9b   : > { %1200 = vrot.lane.b32.xlu1 %v1648_v6, %s1585_s29  ;;  %418 = vmatprep.mubr.bf16.mxu1 %v1578_v8 }
  0x9c   : > { %v461_v34 = vpop.permute.xlu0 %460  ;;  %v463_v35 = vpop.permute.xlu1 %462 }
  0x9d   : > { %v471_v36 = vsel %vm468_vm2, %v461_v34, %v463_v35  ;;  %497 = vmatprep.subr.bf16.mxu0 %v463_v35 }
  0x9e   : > { %1202 = vrot.lane.b32.xlu0 %v1550_v14, %s1585_s29  ;;  %498 = vmatpush1.bf16.msra.mxu0 %v471_v36 }
  0x9f   : > { %1198 = vrot.lane.b32.xlu1 %v1653_v7, %s1585_s29 }
  0xa0   : > { %v572_v38 = vpop.permute.xlu0 %571  ;;  %v574_v41 = vpop.permute.xlu1 %573 }
  0xa1   : > { %v582_v42 = vsel %vm579_vm3, %v572_v38, %v574_v41  ;;  %608 = vmatprep.subr.bf16.mxu1 %v574_v41  ;;  %1427 = vmatmul.mubr.msk.bf16.gmra.mxu1 %vm258_vm0, %v1554_v39 }
  0xa2   : > { %178 = vperm.xlu0 %1533, %v172_v37   ;;  %609 = vmatpush1.bf16.msra.mxu1 %v582_v42 }
  0xa3   : > { %183 = vperm.xlu1 %1534, %v173_v40   ;;  %630 = vmatprep.mubr.bf16.mxu1 %v1578_v8 }
  0xa4   : > { %v457_v44 = vpop.permute.xlu0 %456  ;;  %v459_v46 = vpop.permute.xlu1 %458 }
  0xa5   : > { %v470_v47 = vsel %vm468_vm2, %v457_v44, %v459_v46  ;;  %499 = vmatprep.subr.bf16.mxu0 %v459_v46 }
  0xa6   : > { %193 = vperm.xlu0 %1533, %v175_v43   ;;  %500 = vmatpush1.bf16.msra.mxu0 %v470_v47 }
  0xa7   : > { %188 = vperm.xlu1 %1534, %v174_v45  }
  0xa8   : > { %v568_v48 = vpop.permute.xlu0 %567  ;;  %v570_v49 = vpop.permute.xlu1 %569 }
  0xa9   : > { %v581_v50 = vsel %vm579_vm3, %v568_v48, %v570_v49  ;;  %610 = vmatprep.subr.bf16.mxu1 %v570_v49 }
  0xaa   : > { %611 = vmatpush1.bf16.msra.mxu1 %v581_v50 }
  0xac   : > { %v453_v51 = vpop.permute.xlu0 %452  ;;  %v455_v52 = vpop.permute.xlu1 %454 }
  0xad   : > { %v469_v53 = vsel %vm468_vm2, %v453_v51, %v455_v52  ;;  %501 = vmatprep.subr.bf16.mxu0 %v455_v52 }
  0xae   : > { %502 = vmatpush1.bf16.msra.mxu0 %v469_v53 }
  0xb0   : > { %v564_v55 = vpop.permute.xlu0 %563  ;;  %v566_v56 = vpop.permute.xlu1 %565 }
  0xb1   : > { %v580_v57 = vsel %vm579_vm3, %v564_v55, %v566_v56  ;;  %612 = vmatprep.subr.bf16.mxu1 %v566_v56  ;;  %1434 = vmatmul.mubr.msk.bf16.vlgmr.msra.gmra.mxu0 %vm258_vm0, %v1555_v54 }
  0xb2   : > { %613 = vmatpush1.bf16.msra.mxu1 %v580_v57  ;;  %529 = vmatprep.mubr.bf16.mxu0 %v1578_v8  ;;  %v1563_v57 = vld [vmem:[%s1964_s1 + $0x60] sm:$0xff]  }
  0xb4   : > { %v687_v59 = vpop.permute.xlu0 %686  ;;  %v689_v60 = vpop.permute.xlu1 %688 }
  0xb5   : > { %v694_v61 = vsel %vm690_vm4, %v687_v59, %v689_v60  ;;  %717 = vmatprep.subr.bf16.mxu0 %v689_v60  ;;  %1442 = vmatmul.mubr.msk.bf16.vlgmr.msra.gmra.mxu1 %vm258_vm0, %v1556_v58  ;;  %v1564_v59 = vld [vmem:[%s1964_s1 + $0x70] sm:$0xff]  }
  0xb6   : > { %718 = vmatpush1.bf16.msra.mxu0 %v694_v61  ;;  %640 = vmatprep.mubr.bf16.mxu1 %v1578_v8 }
  0xb8   : > { %v798_v63 = vpop.permute.xlu0 %797  ;;  %v800_v0 = vpop.permute.xlu1 %799 }
  0xb9   : > { %v805_v1 = vsel %vm801_vm5, %v798_v63, %v800_v0  ;;  %828 = vmatprep.subr.bf16.mxu1 %v800_v0  ;;  %1435 = vmatmul.mubr.msk.bf16.gmra.mxu0 %vm258_vm0, %v1557_v62 }
  0xba   : > { %829 = vmatpush1.bf16.msra.mxu1 %v805_v1  ;;  %741 = vmatprep.mubr.bf16.mxu0 %v1578_v8 }
  0xbc   : > { %v683_v3 = vpop.permute.xlu0 %682  ;;  %v685_v4 = vpop.permute.xlu1 %684 }
  0xbd   : > { %v693_v5 = vsel %vm690_vm4, %v683_v3, %v685_v4  ;;  %719 = vmatprep.subr.bf16.mxu0 %v685_v4  ;;  %1443 = vmatmul.mubr.msk.bf16.gmra.mxu1 %vm258_vm0, %v1558_v2  ;;  %v1565_v2 = vld [vmem:[%s1964_s1 + $0x68] sm:$0xff]   ;;  %v1566_v3 = vld [vmem:[%s1964_s1 + $0x78] sm:$0xff]  }
  0xbe   : > { %720 = vmatpush1.bf16.msra.mxu0 %v693_v5  ;;  %852 = vmatprep.mubr.bf16.mxu1 %v1578_v8 }
  0xc0   : > { %v794_v6 = vpop.permute.xlu0 %793  ;;  %v796_v7 = vpop.permute.xlu1 %795 }
  0xc1   : > { %v804_v9 = vsel %vm801_vm5, %v794_v6, %v796_v7  ;;  %830 = vmatprep.subr.bf16.mxu1 %v796_v7 }
  0xc2   : > { %831 = vmatpush1.bf16.msra.mxu1 %v804_v9 }
  0xc4   : > { %v679_v10 = vpop.permute.xlu0 %678  ;;  %v681_v11 = vpop.permute.xlu1 %680 }
  0xc5   : > { %v692_v12 = vsel %vm690_vm4, %v679_v10, %v681_v11  ;;  %721 = vmatprep.subr.bf16.mxu0 %v681_v11 }
  0xc6   : > { %722 = vmatpush1.bf16.msra.mxu0 %v692_v12 }
  0xc8   : > { %v790_v13 = vpop.permute.xlu0 %789  ;;  %v792_v14 = vpop.permute.xlu1 %791 }
  0xc9   : > { %v803_v15 = vsel %vm801_vm5, %v790_v13, %v792_v14  ;;  %832 = vmatprep.subr.bf16.mxu1 %v792_v14 }
  0xca   : > { %833 = vmatpush1.bf16.msra.mxu1 %v803_v15 }
  0xcc   : > { %v675_v16 = vpop.permute.xlu0 %674  ;;  %v677_v17 = vpop.permute.xlu1 %676 }
  0xcd   : > { %v691_v18 = vsel %vm690_vm4, %v675_v16, %v677_v17  ;;  %723 = vmatprep.subr.bf16.mxu0 %v677_v17 }
  0xce   : > { %724 = vmatpush1.bf16.msra.mxu0 %v691_v18 }
  0xd0   : > { %v786_v20 = vpop.permute.xlu0 %785  ;;  %v788_v21 = vpop.permute.xlu1 %787 }
  0xd1   : > { %v802_v22 = vsel %vm801_vm5, %v786_v20, %v788_v21  ;;  %834 = vmatprep.subr.bf16.mxu1 %v788_v21  ;;  %1450 = vmatmul.mubr.msk.bf16.vlgmr.msra.gmra.mxu0 %vm258_vm0, %v1559_v19  ;;  %v1568_v19 = vld [vmem:[%s1964_s1 + $0x88] sm:$0xff]  }
  0xd2   : > { %835 = vmatpush1.bf16.msra.mxu1 %v802_v22  ;;  %751 = vmatprep.mubr.bf16.mxu0 %v1578_v8 }
  0xd4   : > { %v1096_v24 = vpop.permute.xlu0 %1095  ;;  %v1098_v25 = vpop.permute.xlu1 %1097 }
  0xd5   : > { %v1107_v26 = vsel %vm1099_vm6, %v1096_v24, %v1098_v25  ;;  %1458 = vmatmul.mubr.msk.bf16.vlgmr.msra.gmra.mxu1 %vm258_vm0, %v1560_v23 }
  0xd6   : > { %1130 = vmatprep.subr.bf16.mxu1 %v1107_v26  ;;  %862 = vmatprep.mubr.bf16.mxu1 %v1578_v8 }
  0xd8   : > { %v909_v28 = vpop.permute.xlu0 %908  ;;  %v911_v29 = vpop.permute.xlu1 %910 }
  0xd9   : > { %v916_v30 = vsel %vm912_vm7, %v909_v28, %v911_v29  ;;  %939 = vmatprep.subr.bf16.mxu0 %v911_v29  ;;  %1451 = vmatmul.mubr.msk.bf16.gmra.mxu0 %vm258_vm0, %v1561_v27 }
  0xda   : > { %940 = vmatpush1.bf16.msra.mxu0 %v916_v30  ;;  %963 = vmatprep.mubr.bf16.mxu0 %v1578_v8 }
  0xdc   : > { %v1094_v32 = vpop.permute.xlu0 %1093  ;;  %v1090_v33 = vpop.permute.xlu1 %1089 }
  0xdd   : > { %v1106_v34 = vsel %vm1099_vm6, %v1094_v32, %v1096_v24  ;;  %1459 = vmatmul.mubr.msk.bf16.gmra.mxu1 %vm258_vm0, %v1562_v31 }
  0xde   : > { %1131 = vmatpush1.bf16.msra.mxu1 %v1106_v34  ;;  %1154 = vmatprep.mubr.bf16.mxu1 %v1578_v8 }
  0xe0   : > { %v1092_v35 = vpop.permute.xlu0 %1091  ;;  %v905_v36 = vpop.permute.xlu1 %904 }
  0xe1   : > { %v1105_v37 = vsel %vm1099_vm6, %v1090_v33, %v1092_v35 }
  0xe2   : > { %1132 = vmatprep.subr.bf16.mxu1 %v1105_v37 }
  0xe3   : > { %v299_v20 = vpop.f32.mrf.mxu0 }
  0xe4   : > { %v907_v38 = vpop.permute.xlu0 %906  ;;  %v1088_v39 = vpop.permute.xlu1 %1087 }
  0xe5   : > { %v915_v40 = vsel %vm912_vm7, %v905_v36, %v907_v38  ;;  %941 = vmatprep.subr.bf16.mxu0 %v907_v38  ;;  %v1104_v41 = vsel %vm1099_vm6, %v1088_v39, %v1090_v33  ;;  %v301_v22 = vpop.f32.mrf.mxu0 }
  0xe6   : > { %942 = vmatpush1.bf16.msra.mxu0 %v915_v40  ;;  %1133 = vmatpush1.bf16.msra.mxu1 %v1104_v41 }
  0xe7   : > { %v303_v24 = vpop.f32.mrf.mxu0 }
  0xe8   : > { %v1084_v42 = vpop.permute.xlu0 %1083  ;;  %v1086_v43 = vpop.permute.xlu1 %1085 }
  0xe9   : > { %v1103_v44 = vsel %vm1099_vm6, %v1084_v42, %v1086_v43  ;;  %v305_v26 = vpop.f32.mrf.mxu0 }
  0xea   : > { %1134 = vmatprep.subr.bf16.mxu1 %v1103_v44 }
  0xeb   : > { %v309_v28 = vpop.f32.mrf.mxu0 }
  0xec   : > { %v901_v45 = vpop.permute.xlu0 %900  ;;  %v903_v46 = vpop.permute.xlu1 %902 }
  0xed   : > { %v914_v47 = vsel %vm912_vm7, %v901_v45, %v903_v46  ;;  %943 = vmatprep.subr.bf16.mxu0 %v903_v46  ;;  %v311_v30 = vpop.f32.mrf.mxu0 }
  0xee   : > { %944 = vmatpush1.bf16.msra.mxu0 %v914_v47 }
  0xef   : > { %v313_v32 = vpop.f32.mrf.mxu0 }
  0xf0   : > { %v1082_v48 = vpop.permute.xlu0 %1081  ;;  %v1078_v49 = vpop.permute.xlu1 %1077 }
  0xf1   : > { %v1102_v50 = vsel %vm1099_vm6, %v1082_v48, %v1084_v42  ;;  %v315_v34 = vpop.f32.mrf.mxu0 }
  0xf2   : > { %1135 = vmatpush1.bf16.msra.mxu1 %v1102_v50 }
  0xf4   : > { %v1080_v51 = vpop.permute.xlu0 %1079  ;;  %v897_v52 = vpop.permute.xlu1 %896 }
  0xf5   : > { %v1101_v53 = vsel %vm1099_vm6, %v1078_v49, %v1080_v51 }
  0xf6   : > { %1136 = vmatprep.subr.bf16.mxu1 %v1101_v53 }
  0xf8   : > { %v899_v54 = vpop.permute.xlu0 %898  ;;  %v1076_v55 = vpop.permute.xlu1 %1075 }
  0xf9   : > { %v913_v56 = vsel %vm912_vm7, %v897_v52, %v899_v54  ;;  %945 = vmatprep.subr.bf16.mxu0 %v899_v54  ;;  %v1100_v58 = vsel %vm1099_vm6, %v1076_v55, %v1078_v49 }
  0xfa   : > { %946 = vmatpush1.bf16.msra.mxu0 %v913_v56  ;;  %1137 = vmatpush1.bf16.msra.mxu1 %v1100_v58 }
  0xfc   : > { %v1219_v60 = vpop.permute.xlu0 %1218 }
  0xfd   : > { %v1221_v61 = vpop.permute.xlu1 %1220  ;;  %1466 = vmatmul.mubr.msk.bf16.vlgmr.msra.gmra.mxu0 %vm258_vm0, %v1563_v57  ;;  %1486 = vmatmul.mubr.msk.bf16.vlgmr.msra.gmra.mxu1 %vm258_vm0, %v1564_v59 }
  0xfe   : > { %v1230_v62 = vsel %vm1222_vm8, %v1219_v60, %v1221_v61  ;;  %973 = vmatprep.mubr.bf16.mxu0 %v1578_v8  ;;  %1164 = vmatprep.mubr.bf16.mxu1 %v1578_v8 }
  0xff   : > { %1253 = vmatprep.subr.bf16.mxu0 %v1230_v62  ;;  %1507 = vmatprep.subr.bf16.mxu1 %v1230_v62 }
 0x100   : > { %v1217_v63 = vpop.permute.xlu0 %1216 }
 0x101   : > { %v1213_v0 = vpop.permute.xlu1 %1212  ;;  %v1229_v1 = vsel %vm1222_vm8, %v1217_v63, %v1219_v60 }
 0x102   : > { %1254 = vmatpush1.bf16.msra.mxu0 %v1229_v1  ;;  %1511 = vmatpush1.bf16.msra.mxu1 %v1229_v1 }
 0x104   : > { %v1215_v4 = vpop.permute.xlu0 %1214 }
 0x105   : > { %v1211_v5 = vpop.permute.xlu1 %1210  ;;  %1467 = vmatmul.mubr.msk.bf16.gmra.mxu0 %vm258_vm0, %v1565_v2  ;;  %v1228_v6 = vsel %vm1222_vm8, %v1213_v0, %v1215_v4  ;;  %1487 = vmatmul.mubr.msk.bf16.gmra.mxu1 %vm258_vm0, %v1566_v3 }
 0x106   : > { %v1227_v7 = vsel %vm1222_vm8, %v1211_v5, %v1213_v0  ;;  %1255 = vmatprep.subr.bf16.mxu0 %v1228_v6  ;;  %1508 = vmatprep.subr.bf16.mxu1 %v1228_v6 }
 0x107   : > { %1256 = vmatpush1.bf16.msra.mxu0 %v1227_v7  ;;  %1512 = vmatpush1.bf16.msra.mxu1 %v1227_v7 }
 0x108   : > { %v1207_v9 = vpop.permute.xlu0 %1206  ;;  %1277 = vmatprep.mubr.bf16.mxu0 %v1578_v8  ;;  %1287 = vmatprep.mubr.bf16.mxu1 %v1578_v8  ;;  %v1567_v8 = vld [vmem:[%s1964_s1 + $0x80] sm:$0xff]  }
 0x109   : > { %v1209_v10 = vpop.permute.xlu1 %1208 }
 0x10a   : > { %v1226_v11 = vsel %vm1222_vm8, %v1207_v9, %v1209_v10 }
 0x10b   : > { %1257 = vmatprep.subr.bf16.mxu0 %v1226_v11  ;;  %1509 = vmatprep.subr.bf16.mxu1 %v1226_v11 }
 0x10c   : > { %v1205_v12 = vpop.permute.xlu0 %1204 }
 0x10d   : > { %v1201_v13 = vpop.permute.xlu1 %1200  ;;  %v1225_v14 = vsel %vm1222_vm8, %v1205_v12, %v1207_v9 }
 0x10e   : > { %1258 = vmatpush1.bf16.msra.mxu0 %v1225_v14  ;;  %1513 = vmatpush1.bf16.msra.mxu1 %v1225_v14 }
 0x110   : > { %v1203_v15 = vpop.permute.xlu0 %1202 }
 0x111   : > { %v1199_v16 = vpop.permute.xlu1 %1198  ;;  %v1224_v17 = vsel %vm1222_vm8, %v1201_v13, %v1203_v15 }
 0x112   : > { %v1223_v18 = vsel %vm1222_vm8, %v1199_v16, %v1201_v13  ;;  %1259 = vmatprep.subr.bf16.mxu0 %v1224_v17  ;;  %1510 = vmatprep.subr.bf16.mxu1 %v1224_v17 }
 0x113   : > { %1260 = vmatpush1.bf16.msra.mxu0 %v1223_v18  ;;  %1514 = vmatpush1.bf16.msra.mxu1 %v1223_v18 }
 0x116   : > { %1494 = vmatmul.mubr.msk.bf16.vlgmr.msra.gmra.mxu0 %vm258_vm0, %v1567_v8  ;;  %1495 = vmatmul.mubr.msk.bf16.vlgmr.msra.gmra.mxu1 %vm258_vm0, %v1568_v19 }
 0x11d   : > { %v179_v1 = vpop.permute.xlu0 %178 }
 0x11e   : > { %v184_v63 = vpop.permute.xlu1 %183  ;;  %v318_v5 = vadd.f32 %v299_v20, %v179_v1  ;;  %v319_v10 = vadd.f32 %v301_v22, %v179_v1 }
 0x11f   : > { %v320_v18 = vadd.f32 %v303_v24, %v184_v63  ;;  %v321_v20 = vadd.f32 %v305_v26, %v184_v63 }
 0x121   : > { %v194_v12 = vpop.permute.xlu0 %193 }
 0x122   : > { %v189_v3 = vpop.permute.xlu1 %188  ;;  %v324_v8 = vadd.f32 %v313_v32, %v194_v12 }
 0x123   : > { %v322_v6 = vadd.f32 %v309_v28, %v189_v3  ;;  %v323_v11 = vadd.f32 %v311_v30, %v189_v3  ;;  %v325_v28 = vadd.f32 %v315_v34, %v194_v12 }
 0x159   : > { %v410_v21 = vpop.f32.mrf.mxu1 }
 0x15a   : > { %v429_v15 = vadd.f32 %v410_v21, %v318_v5 }
 0x15b   : > { %v412_v23 = vpop.f32.mrf.mxu1 }
 0x15d   : > { %v1878_v25 = vpop.f32.mrf.mxu1 }
 0x15e   : > { %v431_v30 = vadd.f32 %v1878_v25, %v320_v18 }
 0x15f   : > { %v1880_v27 = vpop.f32.mrf.mxu1 }
 0x160   : > { %v432_v32 = vadd.f32 %v1880_v27, %v321_v20 }
 0x161   : > { %v420_v29 = vpop.f32.mrf.mxu1 }
 0x162   : > { %v433_v16 = vadd.f32 %v420_v29, %v322_v6 }
 0x163   : > { %v422_v31 = vpop.f32.mrf.mxu1 }
 0x165   : > { %v424_v33 = vpop.f32.mrf.mxu1 }
 0x166   : > { %v435_v1 = vadd.f32 %v424_v33, %v324_v8 }
 0x167   : > { %v1882_v35 = vpop.f32.mrf.mxu1 }
 0x171   : > { %v521_v36 = vpop.f32.mrf.mxu0 }
 0x173   : > { %v523_v38 = vpop.f32.mrf.mxu0 }
 0x175   : > { %v1884_v37 = vpop.f32.mrf.mxu1  ;;  %v525_v40 = vpop.f32.mrf.mxu0 }
 0x176   : > { %v542_v34 = vadd.f32 %v525_v40, %v431_v30 }
 0x177   : > { %v1886_v39 = vpop.f32.mrf.mxu1  ;;  %v1890_v42 = vpop.f32.mrf.mxu0 }
 0x178   : > { %v543_v33 = vadd.f32 %v1890_v42, %v432_v32 }
 0x179   : > { %v1888_v41 = vpop.f32.mrf.mxu1  ;;  %v531_v44 = vpop.f32.mrf.mxu0 }
 0x17a   : > { %v544_v22 = vadd.f32 %v531_v44, %v433_v16 }
 0x17b   : > { %v1892_v43 = vpop.f32.mrf.mxu1  ;;  %v533_v46 = vpop.f32.mrf.mxu0 }
 0x17c   : > { %v654_v40 = vadd.f32 %v1892_v43, %v543_v33 }
 0x17d   : > { %v642_v45 = vpop.f32.mrf.mxu1  ;;  %v535_v48 = vpop.f32.mrf.mxu0 }
 0x17e   : > { %v655_v26 = vadd.f32 %v642_v45, %v544_v22  ;;  %v546_v63 = vadd.f32 %v535_v48, %v435_v1 }
 0x17f   : > { %v644_v47 = vpop.f32.mrf.mxu1  ;;  %v537_v50 = vpop.f32.mrf.mxu0 }
 0x181   : > { %v1894_v49 = vpop.f32.mrf.mxu1 }
 0x182   : > { %v657_v27 = vadd.f32 %v1894_v49, %v546_v63 }
 0x183   : > { %v1896_v51 = vpop.f32.mrf.mxu1 }
 0x191   : > { %v743_v52 = vpop.f32.mrf.mxu0 }
 0x193   : > { %v745_v54 = vpop.f32.mrf.mxu0 }
 0x195   : > { %v1898_v53 = vpop.f32.mrf.mxu1  ;;  %v1902_v56 = vpop.f32.mrf.mxu0 }
 0x197   : > { %v1900_v55 = vpop.f32.mrf.mxu1  ;;  %v1906_v58 = vpop.f32.mrf.mxu0 }
 0x198   : > { %1968 = vst [vmem:[#allocation3_spill] sm:$0xff] %v1906_v58 }
 0x199   : > { %v1904_v57 = vpop.f32.mrf.mxu1  ;;  %v753_v60 = vpop.f32.mrf.mxu0 }
 0x19a   : > { %1967 = vst [vmem:[#allocation2_spill] sm:$0xff] %v1904_v57  ;;  %v434_v57 = vadd.f32 %v422_v31, %v323_v11 }
 0x19b   : > { %v1908_v59 = vpop.f32.mrf.mxu1  ;;  %v755_v62 = vpop.f32.mrf.mxu0 }
 0x19c   : > { %1969 = vst [vmem:[#allocation4_spill] sm:$0xff] %v1908_v59  ;;  %v430_v59 = vadd.f32 %v412_v23, %v319_v10  ;;  %v545_v24 = vadd.f32 %v533_v46, %v434_v57  ;;  %v436_v23 = vadd.f32 %v1882_v35, %v325_v28  ;;  %v653_v46 = vadd.f32 %v1888_v41, %v542_v34 }
 0x19d   : > { %v864_v61 = vpop.f32.mrf.mxu1  ;;  %v757_v2 = vpop.f32.mrf.mxu0 }
 0x19e   : > { %v541_v29 = vadd.f32 %v523_v38, %v430_v59  ;;  %v656_v25 = vadd.f32 %v644_v47, %v545_v24  ;;  %v547_v6 = vadd.f32 %v537_v50, %v436_v23  ;;  %v766_v38 = vadd.f32 %v753_v60, %v655_v26 }
 0x19f   : > { %v1910_v0 = vpop.f32.mrf.mxu1  ;;  %v759_v7 = vpop.f32.mrf.mxu0  ;;  %v764_v42 = vadd.f32 %v1902_v56, %v653_v46  ;;  %v768_v50 = vadd.f32 %v757_v2, %v657_v27 }
 0x1a0   : > { %v652_v44 = vadd.f32 %v1886_v39, %v541_v29  ;;  %v767_v45 = vadd.f32 %v755_v62, %v656_v25  ;;  %v658_v48 = vadd.f32 %v1896_v51, %v547_v6  ;;  %v877_v47 = vadd.f32 %v864_v61, %v766_v38 }
 0x1a1   : > { %v1912_v4 = vpop.f32.mrf.mxu1  ;;  %v1973_v51 = vld [vmem:[#allocation2_spill] sm:$0xff] }
 0x1a2   : > { %1970 = vst [vmem:[#allocation5_spill] sm:$0xff] %v1912_v4  ;;  %v878_v49 = vadd.f32 %v1910_v0, %v767_v45  ;;  %v769_v11 = vadd.f32 %v759_v7, %v658_v48 }
 0x1a3   : > { %v1914_v9 = vpop.f32.mrf.mxu1  ;;  %v1975_v8 = vld [vmem:[#allocation4_spill] sm:$0xff] }
 0x1a4   : > { %1971 = vst [vmem:[#allocation6_spill] sm:$0xff] %v1914_v9  ;;  %v540_v9 = vadd.f32 %v521_v36, %v429_v15  ;;  %v875_v15 = vadd.f32 %v1973_v51, %v764_v42 }
 0x1a6   : > { %v651_v31 = vadd.f32 %v1884_v37, %v540_v9  ;;  %v763_v37 = vadd.f32 %v745_v54, %v652_v44  ;;  %v1972_v54 = vld [vmem:[#allocation3_spill] sm:$0xff] }
 0x1a7   : > { %v765_v62 = vadd.f32 %v1972_v54, %v654_v40 }
 0x1a8   : > { %v762_v10 = vadd.f32 %v743_v52, %v651_v31  ;;  %v874_v41 = vadd.f32 %v1900_v55, %v763_v37 }
 0x1a9   : > { %v876_v55 = vadd.f32 %v1975_v8, %v765_v62 }
 0x1aa   : > { %v873_v39 = vadd.f32 %v1898_v53, %v762_v10  ;;  %v1974_v53 = vld [vmem:[#allocation5_spill] sm:$0xff] }
 0x1ab   : > { %v879_v61 = vadd.f32 %v1974_v53, %v768_v50  ;;  %v1976_v20 = vld [vmem:[#allocation6_spill] sm:$0xff] }
 0x1ac   : > { %v880_v0 = vadd.f32 %v1976_v20, %v769_v11 }
 0x1bd   : > { %v965_v13 = vpop.f32.mrf.mxu0  ;;  %v1156_v14 = vpop.f32.mrf.mxu1 }
 0x1be   : > { %v984_v60 = vadd.f32 %v965_v13, %v873_v39 }
 0x1bf   : > { %v967_v17 = vpop.f32.mrf.mxu0  ;;  %v1916_v19 = vpop.f32.mrf.mxu1 }
 0x1c0   : > { %v985_v43 = vadd.f32 %v967_v17, %v874_v41  ;;  %v1175_v2 = vadd.f32 %v1156_v14, %v984_v60 }
 0x1c1   : > { %v969_v4 = vpop.f32.mrf.mxu0  ;;  %v1918_v58 = vpop.f32.mrf.mxu1 }
 0x1c2   : > { %v986_v13 = vadd.f32 %v969_v4, %v875_v15  ;;  %v1176_v7 = vadd.f32 %v1916_v19, %v985_v43 }
 0x1c3   : > { %v971_v3 = vpop.f32.mrf.mxu0  ;;  %v1921_v21 = vpop.f32.mrf.mxu1 }
 0x1c4   : > { %v987_v24 = vadd.f32 %v971_v3, %v876_v55  ;;  %v1177_v34 = vadd.f32 %v1918_v58, %v986_v13 }
 0x1c5   : > { %v975_v5 = vpop.f32.mrf.mxu0  ;;  %v1166_v36 = vpop.f32.mrf.mxu1 }
 0x1c6   : > { %v988_v9 = vadd.f32 %v975_v5, %v877_v47  ;;  %v1178_v33 = vadd.f32 %v1921_v21, %v987_v24 }
 0x1c7   : > { %v977_v35 = vpop.f32.mrf.mxu0  ;;  %v1168_v57 = vpop.f32.mrf.mxu1 }
 0x1c8   : > { %v989_v12 = vadd.f32 %v977_v35, %v878_v49  ;;  %v1179_v18 = vadd.f32 %v1166_v36, %v988_v9 }
 0x1c9   : > { %v979_v52 = vpop.f32.mrf.mxu0  ;;  %v1170_v59 = vpop.f32.mrf.mxu1 }
 0x1ca   : > { %v990_v28 = vadd.f32 %v979_v52, %v879_v61  ;;  %v1180_v17 = vadd.f32 %v1168_v57, %v989_v12 }
 0x1cb   : > { %v981_v16 = vpop.f32.mrf.mxu0  ;;  %v1172_v56 = vpop.f32.mrf.mxu1 }
 0x1cc   : > { %v991_v32 = vadd.f32 %v981_v16, %v880_v0  ;;  %v1181_v4 = vadd.f32 %v1170_v59, %v990_v28 }
 0x1ce   : > { %v1182_v3 = vadd.f32 %v1172_v56, %v991_v32 }
 0x1d6   : > { %v1279_v22 = vpop.f32.mrf.mxu0  ;;  %v1289_v30 = vpop.f32.mrf.mxu1 }
 0x1d7   : > { %v1298_v1 = vadd.f32 %v1279_v22, %v1175_v2  ;;  %v1302_v29 = vadd.f32 %v1289_v30, %v1179_v18 }
 0x1d8   : > { %v1281_v23 = vpop.f32.mrf.mxu0  ;;  %v1291_v31 = vpop.f32.mrf.mxu1 }
 0x1d9   : > { %v1299_v14 = vadd.f32 %v1281_v23, %v1176_v7  ;;  %v1303_v26 = vadd.f32 %v1291_v31, %v1180_v17  ;;  %v1306_v36 = vmax.f32 %v1298_v1, 0.0  ;;  %v1310_v44 = vmax.f32 %v1302_v29, 0.0 }
 0x1da   : > { %v1283_v63 = vpop.f32.mrf.mxu0  ;;  %v1293_v5 = vpop.f32.mrf.mxu1 }
 0x1db   : > { %v1307_v19 = vmax.f32 %v1299_v14, 0.0  ;;  %v1311_v25 = vmax.f32 %v1303_v26, 0.0  ;;  %v1300_v10 = vadd.f32 %v1283_v63, %v1177_v34  ;;  %v1304_v58 = vadd.f32 %v1293_v5, %v1181_v4 }
 0x1dc   : > { %v1285_v38 = vpop.f32.mrf.mxu0  ;;  %v1295_v46 = vpop.f32.mrf.mxu1 }
 0x1dd   : > { %v1503_v27 = vpack.c.bf16 %v1307_v19, %v1306_v36  ;;  %v1505_v35 = vpack.c.bf16 %v1311_v25, %v1310_v44  ;;  %v1301_v57 = vadd.f32 %v1285_v38, %v1178_v33  ;;  %v1305_v37 = vadd.f32 %v1295_v46, %v1182_v3 }
 0x1de   : > { %v1308_v21 = vmax.f32 %v1300_v10, 0.0  ;;  %v1312_v45 = vmax.f32 %v1304_v58, 0.0 }
 0x1df   : > { %1341 = vst.msk [vmem:[%s170_s13] sm:$0xff] %vm1948_vm11, %v1503_v27  ;;  %1343 = vst.msk [vmem:[%s170_s13 + $0x10] sm:$0xff] %vm1948_vm11, %v1505_v35  ;;  %v1309_v40 = vmax.f32 %v1301_v57, 0.0  ;;  %v1313_v48 = vmax.f32 %v1305_v37, 0.0 }
 0x1e1   : > { %v1504_v39 = vpack.c.bf16 %v1309_v40, %v1308_v21  ;;  %v1506_v47 = vpack.c.bf16 %v1313_v48, %v1312_v45 }
 0x1e3   : > { %1342 = vst.msk [vmem:[%s170_s13 + $0x8] sm:$0xff] %vm1948_vm11, %v1504_v39  ;;  %1344 = vst.msk [vmem:[%s170_s13 + $0x18] sm:$0xff] %vm1948_vm11, %v1506_v47 }
 0x1e4 PF: > { %s13_s12 = sadd.s32 1, %s1575_s12  }
 0x1e5   : > { %p10_p4 = scmp.ge.s32.totalorder %s13_s12, 4  }
 0x1e7   :  { %12 = sbr.rel (!%p10_p4) target bundleno = 1 (0x1), region = 70 }

// kernel: conv_vae_forward.10
= control target key start
LH: loop header
LB: loop body
LE: loop exit
PB: predicated region body
PF: predicated region fallthrough
CT: control target
= control target key end

     0   :  { %20 = vsyncpa [#allocation3], 0  ;;  %v55_v22 = vlaneseq  ;;  %v5815_v41 = vmov 0.0   ;;  %vm191_vm0 = vcmask 1041409   ;;  %s7852_s0 = inlined_call_operand.vmem [shape: bf16[2,1,512], index: 0, kind: input, shape index: {}]   ;;  %s7853_s1 = inlined_call_operand.vmem [shape: bf16[512,128], index: 1, kind: input, shape index: {}]   ;;  %s7854_s2 = inlined_call_operand.vmem [shape: f32[1,128], index: 2, kind: input, shape index: {}]   ;;  %s7855_s3 = inlined_call_operand.vmem [shape: bf16[128,64], index: 3, kind: input, shape index: {}]   ;;  %s7856_s4 = inlined_call_operand.vmem [shape: f32[1,64], index: 4, kind: input, shape index: {}]   ;;  %s7857_s5 = inlined_call_operand.vmem [shape: f32[1,32], index: 5, kind: input, shape index: {}]   ;;  %s7858_s6 = inlined_call_operand.vmem [shape: bf16[32,128], index: 6, kind: input, shape index: {}]   ;;  %s7859_s7 = inlined_call_operand.vmem [shape: f32[1,128], index: 7, kind: input, shape index: {}]   ;;  %s7860_s8 = inlined_call_operand.vmem [shape: bf16[128,512], index: 8, kind: input, shape index: {}]   ;;  %s7861_s9 = inlined_call_operand.vmem [shape: f32[1,512], index: 9, kind: input, shape index: {}]   ;;  %s7862_s10 = inlined_call_operand.vmem [shape: bf16[512,2048], index: 10, kind: input, shape index: {}]   ;;  %s7863_s11 = inlined_call_operand.vmem [shape: f32[1,2048], index: 11, kind: input, shape index: {}]   ;;  %s7864_s12 = inlined_call_operand.hbm [shape: f32[2,32], index: 12, kind: output, shape index: {0}]   ;;  %s7865_s13 = inlined_call_operand.hbm [shape: f32[2,32], index: 13, kind: output, shape index: {1}]   ;;  %s7866_s14 = inlined_call_operand.vmem [shape: bf16[2,2048], index: 14, kind: output, shape index: {2}]  }
   0x1   :  { %v5678_v0 = vld [vmem:[%s7853_s1 + $0x78] sm:$0xff]   ;;  %v5682_v4 = vld [vmem:[%s7853_s1 + $0x70] sm:$0xff]   ;;  %v5686_v8 = vld [vmem:[%s7853_s1 + $0x68] sm:$0xff]  }
   0x2   :  { %v5679_v1 = vld [vmem:[%s7853_s1 + $0xf8] sm:$0xff]   ;;  %5586 = vmatprep.subr.bf16.mxu0 %v5678_v0  ;;  %v5683_v5 = vld [vmem:[%s7853_s1 + $0xf0] sm:$0xff]   ;;  %v5687_v9 = vld [vmem:[%s7853_s1 + $0xe8] sm:$0xff]   ;;  %v5976_v27 = vshrl.u32 %v55_v22, 7 }
   0x3   :  { %v5680_v2 = vld [vmem:[%s7853_s1 + $0x38] sm:$0xff]   ;;  %5608 = vmatprep.subr.bf16.mxu1 %v5679_v1  ;;  %v5684_v6 = vld [vmem:[%s7853_s1 + $0x30] sm:$0xff]   ;;  %v5688_v10 = vld [vmem:[%s7853_s1 + $0x28] sm:$0xff]  }
   0x4   :  { %v5681_v3 = vld [vmem:[%s7853_s1 + $0xb8] sm:$0xff]   ;;  %5587 = vmatpush3.bf16.msra.mxu0 %v5680_v2  ;;  %v5685_v7 = vld [vmem:[%s7853_s1 + $0xb0] sm:$0xff]   ;;  %v5689_v11 = vld [vmem:[%s7853_s1 + $0xa8] sm:$0xff]   ;;  %v5991_v32 = vsub.s32 2, %v5976_v27  ;;  %v5997_v34 = vsub.s32 6, %v5976_v27  ;;  %v6003_v36 = vsub.s32 0, %v5976_v27 }
   0x5   :  { %5609 = vmatpush3.bf16.msra.mxu1 %v5681_v3  ;;  %5588 = vmatprep.subr.bf16.mxu0 %v5682_v4  ;;  %v5690_v12 = vld [vmem:[%s7853_s1 + $0x60] sm:$0xff]   ;;  %v5694_v16 = vld [vmem:[%s7853_s1 + $0x58] sm:$0xff]   ;;  %v5698_v20 = vld [vmem:[%s7853_s1 + $0x50] sm:$0xff]   ;;  %v6009_v38 = vsub.s32 4, %v5976_v27 }
   0x6   :  { %5610 = vmatprep.subr.bf16.mxu1 %v5683_v5  ;;  %v5691_v13 = vld [vmem:[%s7853_s1 + $0xe0] sm:$0xff]   ;;  %v5695_v17 = vld [vmem:[%s7853_s1 + $0xd8] sm:$0xff]   ;;  %v5699_v21 = vld [vmem:[%s7853_s1 + $0xd0] sm:$0xff]  }
   0x7   :  { %v5692_v14 = vld [vmem:[%s7853_s1 + $0x20] sm:$0xff]   ;;  %v5696_v18 = vld [vmem:[%s7853_s1 + $0x18] sm:$0xff]   ;;  %v5700_v23 = vld [vmem:[%s7853_s1 + $0x10] sm:$0xff]  }
   0x8   :  { %5589 = vmatpush3.bf16.msra.mxu0 %v5684_v6  ;;  %v5693_v15 = vld [vmem:[%s7853_s1 + $0xa0] sm:$0xff]   ;;  %v5697_v19 = vld [vmem:[%s7853_s1 + $0x98] sm:$0xff]   ;;  %v5701_v24 = vld [vmem:[%s7853_s1 + $0x90] sm:$0xff]  }
   0x9   :  { %5611 = vmatpush3.bf16.msra.mxu1 %v5685_v7  ;;  %5590 = vmatprep.subr.bf16.mxu0 %v5686_v8  ;;  %v5702_v25 = vld [vmem:[%s7853_s1 + $0x48] sm:$0xff]   ;;  %v5706_v30 = vld [vmem:[%s7853_s1 + $0x40] sm:$0xff]   ;;  %v5710_v6 = vld [vmem:[%s7855_s3 + $0x38] sm:$0xff]  }
   0xa   :  { %5612 = vmatprep.subr.bf16.mxu1 %v5687_v9  ;;  %v5703_v26 = vld [vmem:[%s7853_s1 + $0xc8] sm:$0xff]   ;;  %v5707_v31 = vld [vmem:[%s7853_s1 + $0xc0] sm:$0xff]  }
   0xb   :  { %v5704_v28 = vld [vmem:[%s7853_s1 + $0x8] sm:$0xff]   ;;  %v5708_v33 = vld [vmem:[%s7853_s1] sm:$0xff]  }
   0xc   :  { %5591 = vmatpush3.bf16.msra.mxu0 %v5688_v10  ;;  %v5705_v29 = vld [vmem:[%s7853_s1 + $0x88] sm:$0xff]   ;;  %v5709_v35 = vld [vmem:[%s7853_s1 + $0x80] sm:$0xff]  }
   0xd   :  { %5613 = vmatpush3.bf16.msra.mxu1 %v5689_v11  ;;  %5592 = vmatprep.subr.bf16.mxu0 %v5690_v12  ;;  %v5583_v37 = vld [vmem:[%s7852_s0] sm:$0xff]  }
   0xe   :  { %5614 = vmatprep.subr.bf16.mxu1 %v5691_v13  ;;  %v5584_v39 = vunpack.c.l.bf16 %v5583_v37  ;;  %v5585_v40 = vunpack.c.h.bf16 %v5583_v37 }
  0x10   :  { %5593 = vmatpush3.bf16.msra.mxu0 %v5692_v14  ;;  %v62_v42 = vrot.slane %v5584_v39, %v5991_v32  ;;  %v78_v43 = vrot.slane %v5585_v40, %v5991_v32  ;;  %v70_v44 = vrot.slane %v5584_v39, %v5997_v34  ;;  %v86_v45 = vrot.slane %v5585_v40, %v5997_v34 }
  0x11   :  { %5615 = vmatpush3.bf16.msra.mxu1 %v5693_v15  ;;  %5594 = vmatprep.subr.bf16.mxu0 %v5694_v16  ;;  %v58_v46 = vrot.slane %v5584_v39, %v6003_v36  ;;  %v74_v47 = vrot.slane %v5585_v40, %v6003_v36  ;;  %v66_v48 = vrot.slane %v5584_v39, %v6009_v38  ;;  %v5711_v15 = vld [vmem:[%s7855_s3 + $0x30] sm:$0xff]  }
  0x12   :  { %5616 = vmatprep.subr.bf16.mxu1 %v5695_v17  ;;  %v82_v49 = vrot.slane %v5585_v40, %v6009_v38  ;;  %v96_v50 = vpack.c.bf16 %v62_v42, %v62_v42  ;;  %v100_v51 = vpack.c.bf16 %v78_v43, %v78_v43  ;;  %v98_v52 = vpack.c.bf16 %v70_v44, %v70_v44 }
  0x13   :  { %v102_v53 = vpack.c.bf16 %v86_v45, %v86_v45  ;;  %v95_v54 = vpack.c.bf16 %v58_v46, %v58_v46  ;;  %v99_v55 = vpack.c.bf16 %v74_v47, %v74_v47  ;;  %v97_v56 = vpack.c.bf16 %v66_v48, %v66_v48 }
  0x14   :  { %5595 = vmatpush3.bf16.msra.mxu0 %v5696_v18  ;;  %v101_v57 = vpack.c.bf16 %v82_v49, %v82_v49  ;;  %v183_v58 = vunpack.c.l.b16 %v96_v50  ;;  %v187_v59 = vunpack.c.l.b16 %v100_v51  ;;  %v185_v60 = vunpack.c.l.b16 %v98_v52 }
  0x15   :  { %5617 = vmatpush3.bf16.msra.mxu1 %v5697_v19  ;;  %5596 = vmatprep.subr.bf16.mxu0 %v5698_v20  ;;  %v189_v61 = vunpack.c.l.b16 %v102_v53  ;;  %v182_v62 = vunpack.c.l.b16 %v95_v54  ;;  %v186_v63 = vunpack.c.l.b16 %v99_v55  ;;  %v184_v0 = vunpack.c.l.b16 %v97_v56 }
  0x16   :  { %5618 = vmatprep.subr.bf16.mxu1 %v5699_v21  ;;  %v188_v1 = vunpack.c.l.b16 %v101_v57  ;;  %v193_v2 = vrot.slane %v187_v59, 7 }
  0x17   :  { %v197_v3 = vrot.slane %v189_v61, 7  ;;  %v190_v4 = vrot.slane %v186_v63, 7 }
  0x18   :  { %5597 = vmatpush3.bf16.msra.mxu0 %v5700_v23  ;;  %v195_v5 = vrot.slane %v188_v1, 7  ;;  %v194_v7 = vsel %vm191_vm0, %v193_v2, %v183_v58 }
  0x19   :  { %5619 = vmatpush3.bf16.msra.mxu1 %v5701_v24  ;;  %5598 = vmatprep.subr.bf16.mxu0 %v5702_v25  ;;  %v198_v8 = vsel %vm191_vm0, %v197_v3, %v185_v60  ;;  %v200_v9 = vpack.c.b16 %v194_v7, %v194_v7  ;;  %v192_v11 = vsel %vm191_vm0, %v190_v4, %v182_v62 }
  0x1a   :  { %5620 = vmatprep.subr.bf16.mxu1 %v5703_v26  ;;  %v202_v10 = vpack.c.b16 %v198_v8, %v198_v8  ;;  %v196_v12 = vsel %vm191_vm0, %v195_v5, %v184_v0  ;;  %v199_v13 = vpack.c.b16 %v192_v11, %v192_v11 }
  0x1b   :  { %v201_v14 = vpack.c.b16 %v196_v12, %v196_v12  ;;  %431 = vmatprep.mubr.bf16.mxu0 %v200_v9 }
  0x1c   :  { %5599 = vmatpush3.bf16.msra.mxu0 %v5704_v28  ;;  %471 = vmatprep.mubr.bf16.mxu1 %v202_v10 }
  0x1d   :  { %5621 = vmatpush3.bf16.msra.mxu1 %v5705_v29  ;;  %5600 = vmatprep.subr.bf16.mxu0 %v5706_v30 }
  0x1e   :  { %5622 = vmatprep.subr.bf16.mxu1 %v5707_v31 }
  0x20   :  { %5601 = vmatpush3.bf16.msra.mxu0 %v5708_v33 }
  0x21   :  { %5623 = vmatpush3.bf16.msra.mxu1 %v5709_v35  ;;  %5642 = vmatprep.subr.bf16.mxu0 %v5815_v41 }
  0x22   :  { %5662 = vmatprep.subr.bf16.mxu1 %v5815_v41 }
  0x23   :  { %432 = vmatmul.mubr.bf16.vlgmr.msra.gmra.mxu0 %v199_v13 }
  0x24   :  { %472 = vmatmul.mubr.bf16.vlgmr.msra.gmra.mxu1 %v201_v14  ;;  %5643 = vmatpush3.bf16.msra.mxu0 %v5710_v6 }
  0x25   :  { %5644 = vmatprep.subr.bf16.mxu0 %v5815_v41 }
  0x26   :  { %21 = vsyncpa [#allocation5], 0  ;;  %v5712_v16 = vld [vmem:[%s7855_s3 + $0x28] sm:$0xff]   ;;  %v5713_v17 = vld [vmem:[%s7855_s3 + $0x20] sm:$0xff]   ;;  %vm5816_vm1 = vmmov 0   ;;  %s5817_s0 = smov 32  }
  0x27   :  { %v5714_v18 = vld [vmem:[%s7855_s3 + $0x18] sm:$0xff]   ;;  %v5715_v19 = vld [vmem:[%s7855_s3 + $0x10] sm:$0xff]   ;;  %v5716_v20 = vld [vmem:[%s7855_s3 + $0x8] sm:$0xff]   ;;  %5658 = vmatprep.mubr.msk.bf16.mxu0 %vm5816_vm1, %v5815_v41  ;;  %5666 = vmatprep.mubr.msk.bf16.mxu1 %vm5816_vm1, %v5815_v41  ;;  %vm4810_vm2 = vcmask 254976   ;;  %s5818_s17 = smov 96   ;;  %vm633_vm3 = vcmask 261120  }
  0x28   :  { %5645 = vmatpush3.bf16.msra.mxu0 %v5711_v15  ;;  %v5717_v21 = vld [vmem:[%s7855_s3] sm:$0xff]   ;;  %v5718_v43 = vld [vmem:[%s7858_s6 + $0x8] sm:$0xff]   ;;  %s5822_s16 = smov [#allocation4]  }
  0x29   :  { %5646 = vmatprep.subr.bf16.mxu0 %v5815_v41  ;;  %v5025_v22 = vld [vmem:[%s7857_s5] ss:$0 sm:$0xff]  ;;  %5663 = vmatpush3.bf16.msra.mxu1 %v5718_v43  ;;  %v5722_v52 = vld [vmem:[%s7860_s8 + $0xe4] ss:$16 sps:$4 sm:$0xff]   ;;  %v5723_v53 = vld [vmem:[%s7860_s8 + $0xe8] ss:$16 sps:$4 sm:$0xff]  }
  0x2a   :  { %600 = vrot.lane.b32.xlu0 %v5025_v22, %s5817_s0  ;;  %v4983_v25 = vld [vmem:[%s7854_s2] ss:$0 sm:$0xff]  ;;  %5664 = vmatprep.subr.bf16.mxu1 %v5815_v41  ;;  %v5725_v54 = vld [vmem:[%s7860_s8 + $0xec] ss:$16 sps:$4 sm:$0xff]   ;;  %v5729_v57 = vld [vmem:[%s7860_s8 + $0xc8] ss:$16 sps:$4 sm:$0xff]  }
  0x2b   :  { %v5016_v44 = vld [vmem:[%s7856_s4] ss:$0 sm:$0xff]  ;;  %v5731_v55 = vld [vmem:[%s7860_s8 + $0xcc] ss:$16 sps:$4 sm:$0xff]   ;;  %v5735_v61 = vld [vmem:[%s7860_s8 + $0xa8] ss:$16 sps:$4 sm:$0xff]  }
  0x2c   :  { %5647 = vmatpush3.bf16.msra.mxu0 %v5712_v16  ;;  %v5737_v59 = vld [vmem:[%s7860_s8 + $0xac] ss:$16 sps:$4 sm:$0xff]   ;;  %v5741_v63 = vld [vmem:[%s7860_s8 + $0x88] ss:$16 sps:$4 sm:$0xff]   ;;  %v5720_v9 = vld [vmem:[%s7860_s8 + $0xe0] ss:$16 sps:$4 sm:$0xff]  }
  0x2d   :  { %5648 = vmatprep.subr.bf16.mxu0 %v5815_v41  ;;  %v5743_v62 = vld [vmem:[%s7860_s8 + $0x8c] ss:$16 sps:$4 sm:$0xff]   ;;  %v5747_v1 = vld [vmem:[%s7860_s8 + $0x68] ss:$16 sps:$4 sm:$0xff]   ;;  %v5728_v11 = vld [vmem:[%s7860_s8 + $0xc4] ss:$16 sps:$4 sm:$0xff]  }
  0x2e   :  { %v5749_v0 = vld [vmem:[%s7860_s8 + $0x6c] ss:$16 sps:$4 sm:$0xff]   ;;  %v5753_v3 = vld [vmem:[%s7860_s8 + $0x48] ss:$16 sps:$4 sm:$0xff]   ;;  %v5726_v12 = vld [vmem:[%s7860_s8 + $0xc0] ss:$16 sps:$4 sm:$0xff]  }
  0x2f   :  { %v5755_v2 = vld [vmem:[%s7860_s8 + $0x4c] ss:$16 sps:$4 sm:$0xff]   ;;  %v5759_v5 = vld [vmem:[%s7860_s8 + $0x28] ss:$16 sps:$4 sm:$0xff]   ;;  %v5734_v13 = vld [vmem:[%s7860_s8 + $0xa4] ss:$16 sps:$4 sm:$0xff]  }
  0x30   :  { %5649 = vmatpush3.bf16.msra.mxu0 %v5713_v17  ;;  %v5761_v4 = vld [vmem:[%s7860_s8 + $0x2c] ss:$16 sps:$4 sm:$0xff]   ;;  %v5732_v14 = vld [vmem:[%s7860_s8 + $0xa0] ss:$16 sps:$4 sm:$0xff]   ;;  %v5740_v15 = vld [vmem:[%s7860_s8 + $0x84] ss:$16 sps:$4 sm:$0xff]  }
  0x31   :  { %5650 = vmatprep.subr.bf16.mxu0 %v5815_v41  ;;  %v5738_v16 = vld [vmem:[%s7860_s8 + $0x80] ss:$16 sps:$4 sm:$0xff]   ;;  %v5746_v17 = vld [vmem:[%s7860_s8 + $0x64] ss:$16 sps:$4 sm:$0xff]   ;;  %s4967_s18 = sshll.u32 %s5822_s16, 4  ;;  %s4968_s18 = int_to_ptr.vmem [resolvable:$true] %s4967_s18 }
  0x32   :  { %v5756_v22 = vld [vmem:[%s7860_s8 + $0x20] ss:$16 sps:$4 sm:$0xff]  }
  0x33   :  { %v1078_v43 = vld [vmem:[%s7862_s10 + $0x300] sm:$0xff] }
  0x34   :  { %5651 = vmatpush3.bf16.msra.mxu0 %v5714_v18  ;;  %v5744_v18 = vld [vmem:[%s7860_s8 + $0x60] ss:$16 sps:$4 sm:$0xff]  }
  0x35   :  { %5652 = vmatprep.subr.bf16.mxu0 %v5815_v41 }
  0x38   :  { %5653 = vmatpush3.bf16.msra.mxu0 %v5715_v19  ;;  %v5752_v19 = vld [vmem:[%s7860_s8 + $0x44] ss:$16 sps:$4 sm:$0xff]  }
  0x39   :  { %5654 = vmatprep.subr.bf16.mxu0 %v5815_v41 }
  0x3c   :  { %5655 = vmatpush3.bf16.msra.mxu0 %v5716_v20  ;;  %v5750_v20 = vld [vmem:[%s7860_s8 + $0x40] ss:$16 sps:$4 sm:$0xff]  }
  0x3d   :  { %5656 = vmatprep.subr.bf16.mxu0 %v5815_v41  ;;  %v5719_v41 = vld [vmem:[%s7858_s6] sm:$0xff]  }
  0x3e   :  { %5665 = vmatpush3.bf16.msra.mxu1 %v5719_v41 }
  0x3f   :  { %892 = vmatprep.subr.bf16.mxu1 %v5722_v52  ;;  %v1062_v52 = vld [vmem:[%s7862_s10 + $0x280] sm:$0xff] }
  0x40   :  { %5657 = vmatpush3.bf16.msra.mxu0 %v5717_v21  ;;  %v5758_v21 = vld [vmem:[%s7860_s8 + $0x24] ss:$16 sps:$4 sm:$0xff]  }
  0x41   :  { %933 = vmatprep.subr.bf16.mxu0 %v5725_v54  ;;  %v1070_v54 = vld [vmem:[%s7862_s10 + $0x2c0] sm:$0xff] }
  0x9c   :  { %v601_v56 = vpop.permute.xlu0 %600 }
  0xe3   :  { %v5602_v23 = vpop.f32.mrf.mxu0 }
  0xe4   :  { %v5624_v24 = vpop.f32.mrf.mxu1 }
  0xe5   :  { %v5603_v26 = vpop.f32.mrf.mxu0 }
  0xe6   :  { %v5625_v28 = vpop.f32.mrf.mxu1  ;;  %v5604_v29 = vadd.f32 %v5603_v26, %v5602_v23  ;;  %v5764_v23 = vld [vmem:[%s7860_s8 + $0x4] ss:$16 sps:$4 sm:$0xff]   ;;  %v5765_v26 = vld [vmem:[%s7860_s8 + $0x8] ss:$16 sps:$4 sm:$0xff]  }
  0xe7   :  { %v5605_v30 = vpop.f32.mrf.mxu0  ;;  %v5626_v35 = vadd.f32 %v5625_v28, %v5624_v24  ;;  %v5767_v24 = vld [vmem:[%s7860_s8 + $0xc] ss:$16 sps:$4 sm:$0xff]   ;;  %v5819_v28 = vmov 0  }
  0xe8   :  { %v5627_v31 = vpop.f32.mrf.mxu1  ;;  %v434_v33 = vadd.f32 %v5604_v29, %v4983_v25  ;;  %v5762_v25 = vld [vmem:[%s7860_s8] ss:$16 sps:$4 sm:$0xff]  }
  0xe9   :  { %v5606_v37 = vpop.f32.mrf.mxu0  ;;  %v1094_v29 = vld [vmem:[%s7862_s10 + $0x380] sm:$0xff] }
  0xea   :  { %v5628_v39 = vpop.f32.mrf.mxu1  ;;  %v474_v40 = vadd.f32 %v5626_v35, %v434_v33  ;;  %v1102_v30 = vld [vmem:[%s7862_s10 + $0x3c0] sm:$0xff] }
  0xeb   :  { %v1350_v31 = vld [vmem:[%s7862_s10 + $0xb80] sm:$0xff]  ;;  %v5174_v33 = vcombine.low %v1094_v29, %v1102_v30  ;;  %v5175_v35 = vcombine.high %v1094_v29, %v1102_v30 }
  0xec   :  { %v479_v42 = vpack.c.bf16 %v474_v40, %v474_v40  ;;  %v1358_v37 = vld [vmem:[%s7862_s10 + $0xbc0] sm:$0xff] }
  0xed   :  { %v5430_v39 = vcombine.low %v1350_v31, %v1358_v37  ;;  %v5431_v40 = vcombine.high %v1350_v31, %v1358_v37  ;;  %v982_v31 = vld [vmem:[%s7862_s10] sm:$0xff] }
  0xee   :  { %5659 = vmatmul.mubr.bf16.vlgmr.msra.gmra.mxu0 %v479_v42  ;;  %v5026_v42 = vld [vmem:[%s7859_s7] ss:$0 sm:$0xff] }
  0xef   :  { %934 = vmatpush1.bf16.msra.mxu0 %v5723_v53  ;;  %965 = vmatprep.mubr.bf16.mxu0 %v5819_v28  ;;  %v1246_v37 = vld [vmem:[%s7862_s10 + $0x840] sm:$0xff] }
  0xf0   :  { %935 = vmatprep.subr.bf16.mxu0 %v5731_v55  ;;  %v1318_v55 = vld [vmem:[%s7862_s10 + $0xa80] sm:$0xff] }
  0xf3   :  { %936 = vmatpush1.bf16.msra.mxu0 %v5729_v57 }
  0xf4   :  { %937 = vmatprep.subr.bf16.mxu0 %v5737_v59 }
  0xf7   :  { %938 = vmatpush1.bf16.msra.mxu0 %v5735_v61 }
  0xf8   :  { %939 = vmatprep.subr.bf16.mxu0 %v5743_v62  ;;  %v1046_v62 = vld [vmem:[%s7862_s10 + $0x200] sm:$0xff] }
  0xfb   :  { %940 = vmatpush1.bf16.msra.mxu0 %v5741_v63  ;;  %v1054_v63 = vld [vmem:[%s7862_s10 + $0x240] sm:$0xff] }
  0xfc   :  { %941 = vmatprep.subr.bf16.mxu0 %v5749_v0  ;;  %v1302_v0 = vld [vmem:[%s7862_s10 + $0xa00] sm:$0xff] }
  0xff   :  { %942 = vmatpush1.bf16.msra.mxu0 %v5747_v1  ;;  %v1310_v1 = vld [vmem:[%s7862_s10 + $0xa40] sm:$0xff] }
 0x100   :  { %943 = vmatprep.subr.bf16.mxu0 %v5755_v2  ;;  %v5142_v2 = vcombine.low %v1062_v52, %v1070_v54 }
 0x103   :  { %944 = vmatpush1.bf16.msra.mxu0 %v5753_v3 }
 0x104   :  { %945 = vmatprep.subr.bf16.mxu0 %v5761_v4  ;;  %v5127_v4 = vcombine.high %v1046_v62, %v1054_v63 }
 0x107   :  { %946 = vmatpush1.bf16.msra.mxu0 %v5759_v5  ;;  %v5383_v5 = vcombine.high %v1302_v0, %v1310_v1 }
 0x108   :  { %947 = vmatprep.subr.bf16.mxu0 %v5767_v24  ;;  %v1254_v24 = vld [vmem:[%s7862_s10 + $0x880] sm:$0xff] }
 0x10b   :  { %948 = vmatpush1.bf16.msra.mxu0 %v5765_v26 }
 0x10c   :  { %4179 = vmatprep.subr.bf16.mxu0 %v5431_v40 }
 0x1ae   :  { %v585_v45 = vpop.f32.mrf.mxu0 }
 0x1af   :  { %v586_v46 = vadd.f32 %v5016_v44, %v585_v45  ;;  %v1086_v45 = vld [vmem:[%s7862_s10 + $0x340] sm:$0xff] }
 0x1b0   :  { %v5660_v47 = vpop.f32.mrf.mxu0 }
 0x1b1   :  { %v591_v48 = vmul.f32 0.5, %v586_v46  ;;  %4813 = vrot.lane.b32.xlu1 %v586_v46, %s5818_s17  ;;  %4811 = vst.msk [vmem:[#allocation2] sm:$0x3] %vm4810_vm2, %v586_v46  ;;  %v1342_v47 = vld [vmem:[%s7862_s10 + $0xb40] sm:$0xff] }
 0x1b2   :  { %v588_v49 = vpop.f32.mrf.mxu0 }
 0x1b3   :  { %v592_v50 = vmul.f32 1.442695, %v591_v48 }
 0x1b4   :  { %v5661_v51 = vpop.f32.mrf.mxu0 }
 0x1b5   :  { %5768 = vpow2.f32 %v592_v50  ;;  %v5159_v51 = vcombine.high %v1078_v43, %v1086_v45 }
 0x1c2   :  { %v5769_v58 = vpop.eup %5768 }
 0x1c3   :  { %v603_v60 = vmul.f32 %v5769_v58, %v601_v56  ;;  %v1326_v56 = vld [vmem:[%s7862_s10 + $0xac0] sm:$0xff]  ;;  %v5158_v58 = vcombine.low %v1078_v43, %v1086_v45 }
 0x1c4   :  { %v5399_v61 = vcombine.high %v1318_v55, %v1326_v56  ;;  %v5398_v3 = vcombine.low %v1318_v55, %v1326_v56  ;;  %v1230_v45 = vld [vmem:[%s7862_s10 + $0x7c0] sm:$0xff] }
 0x1c5   :  { %605 = vrot.lane.b32.xlu0 %v603_v60, %s5818_s17  ;;  %v5143_v60 = vcombine.high %v1062_v52, %v1070_v54  ;;  %v1214_v52 = vld [vmem:[%s7862_s10 + $0x740] sm:$0xff] }
 0x1c6   :  { %v1470_v54 = vld [vmem:[%s7862_s10 + $0xf40] sm:$0xff] }
 0x223   :  { %v4814_v6 = vpop.permute.xlu1 %4813 }
 0x224   :  { %4816 = vst.msk [vmem:[#allocation4] sm:$0x3] %vm4810_vm2, %v4814_v6  ;;  %v1030_v6 = vld [vmem:[%s7862_s10 + $0x180] sm:$0xff] }
 0x237   :  { %v606_v7 = vpop.permute.xlu0 %605 }
 0x238   :  { %v608_v8 = vadd.f32 %v606_v7, %v586_v46  ;;  %v1334_v46 = vld [vmem:[%s7862_s10 + $0xb00] sm:$0xff] }
 0x239   :  { %v5415_v41 = vcombine.high %v1334_v46, %v1342_v47  ;;  %v5414_v59 = vcombine.low %v1334_v46, %v1342_v47  ;;  %v1038_v7 = vld [vmem:[%s7862_s10 + $0x1c0] sm:$0xff] }
 0x23a   :  { %v609_v10 = vpack.c.bf16 %v608_v8, %v608_v8  ;;  %v1286_v8 = vld [vmem:[%s7862_s10 + $0x980] sm:$0xff] }
 0x23b   :  { %v1478_v46 = vld [vmem:[%s7862_s10 + $0xf80] sm:$0xff] }
 0x23c   :  { %5667 = vmatmul.mubr.msk.bf16.vlgmr.msra.gmra.mxu1 %vm633_vm3, %v609_v10  ;;  %v5126_v10 = vcombine.low %v1046_v62, %v1054_v63  ;;  %v1486_v47 = vld [vmem:[%s7862_s10 + $0xfc0] sm:$0xff] }
 0x23d   :  { %893 = vmatpush1.bf16.msra.mxu1 %v5720_v9  ;;  %924 = vmatprep.mubr.bf16.mxu1 %v5819_v28  ;;  %v1294_v9 = vld [vmem:[%s7862_s10 + $0x9c0] sm:$0xff]  ;;  %v5558_v56 = vcombine.low %v1478_v46, %v1486_v47 }
 0x23e   :  { %894 = vmatprep.subr.bf16.mxu1 %v5728_v11  ;;  %v5382_v11 = vcombine.low %v1302_v0, %v1310_v1  ;;  %v1454_v62 = vld [vmem:[%s7862_s10 + $0xec0] sm:$0xff] }
 0x241   :  { %895 = vmatpush1.bf16.msra.mxu1 %v5726_v12  ;;  %v5111_v12 = vcombine.high %v1030_v6, %v1038_v7 }
 0x242   :  { %896 = vmatprep.subr.bf16.mxu1 %v5734_v13  ;;  %v5367_v13 = vcombine.high %v1286_v8, %v1294_v9 }
 0x245   :  { %897 = vmatpush1.bf16.msra.mxu1 %v5732_v14  ;;  %v1014_v14 = vld [vmem:[%s7862_s10 + $0x100] sm:$0xff] }
 0x246   :  { %898 = vmatprep.subr.bf16.mxu1 %v5740_v15  ;;  %v1022_v15 = vld [vmem:[%s7862_s10 + $0x140] sm:$0xff] }
 0x247   :  { %v5094_v26 = vcombine.low %v1014_v14, %v1022_v15 }
 0x249   :  { %899 = vmatpush1.bf16.msra.mxu1 %v5738_v16  ;;  %v1270_v16 = vld [vmem:[%s7862_s10 + $0x900] sm:$0xff] }
 0x24a   :  { %900 = vmatprep.subr.bf16.mxu1 %v5746_v17  ;;  %v1278_v17 = vld [vmem:[%s7862_s10 + $0x940] sm:$0xff] }
 0x24b   :  { %v5350_v28 = vcombine.low %v1270_v16, %v1278_v17 }
 0x24d   :  { %901 = vmatpush1.bf16.msra.mxu1 %v5744_v18  ;;  %v5110_v18 = vcombine.low %v1030_v6, %v1038_v7  ;;  %v1438_v6 = vld [vmem:[%s7862_s10 + $0xe40] sm:$0xff] }
 0x24e   :  { %902 = vmatprep.subr.bf16.mxu1 %v5752_v19  ;;  %v5366_v19 = vcombine.low %v1286_v8, %v1294_v9 }
 0x251   :  { %903 = vmatpush1.bf16.msra.mxu1 %v5750_v20  ;;  %v5095_v20 = vcombine.high %v1014_v14, %v1022_v15  ;;  %v1422_v14 = vld [vmem:[%s7862_s10 + $0xdc0] sm:$0xff] }
 0x252   :  { %904 = vmatprep.subr.bf16.mxu1 %v5758_v21  ;;  %v5351_v21 = vcombine.high %v1270_v16, %v1278_v17 }
 0x255   :  { %905 = vmatpush1.bf16.msra.mxu1 %v5756_v22  ;;  %v998_v22 = vld [vmem:[%s7862_s10 + $0x80] sm:$0xff] }
 0x256   :  { %906 = vmatprep.subr.bf16.mxu1 %v5764_v23  ;;  %v1006_v23 = vld [vmem:[%s7862_s10 + $0xc0] sm:$0xff] }
 0x257   :  { %v5079_v29 = vcombine.high %v998_v22, %v1006_v23 }
 0x259   :  { %907 = vmatpush1.bf16.msra.mxu1 %v5762_v25  ;;  %v1262_v25 = vld [vmem:[%s7862_s10 + $0x8c0] sm:$0xff] }
 0x25a   :  { %4138 = vmatprep.subr.bf16.mxu1 %v5175_v35  ;;  %v5335_v30 = vcombine.high %v1254_v24, %v1262_v25  ;;  %v1238_v35 = vld [vmem:[%s7862_s10 + $0x800] sm:$0xff]  ;;  %v5334_v40 = vcombine.low %v1254_v24, %v1262_v25 }
 0x25b   :  { %v5319_v43 = vcombine.high %v1238_v35, %v1246_v37 }
 0x2fc   :  { %v671_v44 = vpop.f32.mrf.mxu1 }
 0x2fd   :  { %v672_v48 = vadd.f32 %v5026_v42, %v671_v44  ;;  %v1222_v44 = vld [vmem:[%s7862_s10 + $0x780] sm:$0xff] }
 0x2fe   :  { %v5668_v49 = vpop.f32.mrf.mxu1  ;;  %v5302_v55 = vcombine.low %v1222_v44, %v1230_v45 }
 0x2ff   :  { %v677_v50 = vpack.c.bf16 %v672_v48, %v672_v48  ;;  %v5318_v49 = vcombine.low %v1238_v35, %v1246_v37  ;;  %v1390_v37 = vld [vmem:[%s7862_s10 + $0xcc0] sm:$0xff] }
 0x300   :  { %v674_v53 = vpop.f32.mrf.mxu1 }
 0x301   :  { %925 = vmatmul.mubr.bf16.vlgmr.msra.gmra.mxu1 %v677_v50  ;;  %966 = vmatmul.mubr.bf16.vlgmr.msra.gmra.mxu0 %v677_v50  ;;  %v5303_v50 = vcombine.high %v1222_v44, %v1230_v45  ;;  %v1462_v53 = vld [vmem:[%s7862_s10 + $0xf00] sm:$0xff] }
 0x302   :  { %v5669_v57 = vpop.f32.mrf.mxu1  ;;  %4139 = vmatpush1.bf16.msra.mxu1 %v5174_v33  ;;  %4180 = vmatpush1.bf16.msra.mxu0 %v5430_v39  ;;  %v990_v33 = vld [vmem:[%s7862_s10 + $0x40] sm:$0xff]  ;;  %v5078_v39 = vcombine.low %v998_v22, %v1006_v23  ;;  %v5542_v0 = vcombine.low %v1462_v53, %v1470_v54 }
 0x303   :  { %4140 = vmatprep.subr.bf16.mxu1 %v5159_v51  ;;  %4181 = vmatprep.subr.bf16.mxu0 %v5415_v41  ;;  %v5063_v42 = vcombine.high %v982_v31, %v990_v33  ;;  %v5062_v48 = vcombine.low %v982_v31, %v990_v33  ;;  %v5559_v51 = vcombine.high %v1478_v46, %v1486_v47  ;;  %v1206_v41 = vld [vmem:[%s7862_s10 + $0x700] sm:$0xff] }
 0x304   :  { %v5287_v57 = vcombine.high %v1206_v41, %v1214_v52  ;;  %v5286_v63 = vcombine.low %v1206_v41, %v1214_v52  ;;  %v1406_v22 = vld [vmem:[%s7862_s10 + $0xd40] sm:$0xff]  ;;  %v1103_v41 = vld [vmem:[%s7862_s10 + $0x3c8] sm:$0xff] }
 0x305   :  { %v1134_v31 = vld [vmem:[%s7862_s10 + $0x4c0] sm:$0xff]  ;;  %v1351_v52 = vld [vmem:[%s7862_s10 + $0xb88] sm:$0xff] }
 0x306   :  { %4141 = vmatpush1.bf16.msra.mxu1 %v5158_v58  ;;  %4182 = vmatpush1.bf16.msra.mxu0 %v5414_v59  ;;  %v5543_v58 = vcombine.high %v1462_v53, %v1470_v54  ;;  %v1190_v59 = vld [vmem:[%s7862_s10 + $0x680] sm:$0xff]  ;;  %v1359_v54 = vld [vmem:[%s7862_s10 + $0xbc8] sm:$0xff] }
 0x307   :  { %4142 = vmatprep.subr.bf16.mxu1 %v5143_v60  ;;  %4183 = vmatprep.subr.bf16.mxu0 %v5399_v61  ;;  %v1198_v60 = vld [vmem:[%s7862_s10 + $0x6c0] sm:$0xff] }
 0x308   :  { %v1446_v61 = vld [vmem:[%s7862_s10 + $0xe80] sm:$0xff]  ;;  %v5271_v1 = vcombine.high %v1190_v59, %v1198_v60  ;;  %v5270_v7 = vcombine.low %v1190_v59, %v1198_v60  ;;  %v6383_v59 = vsub.s32 1, %v5976_v27  ;;  %v6386_v60 = vsub.s32 3, %v5976_v27 }
 0x309   :  { %v5526_v8 = vcombine.low %v1446_v61, %v1454_v62  ;;  %v1382_v33 = vld [vmem:[%s7862_s10 + $0xc80] sm:$0xff] }
 0x30a   :  { %4143 = vmatpush1.bf16.msra.mxu1 %v5142_v2  ;;  %4184 = vmatpush1.bf16.msra.mxu0 %v5398_v3  ;;  %v5527_v2 = vcombine.high %v1446_v61, %v1454_v62  ;;  %v1174_v3 = vld [vmem:[%s7862_s10 + $0x600] sm:$0xff] }
 0x30b   :  { %4144 = vmatprep.subr.bf16.mxu1 %v5127_v4  ;;  %4185 = vmatprep.subr.bf16.mxu0 %v5383_v5  ;;  %v1182_v4 = vld [vmem:[%s7862_s10 + $0x640] sm:$0xff] }
 0x30c   :  { %v1430_v5 = vld [vmem:[%s7862_s10 + $0xe00] sm:$0xff]  ;;  %v5255_v9 = vcombine.high %v1174_v3, %v1182_v4  ;;  %v5254_v15 = vcombine.low %v1174_v3, %v1182_v4 }
 0x30d   :  { %v5510_v16 = vcombine.low %v1430_v5, %v1438_v6  ;;  %v1118_v44 = vld [vmem:[%s7862_s10 + $0x440] sm:$0xff] }
 0x30e   :  { %4145 = vmatpush1.bf16.msra.mxu1 %v5126_v10  ;;  %4186 = vmatpush1.bf16.msra.mxu0 %v5382_v11  ;;  %v5511_v10 = vcombine.high %v1430_v5, %v1438_v6  ;;  %v1158_v11 = vld [vmem:[%s7862_s10 + $0x580] sm:$0xff] }
 0x30f   :  { %4146 = vmatprep.subr.bf16.mxu1 %v5111_v12  ;;  %4187 = vmatprep.subr.bf16.mxu0 %v5367_v13  ;;  %v1166_v12 = vld [vmem:[%s7862_s10 + $0x5c0] sm:$0xff] }
 0x310   :  { %v1414_v13 = vld [vmem:[%s7862_s10 + $0xd80] sm:$0xff]  ;;  %v5239_v17 = vcombine.high %v1158_v11, %v1166_v12  ;;  %v5238_v23 = vcombine.low %v1158_v11, %v1166_v12 }
 0x311   :  { %v5494_v24 = vcombine.low %v1414_v13, %v1422_v14  ;;  %v1366_v45 = vld [vmem:[%s7862_s10 + $0xc00] sm:$0xff] }
 0x312   :  { %4147 = vmatpush1.bf16.msra.mxu1 %v5110_v18  ;;  %4188 = vmatpush1.bf16.msra.mxu0 %v5366_v19  ;;  %v5495_v18 = vcombine.high %v1414_v13, %v1422_v14  ;;  %v1142_v19 = vld [vmem:[%s7862_s10 + $0x500] sm:$0xff] }
 0x313   :  { %4148 = vmatprep.subr.bf16.mxu1 %v5095_v20  ;;  %4189 = vmatprep.subr.bf16.mxu0 %v5351_v21  ;;  %v1150_v20 = vld [vmem:[%s7862_s10 + $0x540] sm:$0xff] }
 0x314   :  { %v1398_v21 = vld [vmem:[%s7862_s10 + $0xd00] sm:$0xff]  ;;  %v5223_v25 = vcombine.high %v1142_v19, %v1150_v20 }
 0x315   :  { %v1374_v47 = vld [vmem:[%s7862_s10 + $0xc40] sm:$0xff] }
 0x316   :  { %4149 = vmatpush1.bf16.msra.mxu1 %v5094_v26  ;;  %4190 = vmatpush1.bf16.msra.mxu0 %v5350_v28  ;;  %v5479_v26 = vcombine.high %v1398_v21, %v1406_v22  ;;  %v5222_v28 = vcombine.low %v1142_v19, %v1150_v20  ;;  %v1335_v19 = vld [vmem:[%s7862_s10 + $0xb08] sm:$0xff] }
 0x317   :  { %4150 = vmatprep.subr.bf16.mxu1 %v5079_v29  ;;  %4191 = vmatprep.subr.bf16.mxu0 %v5335_v30  ;;  %v5478_v29 = vcombine.low %v1398_v21, %v1406_v22  ;;  %v1126_v30 = vld [vmem:[%s7862_s10 + $0x480] sm:$0xff]  ;;  %v1343_v20 = vld [vmem:[%s7862_s10 + $0xb48] sm:$0xff] }
 0x318   :  { %v5207_v35 = vcombine.high %v1126_v30, %v1134_v31 }
 0x31a   :  { %4151 = vmatpush1.bf16.msra.mxu1 %v5078_v39  ;;  %4192 = vmatpush1.bf16.msra.mxu0 %v5334_v40  ;;  %v5206_v39 = vcombine.low %v1126_v30, %v1134_v31  ;;  %v5462_v40 = vcombine.low %v1382_v33, %v1390_v37  ;;  %v1319_v30 = vld [vmem:[%s7862_s10 + $0xa88] sm:$0xff] }
 0x31b   :  { %4152 = vmatprep.subr.bf16.mxu1 %v5063_v42  ;;  %4193 = vmatprep.subr.bf16.mxu0 %v5319_v43  ;;  %v5463_v42 = vcombine.high %v1382_v33, %v1390_v37  ;;  %v1110_v43 = vld [vmem:[%s7862_s10 + $0x400] sm:$0xff]  ;;  %v1327_v31 = vld [vmem:[%s7862_s10 + $0xac8] sm:$0xff] }
 0x31c   :  { %v5191_v46 = vcombine.high %v1110_v43, %v1118_v44 }
 0x31e   :  { %4153 = vmatpush1.bf16.msra.mxu1 %v5062_v48  ;;  %4194 = vmatpush1.bf16.msra.mxu0 %v5318_v49  ;;  %v5190_v48 = vcombine.low %v1110_v43, %v1118_v44  ;;  %v5446_v49 = vcombine.low %v1366_v45, %v1374_v47  ;;  %v1303_v43 = vld [vmem:[%s7862_s10 + $0xa08] sm:$0xff] }
 0x31f   :  { %4154 = vmatprep.subr.bf16.mxu1 %v5303_v50  ;;  %4195 = vmatprep.subr.bf16.mxu0 %v5559_v51  ;;  %v5447_v50 = vcombine.high %v1366_v45, %v1374_v47  ;;  %v1095_v51 = vld [vmem:[%s7862_s10 + $0x388] sm:$0xff] }
 0x320   :  { %v5177_v53 = vcombine.high %v1095_v51, %v1103_v41  ;;  %v1311_v44 = vld [vmem:[%s7862_s10 + $0xa48] sm:$0xff] }
 0x322   :  { %4155 = vmatpush2.bf16.msra.mxu1 %v5302_v55  ;;  %4196 = vmatpush2.bf16.msra.mxu0 %v5558_v56  ;;  %v5176_v55 = vcombine.low %v1095_v51, %v1103_v41  ;;  %v5432_v56 = vcombine.low %v1351_v52, %v1359_v54  ;;  %v1287_v51 = vld [vmem:[%s7862_s10 + $0x988] sm:$0xff] }
 0x323   :  { %4156 = vmatprep.subr.bf16.mxu1 %v5287_v57  ;;  %4197 = vmatprep.subr.bf16.mxu0 %v5543_v58  ;;  %v5433_v57 = vcombine.high %v1351_v52, %v1359_v54  ;;  %v710_v58 = vld [vmem:[%s7861_s9] sm:$0xf]  ;;  %v1295_v41 = vld [vmem:[%s7862_s10 + $0x9c8] sm:$0xff] }
 0x324   :  { %v715_v61 = vrot.slane %v710_v58, %v6003_v36  ;;  %v723_v62 = vrot.slane %v710_v58, %v5991_v32 }
 0x326   :  { %4157 = vmatpush2.bf16.msra.mxu1 %v5286_v63  ;;  %4198 = vmatpush2.bf16.msra.mxu0 %v5542_v0  ;;  %v719_v63 = vrot.slane %v710_v58, %v6383_v59  ;;  %v727_v0 = vrot.slane %v710_v58, %v6386_v60  ;;  %v1271_v58 = vld [vmem:[%s7862_s10 + $0x908] sm:$0xff] }
 0x327   :  { %4158 = vmatprep.subr.bf16.mxu1 %v5271_v1  ;;  %4199 = vmatprep.subr.bf16.mxu0 %v5527_v2 }
 0x32a   :  { %4159 = vmatpush2.bf16.msra.mxu1 %v5270_v7  ;;  %4200 = vmatpush2.bf16.msra.mxu0 %v5526_v8 }
 0x32b   :  { %4160 = vmatprep.subr.bf16.mxu1 %v5255_v9  ;;  %4201 = vmatprep.subr.bf16.mxu0 %v5511_v10 }
 0x32e   :  { %4161 = vmatpush2.bf16.msra.mxu1 %v5254_v15  ;;  %4202 = vmatpush2.bf16.msra.mxu0 %v5510_v16  ;;  %v1079_v15 = vld [vmem:[%s7862_s10 + $0x308] sm:$0xff] }
 0x32f   :  { %4162 = vmatprep.subr.bf16.mxu1 %v5239_v17  ;;  %4203 = vmatprep.subr.bf16.mxu0 %v5495_v18  ;;  %v1087_v18 = vld [vmem:[%s7862_s10 + $0x348] sm:$0xff] }
 0x330   :  { %v5160_v33 = vcombine.low %v1079_v15, %v1087_v18 }
 0x332   :  { %4163 = vmatpush2.bf16.msra.mxu1 %v5238_v23  ;;  %4204 = vmatpush2.bf16.msra.mxu0 %v5494_v24 }
 0x333   :  { %4164 = vmatprep.subr.bf16.mxu1 %v5223_v25  ;;  %4205 = vmatprep.subr.bf16.mxu0 %v5479_v26  ;;  %v1063_v25 = vld [vmem:[%s7862_s10 + $0x288] sm:$0xff]  ;;  %v5161_v26 = vcombine.high %v1079_v15, %v1087_v18 }
 0x334   :  { %v1223_v18 = vld [vmem:[%s7862_s10 + $0x788] sm:$0xff] }
 0x336   :  { %4165 = vmatpush2.bf16.msra.mxu1 %v5222_v28  ;;  %4206 = vmatpush2.bf16.msra.mxu0 %v5478_v29  ;;  %v5417_v28 = vcombine.high %v1335_v19, %v1343_v20  ;;  %v1071_v29 = vld [vmem:[%s7862_s10 + $0x2c8] sm:$0xff] }
 0x337   :  { %4166 = vmatprep.subr.bf16.mxu1 %v5207_v35  ;;  %4207 = vmatprep.subr.bf16.mxu0 %v5463_v42  ;;  %v5416_v35 = vcombine.low %v1335_v19, %v1343_v20  ;;  %v5145_v37 = vcombine.high %v1063_v25, %v1071_v29  ;;  %v1055_v42 = vld [vmem:[%s7862_s10 + $0x248] sm:$0xff]  ;;  %v5144_v45 = vcombine.low %v1063_v25, %v1071_v29 }
 0x338   :  { %v1231_v19 = vld [vmem:[%s7862_s10 + $0x7c8] sm:$0xff] }
 0x339   :  { %v1479_v20 = vld [vmem:[%s7862_s10 + $0xf88] sm:$0xff]  ;;  %v5305_v29 = vcombine.high %v1223_v18, %v1231_v19 }
 0x33a   :  { %4167 = vmatpush2.bf16.msra.mxu1 %v5206_v39  ;;  %4208 = vmatpush2.bf16.msra.mxu0 %v5462_v40  ;;  %v5401_v39 = vcombine.high %v1319_v30, %v1327_v31  ;;  %v1047_v40 = vld [vmem:[%s7862_s10 + $0x208] sm:$0xff] }
 0x33b   :  { %4168 = vmatprep.subr.bf16.mxu1 %v5191_v46  ;;  %4209 = vmatprep.subr.bf16.mxu0 %v5447_v50  ;;  %v5400_v46 = vcombine.low %v1319_v30, %v1327_v31  ;;  %v5129_v47 = vcombine.high %v1047_v40, %v1055_v42  ;;  %v1039_v50 = vld [vmem:[%s7862_s10 + $0x1c8] sm:$0xff]  ;;  %v5128_v52 = vcombine.low %v1047_v40, %v1055_v42 }
 0x33c   :  { %v1487_v25 = vld [vmem:[%s7862_s10 + $0xfc8] sm:$0xff] }
 0x33d   :  { %v5561_v30 = vcombine.high %v1479_v20, %v1487_v25  ;;  %v1207_v31 = vld [vmem:[%s7862_s10 + $0x708] sm:$0xff]  ;;  %v5560_v40 = vcombine.low %v1479_v20, %v1487_v25 }
 0x33e   :  { %4169 = vmatpush2.bf16.msra.mxu1 %v5190_v48  ;;  %4210 = vmatpush2.bf16.msra.mxu0 %v5446_v49  ;;  %v5385_v48 = vcombine.high %v1303_v43, %v1311_v44  ;;  %v1031_v49 = vld [vmem:[%s7862_s10 + $0x188] sm:$0xff] }
 0x33f   :  { %4220 = vmatprep.subr.bf16.mxu1 %v5177_v53  ;;  %4261 = vmatprep.subr.bf16.mxu0 %v5433_v57  ;;  %v5384_v53 = vcombine.low %v1303_v43, %v1311_v44  ;;  %v5113_v54 = vcombine.high %v1031_v49, %v1039_v50  ;;  %v1023_v57 = vld [vmem:[%s7862_s10 + $0x148] sm:$0xff] }
 0x340   :  { %v1191_v44 = vld [vmem:[%s7862_s10 + $0x688] sm:$0xff] }
 0x341   :  { %v1111_v25 = vld [vmem:[%s7862_s10 + $0x408] sm:$0xff] }
 0x3c1   :  { %v926_v1 = vpop.f32.mrf.mxu1  ;;  %v967_v2 = vpop.f32.mrf.mxu0 }
 0x3c2   :  { %v927_v3 = vadd.f32 %v926_v1, %v715_v61  ;;  %v968_v4 = vadd.f32 %v967_v2, %v723_v62  ;;  %v1279_v61 = vld [vmem:[%s7862_s10 + $0x948] sm:$0xff]  ;;  %v5112_v62 = vcombine.low %v1031_v49, %v1039_v50 }
 0x3c3   :  { %v928_v5 = vpop.f32.mrf.mxu1  ;;  %v969_v6 = vpop.f32.mrf.mxu0  ;;  %v5353_v1 = vcombine.high %v1271_v58, %v1279_v61  ;;  %v999_v2 = vld [vmem:[%s7862_s10 + $0x88] sm:$0xff] }
 0x3c4   :  { %v929_v7 = vadd.f32 %v928_v5, %v719_v63  ;;  %v970_v8 = vadd.f32 %v969_v6, %v727_v0  ;;  %v974_v9 = vmax.f32 %v927_v3, 0.0  ;;  %v976_v10 = vmax.f32 %v968_v4, 0.0  ;;  %v1007_v3 = vld [vmem:[%s7862_s10 + $0xc8] sm:$0xff] }
 0x3c5   :  { %v930_v11 = vpop.f32.mrf.mxu1  ;;  %v971_v12 = vpop.f32.mrf.mxu0  ;;  %v5368_v63 = vcombine.low %v1287_v51, %v1295_v41  ;;  %v1255_v4 = vld [vmem:[%s7862_s10 + $0x888] sm:$0xff] }
 0x3c6   :  { %v975_v13 = vmax.f32 %v929_v7, 0.0  ;;  %v977_v14 = vmax.f32 %v970_v8, 0.0  ;;  %v6408_v23 = vpack.c.bf16 %v974_v9, %v974_v9  ;;  %v6410_v24 = vpack.c.bf16 %v976_v10, %v976_v10  ;;  %v1263_v5 = vld [vmem:[%s7862_s10 + $0x8c8] sm:$0xff] }
 0x3c7   :  { %v931_v16 = vpop.f32.mrf.mxu1  ;;  %v972_v17 = vpop.f32.mrf.mxu0  ;;  %v5352_v7 = vcombine.low %v1271_v58, %v1279_v61  ;;  %v5081_v8 = vcombine.high %v999_v2, %v1007_v3  ;;  %v5337_v9 = vcombine.high %v1255_v4, %v1263_v5  ;;  %v983_v10 = vld [vmem:[%s7862_s10 + $0x8] sm:$0xff]  ;;  %v5336_v15 = vcombine.low %v1255_v4, %v1263_v5 }
 0x3c8   :  { %v6404_v21 = vpack.c.bf16 %v975_v13, %v975_v13  ;;  %v6406_v22 = vpack.c.bf16 %v977_v14, %v977_v14  ;;  %v991_v11 = vld [vmem:[%s7862_s10 + $0x48] sm:$0xff]  ;;  %v5080_v14 = vcombine.low %v999_v2, %v1007_v3 }
 0x3c9   :  { %v1239_v12 = vld [vmem:[%s7862_s10 + $0x808] sm:$0xff]  ;;  %v5065_v16 = vcombine.high %v983_v10, %v991_v11 }
 0x3ca   :  { %4170 = vmatprep.mubr.bf16.mxu1 %v6404_v21  ;;  %4211 = vmatprep.mubr.bf16.mxu0 %v6406_v22  ;;  %v1247_v13 = vld [vmem:[%s7862_s10 + $0x848] sm:$0xff] }
 0x3cb   :  { %4171 = vmatmul.mubr.bf16.vlgmr.msra.gmra.mxu1 %v6408_v23  ;;  %4212 = vmatmul.mubr.bf16.vlgmr.msra.gmra.mxu0 %v6410_v24  ;;  %v5321_v17 = vcombine.high %v1239_v12, %v1247_v13  ;;  %v1159_v61 = vld [vmem:[%s7862_s10 + $0x588] sm:$0xff] }
 0x3cc   :  { %4221 = vmatpush1.bf16.msra.mxu1 %v5176_v55  ;;  %4262 = vmatpush1.bf16.msra.mxu0 %v5432_v56  ;;  %v5369_v55 = vcombine.high %v1287_v51, %v1295_v41  ;;  %v1015_v56 = vld [vmem:[%s7862_s10 + $0x108] sm:$0xff] }
 0x3cd   :  { %4252 = vmatprep.mubr.bf16.mxu1 %v6404_v21  ;;  %4293 = vmatprep.mubr.bf16.mxu0 %v6406_v22  ;;  %v5097_v0 = vcombine.high %v1015_v56, %v1023_v57  ;;  %v5096_v6 = vcombine.low %v1015_v56, %v1023_v57  ;;  %v1175_v41 = vld [vmem:[%s7862_s10 + $0x608] sm:$0xff] }
 0x3ce   :  { %4222 = vmatprep.subr.bf16.mxu1 %v5161_v26  ;;  %4263 = vmatprep.subr.bf16.mxu0 %v5417_v28  ;;  %v5064_v26 = vcombine.low %v983_v10, %v991_v11  ;;  %v5320_v28 = vcombine.low %v1239_v12, %v1247_v13  ;;  %v1143_v5 = vld [vmem:[%s7862_s10 + $0x508] sm:$0xff] }
 0x3cf   :  { %v1127_v13 = vld [vmem:[%s7862_s10 + $0x488] sm:$0xff] }
 0x3d0   :  { %4223 = vmatpush1.bf16.msra.mxu1 %v5160_v33  ;;  %4264 = vmatpush1.bf16.msra.mxu0 %v5416_v35  ;;  %v1215_v33 = vld [vmem:[%s7862_s10 + $0x748] sm:$0xff] }
 0x3d1   :  { %4224 = vmatprep.subr.bf16.mxu1 %v5145_v37  ;;  %4265 = vmatprep.subr.bf16.mxu0 %v5401_v39  ;;  %v1463_v35 = vld [vmem:[%s7862_s10 + $0xf08] sm:$0xff]  ;;  %v5304_v39 = vcombine.low %v1223_v18, %v1231_v19  ;;  %v5289_v42 = vcombine.high %v1207_v31, %v1215_v33 }
 0x3d2   :  { %v1471_v37 = vld [vmem:[%s7862_s10 + $0xf48] sm:$0xff] }
 0x3d3   :  { %v5545_v43 = vcombine.high %v1463_v35, %v1471_v37  ;;  %v5544_v49 = vcombine.low %v1463_v35, %v1471_v37  ;;  %v1096_v37 = vld [vmem:[%s7862_s10 + $0x390] sm:$0xff] }
 0x3d4   :  { %4225 = vmatpush1.bf16.msra.mxu1 %v5144_v45  ;;  %4266 = vmatpush1.bf16.msra.mxu0 %v5400_v46  ;;  %v1199_v45 = vld [vmem:[%s7862_s10 + $0x6c8] sm:$0xff] }
 0x3d5   :  { %4226 = vmatprep.subr.bf16.mxu1 %v5129_v47  ;;  %4267 = vmatprep.subr.bf16.mxu0 %v5385_v48  ;;  %v1447_v46 = vld [vmem:[%s7862_s10 + $0xe88] sm:$0xff]  ;;  %v5288_v48 = vcombine.low %v1207_v31, %v1215_v33  ;;  %v5273_v50 = vcombine.high %v1191_v44, %v1199_v45 }
 0x3d6   :  { %v1455_v47 = vld [vmem:[%s7862_s10 + $0xec8] sm:$0xff] }
 0x3d7   :  { %v5529_v51 = vcombine.high %v1447_v46, %v1455_v47  ;;  %v5528_v56 = vcombine.low %v1447_v46, %v1455_v47  ;;  %v1080_v47 = vld [vmem:[%s7862_s10 + $0x310] sm:$0xff] }
 0x3d8   :  { %4227 = vmatpush1.bf16.msra.mxu1 %v5128_v52  ;;  %4268 = vmatpush1.bf16.msra.mxu0 %v5384_v53  ;;  %v1183_v52 = vld [vmem:[%s7862_s10 + $0x648] sm:$0xff] }
 0x3d9   :  { %4228 = vmatprep.subr.bf16.mxu1 %v5113_v54  ;;  %4269 = vmatprep.subr.bf16.mxu0 %v5369_v55  ;;  %v1431_v53 = vld [vmem:[%s7862_s10 + $0xe08] sm:$0xff]  ;;  %v5272_v55 = vcombine.low %v1191_v44, %v1199_v45  ;;  %v5257_v57 = vcombine.high %v1175_v41, %v1183_v52 }
 0x3da   :  { %v1439_v54 = vld [vmem:[%s7862_s10 + $0xe48] sm:$0xff] }
 0x3db   :  { %v5513_v58 = vcombine.high %v1431_v53, %v1439_v54  ;;  %v5512_v2 = vcombine.low %v1431_v53, %v1439_v54  ;;  %v1064_v54 = vld [vmem:[%s7862_s10 + $0x290] sm:$0xff] }
 0x3dc   :  { %4229 = vmatpush1.bf16.msra.mxu1 %v5112_v62  ;;  %4270 = vmatpush1.bf16.msra.mxu0 %v5368_v63  ;;  %v1167_v62 = vld [vmem:[%s7862_s10 + $0x5c8] sm:$0xff] }
 0x3dd   :  { %4230 = vmatprep.subr.bf16.mxu1 %v5097_v0  ;;  %4271 = vmatprep.subr.bf16.mxu0 %v5353_v1  ;;  %v1415_v63 = vld [vmem:[%s7862_s10 + $0xd88] sm:$0xff]  ;;  %v5256_v1 = vcombine.low %v1175_v41, %v1183_v52  ;;  %v5241_v3 = vcombine.high %v1159_v61, %v1167_v62 }
 0x3de   :  { %v1423_v0 = vld [vmem:[%s7862_s10 + $0xdc8] sm:$0xff] }
 0x3df   :  { %v5497_v4 = vcombine.high %v1415_v63, %v1423_v0  ;;  %v5496_v10 = vcombine.low %v1415_v63, %v1423_v0  ;;  %v1048_v0 = vld [vmem:[%s7862_s10 + $0x210] sm:$0xff] }
 0x3e0   :  { %4231 = vmatpush1.bf16.msra.mxu1 %v5096_v6  ;;  %4272 = vmatpush1.bf16.msra.mxu0 %v5352_v7  ;;  %v1151_v6 = vld [vmem:[%s7862_s10 + $0x548] sm:$0xff] }
 0x3e1   :  { %4232 = vmatprep.subr.bf16.mxu1 %v5081_v8  ;;  %4273 = vmatprep.subr.bf16.mxu0 %v5337_v9  ;;  %v1399_v7 = vld [vmem:[%s7862_s10 + $0xd08] sm:$0xff]  ;;  %v5240_v9 = vcombine.low %v1159_v61, %v1167_v62  ;;  %v5225_v11 = vcombine.high %v1143_v5, %v1151_v6 }
 0x3e2   :  { %v1407_v8 = vld [vmem:[%s7862_s10 + $0xd48] sm:$0xff] }
 0x3e3   :  { %v5481_v12 = vcombine.high %v1399_v7, %v1407_v8  ;;  %v5480_v18 = vcombine.low %v1399_v7, %v1407_v8  ;;  %v1032_v8 = vld [vmem:[%s7862_s10 + $0x190] sm:$0xff] }
 0x3e4   :  { %4233 = vmatpush1.bf16.msra.mxu1 %v5080_v14  ;;  %4274 = vmatpush1.bf16.msra.mxu0 %v5336_v15  ;;  %v1135_v14 = vld [vmem:[%s7862_s10 + $0x4c8] sm:$0xff] }
 0x3e5   :  { %4234 = vmatprep.subr.bf16.mxu1 %v5065_v16  ;;  %4275 = vmatprep.subr.bf16.mxu0 %v5321_v17  ;;  %v1383_v15 = vld [vmem:[%s7862_s10 + $0xc88] sm:$0xff]  ;;  %v5224_v17 = vcombine.low %v1143_v5, %v1151_v6  ;;  %v5209_v19 = vcombine.high %v1127_v13, %v1135_v14 }
 0x3e6   :  { %v1391_v16 = vld [vmem:[%s7862_s10 + $0xcc8] sm:$0xff] }
 0x3e7   :  { %v5465_v20 = vcombine.high %v1383_v15, %v1391_v16  ;;  %v5464_v31 = vcombine.low %v1383_v15, %v1391_v16  ;;  %v1016_v16 = vld [vmem:[%s7862_s10 + $0x110] sm:$0xff] }
 0x3e8   :  { %4235 = vmatpush1.bf16.msra.mxu1 %v5064_v26  ;;  %4276 = vmatpush1.bf16.msra.mxu0 %v5320_v28  ;;  %v1119_v26 = vld [vmem:[%s7862_s10 + $0x448] sm:$0xff] }
 0x3e9   :  { %4236 = vmatprep.subr.bf16.mxu1 %v5305_v29  ;;  %4277 = vmatprep.subr.bf16.mxu0 %v5561_v30  ;;  %v1367_v28 = vld [vmem:[%s7862_s10 + $0xc08] sm:$0xff]  ;;  %v5208_v30 = vcombine.low %v1127_v13, %v1135_v14  ;;  %v5193_v33 = vcombine.high %v1111_v25, %v1119_v26 }
 0x3ea   :  { %v1375_v29 = vld [vmem:[%s7862_s10 + $0xc48] sm:$0xff] }
 0x3eb   :  { %v5449_v35 = vcombine.high %v1367_v28, %v1375_v29  ;;  %v5448_v44 = vcombine.low %v1367_v28, %v1375_v29  ;;  %v1000_v29 = vld [vmem:[%s7862_s10 + $0x90] sm:$0xff] }
 0x3ec   :  { %4237 = vmatpush2.bf16.msra.mxu1 %v5304_v39  ;;  %4278 = vmatpush2.bf16.msra.mxu0 %v5560_v40  ;;  %v1104_v39 = vld [vmem:[%s7862_s10 + $0x3d0] sm:$0xff] }
 0x3ed   :  { %4238 = vmatprep.subr.bf16.mxu1 %v5289_v42  ;;  %4279 = vmatprep.subr.bf16.mxu0 %v5545_v43  ;;  %v1352_v40 = vld [vmem:[%s7862_s10 + $0xb90] sm:$0xff]  ;;  %v5192_v43 = vcombine.low %v1111_v25, %v1119_v26  ;;  %v5179_v45 = vcombine.high %v1096_v37, %v1104_v39 }
 0x3ee   :  { %v1360_v42 = vld [vmem:[%s7862_s10 + $0xbd0] sm:$0xff] }
 0x3ef   :  { %v5435_v46 = vcombine.high %v1352_v40, %v1360_v42  ;;  %v5434_v41 = vcombine.low %v1352_v40, %v1360_v42  ;;  %v984_v42 = vld [vmem:[%s7862_s10 + $0x10] sm:$0xff] }
 0x3f0   :  { %4239 = vmatpush2.bf16.msra.mxu1 %v5288_v48  ;;  %4280 = vmatpush2.bf16.msra.mxu0 %v5544_v49  ;;  %v1088_v48 = vld [vmem:[%s7862_s10 + $0x350] sm:$0xff] }
 0x3f1   :  { %4240 = vmatprep.subr.bf16.mxu1 %v5273_v50  ;;  %4281 = vmatprep.subr.bf16.mxu0 %v5529_v51  ;;  %v1336_v49 = vld [vmem:[%s7862_s10 + $0xb10] sm:$0xff]  ;;  %v5178_v51 = vcombine.low %v1096_v37, %v1104_v39  ;;  %v5163_v52 = vcombine.high %v1080_v47, %v1088_v48 }
 0x3f2   :  { %v1344_v50 = vld [vmem:[%s7862_s10 + $0xb50] sm:$0xff] }
 0x3f3   :  { %v5419_v53 = vcombine.high %v1336_v49, %v1344_v50  ;;  %v5418_v61 = vcombine.low %v1336_v49, %v1344_v50  ;;  %v1224_v50 = vld [vmem:[%s7862_s10 + $0x790] sm:$0xff] }
 0x3f4   :  { %4241 = vmatpush2.bf16.msra.mxu1 %v5272_v55  ;;  %4282 = vmatpush2.bf16.msra.mxu0 %v5528_v56  ;;  %v1072_v55 = vld [vmem:[%s7862_s10 + $0x2d0] sm:$0xff] }
 0x3f5   :  { %4242 = vmatprep.subr.bf16.mxu1 %v5257_v57  ;;  %4283 = vmatprep.subr.bf16.mxu0 %v5513_v58  ;;  %v1320_v56 = vld [vmem:[%s7862_s10 + $0xa90] sm:$0xff]  ;;  %v5162_v58 = vcombine.low %v1080_v47, %v1088_v48  ;;  %v5147_v62 = vcombine.high %v1064_v54, %v1072_v55 }
 0x3f6   :  { %v1328_v57 = vld [vmem:[%s7862_s10 + $0xad0] sm:$0xff] }
 0x3f7   :  { %v5403_v63 = vcombine.high %v1320_v56, %v1328_v57  ;;  %v5402_v5 = vcombine.low %v1320_v56, %v1328_v57  ;;  %v1208_v57 = vld [vmem:[%s7862_s10 + $0x710] sm:$0xff] }
 0x3f8   :  { %4243 = vmatpush2.bf16.msra.mxu1 %v5256_v1  ;;  %4284 = vmatpush2.bf16.msra.mxu0 %v5512_v2  ;;  %v1056_v1 = vld [vmem:[%s7862_s10 + $0x250] sm:$0xff] }
 0x3f9   :  { %4244 = vmatprep.subr.bf16.mxu1 %v5241_v3  ;;  %4285 = vmatprep.subr.bf16.mxu0 %v5497_v4  ;;  %v1304_v2 = vld [vmem:[%s7862_s10 + $0xa10] sm:$0xff]  ;;  %v5146_v4 = vcombine.low %v1064_v54, %v1072_v55  ;;  %v5131_v6 = vcombine.high %v1048_v0, %v1056_v1 }
 0x3fa   :  { %v1312_v3 = vld [vmem:[%s7862_s10 + $0xa50] sm:$0xff] }
 0x3fb   :  { %v5387_v7 = vcombine.high %v1304_v2, %v1312_v3  ;;  %v5386_v13 = vcombine.low %v1304_v2, %v1312_v3  ;;  %v1192_v3 = vld [vmem:[%s7862_s10 + $0x690] sm:$0xff] }
 0x3fc   :  { %4245 = vmatpush2.bf16.msra.mxu1 %v5240_v9  ;;  %4286 = vmatpush2.bf16.msra.mxu0 %v5496_v10  ;;  %v1040_v9 = vld [vmem:[%s7862_s10 + $0x1d0] sm:$0xff] }
 0x3fd   :  { %4246 = vmatprep.subr.bf16.mxu1 %v5225_v11  ;;  %4287 = vmatprep.subr.bf16.mxu0 %v5481_v12  ;;  %v1288_v10 = vld [vmem:[%s7862_s10 + $0x990] sm:$0xff]  ;;  %v5130_v12 = vcombine.low %v1048_v0, %v1056_v1  ;;  %v5115_v14 = vcombine.high %v1032_v8, %v1040_v9 }
 0x3fe   :  { %v1296_v11 = vld [vmem:[%s7862_s10 + $0x9d0] sm:$0xff] }
 0x3ff   :  { %v5371_v15 = vcombine.high %v1288_v10, %v1296_v11  ;;  %v5370_v25 = vcombine.low %v1288_v10, %v1296_v11  ;;  %v1176_v11 = vld [vmem:[%s7862_s10 + $0x610] sm:$0xff] }
 0x400   :  { %4247 = vmatpush2.bf16.msra.mxu1 %v5224_v17  ;;  %4288 = vmatpush2.bf16.msra.mxu0 %v5480_v18  ;;  %v1024_v17 = vld [vmem:[%s7862_s10 + $0x150] sm:$0xff] }
 0x401   :  { %4248 = vmatprep.subr.bf16.mxu1 %v5209_v19  ;;  %4289 = vmatprep.subr.bf16.mxu0 %v5465_v20  ;;  %v1272_v18 = vld [vmem:[%s7862_s10 + $0x910] sm:$0xff]  ;;  %v5114_v20 = vcombine.low %v1032_v8, %v1040_v9  ;;  %v5099_v26 = vcombine.high %v1016_v16, %v1024_v17 }
 0x402   :  { %v1280_v19 = vld [vmem:[%s7862_s10 + $0x950] sm:$0xff] }
 0x403   :  { %v5355_v28 = vcombine.high %v1272_v18, %v1280_v19  ;;  %v5354_v37 = vcombine.low %v1272_v18, %v1280_v19  ;;  %v1160_v19 = vld [vmem:[%s7862_s10 + $0x590] sm:$0xff] }
 0x404   :  { %4249 = vmatpush2.bf16.msra.mxu1 %v5208_v30  ;;  %4290 = vmatpush2.bf16.msra.mxu0 %v5464_v31  ;;  %v1008_v30 = vld [vmem:[%s7862_s10 + $0xd0] sm:$0xff] }
 0x405   :  { %4250 = vmatprep.subr.bf16.mxu1 %v5193_v33  ;;  %4291 = vmatprep.subr.bf16.mxu0 %v5449_v35  ;;  %v1256_v31 = vld [vmem:[%s7862_s10 + $0x890] sm:$0xff]  ;;  %v5098_v35 = vcombine.low %v1016_v16, %v1024_v17  ;;  %v5083_v39 = vcombine.high %v1000_v29, %v1008_v30 }
 0x406   :  { %v1264_v33 = vld [vmem:[%s7862_s10 + $0x8d0] sm:$0xff] }
 0x407   :  { %v5339_v40 = vcombine.high %v1256_v31, %v1264_v33  ;;  %v5338_v47 = vcombine.low %v1256_v31, %v1264_v33  ;;  %v1144_v33 = vld [vmem:[%s7862_s10 + $0x510] sm:$0xff] }
 0x408   :  { %4251 = vmatpush2.bf16.msra.mxu1 %v5192_v43  ;;  %4292 = vmatpush2.bf16.msra.mxu0 %v5448_v44  ;;  %v992_v43 = vld [vmem:[%s7862_s10 + $0x50] sm:$0xff] }
 0x409   :  { %4302 = vmatprep.subr.bf16.mxu1 %v5179_v45  ;;  %4343 = vmatprep.subr.bf16.mxu0 %v5435_v46  ;;  %v1240_v44 = vld [vmem:[%s7862_s10 + $0x810] sm:$0xff]  ;;  %v5082_v46 = vcombine.low %v1000_v29, %v1008_v30  ;;  %v5067_v48 = vcombine.high %v984_v42, %v992_v43 }
 0x40a   :  { %v1248_v45 = vld [vmem:[%s7862_s10 + $0x850] sm:$0xff] }
 0x40b   :  { %4253 = vmatmul.mubr.bf16.vlgmr.msra.gmra.mxu1 %v6408_v23  ;;  %4294 = vmatmul.mubr.bf16.vlgmr.msra.gmra.mxu0 %v6410_v24  ;;  %v5323_v49 = vcombine.high %v1240_v44, %v1248_v45  ;;  %v5322_v54 = vcombine.low %v1240_v44, %v1248_v45  ;;  %v1128_v45 = vld [vmem:[%s7862_s10 + $0x490] sm:$0xff] }
 0x40c   :  { %4303 = vmatpush1.bf16.msra.mxu1 %v5178_v51  ;;  %4334 = vmatprep.mubr.bf16.mxu1 %v6404_v21  ;;  %v1232_v51 = vld [vmem:[%s7862_s10 + $0x7d0] sm:$0xff] }
 0x40d   :  { %4344 = vmatpush1.bf16.msra.mxu0 %v5434_v41  ;;  %4375 = vmatprep.mubr.bf16.mxu0 %v6406_v22  ;;  %v1480_v41 = vld [vmem:[%s7862_s10 + $0xf90] sm:$0xff]  ;;  %v5307_v55 = vcombine.high %v1224_v50, %v1232_v51 }
 0x40e   :  { %4304 = vmatprep.subr.bf16.mxu1 %v5163_v52  ;;  %4345 = vmatprep.subr.bf16.mxu0 %v5419_v53  ;;  %v1488_v52 = vld [vmem:[%s7862_s10 + $0xfd0] sm:$0xff]  ;;  %v5066_v53 = vcombine.low %v984_v42, %v992_v43 }
 0x40f   :  { %v5563_v56 = vcombine.high %v1480_v41, %v1488_v52  ;;  %v5562_v0 = vcombine.low %v1480_v41, %v1488_v52  ;;  %v1112_v52 = vld [vmem:[%s7862_s10 + $0x410] sm:$0xff] }
 0x410   :  { %4305 = vmatpush1.bf16.msra.mxu1 %v5162_v58  ;;  %v1216_v58 = vld [vmem:[%s7862_s10 + $0x750] sm:$0xff] }
 0x411   :  { %4346 = vmatpush1.bf16.msra.mxu0 %v5418_v61  ;;  %4306 = vmatprep.subr.bf16.mxu1 %v5147_v62  ;;  %v1464_v61 = vld [vmem:[%s7862_s10 + $0xf10] sm:$0xff]  ;;  %v5291_v1 = vcombine.high %v1208_v57, %v1216_v58 }
 0x412   :  { %4347 = vmatprep.subr.bf16.mxu0 %v5403_v63  ;;  %v1472_v62 = vld [vmem:[%s7862_s10 + $0xf50] sm:$0xff]  ;;  %v5306_v63 = vcombine.low %v1224_v50, %v1232_v51 }
 0x413   :  { %v5547_v2 = vcombine.high %v1464_v61, %v1472_v62  ;;  %v5546_v8 = vcombine.low %v1464_v61, %v1472_v62  ;;  %v1097_v62 = vld [vmem:[%s7862_s10 + $0x398] sm:$0xff] }
 0x414   :  { %4307 = vmatpush1.bf16.msra.mxu1 %v5146_v4  ;;  %v1200_v4 = vld [vmem:[%s7862_s10 + $0x6d0] sm:$0xff] }
 0x415   :  { %4348 = vmatpush1.bf16.msra.mxu0 %v5402_v5  ;;  %4308 = vmatprep.subr.bf16.mxu1 %v5131_v6  ;;  %v1448_v5 = vld [vmem:[%s7862_s10 + $0xe90] sm:$0xff]  ;;  %v5275_v9 = vcombine.high %v1192_v3, %v1200_v4 }
 0x416   :  { %4349 = vmatprep.subr.bf16.mxu0 %v5387_v7  ;;  %v1456_v6 = vld [vmem:[%s7862_s10 + $0xed0] sm:$0xff]  ;;  %v5290_v7 = vcombine.low %v1208_v57, %v1216_v58 }
 0x417   :  { %v5531_v10 = vcombine.high %v1448_v5, %v1456_v6  ;;  %v5530_v16 = vcombine.low %v1448_v5, %v1456_v6  ;;  %v1081_v6 = vld [vmem:[%s7862_s10 + $0x318] sm:$0xff] }
 0x418   :  { %4309 = vmatpush1.bf16.msra.mxu1 %v5130_v12  ;;  %v1184_v12 = vld [vmem:[%s7862_s10 + $0x650] sm:$0xff] }
 0x419   :  { %4350 = vmatpush1.bf16.msra.mxu0 %v5386_v13  ;;  %4310 = vmatprep.subr.bf16.mxu1 %v5115_v14  ;;  %v1432_v13 = vld [vmem:[%s7862_s10 + $0xe10] sm:$0xff]  ;;  %v5259_v17 = vcombine.high %v1176_v11, %v1184_v12 }
 0x41a   :  { %4351 = vmatprep.subr.bf16.mxu0 %v5371_v15  ;;  %v1440_v14 = vld [vmem:[%s7862_s10 + $0xe50] sm:$0xff]  ;;  %v5274_v15 = vcombine.low %v1192_v3, %v1200_v4 }
 0x41b   :  { %v5515_v18 = vcombine.high %v1432_v13, %v1440_v14  ;;  %v5514_v29 = vcombine.low %v1432_v13, %v1440_v14  ;;  %v1065_v13 = vld [vmem:[%s7862_s10 + $0x298] sm:$0xff] }
 0x41c   :  { %4311 = vmatpush1.bf16.msra.mxu1 %v5114_v20  ;;  %v1168_v20 = vld [vmem:[%s7862_s10 + $0x5d0] sm:$0xff]  ;;  %v1073_v14 = vld [vmem:[%s7862_s10 + $0x2d8] sm:$0xff] }
 0x41d   :  { %4352 = vmatpush1.bf16.msra.mxu0 %v5370_v25  ;;  %4312 = vmatprep.subr.bf16.mxu1 %v5099_v26  ;;  %v1416_v25 = vld [vmem:[%s7862_s10 + $0xd90] sm:$0xff]  ;;  %v5243_v30 = vcombine.high %v1160_v19, %v1168_v20 }
 0x41e   :  { %4353 = vmatprep.subr.bf16.mxu0 %v5355_v28  ;;  %v1424_v26 = vld [vmem:[%s7862_s10 + $0xdd0] sm:$0xff]  ;;  %v5258_v28 = vcombine.low %v1176_v11, %v1184_v12 }
 0x41f   :  { %v5499_v31 = vcombine.high %v1416_v25, %v1424_v26  ;;  %v5498_v42 = vcombine.low %v1416_v25, %v1424_v26  ;;  %v1049_v26 = vld [vmem:[%s7862_s10 + $0x218] sm:$0xff] }
 0x420   :  { %4313 = vmatpush1.bf16.msra.mxu1 %v5098_v35  ;;  %v1152_v35 = vld [vmem:[%s7862_s10 + $0x550] sm:$0xff] }
 0x421   :  { %4354 = vmatpush1.bf16.msra.mxu0 %v5354_v37  ;;  %4314 = vmatprep.subr.bf16.mxu1 %v5083_v39  ;;  %v1400_v37 = vld [vmem:[%s7862_s10 + $0xd10] sm:$0xff]  ;;  %v5227_v43 = vcombine.high %v1144_v33, %v1152_v35 }
 0x422   :  { %4355 = vmatprep.subr.bf16.mxu0 %v5339_v40  ;;  %v1408_v39 = vld [vmem:[%s7862_s10 + $0xd50] sm:$0xff]  ;;  %v5242_v40 = vcombine.low %v1160_v19, %v1168_v20  ;;  %v5149_v20 = vcombine.high %v1065_v13, %v1073_v14 }
 0x423   :  { %v5483_v44 = vcombine.high %v1400_v37, %v1408_v39  ;;  %v5482_v50 = vcombine.low %v1400_v37, %v1408_v39  ;;  %v1033_v39 = vld [vmem:[%s7862_s10 + $0x198] sm:$0xff] }
 0x424   :  { %4315 = vmatpush1.bf16.msra.mxu1 %v5082_v46  ;;  %v1136_v46 = vld [vmem:[%s7862_s10 + $0x4d0] sm:$0xff] }
 0x425   :  { %4356 = vmatpush1.bf16.msra.mxu0 %v5338_v47  ;;  %4316 = vmatprep.subr.bf16.mxu1 %v5067_v48  ;;  %v1384_v47 = vld [vmem:[%s7862_s10 + $0xc90] sm:$0xff]  ;;  %v5211_v51 = vcombine.high %v1128_v45, %v1136_v46 }
 0x426   :  { %4357 = vmatprep.subr.bf16.mxu0 %v5323_v49  ;;  %v1392_v48 = vld [vmem:[%s7862_s10 + $0xcd0] sm:$0xff]  ;;  %v5226_v49 = vcombine.low %v1144_v33, %v1152_v35 }
 0x427   :  { %v5467_v41 = vcombine.high %v1384_v47, %v1392_v48  ;;  %v5466_v57 = vcombine.low %v1384_v47, %v1392_v48  ;;  %v1017_v48 = vld [vmem:[%s7862_s10 + $0x118] sm:$0xff] }
 0x428   :  { %4317 = vmatpush1.bf16.msra.mxu1 %v5066_v53  ;;  %v1120_v53 = vld [vmem:[%s7862_s10 + $0x450] sm:$0xff] }
 0x429   :  { %4358 = vmatpush1.bf16.msra.mxu0 %v5322_v54  ;;  %4318 = vmatprep.subr.bf16.mxu1 %v5307_v55  ;;  %v1368_v54 = vld [vmem:[%s7862_s10 + $0xc10] sm:$0xff]  ;;  %v5195_v58 = vcombine.high %v1112_v52, %v1120_v53 }
 0x42a   :  { %4359 = vmatprep.subr.bf16.mxu0 %v5563_v56  ;;  %v1376_v55 = vld [vmem:[%s7862_s10 + $0xc50] sm:$0xff]  ;;  %v5210_v56 = vcombine.low %v1128_v45, %v1136_v46 }
 0x42b   :  { %v5451_v61 = vcombine.high %v1368_v54, %v1376_v55  ;;  %v5450_v3 = vcombine.low %v1368_v54, %v1376_v55  ;;  %v1001_v55 = vld [vmem:[%s7862_s10 + $0x98] sm:$0xff] }
 0x42c   :  { %4319 = vmatpush2.bf16.msra.mxu1 %v5306_v63  ;;  %v1105_v63 = vld [vmem:[%s7862_s10 + $0x3d8] sm:$0xff] }
 0x42d   :  { %4360 = vmatpush2.bf16.msra.mxu0 %v5562_v0  ;;  %4320 = vmatprep.subr.bf16.mxu1 %v5291_v1  ;;  %v1353_v0 = vld [vmem:[%s7862_s10 + $0xb98] sm:$0xff]  ;;  %v5181_v4 = vcombine.high %v1097_v62, %v1105_v63 }
 0x42e   :  { %4361 = vmatprep.subr.bf16.mxu0 %v5547_v2  ;;  %v1361_v1 = vld [vmem:[%s7862_s10 + $0xbd8] sm:$0xff]  ;;  %v5194_v2 = vcombine.low %v1112_v52, %v1120_v53 }
 0x42f   :  { %v5437_v5 = vcombine.high %v1353_v0, %v1361_v1  ;;  %v5436_v11 = vcombine.low %v1353_v0, %v1361_v1  ;;  %v985_v1 = vld [vmem:[%s7862_s10 + $0x18] sm:$0xff] }
 0x430   :  { %4321 = vmatpush2.bf16.msra.mxu1 %v5290_v7  ;;  %v1089_v7 = vld [vmem:[%s7862_s10 + $0x358] sm:$0xff] }
 0x431   :  { %4362 = vmatpush2.bf16.msra.mxu0 %v5546_v8  ;;  %4322 = vmatprep.subr.bf16.mxu1 %v5275_v9  ;;  %v5180_v8 = vcombine.low %v1097_v62, %v1105_v63  ;;  %v1337_v9 = vld [vmem:[%s7862_s10 + $0xb18] sm:$0xff]  ;;  %v5165_v12 = vcombine.high %v1081_v6, %v1089_v7 }
 0x432   :  { %4363 = vmatprep.subr.bf16.mxu0 %v5531_v10  ;;  %v1345_v10 = vld [vmem:[%s7862_s10 + $0xb58] sm:$0xff] }
 0x433   :  { %v5420_v19 = vcombine.low %v1337_v9, %v1345_v10 }
 0x434   :  { %4323 = vmatpush2.bf16.msra.mxu1 %v5274_v15  ;;  %v5421_v15 = vcombine.high %v1337_v9, %v1345_v10  ;;  %v1225_v9 = vld [vmem:[%s7862_s10 + $0x798] sm:$0xff] }
 0x435   :  { %4364 = vmatpush2.bf16.msra.mxu0 %v5530_v16  ;;  %4324 = vmatprep.subr.bf16.mxu1 %v5259_v17  ;;  %v1321_v16 = vld [vmem:[%s7862_s10 + $0xa98] sm:$0xff] }
 0x436   :  { %4365 = vmatprep.subr.bf16.mxu0 %v5515_v18  ;;  %v1329_v17 = vld [vmem:[%s7862_s10 + $0xad8] sm:$0xff]  ;;  %v5164_v18 = vcombine.low %v1081_v6, %v1089_v7 }
 0x437   :  { %v5405_v25 = vcombine.high %v1321_v16, %v1329_v17  ;;  %v5404_v33 = vcombine.low %v1321_v16, %v1329_v17  ;;  %v1233_v10 = vld [vmem:[%s7862_s10 + $0x7d8] sm:$0xff] }
 0x438   :  { %4325 = vmatpush2.bf16.msra.mxu1 %v5258_v28  ;;  %v1057_v28 = vld [vmem:[%s7862_s10 + $0x258] sm:$0xff] }
 0x439   :  { %4366 = vmatpush2.bf16.msra.mxu0 %v5514_v29  ;;  %4326 = vmatprep.subr.bf16.mxu1 %v5243_v30  ;;  %v1305_v29 = vld [vmem:[%s7862_s10 + $0xa18] sm:$0xff]  ;;  %v5133_v35 = vcombine.high %v1049_v26, %v1057_v28 }
 0x43a   :  { %4367 = vmatprep.subr.bf16.mxu0 %v5499_v31  ;;  %v1313_v30 = vld [vmem:[%s7862_s10 + $0xa58] sm:$0xff]  ;;  %v5148_v31 = vcombine.low %v1065_v13, %v1073_v14 }
 0x43b   :  { %v5389_v37 = vcombine.high %v1305_v29, %v1313_v30  ;;  %v5388_v45 = vcombine.low %v1305_v29, %v1313_v30  ;;  %v1209_v17 = vld [vmem:[%s7862_s10 + $0x718] sm:$0xff] }
 0x43c   :  { %4327 = vmatpush2.bf16.msra.mxu1 %v5242_v40  ;;  %v1041_v40 = vld [vmem:[%s7862_s10 + $0x1d8] sm:$0xff] }
 0x43d   :  { %4368 = vmatpush2.bf16.msra.mxu0 %v5498_v42  ;;  %4328 = vmatprep.subr.bf16.mxu1 %v5227_v43  ;;  %v1289_v42 = vld [vmem:[%s7862_s10 + $0x998] sm:$0xff]  ;;  %v5117_v46 = vcombine.high %v1033_v39, %v1041_v40 }
 0x43e   :  { %4369 = vmatprep.subr.bf16.mxu0 %v5483_v44  ;;  %v1297_v43 = vld [vmem:[%s7862_s10 + $0x9d8] sm:$0xff]  ;;  %v5132_v44 = vcombine.low %v1049_v26, %v1057_v28 }
 0x43f   :  { %v5373_v47 = vcombine.high %v1289_v42, %v1297_v43  ;;  %v5372_v52 = vcombine.low %v1289_v42, %v1297_v43  ;;  %v1193_v30 = vld [vmem:[%s7862_s10 + $0x698] sm:$0xff] }
 0x440   :  { %4329 = vmatpush2.bf16.msra.mxu1 %v5226_v49  ;;  %v1025_v49 = vld [vmem:[%s7862_s10 + $0x158] sm:$0xff] }
 0x441   :  { %4370 = vmatpush2.bf16.msra.mxu0 %v5482_v50  ;;  %4330 = vmatprep.subr.bf16.mxu1 %v5211_v51  ;;  %v1273_v50 = vld [vmem:[%s7862_s10 + $0x918] sm:$0xff]  ;;  %v5101_v53 = vcombine.high %v1017_v48, %v1025_v49 }
 0x442   :  { %4371 = vmatprep.subr.bf16.mxu0 %v5467_v41  ;;  %v1281_v51 = vld [vmem:[%s7862_s10 + $0x958] sm:$0xff]  ;;  %v5116_v41 = vcombine.low %v1033_v39, %v1041_v40 }
 0x443   :  { %v5357_v54 = vcombine.high %v1273_v50, %v1281_v51  ;;  %v5356_v62 = vcombine.low %v1273_v50, %v1281_v51  ;;  %v1177_v43 = vld [vmem:[%s7862_s10 + $0x618] sm:$0xff] }
 0x444   :  { %4331 = vmatpush2.bf16.msra.mxu1 %v5210_v56  ;;  %v1009_v56 = vld [vmem:[%s7862_s10 + $0xd8] sm:$0xff] }
 0x445   :  { %4372 = vmatpush2.bf16.msra.mxu0 %v5466_v57  ;;  %4332 = vmatprep.subr.bf16.mxu1 %v5195_v58  ;;  %v1257_v57 = vld [vmem:[%s7862_s10 + $0x898] sm:$0xff]  ;;  %v5085_v63 = vcombine.high %v1001_v55, %v1009_v56 }
 0x446   :  { %4373 = vmatprep.subr.bf16.mxu0 %v5451_v61  ;;  %v1265_v58 = vld [vmem:[%s7862_s10 + $0x8d8] sm:$0xff]  ;;  %v5100_v61 = vcombine.low %v1017_v48, %v1025_v49 }
 0x447   :  { %v5341_v0 = vcombine.high %v1257_v57, %v1265_v58  ;;  %v5340_v6 = vcombine.low %v1257_v57, %v1265_v58  ;;  %v1161_v51 = vld [vmem:[%s7862_s10 + $0x598] sm:$0xff] }
 0x448   :  { %4333 = vmatpush2.bf16.msra.mxu1 %v5194_v2  ;;  %v993_v2 = vld [vmem:[%s7862_s10 + $0x58] sm:$0xff] }
 0x449   :  { %4374 = vmatpush2.bf16.msra.mxu0 %v5450_v3  ;;  %4384 = vmatprep.subr.bf16.mxu1 %v5181_v4  ;;  %v1241_v3 = vld [vmem:[%s7862_s10 + $0x818] sm:$0xff]  ;;  %v5069_v7 = vcombine.high %v985_v1, %v993_v2  ;;  %v5068_v13 = vcombine.low %v985_v1, %v993_v2 }
 0x44a   :  { %4425 = vmatprep.subr.bf16.mxu0 %v5437_v5  ;;  %v1249_v4 = vld [vmem:[%s7862_s10 + $0x858] sm:$0xff]  ;;  %v5084_v5 = vcombine.low %v1001_v55, %v1009_v56 }
 0x44b   :  { %4335 = vmatmul.mubr.bf16.vlgmr.msra.gmra.mxu1 %v6408_v23  ;;  %v5324_v14 = vcombine.low %v1241_v3, %v1249_v4  ;;  %v1145_v58 = vld [vmem:[%s7862_s10 + $0x518] sm:$0xff] }
 0x44c   :  { %4376 = vmatmul.mubr.bf16.vlgmr.msra.gmra.mxu0 %v6410_v24  ;;  %4385 = vmatpush1.bf16.msra.mxu1 %v5180_v8  ;;  %v5325_v8 = vcombine.high %v1241_v3, %v1249_v4  ;;  %v1129_v4 = vld [vmem:[%s7862_s10 + $0x498] sm:$0xff] }
 0x44d   :  { %4416 = vmatprep.mubr.bf16.mxu1 %v6404_v21  ;;  %4426 = vmatpush1.bf16.msra.mxu0 %v5436_v11  ;;  %v1481_v11 = vld [vmem:[%s7862_s10 + $0xf98] sm:$0xff] }
 0x44e   :  { %4457 = vmatprep.mubr.bf16.mxu0 %v6406_v22  ;;  %4386 = vmatprep.subr.bf16.mxu1 %v5165_v12  ;;  %v1489_v12 = vld [vmem:[%s7862_s10 + $0xfd8] sm:$0xff] }
 0x44f   :  { %4427 = vmatprep.subr.bf16.mxu0 %v5421_v15  ;;  %v5309_v15 = vcombine.high %v1225_v9, %v1233_v10  ;;  %v5565_v16 = vcombine.high %v1481_v11, %v1489_v12  ;;  %v5564_v26 = vcombine.low %v1481_v11, %v1489_v12  ;;  %v1113_v12 = vld [vmem:[%s7862_s10 + $0x418] sm:$0xff] }
 0x450   :  { %4387 = vmatpush1.bf16.msra.mxu1 %v5164_v18  ;;  %v1217_v18 = vld [vmem:[%s7862_s10 + $0x758] sm:$0xff] }
 0x451   :  { %4428 = vmatpush1.bf16.msra.mxu0 %v5420_v19  ;;  %4388 = vmatprep.subr.bf16.mxu1 %v5149_v20  ;;  %v1465_v19 = vld [vmem:[%s7862_s10 + $0xf18] sm:$0xff]  ;;  %v5293_v28 = vcombine.high %v1209_v17, %v1217_v18 }
 0x452   :  { %4429 = vmatprep.subr.bf16.mxu0 %v5405_v25  ;;  %v1473_v20 = vld [vmem:[%s7862_s10 + $0xf58] sm:$0xff]  ;;  %v5308_v25 = vcombine.low %v1225_v9, %v1233_v10 }
 0x453   :  { %v5549_v29 = vcombine.high %v1465_v19, %v1473_v20  ;;  %v5548_v39 = vcombine.low %v1465_v19, %v1473_v20  ;;  %v1098_v20 = vld [vmem:[%s7862_s10 + $0x3a0] sm:$0xff] }
 0x454   :  { %4389 = vmatpush1.bf16.msra.mxu1 %v5148_v31  ;;  %v1201_v31 = vld [vmem:[%s7862_s10 + $0x6d8] sm:$0xff] }
 0x455   :  { %4430 = vmatpush1.bf16.msra.mxu0 %v5404_v33  ;;  %4390 = vmatprep.subr.bf16.mxu1 %v5133_v35  ;;  %v1449_v33 = vld [vmem:[%s7862_s10 + $0xe98] sm:$0xff]  ;;  %v5277_v40 = vcombine.high %v1193_v30, %v1201_v31 }
 0x456   :  { %4431 = vmatprep.subr.bf16.mxu0 %v5389_v37  ;;  %v1457_v35 = vld [vmem:[%s7862_s10 + $0xed8] sm:$0xff]  ;;  %v5292_v37 = vcombine.low %v1209_v17, %v1217_v18 }
 0x457   :  { %v5533_v42 = vcombine.high %v1449_v33, %v1457_v35  ;;  %v5532_v48 = vcombine.low %v1449_v33, %v1457_v35  ;;  %v6993_v33 = vld [vmem:[%s7863_s11] sm:$0xff] }
 0x458   :  { %4391 = vmatpush1.bf16.msra.mxu1 %v5132_v44  ;;  %v1185_v44 = vld [vmem:[%s7862_s10 + $0x658] sm:$0xff] }
 0x459   :  { %4432 = vmatpush1.bf16.msra.mxu0 %v5388_v45  ;;  %4392 = vmatprep.subr.bf16.mxu1 %v5117_v46  ;;  %v1433_v45 = vld [vmem:[%s7862_s10 + $0xe18] sm:$0xff]  ;;  %v5261_v49 = vcombine.high %v1177_v43, %v1185_v44 }
 0x45a   :  { %4433 = vmatprep.subr.bf16.mxu0 %v5373_v47  ;;  %v1441_v46 = vld [vmem:[%s7862_s10 + $0xe58] sm:$0xff]  ;;  %v5276_v47 = vcombine.low %v1193_v30, %v1201_v31 }
 0x45b   :  { %v5517_v50 = vcombine.high %v1433_v45, %v1441_v46  ;;  %v5516_v55 = vcombine.low %v1433_v45, %v1441_v46  ;;  %v1505_v46 = vrot.slane %v6993_v33, %v6383_v59 }
 0x45c   :  { %4393 = vmatpush1.bf16.msra.mxu1 %v5116_v41  ;;  %v1169_v41 = vld [vmem:[%s7862_s10 + $0x5d8] sm:$0xff] }
 0x45d   :  { %4434 = vmatpush1.bf16.msra.mxu0 %v5372_v52  ;;  %4394 = vmatprep.subr.bf16.mxu1 %v5101_v53  ;;  %v1417_v52 = vld [vmem:[%s7862_s10 + $0xd98] sm:$0xff]  ;;  %v5245_v56 = vcombine.high %v1161_v51, %v1169_v41 }
 0x45e   :  { %4435 = vmatprep.subr.bf16.mxu0 %v5357_v54  ;;  %v1425_v53 = vld [vmem:[%s7862_s10 + $0xdd8] sm:$0xff]  ;;  %v5260_v54 = vcombine.low %v1177_v43, %v1185_v44  ;;  %v1338_v43 = vld [vmem:[%s7862_s10 + $0xb20] sm:$0xff] }
 0x45f   :  { %v5501_v57 = vcombine.high %v1417_v52, %v1425_v53  ;;  %v5500_v1 = vcombine.low %v1417_v52, %v1425_v53  ;;  %v1346_v44 = vld [vmem:[%s7862_s10 + $0xb60] sm:$0xff] }
 0x460   :  { %4395 = vmatpush1.bf16.msra.mxu1 %v5100_v61  ;;  %v1153_v61 = vld [vmem:[%s7862_s10 + $0x558] sm:$0xff]  ;;  %v1322_v52 = vld [vmem:[%s7862_s10 + $0xaa0] sm:$0xff] }
 0x461   :  { %4436 = vmatpush1.bf16.msra.mxu0 %v5356_v62  ;;  %4396 = vmatprep.subr.bf16.mxu1 %v5085_v63  ;;  %v1401_v62 = vld [vmem:[%s7862_s10 + $0xd18] sm:$0xff]  ;;  %v5229_v2 = vcombine.high %v1145_v58, %v1153_v61  ;;  %v1330_v53 = vld [vmem:[%s7862_s10 + $0xae0] sm:$0xff] }
 0x462   :  { %4437 = vmatprep.subr.bf16.mxu0 %v5341_v0  ;;  %v1409_v63 = vld [vmem:[%s7862_s10 + $0xd58] sm:$0xff]  ;;  %v5244_v0 = vcombine.low %v1161_v51, %v1169_v41  ;;  %v5423_v41 = vcombine.high %v1338_v43, %v1346_v44 }
 0x463   :  { %v5485_v3 = vcombine.high %v1401_v62, %v1409_v63  ;;  %v5484_v9 = vcombine.low %v1401_v62, %v1409_v63 }
 0x464   :  { %4397 = vmatpush1.bf16.msra.mxu1 %v5084_v5  ;;  %v1137_v5 = vld [vmem:[%s7862_s10 + $0x4d8] sm:$0xff] }
 0x465   :  { %4438 = vmatpush1.bf16.msra.mxu0 %v5340_v6  ;;  %4398 = vmatprep.subr.bf16.mxu1 %v5069_v7  ;;  %v1385_v6 = vld [vmem:[%s7862_s10 + $0xc98] sm:$0xff]  ;;  %v5213_v10 = vcombine.high %v1129_v4, %v1137_v5 }
 0x466   :  { %4439 = vmatprep.subr.bf16.mxu0 %v5325_v8  ;;  %v1393_v7 = vld [vmem:[%s7862_s10 + $0xcd8] sm:$0xff]  ;;  %v5228_v8 = vcombine.low %v1145_v58, %v1153_v61  ;;  %v5422_v58 = vcombine.low %v1338_v43, %v1346_v44  ;;  %v1002_v44 = vld [vmem:[%s7862_s10 + $0xa0] sm:$0xff] }
 0x467   :  { %v5469_v11 = vcombine.high %v1385_v6, %v1393_v7  ;;  %v5468_v17 = vcombine.low %v1385_v6, %v1393_v7  ;;  %v1314_v6 = vld [vmem:[%s7862_s10 + $0xa60] sm:$0xff] }
 0x468   :  { %4399 = vmatpush1.bf16.msra.mxu1 %v5068_v13  ;;  %v1121_v13 = vld [vmem:[%s7862_s10 + $0x458] sm:$0xff] }
 0x469   :  { %4440 = vmatpush1.bf16.msra.mxu0 %v5324_v14  ;;  %4400 = vmatprep.subr.bf16.mxu1 %v5309_v15  ;;  %v1369_v14 = vld [vmem:[%s7862_s10 + $0xc18] sm:$0xff]  ;;  %v5197_v18 = vcombine.high %v1113_v12, %v1121_v13 }
 0x46a   :  { %4441 = vmatprep.subr.bf16.mxu0 %v5565_v16  ;;  %v1377_v15 = vld [vmem:[%s7862_s10 + $0xc58] sm:$0xff]  ;;  %v5212_v16 = vcombine.low %v1129_v4, %v1137_v5  ;;  %v1306_v5 = vld [vmem:[%s7862_s10 + $0xa20] sm:$0xff] }
 0x46b   :  { %v5453_v19 = vcombine.high %v1369_v14, %v1377_v15  ;;  %v5452_v30 = vcombine.low %v1369_v14, %v1377_v15  ;;  %v5391_v15 = vcombine.high %v1306_v5, %v1314_v6 }
 0x46c   :  { %4401 = vmatpush2.bf16.msra.mxu1 %v5308_v25  ;;  %v1106_v25 = vld [vmem:[%s7862_s10 + $0x3e0] sm:$0xff] }
 0x46d   :  { %4442 = vmatpush2.bf16.msra.mxu0 %v5564_v26  ;;  %4402 = vmatprep.subr.bf16.mxu1 %v5293_v28  ;;  %v1354_v26 = vld [vmem:[%s7862_s10 + $0xba0] sm:$0xff]  ;;  %v5183_v31 = vcombine.high %v1098_v20, %v1106_v25 }
 0x46e   :  { %4443 = vmatprep.subr.bf16.mxu0 %v5549_v29  ;;  %v1362_v28 = vld [vmem:[%s7862_s10 + $0xbe0] sm:$0xff]  ;;  %v5196_v29 = vcombine.low %v1113_v12, %v1121_v13 }
 0x46f   :  { %v5439_v35 = vcombine.high %v1354_v26, %v1362_v28  ;;  %v5438_v45 = vcombine.low %v1354_v26, %v1362_v28  ;;  %v5390_v26 = vcombine.low %v1306_v5, %v1314_v6  ;;  %v1210_v5 = vld [vmem:[%s7862_s10 + $0x720] sm:$0xff] }
 0x470   :  { %4403 = vmatpush2.bf16.msra.mxu1 %v5292_v37  ;;  %v1082_v37 = vld [vmem:[%s7862_s10 + $0x320] sm:$0xff] }
 0x471   :  { %4444 = vmatpush2.bf16.msra.mxu0 %v5548_v39  ;;  %4404 = vmatprep.subr.bf16.mxu1 %v5277_v40  ;;  %v1090_v39 = vld [vmem:[%s7862_s10 + $0x360] sm:$0xff]  ;;  %v5182_v40 = vcombine.low %v1098_v20, %v1106_v25 }
 0x472   :  { %4445 = vmatprep.subr.bf16.mxu0 %v5533_v42  ;;  %v1501_v42 = vrot.slane %v6993_v33, %v6003_v36  ;;  %v1218_v6 = vld [vmem:[%s7862_s10 + $0x760] sm:$0xff] }
 0x474   :  { %4405 = vmatpush2.bf16.msra.mxu1 %v5276_v47  ;;  %v5167_v47 = vcombine.high %v1082_v37, %v1090_v39 }
 0x475   :  { %4446 = vmatpush2.bf16.msra.mxu0 %v5532_v48  ;;  %4406 = vmatprep.subr.bf16.mxu1 %v5261_v49  ;;  %v1066_v48 = vld [vmem:[%s7862_s10 + $0x2a0] sm:$0xff] }
 0x476   :  { %4447 = vmatprep.subr.bf16.mxu0 %v5517_v50  ;;  %v1074_v49 = vld [vmem:[%s7862_s10 + $0x2e0] sm:$0xff] }
 0x477   :  { %v5151_v61 = vcombine.high %v1066_v48, %v1074_v49 }
 0x478   :  { %4407 = vmatpush2.bf16.msra.mxu1 %v5260_v54 }
 0x479   :  { %4448 = vmatpush2.bf16.msra.mxu0 %v5516_v55  ;;  %4408 = vmatprep.subr.bf16.mxu1 %v5245_v56  ;;  %v5166_v55 = vcombine.low %v1082_v37, %v1090_v39  ;;  %v1282_v37 = vld [vmem:[%s7862_s10 + $0x960] sm:$0xff] }
 0x47a   :  { %4449 = vmatprep.subr.bf16.mxu0 %v5501_v57 }
 0x47c   :  { %4409 = vmatpush2.bf16.msra.mxu1 %v5244_v0  ;;  %v5407_v0 = vcombine.high %v1322_v52, %v1330_v53 }
 0x47d   :  { %4450 = vmatpush2.bf16.msra.mxu0 %v5500_v1  ;;  %4410 = vmatprep.subr.bf16.mxu1 %v5229_v2  ;;  %v1050_v1 = vld [vmem:[%s7862_s10 + $0x220] sm:$0xff] }
 0x47e   :  { %4451 = vmatprep.subr.bf16.mxu0 %v5485_v3  ;;  %v1058_v2 = vld [vmem:[%s7862_s10 + $0x260] sm:$0xff] }
 0x47f   :  { %v5135_v12 = vcombine.high %v1050_v1, %v1058_v2  ;;  %v5134_v25 = vcombine.low %v1050_v1, %v1058_v2 }
 0x480   :  { %4411 = vmatpush2.bf16.msra.mxu1 %v5228_v8  ;;  %v5150_v8 = vcombine.low %v1066_v48, %v1074_v49 }
 0x481   :  { %4452 = vmatpush2.bf16.msra.mxu0 %v5484_v9  ;;  %4412 = vmatprep.subr.bf16.mxu1 %v5213_v10 }
 0x482   :  { %4453 = vmatprep.subr.bf16.mxu0 %v5469_v11  ;;  %v5406_v11 = vcombine.low %v1322_v52, %v1330_v53  ;;  %v994_v52 = vld [vmem:[%s7862_s10 + $0x60] sm:$0xff] }
 0x483   :  { %v1242_v53 = vld [vmem:[%s7862_s10 + $0x820] sm:$0xff] }
 0x484   :  { %4413 = vmatpush2.bf16.msra.mxu1 %v5212_v16  ;;  %v1034_v16 = vld [vmem:[%s7862_s10 + $0x1a0] sm:$0xff] }
 0x485   :  { %4454 = vmatpush2.bf16.msra.mxu0 %v5468_v17  ;;  %4414 = vmatprep.subr.bf16.mxu1 %v5197_v18  ;;  %v1042_v17 = vld [vmem:[%s7862_s10 + $0x1e0] sm:$0xff] }
 0x486   :  { %4455 = vmatprep.subr.bf16.mxu0 %v5453_v19  ;;  %v1290_v18 = vld [vmem:[%s7862_s10 + $0x9a0] sm:$0xff]  ;;  %v5119_v28 = vcombine.high %v1034_v16, %v1042_v17  ;;  %v5118_v39 = vcombine.low %v1034_v16, %v1042_v17  ;;  %v5294_v17 = vcombine.low %v1210_v5, %v1218_v6 }
 0x487   :  { %v1298_v19 = vld [vmem:[%s7862_s10 + $0x9e0] sm:$0xff] }
 0x488   :  { %4415 = vmatpush2.bf16.msra.mxu1 %v5196_v29  ;;  %v5375_v29 = vcombine.high %v1290_v18, %v1298_v19  ;;  %v1458_v16 = vld [vmem:[%s7862_s10 + $0xee0] sm:$0xff] }
 0x489   :  { %4456 = vmatpush2.bf16.msra.mxu0 %v5452_v30  ;;  %4466 = vmatprep.subr.bf16.mxu1 %v5183_v31  ;;  %v1018_v30 = vld [vmem:[%s7862_s10 + $0x120] sm:$0xff] }
 0x48a   :  { %4507 = vmatprep.subr.bf16.mxu0 %v5439_v35  ;;  %v1026_v31 = vld [vmem:[%s7862_s10 + $0x160] sm:$0xff] }
 0x48b   :  { %4417 = vmatmul.mubr.bf16.vlgmr.msra.gmra.mxu1 %v6408_v23  ;;  %v4172_v50 = vpop.f32.mrf.mxu1  ;;  %v4213_v51 = vpop.f32.mrf.mxu0  ;;  %v1274_v35 = vld [vmem:[%s7862_s10 + $0x920] sm:$0xff]  ;;  %v5102_v48 = vcombine.low %v1018_v30, %v1026_v31 }
 0x48c   :  { %4458 = vmatmul.mubr.bf16.vlgmr.msra.gmra.mxu0 %v6410_v24  ;;  %v4173_v54 = vadd.f32 %v4172_v50, %v1501_v42  ;;  %4467 = vmatpush1.bf16.msra.mxu1 %v5182_v40  ;;  %v5374_v40 = vcombine.low %v1290_v18, %v1298_v19  ;;  %v5103_v42 = vcombine.high %v1018_v30, %v1026_v31  ;;  %v1442_v30 = vld [vmem:[%s7862_s10 + $0xe60] sm:$0xff] }
 0x48d   :  { %4498 = vmatprep.mubr.bf16.mxu1 %v6404_v21  ;;  %4508 = vmatpush1.bf16.msra.mxu0 %v5438_v45  ;;  %v4174_v56 = vpop.f32.mrf.mxu1  ;;  %v4215_v57 = vpop.f32.mrf.mxu0  ;;  %v5359_v43 = vcombine.high %v1274_v35, %v1282_v37  ;;  %v1010_v45 = vld [vmem:[%s7862_s10 + $0xe0] sm:$0xff]  ;;  %v5358_v49 = vcombine.low %v1274_v35, %v1282_v37 }
 0x48e   :  { %v4214_v62 = vadd.f32 %v4213_v51, %v4173_v54  ;;  %4539 = vmatprep.mubr.bf16.mxu0 %v6406_v22  ;;  %v4175_v63 = vadd.f32 %v4174_v56, %v1505_v46  ;;  %4468 = vmatprep.subr.bf16.mxu1 %v5167_v47  ;;  %v1258_v46 = vld [vmem:[%s7862_s10 + $0x8a0] sm:$0xff]  ;;  %v5087_v50 = vcombine.high %v1002_v44, %v1010_v45 }
 0x48f   :  { %4509 = vmatprep.subr.bf16.mxu0 %v5423_v41  ;;  %v4176_v3 = vpop.f32.mrf.mxu1  ;;  %v4217_v4 = vpop.f32.mrf.mxu0  ;;  %v1266_v47 = vld [vmem:[%s7862_s10 + $0x8e0] sm:$0xff] }
 0x490   :  { %v4216_v7 = vadd.f32 %v4215_v57, %v4175_v63  ;;  %4469 = vmatpush1.bf16.msra.mxu1 %v5166_v55  ;;  %v4794_v13 = vmax.f32 %v4214_v62, 0.0  ;;  %v5343_v51 = vcombine.high %v1258_v46, %v1266_v47  ;;  %v986_v41 = vld [vmem:[%s7862_s10 + $0x20] sm:$0xff]  ;;  %v5086_v55 = vcombine.low %v1002_v44, %v1010_v45 }
 0x491   :  { %4510 = vmatpush1.bf16.msra.mxu0 %v5422_v58  ;;  %v4177_v9 = vpop.f32.mrf.mxu1  ;;  %v4218_v10 = vpop.f32.mrf.mxu0  ;;  %4470 = vmatprep.subr.bf16.mxu1 %v5151_v61  ;;  %v1250_v54 = vld [vmem:[%s7862_s10 + $0x860] sm:$0xff]  ;;  %v5342_v56 = vcombine.low %v1258_v46, %v1266_v47  ;;  %v5071_v57 = vcombine.high %v986_v41, %v994_v52  ;;  %v5070_v1 = vcombine.low %v986_v41, %v994_v52 }
 0x492   :  { %v4795_v14 = vmax.f32 %v4216_v7, 0.0  ;;  %4511 = vmatprep.subr.bf16.mxu0 %v5407_v0  ;;  %v5327_v58 = vcombine.high %v1242_v53, %v1250_v54  ;;  %v1226_v61 = vld [vmem:[%s7862_s10 + $0x7a0] sm:$0xff]  ;;  %v5326_v2 = vcombine.low %v1242_v53, %v1250_v54 }
 0x493   :  { %v1234_v62 = vld [vmem:[%s7862_s10 + $0x7e0] sm:$0xff] }
 0x494   :  { %v7051_v20 = vpack.c.bf16 %v4795_v14, %v4794_v13  ;;  %4471 = vmatpush1.bf16.msra.mxu1 %v5150_v8  ;;  %v1482_v63 = vld [vmem:[%s7862_s10 + $0xfa0] sm:$0xff]  ;;  %v5311_v3 = vcombine.high %v1226_v61, %v1234_v62  ;;  %v5310_v9 = vcombine.low %v1226_v61, %v1234_v62 }
 0x495   :  { %4512 = vmatpush1.bf16.msra.mxu0 %v5406_v11  ;;  %4472 = vmatprep.subr.bf16.mxu1 %v5135_v12  ;;  %v1490_v0 = vld [vmem:[%s7862_s10 + $0xfe0] sm:$0xff]  ;;  %v5295_v11 = vcombine.high %v1210_v5, %v1218_v6 }
 0x496   :  { %4513 = vmatprep.subr.bf16.mxu0 %v5391_v15  ;;  %v5567_v4 = vcombine.high %v1482_v63, %v1490_v0  ;;  %v1466_v7 = vld [vmem:[%s7862_s10 + $0xf20] sm:$0xff]  ;;  %v5566_v10 = vcombine.low %v1482_v63, %v1490_v0 }
 0x497   :  { %v1474_v8 = vld [vmem:[%s7862_s10 + $0xf60] sm:$0xff] }
 0x498   :  { %4473 = vmatpush1.bf16.msra.mxu1 %v5134_v25  ;;  %v5551_v12 = vcombine.high %v1466_v7, %v1474_v8  ;;  %v1194_v13 = vld [vmem:[%s7862_s10 + $0x6a0] sm:$0xff]  ;;  %v5550_v18 = vcombine.low %v1466_v7, %v1474_v8 }
 0x499   :  { %4514 = vmatpush1.bf16.msra.mxu0 %v5390_v26  ;;  %4474 = vmatprep.subr.bf16.mxu1 %v5119_v28  ;;  %v1202_v14 = vld [vmem:[%s7862_s10 + $0x6e0] sm:$0xff] }
 0x49a   :  { %4515 = vmatprep.subr.bf16.mxu0 %v5375_v29  ;;  %v1450_v15 = vld [vmem:[%s7862_s10 + $0xea0] sm:$0xff]  ;;  %v5279_v19 = vcombine.high %v1194_v13, %v1202_v14  ;;  %v5278_v31 = vcombine.low %v1194_v13, %v1202_v14  ;;  %v1363_v13 = vld [vmem:[%s7862_s10 + $0xbe8] sm:$0xff] }
 0x49b   :  { %v5535_v25 = vcombine.high %v1450_v15, %v1458_v16  ;;  %v1178_v26 = vld [vmem:[%s7862_s10 + $0x620] sm:$0xff]  ;;  %v5534_v35 = vcombine.low %v1450_v15, %v1458_v16 }
 0x49c   :  { %4475 = vmatpush1.bf16.msra.mxu1 %v5118_v39  ;;  %v1186_v28 = vld [vmem:[%s7862_s10 + $0x660] sm:$0xff] }
 0x49d   :  { %4516 = vmatpush1.bf16.msra.mxu0 %v5374_v40  ;;  %4476 = vmatprep.subr.bf16.mxu1 %v5103_v42  ;;  %v1434_v29 = vld [vmem:[%s7862_s10 + $0xe20] sm:$0xff]  ;;  %v5263_v37 = vcombine.high %v1178_v26, %v1186_v28  ;;  %v5262_v45 = vcombine.low %v1178_v26, %v1186_v28  ;;  %v1339_v28 = vld [vmem:[%s7862_s10 + $0xb28] sm:$0xff] }
 0x49e   :  { %4517 = vmatprep.subr.bf16.mxu0 %v5359_v43  ;;  %v5519_v39 = vcombine.high %v1434_v29, %v1442_v30  ;;  %v1162_v40 = vld [vmem:[%s7862_s10 + $0x5a0] sm:$0xff]  ;;  %v5518_v46 = vcombine.low %v1434_v29, %v1442_v30  ;;  %v1347_v29 = vld [vmem:[%s7862_s10 + $0xb68] sm:$0xff] }
 0x49f   :  { %v1170_v42 = vld [vmem:[%s7862_s10 + $0x5e0] sm:$0xff] }
 0x4a0   :  { %4477 = vmatpush1.bf16.msra.mxu1 %v5102_v48  ;;  %v1418_v43 = vld [vmem:[%s7862_s10 + $0xda0] sm:$0xff]  ;;  %v5247_v47 = vcombine.high %v1162_v40, %v1170_v42  ;;  %v5246_v52 = vcombine.low %v1162_v40, %v1170_v42  ;;  %v1067_v40 = vld [vmem:[%s7862_s10 + $0x2a8] sm:$0xff] }
 0x4a1   :  { %4518 = vmatpush1.bf16.msra.mxu0 %v5358_v49  ;;  %4478 = vmatprep.subr.bf16.mxu1 %v5087_v50  ;;  %v1426_v44 = vld [vmem:[%s7862_s10 + $0xde0] sm:$0xff]  ;;  %v1075_v42 = vld [vmem:[%s7862_s10 + $0x2e8] sm:$0xff] }
 0x4a2   :  { %4519 = vmatprep.subr.bf16.mxu0 %v5343_v51  ;;  %v5503_v48 = vcombine.high %v1418_v43, %v1426_v44  ;;  %v1146_v49 = vld [vmem:[%s7862_s10 + $0x520] sm:$0xff]  ;;  %v5502_v53 = vcombine.low %v1418_v43, %v1426_v44 }
 0x4a3   :  { %v1154_v50 = vld [vmem:[%s7862_s10 + $0x560] sm:$0xff] }
 0x4a4   :  { %4479 = vmatpush1.bf16.msra.mxu1 %v5086_v55  ;;  %v1402_v51 = vld [vmem:[%s7862_s10 + $0xd20] sm:$0xff]  ;;  %v5231_v54 = vcombine.high %v1146_v49, %v1154_v50  ;;  %v5230_v62 = vcombine.low %v1146_v49, %v1154_v50 }
 0x4a5   :  { %4520 = vmatpush1.bf16.msra.mxu0 %v5342_v56  ;;  %4480 = vmatprep.subr.bf16.mxu1 %v5071_v57  ;;  %v1410_v41 = vld [vmem:[%s7862_s10 + $0xd60] sm:$0xff] }
 0x4a6   :  { %4521 = vmatprep.subr.bf16.mxu0 %v5327_v58  ;;  %v5487_v55 = vcombine.high %v1402_v51, %v1410_v41  ;;  %v1130_v56 = vld [vmem:[%s7862_s10 + $0x4a0] sm:$0xff]  ;;  %v5486_v63 = vcombine.low %v1402_v51, %v1410_v41  ;;  %v5424_v41 = vcombine.low %v1339_v28, %v1347_v29 }
 0x4a7   :  { %v1138_v57 = vld [vmem:[%s7862_s10 + $0x4e0] sm:$0xff] }
 0x4a8   :  { %4481 = vmatpush1.bf16.msra.mxu1 %v5070_v1  ;;  %v1386_v58 = vld [vmem:[%s7862_s10 + $0xca0] sm:$0xff]  ;;  %v5215_v0 = vcombine.high %v1130_v56, %v1138_v57  ;;  %v5214_v6 = vcombine.low %v1130_v56, %v1138_v57  ;;  %v1051_v57 = vld [vmem:[%s7862_s10 + $0x228] sm:$0xff] }
 0x4a9   :  { %4522 = vmatpush1.bf16.msra.mxu0 %v5326_v2  ;;  %4482 = vmatprep.subr.bf16.mxu1 %v5311_v3  ;;  %v1394_v61 = vld [vmem:[%s7862_s10 + $0xce0] sm:$0xff] }
 0x4aa   :  { %4523 = vmatprep.subr.bf16.mxu0 %v5567_v4  ;;  %v5471_v1 = vcombine.high %v1386_v58, %v1394_v61  ;;  %v1114_v2 = vld [vmem:[%s7862_s10 + $0x420] sm:$0xff]  ;;  %v5470_v7 = vcombine.low %v1386_v58, %v1394_v61  ;;  %v1059_v58 = vld [vmem:[%s7862_s10 + $0x268] sm:$0xff] }
 0x4ab   :  { %v1122_v3 = vld [vmem:[%s7862_s10 + $0x460] sm:$0xff] }
 0x4ac   :  { %4483 = vmatpush2.bf16.msra.mxu1 %v5310_v9  ;;  %v1370_v4 = vld [vmem:[%s7862_s10 + $0xc20] sm:$0xff]  ;;  %v5199_v8 = vcombine.high %v1114_v2, %v1122_v3  ;;  %v5198_v14 = vcombine.low %v1114_v2, %v1122_v3  ;;  %v5152_v2 = vcombine.low %v1067_v40, %v1075_v42 }
 0x4ad   :  { %4524 = vmatpush2.bf16.msra.mxu0 %v5566_v10  ;;  %4484 = vmatprep.subr.bf16.mxu1 %v5295_v11  ;;  %v1378_v5 = vld [vmem:[%s7862_s10 + $0xc60] sm:$0xff]  ;;  %v1099_v10 = vld [vmem:[%s7862_s10 + $0x3a8] sm:$0xff] }
 0x4ae   :  { %4525 = vmatprep.subr.bf16.mxu0 %v5551_v12  ;;  %v5455_v9 = vcombine.high %v1370_v4, %v1378_v5  ;;  %v1107_v11 = vld [vmem:[%s7862_s10 + $0x3e8] sm:$0xff]  ;;  %v5454_v15 = vcombine.low %v1370_v4, %v1378_v5 }
 0x4af   :  { %v1355_v12 = vld [vmem:[%s7862_s10 + $0xba8] sm:$0xff]  ;;  %v5185_v16 = vcombine.high %v1099_v10, %v1107_v11  ;;  %v5184_v26 = vcombine.low %v1099_v10, %v1107_v11 }
 0x4b0   :  { %4485 = vmatpush2.bf16.msra.mxu1 %v5294_v17  ;;  %v5441_v17 = vcombine.high %v1355_v12, %v1363_v13  ;;  %v5440_v30 = vcombine.low %v1355_v12, %v1363_v13  ;;  %v1035_v11 = vld [vmem:[%s7862_s10 + $0x1a8] sm:$0xff] }
 0x4b1   :  { %4526 = vmatpush2.bf16.msra.mxu0 %v5550_v18  ;;  %4486 = vmatprep.subr.bf16.mxu1 %v5279_v19  ;;  %v1083_v18 = vld [vmem:[%s7862_s10 + $0x328] sm:$0xff] }
 0x4b2   :  { %4527 = vmatprep.subr.bf16.mxu0 %v5535_v25  ;;  %v1091_v19 = vld [vmem:[%s7862_s10 + $0x368] sm:$0xff]  ;;  %v1509_v25 = vrot.slane %v6993_v33, %v5991_v32 }
 0x4b3   :  { %v5168_v49 = vcombine.low %v1083_v18, %v1091_v19  ;;  %v1043_v12 = vld [vmem:[%s7862_s10 + $0x1e8] sm:$0xff] }
 0x4b4   :  { %4487 = vmatpush2.bf16.msra.mxu1 %v5278_v31  ;;  %v5820_v31 = vmov 1966171168   ;;  %v1291_v13 = vld [vmem:[%s7862_s10 + $0x9a8] sm:$0xff] }
 0x4b5   :  { %4528 = vmatpush2.bf16.msra.mxu0 %v5534_v35  ;;  %4488 = vmatprep.subr.bf16.mxu1 %v5263_v37  ;;  %v4854_v35 = vunpack.c.l.s4 %v5820_v31  ;;  %v1513_v37 = vrot.slane %v6993_v33, %v6386_v60 }
 0x4b6   :  { %4529 = vmatprep.subr.bf16.mxu0 %v5519_v39  ;;  %v5169_v39 = vcombine.high %v1083_v18, %v1091_v19  ;;  %v5121_v18 = vcombine.high %v1035_v11, %v1043_v12 }
 0x4b8   :  { %4489 = vmatpush2.bf16.msra.mxu1 %v5262_v45  ;;  %v5425_v45 = vcombine.high %v1339_v28, %v1347_v29  ;;  %v1019_v28 = vld [vmem:[%s7862_s10 + $0x128] sm:$0xff] }
 0x4b9   :  { %4530 = vmatpush2.bf16.msra.mxu0 %v5518_v46  ;;  %4490 = vmatprep.subr.bf16.mxu1 %v5247_v47  ;;  %v1323_v46 = vld [vmem:[%s7862_s10 + $0xaa8] sm:$0xff] }
 0x4ba   :  { %4531 = vmatprep.subr.bf16.mxu0 %v5503_v48  ;;  %v1331_v47 = vld [vmem:[%s7862_s10 + $0xae8] sm:$0xff] }
 0x4bb   :  { %v5409_v56 = vcombine.high %v1323_v46, %v1331_v47  ;;  %v5408_v5 = vcombine.low %v1323_v46, %v1331_v47  ;;  %v1027_v29 = vld [vmem:[%s7862_s10 + $0x168] sm:$0xff] }
 0x4bc   :  { %4491 = vmatpush2.bf16.msra.mxu1 %v5246_v52  ;;  %v5153_v52 = vcombine.high %v1067_v40, %v1075_v42  ;;  %v1003_v42 = vld [vmem:[%s7862_s10 + $0xa8] sm:$0xff]  ;;  %v5104_v46 = vcombine.low %v1019_v28, %v1027_v29 }
 0x4bd   :  { %4532 = vmatpush2.bf16.msra.mxu0 %v5502_v53  ;;  %4492 = vmatprep.subr.bf16.mxu1 %v5231_v54  ;;  %v4855_v53 = vunpack.c.0.s8 %v4854_v35  ;;  %v5120_v35 = vcombine.low %v1035_v11, %v1043_v12  ;;  %v1195_v12 = vld [vmem:[%s7862_s10 + $0x6a8] sm:$0xff] }
 0x4be   :  { %4533 = vmatprep.subr.bf16.mxu0 %v5487_v55 }
 0x4c0   :  { %4493 = vmatpush2.bf16.msra.mxu1 %v5230_v62 }
 0x4c1   :  { %4534 = vmatpush2.bf16.msra.mxu0 %v5486_v63  ;;  %4494 = vmatprep.subr.bf16.mxu1 %v5215_v0  ;;  %v1307_v63 = vld [vmem:[%s7862_s10 + $0xa28] sm:$0xff] }
 0x4c2   :  { %4535 = vmatprep.subr.bf16.mxu0 %v5471_v1  ;;  %v1315_v0 = vld [vmem:[%s7862_s10 + $0xa68] sm:$0xff] }
 0x4c3   :  { %v5393_v10 = vcombine.high %v1307_v63, %v1315_v0 }
 0x4c4   :  { %4495 = vmatpush2.bf16.msra.mxu1 %v5214_v6  ;;  %v5137_v6 = vcombine.high %v1051_v57, %v1059_v58 }
 0x4c5   :  { %4536 = vmatpush2.bf16.msra.mxu0 %v5470_v7  ;;  %4496 = vmatprep.subr.bf16.mxu1 %v5199_v8  ;;  %v7242_v7 = vsub.s32 %v4855_v53, %v5976_v27 }
 0x4c6   :  { %4537 = vmatprep.subr.bf16.mxu0 %v5455_v9 }
 0x4c7   :  { %v4859_v19 = vrot.slane %v7051_v20, %v7242_v7  ;;  %v1283_v20 = vld [vmem:[%s7862_s10 + $0x968] sm:$0xff] }
 0x4c8   :  { %4497 = vmatpush2.bf16.msra.mxu1 %v5198_v14  ;;  %v1299_v14 = vld [vmem:[%s7862_s10 + $0x9e8] sm:$0xff] }
 0x4c9   :  { %4538 = vmatpush2.bf16.msra.mxu0 %v5454_v15  ;;  %4548 = vmatprep.subr.bf16.mxu1 %v5185_v16  ;;  %v5136_v16 = vcombine.low %v1051_v57, %v1059_v58  ;;  %v1227_v57 = vld [vmem:[%s7862_s10 + $0x7a8] sm:$0xff] }
 0x4ca   :  { %4589 = vmatprep.subr.bf16.mxu0 %v5441_v17  ;;  %v5392_v17 = vcombine.low %v1307_v63, %v1315_v0  ;;  %v1235_v58 = vld [vmem:[%s7862_s10 + $0x7e8] sm:$0xff] }
 0x4cb   :  { %v4254_v43 = vpop.f32.mrf.mxu1  ;;  %v4295_v44 = vpop.f32.mrf.mxu0  ;;  %4499 = vmatmul.mubr.bf16.vlgmr.msra.gmra.mxu1 %v6408_v23 }
 0x4cc   :  { %v4255_v48 = vadd.f32 %v4254_v43, %v1509_v25  ;;  %4540 = vmatmul.mubr.bf16.vlgmr.msra.gmra.mxu0 %v6410_v24  ;;  %4549 = vmatpush1.bf16.msra.mxu1 %v5184_v26  ;;  %v5377_v26 = vcombine.high %v1291_v13, %v1299_v14  ;;  %v1011_v43 = vld [vmem:[%s7862_s10 + $0xe8] sm:$0xff] }
 0x4cd   :  { %4580 = vmatprep.mubr.bf16.mxu1 %v6404_v21  ;;  %4590 = vmatpush1.bf16.msra.mxu0 %v5440_v30  ;;  %v4256_v50 = vpop.f32.mrf.mxu1  ;;  %v4297_v51 = vpop.f32.mrf.mxu0  ;;  %v1275_v30 = vld [vmem:[%s7862_s10 + $0x928] sm:$0xff]  ;;  %v5088_v53 = vcombine.low %v1003_v42, %v1011_v43 }
 0x4ce   :  { %v4296_v54 = vadd.f32 %v4295_v44, %v4255_v48  ;;  %4621 = vmatprep.mubr.bf16.mxu0 %v6406_v22  ;;  %v4257_v55 = vadd.f32 %v4256_v50, %v1513_v37  ;;  %4550 = vmatprep.subr.bf16.mxu1 %v5169_v39  ;;  %v5376_v37 = vcombine.low %v1291_v13, %v1299_v14  ;;  %v1259_v44 = vld [vmem:[%s7862_s10 + $0x8a8] sm:$0xff] }
 0x4cf   :  { %v4258_v61 = vpop.f32.mrf.mxu1  ;;  %v4299_v62 = vpop.f32.mrf.mxu0  ;;  %4591 = vmatprep.subr.bf16.mxu0 %v5425_v45  ;;  %v5105_v39 = vcombine.high %v1019_v28, %v1027_v29  ;;  %v5361_v40 = vcombine.high %v1275_v30, %v1283_v20  ;;  %v1267_v45 = vld [vmem:[%s7862_s10 + $0x8e8] sm:$0xff]  ;;  %v5360_v47 = vcombine.low %v1275_v30, %v1283_v20  ;;  %v5089_v48 = vcombine.high %v1003_v42, %v1011_v43 }
 0x4d0   :  { %v4298_v1 = vadd.f32 %v4297_v51, %v4257_v55  ;;  %4551 = vmatpush1.bf16.msra.mxu1 %v5168_v49  ;;  %v4796_v8 = vmax.f32 %v4296_v54, 0.0  ;;  %v5345_v49 = vcombine.high %v1259_v44, %v1267_v45  ;;  %v987_v50 = vld [vmem:[%s7862_s10 + $0x28] sm:$0xff]  ;;  %v5344_v54 = vcombine.low %v1259_v44, %v1267_v45 }
 0x4d1   :  { %4592 = vmatpush1.bf16.msra.mxu0 %v5424_v41  ;;  %v4259_v3 = vpop.f32.mrf.mxu1  ;;  %v4300_v4 = vpop.f32.mrf.mxu0  ;;  %4552 = vmatprep.subr.bf16.mxu1 %v5153_v52  ;;  %v995_v51 = vld [vmem:[%s7862_s10 + $0x68] sm:$0xff] }
 0x4d2   :  { %v4797_v9 = vmax.f32 %v4298_v1, 0.0  ;;  %4593 = vmatprep.subr.bf16.mxu0 %v5409_v56  ;;  %v1243_v41 = vld [vmem:[%s7862_s10 + $0x828] sm:$0xff]  ;;  %v5073_v55 = vcombine.high %v987_v50, %v995_v51  ;;  %v5072_v63 = vcombine.low %v987_v50, %v995_v51  ;;  %v5313_v1 = vcombine.high %v1227_v57, %v1235_v58 }
 0x4d3   :  { %v1251_v52 = vld [vmem:[%s7862_s10 + $0x868] sm:$0xff] }
 0x4d4   :  { %v5575_v15 = vpack.c.bf16 %v4797_v9, %v4796_v8  ;;  %4553 = vmatpush1.bf16.msra.mxu1 %v5152_v2  ;;  %v5329_v56 = vcombine.high %v1243_v41, %v1251_v52  ;;  %v1483_v61 = vld [vmem:[%s7862_s10 + $0xfa8] sm:$0xff]  ;;  %v5328_v0 = vcombine.low %v1243_v41, %v1251_v52  ;;  %v5312_v8 = vcombine.low %v1227_v57, %v1235_v58 }
 0x4d5   :  { %4594 = vmatpush1.bf16.msra.mxu0 %v5408_v5  ;;  %4554 = vmatprep.subr.bf16.mxu1 %v5137_v6  ;;  %v1491_v62 = vld [vmem:[%s7862_s10 + $0xfe8] sm:$0xff] }
 0x4d6   :  { %v4866_v25 = vrot.slane %v5575_v15, %v7242_v7  ;;  %4595 = vmatprep.subr.bf16.mxu0 %v5393_v10  ;;  %v5569_v2 = vcombine.high %v1483_v61, %v1491_v62  ;;  %v1211_v3 = vld [vmem:[%s7862_s10 + $0x728] sm:$0xff]  ;;  %v5568_v9 = vcombine.low %v1483_v61, %v1491_v62 }
 0x4d7   :  { %v1219_v4 = vld [vmem:[%s7862_s10 + $0x768] sm:$0xff] }
 0x4d8   :  { %v7271_v31 = vcombine.low %v4859_v19, %v4866_v25  ;;  %4555 = vmatpush1.bf16.msra.mxu1 %v5136_v16  ;;  %v1467_v5 = vld [vmem:[%s7862_s10 + $0xf28] sm:$0xff]  ;;  %v5297_v10 = vcombine.high %v1211_v3, %v1219_v4  ;;  %v5296_v16 = vcombine.low %v1211_v3, %v1219_v4 }
 0x4d9   :  { %4596 = vmatpush1.bf16.msra.mxu0 %v5392_v17  ;;  %4556 = vmatprep.subr.bf16.mxu1 %v5121_v18  ;;  %v1475_v6 = vld [vmem:[%s7862_s10 + $0xf68] sm:$0xff] }
 0x4da   :  { %4597 = vmatprep.subr.bf16.mxu0 %v5377_v26  ;;  %v5553_v11 = vcombine.high %v1467_v5, %v1475_v6  ;;  %v1203_v13 = vld [vmem:[%s7862_s10 + $0x6e8] sm:$0xff]  ;;  %v5552_v17 = vcombine.low %v1467_v5, %v1475_v6 }
 0x4db   :  { %v1451_v14 = vld [vmem:[%s7862_s10 + $0xea8] sm:$0xff]  ;;  %v5281_v18 = vcombine.high %v1195_v12, %v1203_v13  ;;  %v5280_v30 = vcombine.low %v1195_v12, %v1203_v13  ;;  %v1356_v12 = vld [vmem:[%s7862_s10 + $0xbb0] sm:$0xff] }
 0x4dc   :  { %4557 = vmatpush1.bf16.msra.mxu1 %v5120_v35  ;;  %v1459_v15 = vld [vmem:[%s7862_s10 + $0xee8] sm:$0xff]  ;;  %v1364_v13 = vld [vmem:[%s7862_s10 + $0xbf0] sm:$0xff] }
 0x4dd   :  { %4598 = vmatpush1.bf16.msra.mxu0 %v5376_v37  ;;  %4558 = vmatprep.subr.bf16.mxu1 %v5105_v39  ;;  %v5537_v19 = vcombine.high %v1451_v14, %v1459_v15  ;;  %v1179_v25 = vld [vmem:[%s7862_s10 + $0x628] sm:$0xff]  ;;  %v5536_v20 = vcombine.low %v1451_v14, %v1459_v15 }
 0x4de   :  { %4599 = vmatprep.subr.bf16.mxu0 %v5361_v40  ;;  %v1187_v26 = vld [vmem:[%s7862_s10 + $0x668] sm:$0xff] }
 0x4df   :  { %v1435_v28 = vld [vmem:[%s7862_s10 + $0xe28] sm:$0xff]  ;;  %v5265_v35 = vcombine.high %v1179_v25, %v1187_v26  ;;  %v5264_v44 = vcombine.low %v1179_v25, %v1187_v26  ;;  %v1092_v25 = vld [vmem:[%s7862_s10 + $0x370] sm:$0xff]  ;;  %v1517_v26 = vrot.slane %v6993_v33, %v6009_v38 }
 0x4e0   :  { %4559 = vmatpush1.bf16.msra.mxu1 %v5104_v46  ;;  %v1443_v29 = vld [vmem:[%s7862_s10 + $0xe68] sm:$0xff] }
 0x4e1   :  { %4600 = vmatpush1.bf16.msra.mxu0 %v5360_v47  ;;  %4560 = vmatprep.subr.bf16.mxu1 %v5089_v48  ;;  %v5521_v37 = vcombine.high %v1435_v28, %v1443_v29  ;;  %v1163_v39 = vld [vmem:[%s7862_s10 + $0x5a8] sm:$0xff]  ;;  %v5520_v45 = vcombine.low %v1435_v28, %v1443_v29  ;;  %v1340_v29 = vld [vmem:[%s7862_s10 + $0xb30] sm:$0xff] }
 0x4e2   :  { %4601 = vmatprep.subr.bf16.mxu0 %v5345_v49  ;;  %v1171_v40 = vld [vmem:[%s7862_s10 + $0x5e8] sm:$0xff] }
 0x4e3   :  { %v1419_v42 = vld [vmem:[%s7862_s10 + $0xda8] sm:$0xff]  ;;  %v5249_v46 = vcombine.high %v1163_v39, %v1171_v40  ;;  %v5248_v41 = vcombine.low %v1163_v39, %v1171_v40  ;;  %v1068_v39 = vld [vmem:[%s7862_s10 + $0x2b0] sm:$0xff] }
 0x4e4   :  { %4561 = vmatpush1.bf16.msra.mxu1 %v5088_v53  ;;  %v1427_v43 = vld [vmem:[%s7862_s10 + $0xde8] sm:$0xff]  ;;  %v1076_v40 = vld [vmem:[%s7862_s10 + $0x2f0] sm:$0xff] }
 0x4e5   :  { %4602 = vmatpush1.bf16.msra.mxu0 %v5344_v54  ;;  %4562 = vmatprep.subr.bf16.mxu1 %v5073_v55  ;;  %v5505_v47 = vcombine.high %v1419_v42, %v1427_v43  ;;  %v1147_v48 = vld [vmem:[%s7862_s10 + $0x528] sm:$0xff]  ;;  %v5504_v52 = vcombine.low %v1419_v42, %v1427_v43 }
 0x4e6   :  { %4603 = vmatprep.subr.bf16.mxu0 %v5329_v56  ;;  %v1155_v49 = vld [vmem:[%s7862_s10 + $0x568] sm:$0xff] }
 0x4e7   :  { %v1403_v50 = vld [vmem:[%s7862_s10 + $0xd28] sm:$0xff]  ;;  %v5233_v53 = vcombine.high %v1147_v48, %v1155_v49  ;;  %v5232_v61 = vcombine.low %v1147_v48, %v1155_v49 }
 0x4e8   :  { %4563 = vmatpush1.bf16.msra.mxu1 %v5072_v63  ;;  %v1411_v51 = vld [vmem:[%s7862_s10 + $0xd68] sm:$0xff] }
 0x4e9   :  { %4604 = vmatpush1.bf16.msra.mxu0 %v5328_v0  ;;  %4564 = vmatprep.subr.bf16.mxu1 %v5313_v1  ;;  %v5489_v54 = vcombine.high %v1403_v50, %v1411_v51  ;;  %v1131_v55 = vld [vmem:[%s7862_s10 + $0x4a8] sm:$0xff]  ;;  %v5488_v62 = vcombine.low %v1403_v50, %v1411_v51  ;;  %v5155_v50 = vcombine.high %v1068_v39, %v1076_v40 }
 0x4ea   :  { %4605 = vmatprep.subr.bf16.mxu0 %v5569_v2  ;;  %v1139_v56 = vld [vmem:[%s7862_s10 + $0x4e8] sm:$0xff] }
 0x4eb   :  { %v1387_v57 = vld [vmem:[%s7862_s10 + $0xca8] sm:$0xff]  ;;  %v5217_v63 = vcombine.high %v1131_v55, %v1139_v56  ;;  %v5216_v5 = vcombine.low %v1131_v55, %v1139_v56  ;;  %v1060_v55 = vld [vmem:[%s7862_s10 + $0x270] sm:$0xff] }
 0x4ec   :  { %4565 = vmatpush2.bf16.msra.mxu1 %v5312_v8  ;;  %v1395_v58 = vld [vmem:[%s7862_s10 + $0xce8] sm:$0xff] }
 0x4ed   :  { %4606 = vmatpush2.bf16.msra.mxu0 %v5568_v9  ;;  %4566 = vmatprep.subr.bf16.mxu1 %v5297_v10  ;;  %v5473_v0 = vcombine.high %v1387_v57, %v1395_v58  ;;  %v1115_v1 = vld [vmem:[%s7862_s10 + $0x428] sm:$0xff]  ;;  %v5472_v6 = vcombine.low %v1387_v57, %v1395_v58  ;;  %v1100_v10 = vld [vmem:[%s7862_s10 + $0x3b0] sm:$0xff] }
 0x4ee   :  { %4607 = vmatprep.subr.bf16.mxu0 %v5553_v11  ;;  %v1123_v2 = vld [vmem:[%s7862_s10 + $0x468] sm:$0xff]  ;;  %v1108_v11 = vld [vmem:[%s7862_s10 + $0x3f0] sm:$0xff] }
 0x4ef   :  { %v1371_v3 = vld [vmem:[%s7862_s10 + $0xc28] sm:$0xff]  ;;  %v5201_v8 = vcombine.high %v1115_v1, %v1123_v2  ;;  %v5200_v14 = vcombine.low %v1115_v1, %v1123_v2  ;;  %v5186_v28 = vcombine.low %v1100_v10, %v1108_v11  ;;  %v1308_v57 = vld [vmem:[%s7862_s10 + $0xa30] sm:$0xff] }
 0x4f0   :  { %4567 = vmatpush2.bf16.msra.mxu1 %v5296_v16  ;;  %v1379_v4 = vld [vmem:[%s7862_s10 + $0xc68] sm:$0xff]  ;;  %v5187_v16 = vcombine.high %v1100_v10, %v1108_v11  ;;  %v1316_v58 = vld [vmem:[%s7862_s10 + $0xa70] sm:$0xff] }
 0x4f1   :  { %4608 = vmatpush2.bf16.msra.mxu0 %v5552_v17  ;;  %4568 = vmatprep.subr.bf16.mxu1 %v5281_v18  ;;  %v5457_v9 = vcombine.high %v1371_v3, %v1379_v4  ;;  %v5456_v15 = vcombine.low %v1371_v3, %v1379_v4  ;;  %v5443_v17 = vcombine.high %v1356_v12, %v1364_v13  ;;  %v1520_v18 = vsub.s32 5, %v5976_v27  ;;  %v1292_v10 = vld [vmem:[%s7862_s10 + $0x9b0] sm:$0xff] }
 0x4f2   :  { %4609 = vmatprep.subr.bf16.mxu0 %v5537_v19  ;;  %v1084_v19 = vld [vmem:[%s7862_s10 + $0x330] sm:$0xff] }
 0x4f3   :  { %v1300_v11 = vld [vmem:[%s7862_s10 + $0x9f0] sm:$0xff] }
 0x4f4   :  { %4569 = vmatpush2.bf16.msra.mxu1 %v5280_v30  ;;  %v1348_v30 = vld [vmem:[%s7862_s10 + $0xb70] sm:$0xff] }
 0x4f5   :  { %4610 = vmatpush2.bf16.msra.mxu0 %v5536_v20  ;;  %4570 = vmatprep.subr.bf16.mxu1 %v5265_v35  ;;  %v5442_v20 = vcombine.low %v1356_v12, %v1364_v13  ;;  %v1521_v35 = vrot.slane %v6993_v33, %v1520_v18  ;;  %v5427_v43 = vcombine.high %v1340_v29, %v1348_v30  ;;  %v1332_v33 = vld [vmem:[%s7862_s10 + $0xaf0] sm:$0xff] }
 0x4f6   :  { %4611 = vmatprep.subr.bf16.mxu0 %v5521_v37  ;;  %v5171_v37 = vcombine.high %v1084_v19, %v1092_v25  ;;  %v5426_v49 = vcombine.low %v1340_v29, %v1348_v30  ;;  %v5378_v29 = vcombine.low %v1292_v10, %v1300_v11 }
 0x4f8   :  { %4571 = vmatpush2.bf16.msra.mxu1 %v5264_v44  ;;  %v1324_v44 = vld [vmem:[%s7862_s10 + $0xab0] sm:$0xff] }
 0x4f9   :  { %4612 = vmatpush2.bf16.msra.mxu0 %v5520_v45  ;;  %4572 = vmatprep.subr.bf16.mxu1 %v5249_v46  ;;  %v5410_v1 = vcombine.low %v1324_v44, %v1332_v33 }
 0x4fa   :  { %4613 = vmatprep.subr.bf16.mxu0 %v5505_v47  ;;  %v5170_v47 = vcombine.low %v1084_v19, %v1092_v25  ;;  %v1028_v19 = vld [vmem:[%s7862_s10 + $0x170] sm:$0xff] }
 0x4fb   :  { %v1276_v25 = vld [vmem:[%s7862_s10 + $0x930] sm:$0xff] }
 0x4fc   :  { %4573 = vmatpush2.bf16.msra.mxu1 %v5248_v41 }
 0x4fd   :  { %4614 = vmatpush2.bf16.msra.mxu0 %v5504_v52  ;;  %4574 = vmatprep.subr.bf16.mxu1 %v5233_v53  ;;  %v5411_v53 = vcombine.high %v1324_v44, %v1332_v33 }
 0x4fe   :  { %4615 = vmatprep.subr.bf16.mxu0 %v5489_v54  ;;  %v1052_v54 = vld [vmem:[%s7862_s10 + $0x230] sm:$0xff] }
 0x4ff   :  { %v5139_v2 = vcombine.high %v1052_v54, %v1060_v55  ;;  %v5138_v13 = vcombine.low %v1052_v54, %v1060_v55  ;;  %v1484_v54 = vld [vmem:[%s7862_s10 + $0xfb0] sm:$0xff] }
 0x500   :  { %4575 = vmatpush2.bf16.msra.mxu1 %v5232_v61  ;;  %v1492_v55 = vld [vmem:[%s7862_s10 + $0xff0] sm:$0xff] }
 0x501   :  { %4616 = vmatpush2.bf16.msra.mxu0 %v5488_v62  ;;  %4576 = vmatprep.subr.bf16.mxu1 %v5217_v63  ;;  %v5154_v63 = vcombine.low %v1068_v39, %v1076_v40  ;;  %v1260_v39 = vld [vmem:[%s7862_s10 + $0x8b0] sm:$0xff] }
 0x502   :  { %4617 = vmatprep.subr.bf16.mxu0 %v5473_v0  ;;  %v1268_v40 = vld [vmem:[%s7862_s10 + $0x8f0] sm:$0xff] }
 0x503   :  { %v5347_v33 = vcombine.high %v1260_v39, %v1268_v40 }
 0x504   :  { %4577 = vmatpush2.bf16.msra.mxu1 %v5216_v5 }
 0x505   :  { %4618 = vmatpush2.bf16.msra.mxu0 %v5472_v6  ;;  %4578 = vmatprep.subr.bf16.mxu1 %v5201_v8  ;;  %v5395_v6 = vcombine.high %v1308_v57, %v1316_v58  ;;  %v1036_v8 = vld [vmem:[%s7862_s10 + $0x1b0] sm:$0xff] }
 0x506   :  { %4619 = vmatprep.subr.bf16.mxu0 %v5457_v9  ;;  %v1044_v9 = vld [vmem:[%s7862_s10 + $0x1f0] sm:$0xff] }
 0x508   :  { %4579 = vmatpush2.bf16.msra.mxu1 %v5200_v14  ;;  %v5394_v14 = vcombine.low %v1308_v57, %v1316_v58 }
 0x509   :  { %4620 = vmatpush2.bf16.msra.mxu0 %v5456_v15  ;;  %4630 = vmatprep.subr.bf16.mxu1 %v5187_v16  ;;  %v5123_v15 = vcombine.high %v1036_v8, %v1044_v9  ;;  %v5379_v16 = vcombine.high %v1292_v10, %v1300_v11  ;;  %v1460_v10 = vld [vmem:[%s7862_s10 + $0xef0] sm:$0xff] }
 0x50a   :  { %4671 = vmatprep.subr.bf16.mxu0 %v5443_v17  ;;  %v1020_v17 = vld [vmem:[%s7862_s10 + $0x130] sm:$0xff] }
 0x50b   :  { %v4336_v42 = vpop.f32.mrf.mxu1  ;;  %4581 = vmatmul.mubr.bf16.vlgmr.msra.gmra.mxu1 %v6408_v23  ;;  %v5107_v30 = vcombine.high %v1020_v17, %v1028_v19 }
 0x50c   :  { %v4337_v45 = vadd.f32 %v4336_v42, %v1517_v26  ;;  %v4377_v46 = vpop.f32.mrf.mxu0  ;;  %4622 = vmatmul.mubr.bf16.vlgmr.msra.gmra.mxu0 %v6410_v24  ;;  %4631 = vmatpush1.bf16.msra.mxu1 %v5186_v28  ;;  %v1284_v26 = vld [vmem:[%s7862_s10 + $0x970] sm:$0xff]  ;;  %v5122_v28 = vcombine.low %v1036_v8, %v1044_v9  ;;  %v5106_v42 = vcombine.low %v1020_v17, %v1028_v19 }
 0x50d   :  { %4662 = vmatprep.mubr.bf16.mxu1 %v6404_v21  ;;  %4672 = vmatpush1.bf16.msra.mxu0 %v5442_v20  ;;  %v4338_v48 = vpop.f32.mrf.mxu1  ;;  %v5363_v20 = vcombine.high %v1276_v25, %v1284_v26  ;;  %v1204_v8 = vld [vmem:[%s7862_s10 + $0x6f0] sm:$0xff] }
 0x50e   :  { %v4378_v51 = vadd.f32 %v4377_v46, %v4337_v45  ;;  %4703 = vmatprep.mubr.bf16.mxu0 %v6406_v22  ;;  %v4339_v41 = vadd.f32 %v4338_v48, %v1521_v35  ;;  %v4379_v52 = vpop.f32.mrf.mxu0  ;;  %4632 = vmatprep.subr.bf16.mxu1 %v5171_v37  ;;  %v1004_v35 = vld [vmem:[%s7862_s10 + $0xb0] sm:$0xff] }
 0x50f   :  { %v4340_v56 = vpop.f32.mrf.mxu1  ;;  %4673 = vmatprep.subr.bf16.mxu0 %v5427_v43  ;;  %v1012_v37 = vld [vmem:[%s7862_s10 + $0xf0] sm:$0xff]  ;;  %v5362_v43 = vcombine.low %v1276_v25, %v1284_v26 }
 0x510   :  { %v4380_v61 = vadd.f32 %v4379_v52, %v4339_v41  ;;  %v4381_v62 = vpop.f32.mrf.mxu0  ;;  %4633 = vmatpush1.bf16.msra.mxu1 %v5170_v47  ;;  %v4798_v3 = vmax.f32 %v4378_v51, 0.0  ;;  %v5091_v44 = vcombine.high %v1004_v35, %v1012_v37  ;;  %v988_v45 = vld [vmem:[%s7862_s10 + $0x30] sm:$0xff] }
 0x511   :  { %4674 = vmatpush1.bf16.msra.mxu0 %v5426_v49  ;;  %v4341_v0 = vpop.f32.mrf.mxu1  ;;  %4634 = vmatprep.subr.bf16.mxu1 %v5155_v50  ;;  %v996_v46 = vld [vmem:[%s7862_s10 + $0x70] sm:$0xff]  ;;  %v5090_v49 = vcombine.low %v1004_v35, %v1012_v37  ;;  %v5346_v50 = vcombine.low %v1260_v39, %v1268_v40 }
 0x512   :  { %v4799_v4 = vmax.f32 %v4380_v61, 0.0  ;;  %v4382_v5 = vpop.f32.mrf.mxu0  ;;  %4675 = vmatprep.subr.bf16.mxu0 %v5411_v53  ;;  %v1244_v47 = vld [vmem:[%s7862_s10 + $0x830] sm:$0xff]  ;;  %v5075_v51 = vcombine.high %v988_v45, %v996_v46  ;;  %v5074_v56 = vcombine.low %v988_v45, %v996_v46  ;;  %v5571_v61 = vcombine.high %v1484_v54, %v1492_v55 }
 0x513   :  { %v1252_v48 = vld [vmem:[%s7862_s10 + $0x870] sm:$0xff] }
 0x514   :  { %v7463_v12 = vpack.c.bf16 %v4799_v4, %v4798_v3  ;;  %4635 = vmatpush1.bf16.msra.mxu1 %v5154_v63  ;;  %v5331_v41 = vcombine.high %v1244_v47, %v1252_v48  ;;  %v1228_v52 = vld [vmem:[%s7862_s10 + $0x7b0] sm:$0xff]  ;;  %v5330_v57 = vcombine.low %v1244_v47, %v1252_v48  ;;  %v5570_v3 = vcombine.low %v1484_v54, %v1492_v55 }
 0x515   :  { %4676 = vmatpush1.bf16.msra.mxu0 %v5410_v1  ;;  %4636 = vmatprep.subr.bf16.mxu1 %v5139_v2  ;;  %v1236_v53 = vld [vmem:[%s7862_s10 + $0x7f0] sm:$0xff] }
 0x516   :  { %4677 = vmatprep.subr.bf16.mxu0 %v5395_v6  ;;  %v5315_v58 = vcombine.high %v1228_v52, %v1236_v53  ;;  %v1212_v62 = vld [vmem:[%s7862_s10 + $0x730] sm:$0xff]  ;;  %v5314_v2 = vcombine.low %v1228_v52, %v1236_v53 }
 0x517   :  { %v1220_v63 = vld [vmem:[%s7862_s10 + $0x770] sm:$0xff] }
 0x518   :  { %4637 = vmatpush1.bf16.msra.mxu1 %v5138_v13  ;;  %v1468_v0 = vld [vmem:[%s7862_s10 + $0xf30] sm:$0xff]  ;;  %v5299_v4 = vcombine.high %v1212_v62, %v1220_v63  ;;  %v5298_v11 = vcombine.low %v1212_v62, %v1220_v63 }
 0x519   :  { %4678 = vmatpush1.bf16.msra.mxu0 %v5394_v14  ;;  %4638 = vmatprep.subr.bf16.mxu1 %v5123_v15  ;;  %v1476_v1 = vld [vmem:[%s7862_s10 + $0xf70] sm:$0xff] }
 0x51a   :  { %4679 = vmatprep.subr.bf16.mxu0 %v5379_v16  ;;  %v5555_v5 = vcombine.high %v1468_v0, %v1476_v1  ;;  %v1196_v6 = vld [vmem:[%s7862_s10 + $0x6b0] sm:$0xff]  ;;  %v5554_v13 = vcombine.low %v1468_v0, %v1476_v1 }
 0x51b   :  { %v1452_v9 = vld [vmem:[%s7862_s10 + $0xeb0] sm:$0xff]  ;;  %v5283_v14 = vcombine.high %v1196_v6, %v1204_v8  ;;  %v5282_v26 = vcombine.low %v1196_v6, %v1204_v8  ;;  %v1109_v6 = vld [vmem:[%s7862_s10 + $0x3f8] sm:$0xff] }
 0x51c   :  { %4639 = vmatpush1.bf16.msra.mxu1 %v5122_v28  ;;  %v5539_v15 = vcombine.high %v1452_v9, %v1460_v10  ;;  %v1180_v16 = vld [vmem:[%s7862_s10 + $0x630] sm:$0xff]  ;;  %v5538_v28 = vcombine.low %v1452_v9, %v1460_v10  ;;  %v1357_v8 = vld [vmem:[%s7862_s10 + $0xbb8] sm:$0xff] }
 0x51d   :  { %4680 = vmatpush1.bf16.msra.mxu0 %v5378_v29  ;;  %4640 = vmatprep.subr.bf16.mxu1 %v5107_v30  ;;  %v1188_v17 = vld [vmem:[%s7862_s10 + $0x670] sm:$0xff]  ;;  %v1365_v9 = vld [vmem:[%s7862_s10 + $0xbf8] sm:$0xff] }
 0x51e   :  { %4681 = vmatprep.subr.bf16.mxu0 %v5363_v20  ;;  %v1436_v19 = vld [vmem:[%s7862_s10 + $0xe30] sm:$0xff]  ;;  %v5267_v29 = vcombine.high %v1180_v16, %v1188_v17  ;;  %v5266_v40 = vcombine.low %v1180_v16, %v1188_v17  ;;  %v1085_v16 = vld [vmem:[%s7862_s10 + $0x338] sm:$0xff] }
 0x51f   :  { %v1444_v25 = vld [vmem:[%s7862_s10 + $0xe70] sm:$0xff]  ;;  %v1093_v17 = vld [vmem:[%s7862_s10 + $0x378] sm:$0xff] }
 0x520   :  { %4641 = vmatpush1.bf16.msra.mxu1 %v5106_v42  ;;  %v5523_v30 = vcombine.high %v1436_v19, %v1444_v25  ;;  %v1164_v20 = vld [vmem:[%s7862_s10 + $0x5b0] sm:$0xff]  ;;  %v5522_v42 = vcombine.low %v1436_v19, %v1444_v25  ;;  %v5770_v19 = vld [vmem:[%s7863_s11] sm:$0xff] }
 0x521   :  { %4682 = vmatpush1.bf16.msra.mxu0 %v5362_v43  ;;  %4642 = vmatprep.subr.bf16.mxu1 %v5091_v44  ;;  %v1172_v35 = vld [vmem:[%s7862_s10 + $0x5f0] sm:$0xff]  ;;  %v1525_v25 = vrot.slane %v5770_v19, %v5997_v34 }
 0x522   :  { %4683 = vmatprep.subr.bf16.mxu0 %v5347_v33  ;;  %v1420_v37 = vld [vmem:[%s7862_s10 + $0xdb0] sm:$0xff]  ;;  %v5251_v43 = vcombine.high %v1164_v20, %v1172_v35  ;;  %v5250_v48 = vcombine.low %v1164_v20, %v1172_v35  ;;  %v5173_v35 = vcombine.high %v1085_v16, %v1093_v17 }
 0x523   :  { %v1428_v39 = vld [vmem:[%s7862_s10 + $0xdf0] sm:$0xff] }
 0x524   :  { %4643 = vmatpush1.bf16.msra.mxu1 %v5090_v49  ;;  %v5507_v44 = vcombine.high %v1420_v37, %v1428_v39  ;;  %v1148_v33 = vld [vmem:[%s7862_s10 + $0x530] sm:$0xff]  ;;  %v5506_v49 = vcombine.low %v1420_v37, %v1428_v39  ;;  %v1069_v37 = vld [vmem:[%s7862_s10 + $0x2b8] sm:$0xff] }
 0x525   :  { %4684 = vmatpush1.bf16.msra.mxu0 %v5346_v50  ;;  %4644 = vmatprep.subr.bf16.mxu1 %v5075_v51  ;;  %v1156_v45 = vld [vmem:[%s7862_s10 + $0x570] sm:$0xff]  ;;  %v1077_v39 = vld [vmem:[%s7862_s10 + $0x2f8] sm:$0xff] }
 0x526   :  { %4685 = vmatprep.subr.bf16.mxu0 %v5331_v41  ;;  %v1404_v46 = vld [vmem:[%s7862_s10 + $0xd30] sm:$0xff]  ;;  %v5235_v50 = vcombine.high %v1148_v33, %v1156_v45  ;;  %v5234_v55 = vcombine.low %v1148_v33, %v1156_v45 }
 0x527   :  { %v1412_v47 = vld [vmem:[%s7862_s10 + $0xd70] sm:$0xff] }
 0x528   :  { %4645 = vmatpush1.bf16.msra.mxu1 %v5074_v56  ;;  %v5491_v51 = vcombine.high %v1404_v46, %v1412_v47  ;;  %v1132_v41 = vld [vmem:[%s7862_s10 + $0x4b0] sm:$0xff]  ;;  %v5490_v56 = vcombine.low %v1404_v46, %v1412_v47  ;;  %v5172_v46 = vcombine.low %v1085_v16, %v1093_v17 }
 0x529   :  { %4686 = vmatpush1.bf16.msra.mxu0 %v5330_v57  ;;  %4646 = vmatprep.subr.bf16.mxu1 %v5315_v58  ;;  %v1140_v52 = vld [vmem:[%s7862_s10 + $0x4f0] sm:$0xff] }
 0x52a   :  { %4687 = vmatprep.subr.bf16.mxu0 %v5571_v61  ;;  %v1388_v53 = vld [vmem:[%s7862_s10 + $0xcb0] sm:$0xff]  ;;  %v5219_v57 = vcombine.high %v1132_v41, %v1140_v52  ;;  %v5218_v1 = vcombine.low %v1132_v41, %v1140_v52 }
 0x52b   :  { %v1396_v54 = vld [vmem:[%s7862_s10 + $0xcf0] sm:$0xff] }
 0x52c   :  { %4647 = vmatpush2.bf16.msra.mxu1 %v5314_v2  ;;  %v5475_v58 = vcombine.high %v1388_v53, %v1396_v54  ;;  %v1116_v61 = vld [vmem:[%s7862_s10 + $0x430] sm:$0xff]  ;;  %v5474_v2 = vcombine.low %v1388_v53, %v1396_v54  ;;  %v1053_v53 = vld [vmem:[%s7862_s10 + $0x238] sm:$0xff] }
 0x52d   :  { %4688 = vmatpush2.bf16.msra.mxu0 %v5570_v3  ;;  %4648 = vmatprep.subr.bf16.mxu1 %v5299_v4  ;;  %v1124_v62 = vld [vmem:[%s7862_s10 + $0x470] sm:$0xff]  ;;  %v1061_v54 = vld [vmem:[%s7862_s10 + $0x278] sm:$0xff] }
 0x52e   :  { %4689 = vmatprep.subr.bf16.mxu0 %v5555_v5  ;;  %v1372_v63 = vld [vmem:[%s7862_s10 + $0xc30] sm:$0xff]  ;;  %v5203_v3 = vcombine.high %v1116_v61, %v1124_v62  ;;  %v1101_v5 = vld [vmem:[%s7862_s10 + $0x3b8] sm:$0xff]  ;;  %v5202_v10 = vcombine.low %v1116_v61, %v1124_v62 }
 0x52f   :  { %v1380_v0 = vld [vmem:[%s7862_s10 + $0xc70] sm:$0xff] }
 0x530   :  { %4649 = vmatpush2.bf16.msra.mxu1 %v5298_v11  ;;  %v5459_v4 = vcombine.high %v1372_v63, %v1380_v0  ;;  %v5458_v11 = vcombine.low %v1372_v63, %v1380_v0  ;;  %v5141_v63 = vcombine.high %v1053_v53, %v1061_v54 }
 0x531   :  { %4690 = vmatpush2.bf16.msra.mxu0 %v5554_v13  ;;  %4650 = vmatprep.subr.bf16.mxu1 %v5283_v14  ;;  %v5189_v13 = vcombine.high %v1101_v5, %v1109_v6  ;;  %v5445_v14 = vcombine.high %v1357_v8, %v1365_v9 }
 0x532   :  { %4691 = vmatprep.subr.bf16.mxu0 %v5539_v15  ;;  %v1528_v15 = vsub.s32 7, %v5976_v27 }
 0x534   :  { %4651 = vmatpush2.bf16.msra.mxu1 %v5282_v26  ;;  %v5188_v26 = vcombine.low %v1101_v5, %v1109_v6  ;;  %v1529_v20 = vrot.slane %v5770_v19, %v1528_v15  ;;  %v1045_v5 = vld [vmem:[%s7862_s10 + $0x1f8] sm:$0xff] }
 0x535   :  { %4692 = vmatpush2.bf16.msra.mxu0 %v5538_v28  ;;  %4652 = vmatprep.subr.bf16.mxu1 %v5267_v29  ;;  %v1341_v28 = vld [vmem:[%s7862_s10 + $0xb38] sm:$0xff] }
 0x536   :  { %4693 = vmatprep.subr.bf16.mxu0 %v5523_v30  ;;  %v1349_v29 = vld [vmem:[%s7862_s10 + $0xb78] sm:$0xff]  ;;  %v5444_v30 = vcombine.low %v1357_v8, %v1365_v9 }
 0x537   :  { %v1293_v6 = vld [vmem:[%s7862_s10 + $0x9b8] sm:$0xff] }
 0x538   :  { %4653 = vmatpush2.bf16.msra.mxu1 %v5266_v40  ;;  %v1301_v8 = vld [vmem:[%s7862_s10 + $0x9f8] sm:$0xff] }
 0x539   :  { %4694 = vmatpush2.bf16.msra.mxu0 %v5522_v42  ;;  %4654 = vmatprep.subr.bf16.mxu1 %v5251_v43  ;;  %v5429_v42 = vcombine.high %v1341_v28, %v1349_v29  ;;  %v1325_v43 = vld [vmem:[%s7862_s10 + $0xab8] sm:$0xff]  ;;  %v5381_v17 = vcombine.high %v1293_v6, %v1301_v8 }
 0x53a   :  { %4695 = vmatprep.subr.bf16.mxu0 %v5507_v44  ;;  %v1333_v44 = vld [vmem:[%s7862_s10 + $0xaf8] sm:$0xff] }
 0x53b   :  { %v5413_v52 = vcombine.high %v1325_v43, %v1333_v44  ;;  %v5412_v62 = vcombine.low %v1325_v43, %v1333_v44  ;;  %v1021_v19 = vld [vmem:[%s7862_s10 + $0x138] sm:$0xff] }
 0x53c   :  { %4655 = vmatpush2.bf16.msra.mxu1 %v5250_v48  ;;  %v5428_v48 = vcombine.low %v1341_v28, %v1349_v29  ;;  %v1261_v43 = vld [vmem:[%s7862_s10 + $0x8b8] sm:$0xff] }
 0x53d   :  { %4696 = vmatpush2.bf16.msra.mxu0 %v5506_v49  ;;  %4656 = vmatprep.subr.bf16.mxu1 %v5235_v50  ;;  %v5157_v49 = vcombine.high %v1069_v37, %v1077_v39 }
 0x53e   :  { %4697 = vmatprep.subr.bf16.mxu0 %v5491_v51 }
 0x540   :  { %4657 = vmatpush2.bf16.msra.mxu1 %v5234_v55  ;;  %v1309_v55 = vld [vmem:[%s7862_s10 + $0xa38] sm:$0xff] }
 0x541   :  { %4698 = vmatpush2.bf16.msra.mxu0 %v5490_v56  ;;  %4658 = vmatprep.subr.bf16.mxu1 %v5219_v57 }
 0x542   :  { %4699 = vmatprep.subr.bf16.mxu0 %v5475_v58  ;;  %v5156_v58 = vcombine.low %v1069_v37, %v1077_v39 }
 0x544   :  { %4659 = vmatpush2.bf16.msra.mxu1 %v5218_v1 }
 0x545   :  { %4700 = vmatpush2.bf16.msra.mxu0 %v5474_v2  ;;  %4660 = vmatprep.subr.bf16.mxu1 %v5203_v3 }
 0x546   :  { %4701 = vmatprep.subr.bf16.mxu0 %v5459_v4  ;;  %v1037_v4 = vld [vmem:[%s7862_s10 + $0x1b8] sm:$0xff] }
 0x547   :  { %v5124_v29 = vcombine.low %v1037_v4, %v1045_v5 }
 0x548   :  { %4661 = vmatpush2.bf16.msra.mxu1 %v5202_v10  ;;  %v5140_v10 = vcombine.low %v1053_v53, %v1061_v54 }
 0x549   :  { %4702 = vmatpush2.bf16.msra.mxu0 %v5458_v11  ;;  %4712 = vmatprep.subr.bf16.mxu1 %v5189_v13  ;;  %v5125_v13 = vcombine.high %v1037_v4, %v1045_v5 }
 0x54a   :  { %4753 = vmatprep.subr.bf16.mxu0 %v5445_v14  ;;  %v4873_v14 = vrot.slane %v7463_v12, %v7242_v7  ;;  %v1285_v12 = vld [vmem:[%s7862_s10 + $0x978] sm:$0xff] }
 0x54b   :  { %v4418_v40 = vpop.f32.mrf.mxu1  ;;  %4663 = vmatmul.mubr.bf16.vlgmr.msra.gmra.mxu1 %v6408_v23 }
 0x54c   :  { %v4419_v33 = vadd.f32 %v4418_v40, %v1525_v25  ;;  %v4459_v45 = vpop.f32.mrf.mxu0  ;;  %4704 = vmatmul.mubr.bf16.vlgmr.msra.gmra.mxu0 %v6410_v24  ;;  %4713 = vmatpush1.bf16.msra.mxu1 %v5188_v26  ;;  %v1029_v25 = vld [vmem:[%s7862_s10 + $0x178] sm:$0xff] }
 0x54d   :  { %4744 = vmatprep.mubr.bf16.mxu1 %v6404_v21  ;;  %4754 = vmatpush1.bf16.msra.mxu0 %v5444_v30  ;;  %v4420_v47 = vpop.f32.mrf.mxu1  ;;  %v1277_v26 = vld [vmem:[%s7862_s10 + $0x938] sm:$0xff]  ;;  %v5380_v30 = vcombine.low %v1293_v6, %v1301_v8 }
 0x54e   :  { %v4460_v50 = vadd.f32 %v4459_v45, %v4419_v33  ;;  %4785 = vmatprep.mubr.bf16.mxu0 %v6406_v22  ;;  %v4421_v51 = vadd.f32 %v4420_v47, %v1529_v20  ;;  %v4461_v41 = vpop.f32.mrf.mxu0  ;;  %4714 = vmatprep.subr.bf16.mxu1 %v5173_v35  ;;  %v1317_v22 = vld [vmem:[%s7862_s10 + $0xa78] sm:$0xff]  ;;  %v5109_v20 = vcombine.high %v1021_v19, %v1029_v25 }
 0x54f   :  { %v4422_v21 = vpop.f32.mrf.mxu1  ;;  %4755 = vmatprep.subr.bf16.mxu0 %v5429_v42  ;;  %v5397_v3 = vcombine.high %v1309_v55, %v1317_v22  ;;  %v5396_v11 = vcombine.low %v1309_v55, %v1317_v22  ;;  %v4889_v35 = vrot.slane %v7271_v31, %v7242_v7  ;;  %v5365_v39 = vcombine.high %v1277_v26, %v1285_v12  ;;  %v1005_v40 = vld [vmem:[%s7862_s10 + $0xb8] sm:$0xff] }
 0x550   :  { %v4462_v56 = vadd.f32 %v4461_v41, %v4421_v51  ;;  %v4463_v57 = vpop.f32.mrf.mxu0  ;;  %4715 = vmatpush1.bf16.msra.mxu1 %v5172_v46  ;;  %v4800_v0 = vmax.f32 %v4460_v50, 0.0  ;;  %v1013_v42 = vld [vmem:[%s7862_s10 + $0xf8] sm:$0xff]  ;;  %v5108_v33 = vcombine.low %v1021_v19, %v1029_v25  ;;  %v5364_v45 = vcombine.low %v1277_v26, %v1285_v12 }
 0x551   :  { %4756 = vmatpush1.bf16.msra.mxu0 %v5428_v48  ;;  %v4423_v61 = vpop.f32.mrf.mxu1  ;;  %4716 = vmatprep.subr.bf16.mxu1 %v5157_v49  ;;  %v1269_v31 = vld [vmem:[%s7862_s10 + $0x8f8] sm:$0xff]  ;;  %v5093_v46 = vcombine.high %v1005_v40, %v1013_v42  ;;  %v5092_v41 = vcombine.low %v1005_v40, %v1013_v42 }
 0x552   :  { %v4801_v1 = vmax.f32 %v4462_v56, 0.0  ;;  %v4464_v2 = vpop.f32.mrf.mxu0  ;;  %4757 = vmatprep.subr.bf16.mxu0 %v5413_v52  ;;  %v5349_v47 = vcombine.high %v1261_v43, %v1269_v31  ;;  %v989_v48 = vld [vmem:[%s7862_s10 + $0x38] sm:$0xff]  ;;  %v5348_v52 = vcombine.low %v1261_v43, %v1269_v31 }
 0x553   :  { %v997_v49 = vld [vmem:[%s7862_s10 + $0x78] sm:$0xff] }
 0x554   :  { %v5577_v9 = vpack.c.bf16 %v4801_v1, %v4800_v0  ;;  %4717 = vmatpush1.bf16.msra.mxu1 %v5156_v58  ;;  %v1245_v50 = vld [vmem:[%s7862_s10 + $0x838] sm:$0xff]  ;;  %v5077_v53 = vcombine.high %v989_v48, %v997_v49  ;;  %v5076_v57 = vcombine.low %v989_v48, %v997_v49 }
 0x555   :  { %4758 = vmatpush1.bf16.msra.mxu0 %v5412_v62  ;;  %4718 = vmatprep.subr.bf16.mxu1 %v5141_v63  ;;  %v1253_v51 = vld [vmem:[%s7862_s10 + $0x878] sm:$0xff] }
 0x556   :  { %v4880_v16 = vrot.slane %v5577_v9, %v7242_v7  ;;  %4759 = vmatprep.subr.bf16.mxu0 %v5397_v3  ;;  %v5333_v54 = vcombine.high %v1245_v50, %v1253_v51  ;;  %v1229_v21 = vld [vmem:[%s7862_s10 + $0x7b8] sm:$0xff]  ;;  %v5332_v58 = vcombine.low %v1245_v50, %v1253_v51 }
 0x557   :  { %v1237_v55 = vld [vmem:[%s7862_s10 + $0x7f8] sm:$0xff] }
 0x558   :  { %v4882_v28 = vcombine.low %v4873_v14, %v4880_v16  ;;  %4719 = vmatpush1.bf16.msra.mxu1 %v5140_v10  ;;  %v1485_v22 = vld [vmem:[%s7862_s10 + $0xfb8] sm:$0xff]  ;;  %v5317_v61 = vcombine.high %v1229_v21, %v1237_v55  ;;  %v5316_v3 = vcombine.low %v1229_v21, %v1237_v55 }
 0x559   :  { %4760 = vmatpush1.bf16.msra.mxu0 %v5396_v11  ;;  %4720 = vmatprep.subr.bf16.mxu1 %v5125_v13  ;;  %v1493_v56 = vld [vmem:[%s7862_s10 + $0xff8] sm:$0xff] }
 0x55a   :  { %v4896_v37 = vrot.slane %v4882_v28, %v7242_v7  ;;  %4761 = vmatprep.subr.bf16.mxu0 %v5381_v17  ;;  %v5573_v62 = vcombine.high %v1485_v22, %v1493_v56  ;;  %v1213_v63 = vld [vmem:[%s7862_s10 + $0x738] sm:$0xff]  ;;  %v5572_v4 = vcombine.low %v1485_v22, %v1493_v56 }
 0x55b   :  { %v1221_v0 = vld [vmem:[%s7862_s10 + $0x778] sm:$0xff] }
 0x55c   :  { %v4897_v44 = vcombine.low %v4889_v35, %v4896_v37  ;;  %4721 = vmatpush1.bf16.msra.mxu1 %v5124_v29  ;;  %v1469_v1 = vld [vmem:[%s7862_s10 + $0xf38] sm:$0xff]  ;;  %v5301_v5 = vcombine.high %v1213_v63, %v1221_v0  ;;  %v5300_v13 = vcombine.low %v1213_v63, %v1221_v0 }
 0x55d   :  { %4762 = vmatpush1.bf16.msra.mxu0 %v5380_v30  ;;  %4722 = vmatprep.subr.bf16.mxu1 %v5109_v20  ;;  %v1477_v2 = vld [vmem:[%s7862_s10 + $0xf78] sm:$0xff] }
 0x55e   :  { %4949 = vst [vmem:[%s7866_s14] sm:$0xff] %v4897_v44  ;;  %4763 = vmatprep.subr.bf16.mxu0 %v5365_v39  ;;  %v5557_v6 = vcombine.high %v1469_v1, %v1477_v2  ;;  %v1197_v8 = vld [vmem:[%s7862_s10 + $0x6b8] sm:$0xff]  ;;  %v5556_v14 = vcombine.low %v1469_v1, %v1477_v2 }
 0x55f   :  { %v1205_v9 = vld [vmem:[%s7862_s10 + $0x6f8] sm:$0xff] }
 0x560   :  { %4723 = vmatpush1.bf16.msra.mxu1 %v5108_v33  ;;  %v1453_v10 = vld [vmem:[%s7862_s10 + $0xeb8] sm:$0xff]  ;;  %v5285_v16 = vcombine.high %v1197_v8, %v1205_v9  ;;  %v5284_v28 = vcombine.low %v1197_v8, %v1205_v9 }
 0x561   :  { %4764 = vmatpush1.bf16.msra.mxu0 %v5364_v45  ;;  %4724 = vmatprep.subr.bf16.mxu1 %v5093_v46  ;;  %v1461_v11 = vld [vmem:[%s7862_s10 + $0xef8] sm:$0xff] }
 0x562   :  { %4765 = vmatprep.subr.bf16.mxu0 %v5349_v47  ;;  %v5541_v17 = vcombine.high %v1453_v10, %v1461_v11  ;;  %v1181_v19 = vld [vmem:[%s7862_s10 + $0x638] sm:$0xff]  ;;  %v5540_v29 = vcombine.low %v1453_v10, %v1461_v11 }
 0x563   :  { %v1189_v25 = vld [vmem:[%s7862_s10 + $0x678] sm:$0xff] }
 0x564   :  { %4725 = vmatpush1.bf16.msra.mxu1 %v5092_v41  ;;  %v1437_v26 = vld [vmem:[%s7862_s10 + $0xe38] sm:$0xff]  ;;  %v5269_v30 = vcombine.high %v1181_v19, %v1189_v25  ;;  %v5268_v42 = vcombine.low %v1181_v19, %v1189_v25 }
 0x565   :  { %4766 = vmatpush1.bf16.msra.mxu0 %v5348_v52  ;;  %4726 = vmatprep.subr.bf16.mxu1 %v5077_v53  ;;  %v1445_v12 = vld [vmem:[%s7862_s10 + $0xe78] sm:$0xff] }
 0x566   :  { %4767 = vmatprep.subr.bf16.mxu0 %v5333_v54  ;;  %v5525_v20 = vcombine.high %v1437_v26, %v1445_v12  ;;  %v1165_v35 = vld [vmem:[%s7862_s10 + $0x5b8] sm:$0xff]  ;;  %v5524_v43 = vcombine.low %v1437_v26, %v1445_v12 }
 0x567   :  { %v1173_v37 = vld [vmem:[%s7862_s10 + $0x5f8] sm:$0xff] }
 0x568   :  { %4727 = vmatpush1.bf16.msra.mxu1 %v5076_v57  ;;  %v1421_v39 = vld [vmem:[%s7862_s10 + $0xdb8] sm:$0xff]  ;;  %v5253_v31 = vcombine.high %v1165_v35, %v1173_v37  ;;  %v5252_v48 = vcombine.low %v1165_v35, %v1173_v37 }
 0x569   :  { %4768 = vmatpush1.bf16.msra.mxu0 %v5332_v58  ;;  %4728 = vmatprep.subr.bf16.mxu1 %v5317_v61  ;;  %v1429_v40 = vld [vmem:[%s7862_s10 + $0xdf8] sm:$0xff] }
 0x56a   :  { %4769 = vmatprep.subr.bf16.mxu0 %v5573_v62  ;;  %v5509_v44 = vcombine.high %v1421_v39, %v1429_v40  ;;  %v1149_v33 = vld [vmem:[%s7862_s10 + $0x538] sm:$0xff]  ;;  %v5508_v49 = vcombine.low %v1421_v39, %v1429_v40 }
 0x56b   :  { %v1157_v45 = vld [vmem:[%s7862_s10 + $0x578] sm:$0xff] }
 0x56c   :  { %4729 = vmatpush2.bf16.msra.mxu1 %v5316_v3  ;;  %v1405_v46 = vld [vmem:[%s7862_s10 + $0xd38] sm:$0xff]  ;;  %v5237_v50 = vcombine.high %v1149_v33, %v1157_v45  ;;  %v5236_v21 = vcombine.low %v1149_v33, %v1157_v45 }
 0x56d   :  { %4770 = vmatpush2.bf16.msra.mxu0 %v5572_v4  ;;  %4730 = vmatprep.subr.bf16.mxu1 %v5301_v5  ;;  %v1413_v47 = vld [vmem:[%s7862_s10 + $0xd78] sm:$0xff]  ;;  %v7812_v5 = vld [vmem:[%s7863_s11 + $0x8] sm:$0xff] }
 0x56e   :  { %4771 = vmatprep.subr.bf16.mxu0 %v5557_v6  ;;  %v5493_v51 = vcombine.high %v1405_v46, %v1413_v47  ;;  %v1133_v41 = vld [vmem:[%s7862_s10 + $0x4b8] sm:$0xff]  ;;  %v5492_v55 = vcombine.low %v1405_v46, %v1413_v47  ;;  %v1533_v6 = vrot.slane %v7812_v5, %v6003_v36  ;;  %v1537_v8 = vrot.slane %v7812_v5, %v6383_v59 }
 0x56f   :  { %v1141_v52 = vld [vmem:[%s7862_s10 + $0x4f8] sm:$0xff]  ;;  %v1541_v59 = vrot.slane %v7812_v5, %v5991_v32 }
 0x570   :  { %4731 = vmatpush2.bf16.msra.mxu1 %v5300_v13  ;;  %v1389_v53 = vld [vmem:[%s7862_s10 + $0xcb8] sm:$0xff]  ;;  %v5221_v22 = vcombine.high %v1133_v41, %v1141_v52  ;;  %v5220_v63 = vcombine.low %v1133_v41, %v1141_v52 }
 0x571   :  { %4772 = vmatpush2.bf16.msra.mxu0 %v5556_v14  ;;  %4732 = vmatprep.subr.bf16.mxu1 %v5285_v16  ;;  %v1397_v54 = vld [vmem:[%s7862_s10 + $0xcf8] sm:$0xff] }
 0x572   :  { %4773 = vmatprep.subr.bf16.mxu0 %v5541_v17  ;;  %v5477_v56 = vcombine.high %v1389_v53, %v1397_v54  ;;  %v1117_v57 = vld [vmem:[%s7862_s10 + $0x438] sm:$0xff]  ;;  %v5476_v0 = vcombine.low %v1389_v53, %v1397_v54 }
 0x573   :  { %v1125_v58 = vld [vmem:[%s7862_s10 + $0x478] sm:$0xff] }
 0x574   :  { %4733 = vmatpush2.bf16.msra.mxu1 %v5284_v28  ;;  %v1373_v61 = vld [vmem:[%s7862_s10 + $0xc38] sm:$0xff]  ;;  %v5205_v1 = vcombine.high %v1117_v57, %v1125_v58  ;;  %v5204_v3 = vcombine.low %v1117_v57, %v1125_v58 }
 0x575   :  { %4774 = vmatpush2.bf16.msra.mxu0 %v5540_v29  ;;  %4734 = vmatprep.subr.bf16.mxu1 %v5269_v30  ;;  %v1381_v62 = vld [vmem:[%s7862_s10 + $0xc78] sm:$0xff]  ;;  %s5821_s10 = smov [#allocation2]  }
 0x576   :  { %4775 = vmatprep.subr.bf16.mxu0 %v5525_v20  ;;  %v5461_v2 = vcombine.high %v1373_v61, %v1381_v62  ;;  %v5460_v4 = vcombine.low %v1373_v61, %v1381_v62  ;;  %s4957_s11 = sshll.u32 %s5821_s10, 4  ;;  %s4958_s11 = int_to_ptr.vmem [resolvable:$true] %s4957_s11 }
 0x577   :  { %s5771_s19 = scalar_lea.vmem %s4958_s11, 32  ;;  %p5776_p1 = scmp.lt.s32.totalorder %s4958_s11, %s4958_s11 }
 0x578   :  { %4735 = vmatpush2.bf16.msra.mxu1 %v5268_v42  ;;  %p5772_p0 = scmp.ne.s32.totalorder %s4958_s11, %s5771_s19  ;;  %p5777_p2 = scmp.lt.s32.totalorder %s5771_s19, %s5771_s19 }
 0x579   :  { %4776 = vmatpush2.bf16.msra.mxu0 %v5524_v43  ;;  %4736 = vmatprep.subr.bf16.mxu1 %v5253_v31 }
 0x57a   :  { %4777 = vmatprep.subr.bf16.mxu0 %v5509_v44  ;;  %p5778_p3 = por %p5777_p2, %p5776_p1 }
 0x57c   :  { %4737 = vmatpush2.bf16.msra.mxu1 %v5252_v48  ;;  %p5779_p4 = pnand %p5778_p3, %p5772_p0 }
 0x57d   :  { %4778 = vmatpush2.bf16.msra.mxu0 %v5508_v49  ;;  %4738 = vmatprep.subr.bf16.mxu1 %v5237_v50 }
 0x57e   :  { %4779 = vmatprep.subr.bf16.mxu0 %v5493_v51 }
 0x580   :  { %4739 = vmatpush2.bf16.msra.mxu1 %v5236_v21 }
 0x581   :  { %4780 = vmatpush2.bf16.msra.mxu0 %v5492_v55  ;;  %4740 = vmatprep.subr.bf16.mxu1 %v5221_v22 }
 0x582   :  { %4781 = vmatprep.subr.bf16.mxu0 %v5477_v56 }
 0x584   :  { %4741 = vmatpush2.bf16.msra.mxu1 %v5220_v63 }
 0x585   :  { %4782 = vmatpush2.bf16.msra.mxu0 %v5476_v0  ;;  %4742 = vmatprep.subr.bf16.mxu1 %v5205_v1 }
 0x586   :  { %4783 = vmatprep.subr.bf16.mxu0 %v5461_v2 }
 0x588   :  { %4743 = vmatpush2.bf16.msra.mxu1 %v5204_v3 }
 0x589   :  { %4784 = vmatpush2.bf16.msra.mxu0 %v5460_v4 }
 0x58b   :  { %v4500_v9 = vpop.f32.mrf.mxu1  ;;  %4745 = vmatmul.mubr.bf16.vlgmr.msra.gmra.mxu1 %v6408_v23  ;;  %v1545_v23 = vrot.slane %v7812_v5, %v6386_v60 }
 0x58c   :  { %v4501_v10 = vadd.f32 %v4500_v9, %v1533_v6  ;;  %v4541_v11 = vpop.f32.mrf.mxu0  ;;  %4786 = vmatmul.mubr.bf16.vlgmr.msra.gmra.mxu0 %v6410_v24 }
 0x58d   :  { %v4502_v13 = vpop.f32.mrf.mxu1 }
 0x58e   :  { %v4542_v14 = vadd.f32 %v4541_v11, %v4501_v10  ;;  %v4503_v16 = vadd.f32 %v4502_v13, %v1537_v8  ;;  %v4543_v17 = vpop.f32.mrf.mxu0 }
 0x58f   :  { %v4504_v19 = vpop.f32.mrf.mxu1 }
 0x590   :  { %v4544_v25 = vadd.f32 %v4543_v17, %v4503_v16  ;;  %v4545_v26 = vpop.f32.mrf.mxu0  ;;  %v4802_v36 = vmax.f32 %v4542_v14, 0.0 }
 0x591   :  { %v4505_v12 = vpop.f32.mrf.mxu1 }
 0x592   :  { %v4803_v28 = vmax.f32 %v4544_v25, 0.0  ;;  %v4546_v29 = vpop.f32.mrf.mxu0 }
 0x594   :  { %v5578_v30 = vpack.c.bf16 %v4803_v28, %v4802_v36 }
 0x596   :  { %v4908_v32 = vrot.slane %v5578_v30, %v7242_v7 }
 0x5cb   :  { %v4582_v20 = vpop.f32.mrf.mxu1 }
 0x5cc   :  { %v4583_v24 = vadd.f32 %v4582_v20, %v1541_v59  ;;  %v4623_v35 = vpop.f32.mrf.mxu0 }
 0x5cd   :  { %v4584_v37 = vpop.f32.mrf.mxu1 }
 0x5ce   :  { %v4624_v39 = vadd.f32 %v4623_v35, %v4583_v24  ;;  %v4585_v40 = vadd.f32 %v4584_v37, %v1545_v23  ;;  %v4625_v42 = vpop.f32.mrf.mxu0 }
 0x5cf   :  { %v4586_v43 = vpop.f32.mrf.mxu1 }
 0x5d0   :  { %v4626_v31 = vadd.f32 %v4625_v42, %v4585_v40  ;;  %v4627_v44 = vpop.f32.mrf.mxu0  ;;  %v4804_v45 = vmax.f32 %v4624_v39, 0.0 }
 0x5d1   :  { %v4587_v33 = vpop.f32.mrf.mxu1 }
 0x5d2   :  { %v4805_v46 = vmax.f32 %v4626_v31, 0.0  ;;  %v4628_v47 = vpop.f32.mrf.mxu0 }
 0x5d4   :  { %v5579_v48 = vpack.c.bf16 %v4805_v46, %v4804_v45 }
 0x5d6   :  { %v4915_v49 = vrot.slane %v5579_v48, %v7242_v7 }
 0x5d8   :  { %v7826_v60 = vcombine.low %v4908_v32, %v4915_v49 }
 0x5d9   :  { %5782 = shalt.err (!%p5779_p4)
}
 0x5da   :  { %4960 = dma.vmem_to_hbm [thread:$0]  %s4958_s11, 32, %s7864_s12, [#allocation3]  }
 0x5db   :  { %s5791_s8 = scalar_lea.vmem %s4968_s18, 32  ;;  %p5796_p6 = scmp.lt.s32.totalorder %s4968_s18, %s4968_s18 }
 0x5dc   :  { %p5792_p5 = scmp.ne.s32.totalorder %s4968_s18, %s5791_s8  ;;  %p5797_p7 = scmp.lt.s32.totalorder %s5791_s8, %s5791_s8 }
 0x5de   :  { %p5798_p8 = por %p5797_p7, %p5796_p6 }
 0x5e0   :  { %p5799_p9 = pnand %p5798_p8, %p5792_p5 }
 0x5e2   :  { %5802 = shalt.err (!%p5799_p9)
}
 0x5e3   :  { %4970 = dma.vmem_to_hbm [thread:$0]  %s4968_s18, 32, %s7865_s13, [#allocation5]   ;;  %v1549_v50 = vrot.slane %v7812_v5, %v6009_v38  ;;  %v1553_v51 = vrot.slane %v7812_v5, %v1520_v18  ;;  %v1557_v38 = vrot.slane %v7812_v5, %v5997_v34  ;;  %v1561_v18 = vrot.slane %v7812_v5, %v1528_v15 }
 0x5e4   :  { %v4938_v5 = vrot.slane %v7826_v60, %v7242_v7 }
 0x60b   :  { %v4664_v41 = vpop.f32.mrf.mxu1 }
 0x60c   :  { %v4665_v52 = vadd.f32 %v4664_v41, %v1549_v50  ;;  %v4705_v53 = vpop.f32.mrf.mxu0 }
 0x60d   :  { %v4666_v54 = vpop.f32.mrf.mxu1 }
 0x60e   :  { %v4706_v21 = vadd.f32 %v4705_v53, %v4665_v52  ;;  %v4667_v55 = vadd.f32 %v4666_v54, %v1553_v51  ;;  %v4707_v22 = vpop.f32.mrf.mxu0 }
 0x60f   :  { %v4668_v56 = vpop.f32.mrf.mxu1 }
 0x610   :  { %v4708_v57 = vadd.f32 %v4707_v22, %v4667_v55  ;;  %v4709_v58 = vpop.f32.mrf.mxu0  ;;  %v4806_v62 = vmax.f32 %v4706_v21, 0.0 }
 0x611   :  { %v4669_v61 = vpop.f32.mrf.mxu1 }
 0x612   :  { %v4807_v63 = vmax.f32 %v4708_v57, 0.0  ;;  %v4710_v0 = vpop.f32.mrf.mxu0 }
 0x614   :  { %v5580_v1 = vpack.c.bf16 %v4807_v63, %v4806_v62 }
 0x616   :  { %v4922_v34 = vrot.slane %v5580_v1, %v7242_v7 }
 0x64b   :  { %v4746_v2 = vpop.f32.mrf.mxu1 }
 0x64c   :  { %v4747_v3 = vadd.f32 %v4746_v2, %v1557_v38  ;;  %v4787_v4 = vpop.f32.mrf.mxu0 }
 0x64d   :  { %v4748_v6 = vpop.f32.mrf.mxu1 }
 0x64e   :  { %v4788_v8 = vadd.f32 %v4787_v4, %v4747_v3  ;;  %v4749_v9 = vadd.f32 %v4748_v6, %v1561_v18  ;;  %v4789_v10 = vpop.f32.mrf.mxu0 }
 0x64f   :  { %v4750_v11 = vpop.f32.mrf.mxu1 }
 0x650   :  { %v4790_v13 = vadd.f32 %v4789_v10, %v4749_v9  ;;  %v4791_v14 = vpop.f32.mrf.mxu0  ;;  %v4808_v17 = vmax.f32 %v4788_v8, 0.0 }
 0x651   :  { %v4751_v16 = vpop.f32.mrf.mxu1 }
 0x652   :  { %v4809_v19 = vmax.f32 %v4790_v13, 0.0  ;;  %v4792_v25 = vpop.f32.mrf.mxu0 }
 0x654   :  { %v5581_v26 = vpack.c.bf16 %v4809_v19, %v4808_v17 }
 0x656   :  { %v4929_v27 = vrot.slane %v5581_v26, %v7242_v7 }
 0x658   :  { %v4931_v15 = vcombine.low %v4922_v34, %v4929_v27 }
 0x65a   :  { %v4945_v12 = vrot.slane %v4931_v15, %v7242_v7 }
 0x65c   :  { %v4946_v36 = vcombine.low %v4938_v5, %v4945_v12 }
 0x65e   :  { %4950 = vst [vmem:[%s7866_s14 + $0x8] sm:$0xff] %v4946_v36 }
 0x65f   :  { %5811 = dma.done.wait [#allocation3], 32  }
 0x660   :  { %5812 = vsyncadd [#allocation3], 4294967264 }
 0x661   :  { %5813 = dma.done.wait [#allocation5], 32  }
 0x662   :  { %5814 = vsyncadd [#allocation5], 4294967264 }
 0x663   :  { %4981 = vsyncpa [#allocation3], 1 }
 0x664   :  { %4982 = vsyncpa [#allocation5], 1 }

// kernel: conv_vae_forward.13
= control target key start
LH: loop header
LB: loop body
LE: loop exit
PB: predicated region body
PF: predicated region fallthrough
CT: control target
= control target key end

     0   :  { %s2745_s14 = smov 0   ;;  %s3306_s0 = inlined_call_operand.vmem [shape: bf16[2,32,902], index: 0, kind: input, shape index: {}]   ;;  %s3307_s1 = inlined_call_operand.vmem [shape: bf16[9,1,32], index: 1, kind: input, shape index: {}]   ;;  %s3308_s2 = inlined_call_operand.<no memory space> [shape: f32[1,1], index: 2, kind: input, shape index: {}]   ;;  %s3309_s3 = inlined_call_operand.vmem [shape: f32[2,1,840], index: 3, kind: output, shape index: {}]  }
   0x1   :  { %v8_v0 = vstv %s3308_s2 }
   0x2   :  { %9 = vst [vmem:[#allocation2] sm:$0x1] %v8_v0 }
   0x3 LB: > { %s2497_s15 = sadd.s32 4294967295, %s2708_s14   ;;  %p2501_p0 = scmp.ge.s32.totalorder %s2708_s14, 1  ;;  %s2708_s14 = sphi %s2745_s14, %s15_s14  }
   0x4   : > { %p139_p1 = scmp.lt.s32.totalorder %s2708_s14, 3 }
   0x6   : > { %p140_p2 = pnand %p2501_p0, %p139_p1 }
   0x7   : > { %p162_p3 = scmp.lt.s32.totalorder (!%p140_p2), %s2497_s15, 1  ;;  %s2711_s19 = smov (!%p140_p2), 127  }
   0x8   : > { %143 = sbr.rel (%p140_p2) target bundleno = 579 (0x243), region = 32  ;;  %s2714_s22 = smov (!%p140_p2), 126  }
   0x9   : > { %s2715_s23 = smov (!%p140_p2), 98   ;;  %s2716_s24 = smov (!%p140_p2), 97  }
   0xa   : > { %s2717_s25 = smov (!%p140_p2), 96   ;;  %s2718_s28 = smov (!%p140_p2), 68  }
   0xb   : > { %s2719_s4 = smov (!%p140_p2), 67   ;;  %s2720_s7 = smov (!%p140_p2), 66  }
   0xd   : > { %v2710_v1 = vmov 0   ;;  %s3311_s15 = smov (!%p162_p3, %s2497_s15), 1  ;;  %v198_v21 = vld [vmem:[%s3307_s1] sm:$0x1]  ;;  %vm271_vm0 = vcmask 261120   ;;  %v2712_v24 = vmov 0.0  }
   0xe   : > { %307 = vmatprep.mubr.bf16.mxu0 %v2710_v1  ;;  %348 = vmatprep.mubr.bf16.mxu1 %v2710_v1  ;;  %s2580_s2 = sshll.u32 %s3311_s15, 7  ;;  %vm2713_vm1 = vmmov 0   ;;  %vm475_vm2 = vcmask 1039360   ;;  %v2522_v50 = vld [vmem:[%s3307_s1 + $0x1] sm:$0x1]  ;;  %vm705_vm3 = vcmask 1031168  }
   0xf   : > { %2701 = vset.pattern.permute.xlu0 %v2710_v1  ;;  %s2762_s18 = scalar_lea.vmem %s3306_s0, %s2580_s2  ;;  %vm935_vm4 = vcmask 801792   ;;  %vm1165_vm5 = vcmask 793600   ;;  %vm1395_vm6 = vcmask 785408   ;;  %vm1709_vm7 = vcmask 556032  }
  0x10   : > { %v190_v2 = vld [vmem:[%s2762_s18 + $0x40] sm:$0xff]  ;;  %v191_v4 = vld [vmem:[%s2762_s18 + $0x48] sm:$0xff]  ;;  %v192_v17 = vld [vmem:[%s2762_s18 + $0x50] sm:$0xff]  ;;  %vm1945_vm8 = vcmask 547840   ;;  %vm2181_vm9 = vcmask 539648  }
  0x11   : > { %v194_v3 = vld [vmem:[%s2762_s18 + $0x60] sm:$0xff]  ;;  %v195_v7 = vld [vmem:[%s2762_s18 + $0x68] sm:$0xff]  ;;  %v196_v18 = vld [vmem:[%s2762_s18 + $0x70] sm:$0xff] }
  0x12   : > { %v2767_v5 = vcombine.high %v190_v2, %v194_v3  ;;  %v2769_v6 = vcombine.low %v190_v2, %v194_v3  ;;  %v182_v8 = vld [vmem:[%s2762_s18] sm:$0xff]  ;;  %v2774_v10 = vcombine.high %v191_v4, %v195_v7  ;;  %v2780_v11 = vcombine.low %v191_v4, %v195_v7  ;;  %v183_v13 = vld [vmem:[%s2762_s18 + $0x8] sm:$0xff]  ;;  %v193_v22 = vld [vmem:[%s2762_s18 + $0x58] sm:$0xf] }
  0x13   : > { %v186_v9 = vld [vmem:[%s2762_s18 + $0x20] sm:$0xff]  ;;  %v187_v14 = vld [vmem:[%s2762_s18 + $0x28] sm:$0xff]  ;;  %v2804_v20 = vcombine.high %v192_v17, %v196_v18  ;;  %v197_v23 = vld [vmem:[%s2762_s18 + $0x78] sm:$0xf]  ;;  %v2819_v25 = vcombine.low %v192_v17, %v196_v18 }
  0x14   : > { %463 = vrot.lane.b32.xlu0 %v2767_v5, %s2711_s19  ;;  %461 = vrot.lane.b32.xlu1 %v2769_v6, %s2711_s19  ;;  %v2782_v12 = vcombine.high %v182_v8, %v186_v9  ;;  %v2786_v15 = vcombine.high %v183_v13, %v187_v14  ;;  %v2798_v16 = vcombine.low %v183_v13, %v187_v14  ;;  %v184_v26 = vld [vmem:[%s2762_s18 + $0x10] sm:$0xff]  ;;  %v185_v30 = vld [vmem:[%s2762_s18 + $0x18] sm:$0xf] }
  0x15   : > { %287 = vmatprep.subr.bf16.mxu0 %v2767_v5  ;;  %328 = vmatprep.subr.bf16.mxu1 %v2774_v10  ;;  %v2802_v19 = vcombine.low %v182_v8, %v186_v9  ;;  %v188_v27 = vld [vmem:[%s2762_s18 + $0x30] sm:$0xff]  ;;  %v2823_v28 = vcombine.low %v193_v22, %v197_v23  ;;  %v189_v31 = vld [vmem:[%s2762_s18 + $0x38] sm:$0xf]  ;;  %v2527_v22 = vld [vmem:[%s3307_s1 + $0x2] sm:$0x1] }
  0x16   : > { %288 = vmatpush1.bf16.msra.mxu0 %v2769_v6  ;;  %329 = vmatpush1.bf16.msra.mxu1 %v2780_v11  ;;  %v2825_v29 = vcombine.high %v184_v26, %v188_v27  ;;  %v2839_v32 = vcombine.low %v184_v26, %v188_v27  ;;  %v2841_v33 = vcombine.low %v185_v30, %v189_v31  ;;  %v1606_v14 = vld [vmem:[%s2762_s18 + $0x58] sm:$0xff] }
  0x17   : > { %289 = vmatprep.subr.bf16.mxu0 %v2782_v12  ;;  %330 = vmatprep.subr.bf16.mxu1 %v2786_v15  ;;  %v1610_v17 = vld [vmem:[%s2762_s18 + $0x78] sm:$0xff] }
  0x18   : > { %465 = vrot.lane.b32.xlu0 %v2780_v11, %s2711_s19  ;;  %449 = vrot.lane.b32.xlu1 %v2782_v12, %s2711_s19  ;;  %v2991_v26 = vcombine.low %v1606_v14, %v1610_v17  ;;  %v1598_v30 = vld [vmem:[%s2762_s18 + $0x18] sm:$0xff] }
  0x19   : > { %v1602_v31 = vld [vmem:[%s2762_s18 + $0x38] sm:$0xff] }
  0x1a   : > { %290 = vmatpush1.bf16.msra.mxu0 %v2802_v19  ;;  %331 = vmatpush1.bf16.msra.mxu1 %v2798_v16 }
  0x1b   : > { %369 = vmatprep.subr.bf16.mxu0 %v2804_v20  ;;  %2608 = vmatprep.subr.bf16.mxu1 %v2712_v24 }
  0x1c   : > { %451 = vrot.lane.b32.xlu0 %v2798_v16, %s2711_s19  ;;  %467 = vrot.lane.b32.xlu1 %v2774_v10, %s2711_s19 }
  0x1d   : > { %2518 = vmatmul.mubr.msk.bf16.vlgmr.msra.gmra.mxu0 %vm271_vm0, %v198_v21  ;;  %2519 = vmatmul.mubr.msk.bf16.vlgmr.msra.gmra.mxu1 %vm271_vm0, %v198_v21 }
  0x1e   : > { %370 = vmatpush1.bf16.msra.mxu0 %v2819_v25  ;;  %389 = vmatprep.mubr.bf16.mxu0 %v2710_v1 }
  0x1f   : > { %371 = vmatprep.subr.bf16.mxu0 %v2825_v29  ;;  %2609 = vmatpush3.bf16.msra.mxu1 %v2823_v28 }
  0x20   : > { %469 = vrot.lane.b32.xlu0 %v2819_v25, %s2711_s19  ;;  %447 = vrot.lane.b32.xlu1 %v2802_v19, %s2711_s19 }
  0x21   : > { %2610 = vmatprep.subr.bf16.mxu1 %v2712_v24  ;;  %2612 = vmatprep.mubr.msk.bf16.mxu1 %vm2713_vm1, %v2712_v24 }
  0x22   : > { %372 = vmatpush1.bf16.msra.mxu0 %v2839_v32 }
  0x23   : > { %2611 = vmatpush3.bf16.msra.mxu1 %v2841_v33 }
  0x24   : > { %453 = vrot.lane.b32.xlu0 %v2786_v15, %s2711_s19  ;;  %455 = vrot.lane.b32.xlu1 %v2839_v32, %s2711_s19 }
  0x25   : > { %2520 = vmatmul.mubr.msk.bf16.vlgmr.msra.gmra.mxu0 %vm271_vm0, %v198_v21 }
  0x26   : > { %2613 = vmatmul.mubr.msk.bf16.vlgmr.msra.gmra.mxu1 %vm271_vm0, %v198_v21  ;;  %537 = vmatprep.mubr.bf16.mxu0 %v2710_v1 }
  0x27   : > { %578 = vmatprep.mubr.bf16.mxu1 %v2710_v1 }
  0x28   : > { %471 = vrot.lane.b32.xlu0 %v2804_v20, %s2711_s19  ;;  %473 = vrot.lane.b32.xlu1 %v2823_v28, %s2711_s19 }
  0x2c   : > { %457 = vrot.lane.b32.xlu0 %v2825_v29, %s2711_s19  ;;  %459 = vrot.lane.b32.xlu1 %v2841_v33, %s2711_s19  ;;  %s2680_s19 = smul.u32 7, %s3311_s15 }
  0x30   : > { %693 = vrot.lane.b32.xlu0 %v2767_v5, %s2714_s22  ;;  %695 = vrot.lane.b32.xlu1 %v2780_v11, %s2714_s22 }
  0x34   : > { %691 = vrot.lane.b32.xlu0 %v2769_v6, %s2714_s22  ;;  %679 = vrot.lane.b32.xlu1 %v2782_v12, %s2714_s22 }
  0x38   : > { %681 = vrot.lane.b32.xlu0 %v2798_v16, %s2714_s22  ;;  %697 = vrot.lane.b32.xlu1 %v2774_v10, %s2714_s22 }
  0x3c   : > { %699 = vrot.lane.b32.xlu0 %v2819_v25, %s2714_s22  ;;  %677 = vrot.lane.b32.xlu1 %v2802_v19, %s2714_s22 }
  0x40   : > { %683 = vrot.lane.b32.xlu0 %v2786_v15, %s2714_s22  ;;  %685 = vrot.lane.b32.xlu1 %v2839_v32, %s2714_s22 }
  0x44   : > { %701 = vrot.lane.b32.xlu0 %v2804_v20, %s2714_s22  ;;  %703 = vrot.lane.b32.xlu1 %v2823_v28, %s2714_s22 }
  0x48   : > { %687 = vrot.lane.b32.xlu0 %v2825_v29, %s2714_s22  ;;  %689 = vrot.lane.b32.xlu1 %v2841_v33, %s2714_s22  ;;  %s170_s22 = scalar_lea.vmem %s3309_s3, %s2680_s19 }
  0x4c   : > { %923 = vrot.lane.b32.xlu0 %v2767_v5, %s2715_s23  ;;  %925 = vrot.lane.b32.xlu1 %v2780_v11, %s2715_s23 }
  0x50   : > { %921 = vrot.lane.b32.xlu0 %v2769_v6, %s2715_s23  ;;  %909 = vrot.lane.b32.xlu1 %v2782_v12, %s2715_s23 }
  0x54   : > { %911 = vrot.lane.b32.xlu0 %v2798_v16, %s2715_s23  ;;  %927 = vrot.lane.b32.xlu1 %v2774_v10, %s2715_s23 }
  0x58   : > { %929 = vrot.lane.b32.xlu0 %v2819_v25, %s2715_s23  ;;  %907 = vrot.lane.b32.xlu1 %v2802_v19, %s2715_s23 }
  0x5c   : > { %913 = vrot.lane.b32.xlu0 %v2786_v15, %s2715_s23  ;;  %915 = vrot.lane.b32.xlu1 %v2839_v32, %s2715_s23 }
  0x60   : > { %931 = vrot.lane.b32.xlu0 %v2804_v20, %s2715_s23  ;;  %933 = vrot.lane.b32.xlu1 %v2823_v28, %s2715_s23 }
  0x64   : > { %917 = vrot.lane.b32.xlu0 %v2825_v29, %s2715_s23  ;;  %919 = vrot.lane.b32.xlu1 %v2841_v33, %s2715_s23 }
  0x68   : > { %1153 = vrot.lane.b32.xlu0 %v2767_v5, %s2716_s24  ;;  %1155 = vrot.lane.b32.xlu1 %v2780_v11, %s2716_s24 }
  0x6c   : > { %1151 = vrot.lane.b32.xlu0 %v2769_v6, %s2716_s24  ;;  %1139 = vrot.lane.b32.xlu1 %v2782_v12, %s2716_s24 }
  0x70   : > { %1141 = vrot.lane.b32.xlu0 %v2798_v16, %s2716_s24  ;;  %1157 = vrot.lane.b32.xlu1 %v2774_v10, %s2716_s24 }
  0x74   : > { %1159 = vrot.lane.b32.xlu0 %v2819_v25, %s2716_s24  ;;  %1137 = vrot.lane.b32.xlu1 %v2802_v19, %s2716_s24 }
  0x78   : > { %1143 = vrot.lane.b32.xlu0 %v2786_v15, %s2716_s24  ;;  %1145 = vrot.lane.b32.xlu1 %v2839_v32, %s2716_s24 }
  0x7c   : > { %1161 = vrot.lane.b32.xlu0 %v2804_v20, %s2716_s24  ;;  %1163 = vrot.lane.b32.xlu1 %v2823_v28, %s2716_s24 }
  0x80   : > { %1147 = vrot.lane.b32.xlu0 %v2825_v29, %s2716_s24  ;;  %1149 = vrot.lane.b32.xlu1 %v2841_v33, %s2716_s24 }
  0x84   : > { %1383 = vrot.lane.b32.xlu0 %v2767_v5, %s2717_s25  ;;  %1385 = vrot.lane.b32.xlu1 %v2780_v11, %s2717_s25 }
  0x86   : > { %v464_v34 = vpop.permute.xlu0 %463  ;;  %v462_v35 = vpop.permute.xlu1 %461 }
  0x87   : > { %v482_v39 = vsel %vm475_vm2, %v462_v35, %v464_v34  ;;  %v3002_v35 = vcombine.low %v1598_v30, %v1602_v31 }
  0x88   : > { %1381 = vrot.lane.b32.xlu0 %v2769_v6, %s2717_s25  ;;  %1369 = vrot.lane.b32.xlu1 %v2782_v12, %s2717_s25 }
  0x8a   : > { %v466_v36 = vpop.permute.xlu0 %465  ;;  %v450_v37 = vpop.permute.xlu1 %449 }
  0x8b   : > { %v483_v38 = vsel %vm475_vm2, %v464_v34, %v466_v36 }
  0x8c   : > { %1371 = vrot.lane.b32.xlu0 %v2798_v16, %s2717_s25  ;;  %1387 = vrot.lane.b32.xlu1 %v2774_v10, %s2717_s25 }
  0x8d   : > { %517 = vmatprep.subr.bf16.mxu0 %v483_v38 }
  0x8e   : > { %518 = vmatpush1.bf16.msra.mxu0 %v482_v39  ;;  %v452_v40 = vpop.permute.xlu0 %451  ;;  %v468_v41 = vpop.permute.xlu1 %467 }
  0x8f   : > { %v477_v42 = vsel %vm475_vm2, %v450_v37, %v452_v40  ;;  %v484_v47 = vsel %vm475_vm2, %v466_v36, %v468_v41 }
  0x90   : > { %1389 = vrot.lane.b32.xlu0 %v2819_v25, %s2717_s25  ;;  %1367 = vrot.lane.b32.xlu1 %v2802_v19, %s2717_s25 }
  0x91   : > { %519 = vmatprep.subr.bf16.mxu0 %v477_v42 }
  0x92   : > { %v470_v43 = vpop.permute.xlu0 %469  ;;  %v448_v44 = vpop.permute.xlu1 %447 }
  0x93   : > { %v476_v45 = vsel %vm475_vm2, %v448_v44, %v450_v37  ;;  %v485_v46 = vsel %vm475_vm2, %v468_v41, %v470_v43 }
  0x94   : > { %1373 = vrot.lane.b32.xlu0 %v2786_v15, %s2717_s25  ;;  %558 = vmatprep.subr.bf16.mxu1 %v485_v46 }
  0x95   : > { %1375 = vrot.lane.b32.xlu1 %v2839_v32, %s2717_s25  ;;  %520 = vmatpush1.bf16.msra.mxu0 %v476_v45  ;;  %v3023_v45 = vcombine.high %v1598_v30, %v1602_v31 }
  0x96   : > { %559 = vmatpush1.bf16.msra.mxu1 %v484_v47  ;;  %v454_v48 = vpop.permute.xlu0 %453  ;;  %v456_v49 = vpop.permute.xlu1 %455 }
  0x97   : > { %v479_v51 = vsel %vm475_vm2, %v454_v48, %v456_v49  ;;  %v478_v52 = vsel %vm475_vm2, %v452_v40, %v454_v48  ;;  %v3010_v40 = vcombine.high %v1606_v14, %v1610_v17 }
  0x98   : > { %1391 = vrot.lane.b32.xlu0 %v2804_v20, %s2717_s25  ;;  %560 = vmatprep.subr.bf16.mxu1 %v479_v51 }
  0x99   : > { %1393 = vrot.lane.b32.xlu1 %v2823_v28, %s2717_s25  ;;  %2523 = vmatmul.mubr.msk.bf16.vlgmr.msra.gmra.mxu0 %vm271_vm0, %v2522_v50 }
  0x9a   : > { %561 = vmatpush1.bf16.msra.mxu1 %v478_v52  ;;  %v472_v53 = vpop.permute.xlu0 %471  ;;  %v474_v54 = vpop.permute.xlu1 %473  ;;  %619 = vmatprep.mubr.bf16.mxu0 %v2710_v1 }
  0x9b   : > { %v487_v55 = vsel %vm475_vm2, %v472_v53, %v474_v54  ;;  %v486_v56 = vsel %vm475_vm2, %v470_v43, %v472_v53  ;;  %2616 = vmatprep.subr.bf16.mxu1 %v2712_v24 }
  0x9c   : > { %1377 = vrot.lane.b32.xlu0 %v2825_v29, %s2717_s25  ;;  %599 = vmatprep.subr.bf16.mxu0 %v487_v55 }
  0x9d   : > { %1379 = vrot.lane.b32.xlu1 %v2841_v33, %s2717_s25  ;;  %600 = vmatpush1.bf16.msra.mxu0 %v486_v56 }
  0x9e   : > { %v458_v57 = vpop.permute.xlu0 %457  ;;  %2524 = vmatmul.mubr.msk.bf16.vlgmr.msra.gmra.mxu1 %vm271_vm0, %v2522_v50  ;;  %v460_v58 = vpop.permute.xlu1 %459 }
  0x9f   : > { %2617 = vmatpush3.bf16.msra.mxu1 %v474_v54  ;;  %v481_v59 = vsel %vm475_vm2, %v458_v57, %v460_v58  ;;  %v480_v60 = vsel %vm475_vm2, %v456_v49, %v458_v57  ;;  %2620 = vmatprep.mubr.msk.bf16.mxu1 %vm2713_vm1, %v2712_v24 }
  0xa0   : > { %1695 = vrot.lane.b32.xlu0 %v2767_v5, %s2718_s28  ;;  %601 = vmatprep.subr.bf16.mxu0 %v481_v59  ;;  %v2532_v59 = vld [vmem:[%s3307_s1 + $0x3] sm:$0x1] }
  0xa1   : > { %1697 = vrot.lane.b32.xlu1 %v2780_v11, %s2718_s28  ;;  %602 = vmatpush1.bf16.msra.mxu0 %v480_v60 }
  0xa2   : > { %2618 = vmatprep.subr.bf16.mxu1 %v2712_v24  ;;  %v694_v61 = vpop.permute.xlu0 %693  ;;  %v696_v62 = vpop.permute.xlu1 %695 }
  0xa3   : > { %2619 = vmatpush3.bf16.msra.mxu1 %v460_v58  ;;  %v713_v63 = vsel %vm705_vm3, %v694_v61, %v696_v62 }
  0xa4   : > { %1693 = vrot.lane.b32.xlu0 %v2769_v6, %s2718_s28  ;;  %747 = vmatprep.subr.bf16.mxu0 %v713_v63 }
  0xa5   : > { %1679 = vrot.lane.b32.xlu1 %v2782_v12, %s2718_s28  ;;  %2525 = vmatmul.mubr.msk.bf16.vlgmr.msra.gmra.mxu0 %vm271_vm0, %v2522_v50 }
  0xa6   : > { %v692_v0 = vpop.permute.xlu0 %691  ;;  %v680_v2 = vpop.permute.xlu1 %679  ;;  %2621 = vmatmul.mubr.msk.bf16.vlgmr.msra.gmra.mxu1 %vm271_vm0, %v2522_v50  ;;  %767 = vmatprep.mubr.bf16.mxu0 %v2710_v1 }
  0xa7   : > { %v712_v3 = vsel %vm705_vm3, %v692_v0, %v694_v61  ;;  %808 = vmatprep.mubr.bf16.mxu1 %v2710_v1 }
  0xa8   : > { %1681 = vrot.lane.b32.xlu0 %v2798_v16, %s2718_s28  ;;  %748 = vmatpush1.bf16.msra.mxu0 %v712_v3 }
  0xa9   : > { %1699 = vrot.lane.b32.xlu1 %v2774_v10, %s2718_s28 }
  0xaa   : > { %v682_v4 = vpop.permute.xlu0 %681  ;;  %v698_v7 = vpop.permute.xlu1 %697 }
  0xab   : > { %v707_v8 = vsel %vm705_vm3, %v680_v2, %v682_v4  ;;  %v714_v23 = vsel %vm705_vm3, %v696_v62, %v698_v7 }
  0xac   : > { %1701 = vrot.lane.b32.xlu0 %v2819_v25, %s2718_s28  ;;  %749 = vmatprep.subr.bf16.mxu0 %v707_v8 }
  0xad   : > { %1677 = vrot.lane.b32.xlu1 %v2802_v19, %s2718_s28 }
  0xae   : > { %v700_v9 = vpop.permute.xlu0 %699  ;;  %v678_v13 = vpop.permute.xlu1 %677 }
  0xaf   : > { %v706_v18 = vsel %vm705_vm3, %v678_v13, %v680_v2  ;;  %v715_v21 = vsel %vm705_vm3, %v698_v7, %v700_v9 }
  0xb0   : > { %1683 = vrot.lane.b32.xlu0 %v2786_v15, %s2718_s28  ;;  %750 = vmatpush1.bf16.msra.mxu0 %v706_v18 }
  0xb1   : > { %1685 = vrot.lane.b32.xlu1 %v2839_v32, %s2718_s28  ;;  %788 = vmatprep.subr.bf16.mxu1 %v715_v21 }
  0xb2   : > { %789 = vmatpush1.bf16.msra.mxu1 %v714_v23  ;;  %v684_v27 = vpop.permute.xlu0 %683  ;;  %v686_v28 = vpop.permute.xlu1 %685 }
  0xb3   : > { %v708_v33 = vsel %vm705_vm3, %v682_v4, %v684_v27  ;;  %v709_v34 = vsel %vm705_vm3, %v684_v27, %v686_v28  ;;  %2528 = vmatmul.mubr.msk.bf16.vlgmr.msra.gmra.mxu0 %vm271_vm0, %v2527_v22 }
  0xb4   : > { %1703 = vrot.lane.b32.xlu0 %v2804_v20, %s2718_s28  ;;  %790 = vmatprep.subr.bf16.mxu1 %v709_v34 }
  0xb5   : > { %1705 = vrot.lane.b32.xlu1 %v2991_v26, %s2718_s28  ;;  %849 = vmatprep.mubr.bf16.mxu0 %v2710_v1 }
  0xb6   : > { %791 = vmatpush1.bf16.msra.mxu1 %v708_v33  ;;  %v702_v36 = vpop.permute.xlu0 %701  ;;  %v704_v37 = vpop.permute.xlu1 %703 }
  0xb7   : > { %v716_v38 = vsel %vm705_vm3, %v700_v9, %v702_v36  ;;  %v717_v39 = vsel %vm705_vm3, %v702_v36, %v704_v37  ;;  %2624 = vmatprep.subr.bf16.mxu1 %v2712_v24  ;;  %v2537_v36 = vld [vmem:[%s3307_s1 + $0x4] sm:$0x1] }
  0xb8   : > { %1687 = vrot.lane.b32.xlu0 %v2825_v29, %s2718_s28  ;;  %829 = vmatprep.subr.bf16.mxu0 %v717_v39 }
  0xb9   : > { %1689 = vrot.lane.b32.xlu1 %v3002_v35, %s2718_s28  ;;  %830 = vmatpush1.bf16.msra.mxu0 %v716_v38 }
  0xba   : > { %v688_v41 = vpop.permute.xlu0 %687  ;;  %2529 = vmatmul.mubr.msk.bf16.vlgmr.msra.gmra.mxu1 %vm271_vm0, %v2527_v22  ;;  %v690_v42 = vpop.permute.xlu1 %689 }
  0xbb   : > { %v710_v43 = vsel %vm705_vm3, %v686_v28, %v688_v41  ;;  %2625 = vmatpush3.bf16.msra.mxu1 %v704_v37  ;;  %v711_v44 = vsel %vm705_vm3, %v688_v41, %v690_v42  ;;  %2628 = vmatprep.mubr.msk.bf16.mxu1 %vm2713_vm1, %v2712_v24 }
  0xbc   : > { %1707 = vrot.lane.b32.xlu0 %v3010_v40, %s2718_s28  ;;  %831 = vmatprep.subr.bf16.mxu0 %v711_v44 }
  0xbd   : > { %1931 = vrot.lane.b32.xlu1 %v2767_v5, %s2719_s4  ;;  %832 = vmatpush1.bf16.msra.mxu0 %v710_v43 }
  0xbe   : > { %2626 = vmatprep.subr.bf16.mxu1 %v2712_v24  ;;  %v924_v46 = vpop.permute.xlu0 %923  ;;  %v926_v47 = vpop.permute.xlu1 %925 }
  0xbf   : > { %2627 = vmatpush3.bf16.msra.mxu1 %v690_v42  ;;  %v943_v48 = vsel %vm935_vm4, %v924_v46, %v926_v47 }
  0xc0   : > { %1933 = vrot.lane.b32.xlu0 %v2780_v11, %s2719_s4  ;;  %977 = vmatprep.subr.bf16.mxu0 %v943_v48 }
  0xc1   : > { %1691 = vrot.lane.b32.xlu1 %v3023_v45, %s2718_s28  ;;  %2530 = vmatmul.mubr.msk.bf16.vlgmr.msra.gmra.mxu0 %vm271_vm0, %v2527_v22 }
  0xc2   : > { %v922_v49 = vpop.permute.xlu0 %921  ;;  %v910_v50 = vpop.permute.xlu1 %909  ;;  %2629 = vmatmul.mubr.msk.bf16.vlgmr.msra.gmra.mxu1 %vm271_vm0, %v2527_v22  ;;  %997 = vmatprep.mubr.bf16.mxu0 %v2710_v1 }
  0xc3   : > { %v942_v51 = vsel %vm935_vm4, %v922_v49, %v924_v46  ;;  %1038 = vmatprep.mubr.bf16.mxu1 %v2710_v1 }
  0xc4   : > { %1929 = vrot.lane.b32.xlu0 %v2769_v6, %s2719_s4  ;;  %978 = vmatpush1.bf16.msra.mxu0 %v942_v51 }
  0xc5   : > { %1915 = vrot.lane.b32.xlu1 %v2782_v12, %s2719_s4 }
  0xc6   : > { %v912_v52 = vpop.permute.xlu0 %911  ;;  %v928_v53 = vpop.permute.xlu1 %927 }
  0xc7   : > { %v937_v54 = vsel %vm935_vm4, %v910_v50, %v912_v52  ;;  %v944_v60 = vsel %vm935_vm4, %v926_v47, %v928_v53 }
  0xc8   : > { %1917 = vrot.lane.b32.xlu0 %v2798_v16, %s2719_s4  ;;  %979 = vmatprep.subr.bf16.mxu0 %v937_v54 }
  0xc9   : > { %1935 = vrot.lane.b32.xlu1 %v2774_v10, %s2719_s4 }
  0xca   : > { %v930_v55 = vpop.permute.xlu0 %929  ;;  %v908_v56 = vpop.permute.xlu1 %907 }
  0xcb   : > { %v936_v57 = vsel %vm935_vm4, %v908_v56, %v910_v50  ;;  %v945_v58 = vsel %vm935_vm4, %v928_v53, %v930_v55 }
  0xcc   : > { %1937 = vrot.lane.b32.xlu0 %v2819_v25, %s2719_s4  ;;  %980 = vmatpush1.bf16.msra.mxu0 %v936_v57 }
  0xcd   : > { %1913 = vrot.lane.b32.xlu1 %v2802_v19, %s2719_s4  ;;  %1018 = vmatprep.subr.bf16.mxu1 %v945_v58 }
  0xce   : > { %1019 = vmatpush1.bf16.msra.mxu1 %v944_v60  ;;  %v914_v61 = vpop.permute.xlu0 %913  ;;  %v916_v62 = vpop.permute.xlu1 %915 }
  0xcf   : > { %v938_v63 = vsel %vm935_vm4, %v912_v52, %v914_v61  ;;  %v939_v0 = vsel %vm935_vm4, %v914_v61, %v916_v62  ;;  %2533 = vmatmul.mubr.msk.bf16.vlgmr.msra.gmra.mxu0 %vm271_vm0, %v2532_v59 }
  0xd0   : > { %1919 = vrot.lane.b32.xlu0 %v2786_v15, %s2719_s4  ;;  %1020 = vmatprep.subr.bf16.mxu1 %v939_v0 }
  0xd1   : > { %1921 = vrot.lane.b32.xlu1 %v2839_v32, %s2719_s4  ;;  %1079 = vmatprep.mubr.bf16.mxu0 %v2710_v1 }
  0xd2   : > { %1021 = vmatpush1.bf16.msra.mxu1 %v938_v63  ;;  %v932_v2 = vpop.permute.xlu0 %931  ;;  %v934_v3 = vpop.permute.xlu1 %933 }
  0xd3   : > { %v946_v4 = vsel %vm935_vm4, %v930_v55, %v932_v2  ;;  %v947_v7 = vsel %vm935_vm4, %v932_v2, %v934_v3  ;;  %2632 = vmatprep.subr.bf16.mxu1 %v2712_v24 }
  0xd4   : > { %1939 = vrot.lane.b32.xlu0 %v2804_v20, %s2719_s4  ;;  %1059 = vmatprep.subr.bf16.mxu0 %v947_v7 }
  0xd5   : > { %1941 = vrot.lane.b32.xlu1 %v2991_v26, %s2719_s4  ;;  %1060 = vmatpush1.bf16.msra.mxu0 %v946_v4 }
  0xd6   : > { %v918_v8 = vpop.permute.xlu0 %917  ;;  %2534 = vmatmul.mubr.msk.bf16.vlgmr.msra.gmra.mxu1 %vm271_vm0, %v2532_v59  ;;  %v920_v9 = vpop.permute.xlu1 %919 }
  0xd7   : > { %v940_v13 = vsel %vm935_vm4, %v916_v62, %v918_v8  ;;  %2633 = vmatpush3.bf16.msra.mxu1 %v934_v3  ;;  %v941_v14 = vsel %vm935_vm4, %v918_v8, %v920_v9  ;;  %2636 = vmatprep.mubr.msk.bf16.mxu1 %vm2713_vm1, %v2712_v24  ;;  %v2542_v8 = vld [vmem:[%s3307_s1 + $0x5] sm:$0x1] }
  0xd8   : > { %1923 = vrot.lane.b32.xlu0 %v2825_v29, %s2719_s4  ;;  %1061 = vmatprep.subr.bf16.mxu0 %v941_v14 }
  0xd9   : > { %1925 = vrot.lane.b32.xlu1 %v3002_v35, %s2719_s4  ;;  %1062 = vmatpush1.bf16.msra.mxu0 %v940_v13 }
  0xda   : > { %2634 = vmatprep.subr.bf16.mxu1 %v2712_v24  ;;  %v1154_v17 = vpop.permute.xlu0 %1153  ;;  %v1156_v18 = vpop.permute.xlu1 %1155 }
  0xdb   : > { %2635 = vmatpush3.bf16.msra.mxu1 %v920_v9  ;;  %v1173_v21 = vsel %vm1165_vm5, %v1154_v17, %v1156_v18 }
  0xdc   : > { %1943 = vrot.lane.b32.xlu0 %v3010_v40, %s2719_s4  ;;  %1207 = vmatprep.subr.bf16.mxu0 %v1173_v21 }
  0xdd   : > { %2167 = vrot.lane.b32.xlu1 %v2767_v5, %s2720_s7  ;;  %2535 = vmatmul.mubr.msk.bf16.vlgmr.msra.gmra.mxu0 %vm271_vm0, %v2532_v59 }
  0xde   : > { %v1152_v22 = vpop.permute.xlu0 %1151  ;;  %v1140_v23 = vpop.permute.xlu1 %1139  ;;  %2637 = vmatmul.mubr.msk.bf16.vlgmr.msra.gmra.mxu1 %vm271_vm0, %v2532_v59  ;;  %1227 = vmatprep.mubr.bf16.mxu0 %v2710_v1 }
  0xdf   : > { %v1172_v27 = vsel %vm1165_vm5, %v1152_v22, %v1154_v17  ;;  %1268 = vmatprep.mubr.bf16.mxu1 %v2710_v1 }
  0xe0   : > { %2169 = vrot.lane.b32.xlu0 %v2780_v11, %s2720_s7  ;;  %1208 = vmatpush1.bf16.msra.mxu0 %v1172_v27 }
  0xe1   : > { %1927 = vrot.lane.b32.xlu1 %v3023_v45, %s2719_s4 }
  0xe2   : > { %v1142_v5 = vpop.permute.xlu0 %1141  ;;  %v1158_v28 = vpop.permute.xlu1 %1157 }
  0xe3   : > { %v1167_v30 = vsel %vm1165_vm5, %v1140_v23, %v1142_v5 }
  0xe4   : > { %2165 = vrot.lane.b32.xlu0 %v2769_v6, %s2720_s7  ;;  %1209 = vmatprep.subr.bf16.mxu0 %v1167_v30  ;;  %v1174_v6 = vsel %vm1165_vm5, %v1156_v18, %v1158_v28 }
  0xe5   : > { %2151 = vrot.lane.b32.xlu1 %v2782_v12, %s2720_s7 }
  0xe6   : > { %v1160_v31 = vpop.permute.xlu0 %1159  ;;  %v1138_v33 = vpop.permute.xlu1 %1137 }
  0xe7   : > { %v1166_v34 = vsel %vm1165_vm5, %v1138_v33, %v1140_v23  ;;  %v1175_v11 = vsel %vm1165_vm5, %v1158_v28, %v1160_v31 }
  0xe8   : > { %2153 = vrot.lane.b32.xlu0 %v2798_v16, %s2720_s7  ;;  %1210 = vmatpush1.bf16.msra.mxu0 %v1166_v34 }
  0xe9   : > { %2171 = vrot.lane.b32.xlu1 %v2774_v10, %s2720_s7  ;;  %1248 = vmatprep.subr.bf16.mxu1 %v1175_v11 }
  0xea   : > { %1249 = vmatpush1.bf16.msra.mxu1 %v1174_v6  ;;  %v1144_v12 = vpop.permute.xlu0 %1143  ;;  %v1146_v37 = vpop.permute.xlu1 %1145 }
  0xeb   : > { %v1168_v38 = vsel %vm1165_vm5, %v1142_v5, %v1144_v12  ;;  %v1169_v39 = vsel %vm1165_vm5, %v1144_v12, %v1146_v37  ;;  %2538 = vmatmul.mubr.msk.bf16.vlgmr.msra.gmra.mxu0 %vm271_vm0, %v2537_v36 }
  0xec   : > { %2173 = vrot.lane.b32.xlu0 %v2819_v25, %s2720_s7  ;;  %1250 = vmatprep.subr.bf16.mxu1 %v1169_v39 }
  0xed   : > { %2149 = vrot.lane.b32.xlu1 %v2802_v19, %s2720_s7  ;;  %1309 = vmatprep.mubr.bf16.mxu0 %v2710_v1  ;;  %v3124_v19 = vpop.f32.mrf.mxu0 }
  0xee   : > { %1251 = vmatpush1.bf16.msra.mxu1 %v1168_v38  ;;  %v1162_v10 = vpop.permute.xlu0 %1161  ;;  %v1164_v16 = vpop.permute.xlu1 %1163 }
  0xef   : > { %v1176_v41 = vsel %vm1165_vm5, %v1160_v31, %v1162_v10  ;;  %v1177_v42 = vsel %vm1165_vm5, %v1162_v10, %v1164_v16  ;;  %2640 = vmatprep.subr.bf16.mxu1 %v2712_v24 }
  0xf0   : > { %2155 = vrot.lane.b32.xlu0 %v2786_v15, %s2720_s7  ;;  %1289 = vmatprep.subr.bf16.mxu0 %v1177_v42  ;;  %v3131_v15 = vpop.f32.mrf.mxu0 }
  0xf1   : > { %2157 = vrot.lane.b32.xlu1 %v2839_v32, %s2720_s7  ;;  %1290 = vmatpush1.bf16.msra.mxu0 %v1176_v41  ;;  %v3135_v32 = vpop.f32.mrf.mxu1 }
  0xf2   : > { %v1148_v25 = vpop.permute.xlu0 %1147  ;;  %2539 = vmatmul.mubr.msk.bf16.vlgmr.msra.gmra.mxu1 %vm271_vm0, %v2537_v36  ;;  %v1150_v43 = vpop.permute.xlu1 %1149 }
  0xf3   : > { %v1170_v44 = vsel %vm1165_vm5, %v1146_v37, %v1148_v25  ;;  %2641 = vmatpush3.bf16.msra.mxu1 %v1164_v16  ;;  %v1171_v46 = vsel %vm1165_vm5, %v1148_v25, %v1150_v43  ;;  %2644 = vmatprep.mubr.msk.bf16.mxu1 %vm2713_vm1, %v2712_v24  ;;  %v313_v47 = vpop.f32.mrf.mxu0  ;;  %v3141_v52 = vpop.f32.mrf.mxu1  ;;  %v2547_v25 = vld [vmem:[%s3307_s1 + $0x6] sm:$0x1] }
  0xf4   : > { %2175 = vrot.lane.b32.xlu0 %v2804_v20, %s2720_s7  ;;  %1291 = vmatprep.subr.bf16.mxu0 %v1171_v46 }
  0xf5   : > { %2177 = vrot.lane.b32.xlu1 %v2991_v26, %s2720_s7  ;;  %1292 = vmatpush1.bf16.msra.mxu0 %v1170_v44  ;;  %v314_v51 = vpop.f32.mrf.mxu0  ;;  %v354_v20 = vpop.f32.mrf.mxu1 }
  0xf6   : > { %2642 = vmatprep.subr.bf16.mxu1 %v2712_v24  ;;  %v1384_v48 = vpop.permute.xlu0 %1383  ;;  %v1386_v49 = vpop.permute.xlu1 %1385 }
  0xf7   : > { %2643 = vmatpush3.bf16.msra.mxu1 %v1150_v43  ;;  %v1403_v50 = vsel %vm1395_vm6, %v1384_v48, %v1386_v49  ;;  %v3148_v26 = vpop.f32.mrf.mxu0 }
  0xf8   : > { %2159 = vrot.lane.b32.xlu0 %v2825_v29, %s2720_s7  ;;  %1437 = vmatprep.subr.bf16.mxu0 %v1403_v50  ;;  %v355_v29 = vpop.f32.mrf.mxu1 }
  0xf9   : > { %2161 = vrot.lane.b32.xlu1 %v3002_v35, %s2720_s7  ;;  %2540 = vmatmul.mubr.msk.bf16.vlgmr.msra.gmra.mxu0 %vm271_vm0, %v2537_v36  ;;  %v3154_v56 = vpop.f32.mrf.mxu0  ;;  %v172_v35 = vld [vmem:[#allocation2] sm:$0x1] }
  0xfa   : > { %v1382_v53 = vpop.permute.xlu0 %1381  ;;  %v1370_v54 = vpop.permute.xlu1 %1369  ;;  %2645 = vmatmul.mubr.msk.bf16.vlgmr.msra.gmra.mxu1 %vm271_vm0, %v2537_v36  ;;  %1457 = vmatprep.mubr.bf16.mxu0 %v2710_v1 }
  0xfb   : > { %v1402_v55 = vsel %vm1395_vm6, %v1382_v53, %v1384_v48  ;;  %1498 = vmatprep.mubr.bf16.mxu1 %v2710_v1  ;;  %v395_v57 = vpop.f32.mrf.mxu0  ;;  %v3160_v58 = vpop.f32.mrf.mxu1 }
  0xfc   : > { %2179 = vrot.lane.b32.xlu0 %v3010_v40, %s2720_s7  ;;  %1438 = vmatpush1.bf16.msra.mxu0 %v1402_v55 }
  0xfd   : > { %2163 = vrot.lane.b32.xlu1 %v3023_v45, %s2720_s7  ;;  %v396_v62 = vpop.f32.mrf.mxu0  ;;  %v2614_v63 = vpop.f32.mrf.mxu1 }
  0xfe   : > { %v1372_v59 = vpop.permute.xlu0 %1371  ;;  %v1388_v60 = vpop.permute.xlu1 %1387 }
  0xff   : > { %v1397_v61 = vsel %vm1395_vm6, %v1370_v54, %v1372_v59  ;;  %v435_v0 = vpop.f32.mrf.mxu1  ;;  %v1404_v7 = vsel %vm1395_vm6, %v1386_v49, %v1388_v60 }
 0x100   : > { %1439 = vmatprep.subr.bf16.mxu0 %v1397_v61  ;;  %175 = vperm.xlu0 %2701, %v172_v35  }
 0x101   : > { %v2615_v45 = vpop.f32.mrf.mxu1 }
 0x102   : > { %v1390_v2 = vpop.permute.xlu0 %1389  ;;  %v1368_v3 = vpop.permute.xlu1 %1367 }
 0x103   : > { %v1396_v40 = vsel %vm1395_vm6, %v1368_v3, %v1370_v54  ;;  %v1405_v4 = vsel %vm1395_vm6, %v1388_v60, %v1390_v2 }
 0x104   : > { %1440 = vmatpush1.bf16.msra.mxu0 %v1396_v40  ;;  %1478 = vmatprep.subr.bf16.mxu1 %v1405_v4 }
 0x105   : > { %1479 = vmatpush1.bf16.msra.mxu1 %v1404_v7 }
 0x106   : > { %v1374_v9 = vpop.permute.xlu0 %1373 }
 0x107   : > { %v1398_v13 = vsel %vm1395_vm6, %v1372_v59, %v1374_v9  ;;  %v1376_v14 = vpop.permute.xlu1 %1375  ;;  %2543 = vmatmul.mubr.msk.bf16.vlgmr.msra.gmra.mxu0 %vm271_vm0, %v2542_v8 }
 0x108   : > { %v1399_v17 = vsel %vm1395_vm6, %v1374_v9, %v1376_v14  ;;  %1539 = vmatprep.mubr.bf16.mxu0 %v2710_v1 }
 0x109   : > { %1480 = vmatprep.subr.bf16.mxu1 %v1399_v17 }
 0x10a   : > { %1481 = vmatpush1.bf16.msra.mxu1 %v1398_v13  ;;  %v1392_v18 = vpop.permute.xlu0 %1391 }
 0x10b   : > { %v1406_v21 = vsel %vm1395_vm6, %v1390_v2, %v1392_v18  ;;  %v1394_v22 = vpop.permute.xlu1 %1393  ;;  %2648 = vmatprep.subr.bf16.mxu1 %v2712_v24 }
 0x10c   : > { %v1407_v23 = vsel %vm1395_vm6, %v1392_v18, %v1394_v22 }
 0x10d   : > { %2544 = vmatmul.mubr.msk.bf16.vlgmr.msra.gmra.mxu1 %vm271_vm0, %v2542_v8  ;;  %1519 = vmatprep.subr.bf16.mxu0 %v1407_v23 }
 0x10e   : > { %1520 = vmatpush1.bf16.msra.mxu0 %v1406_v21  ;;  %2649 = vmatpush3.bf16.msra.mxu1 %v1394_v22  ;;  %v1378_v27 = vpop.permute.xlu0 %1377 }
 0x10f   : > { %v1400_v5 = vsel %vm1395_vm6, %v1376_v14, %v1378_v27  ;;  %v1380_v28 = vpop.permute.xlu1 %1379  ;;  %2650 = vmatprep.subr.bf16.mxu1 %v2712_v24  ;;  %2652 = vmatprep.mubr.msk.bf16.mxu1 %vm2713_vm1, %v2712_v24  ;;  %v2568_v14 = vld [vmem:[%s3307_s1 + $0x7] sm:$0x1] }
 0x110   : > { %v1401_v30 = vsel %vm1395_vm6, %v1378_v27, %v1380_v28 }
 0x111   : > { %1521 = vmatprep.subr.bf16.mxu0 %v1401_v30 }
 0x112   : > { %1522 = vmatpush1.bf16.msra.mxu0 %v1400_v5  ;;  %2651 = vmatpush3.bf16.msra.mxu1 %v1380_v28  ;;  %v1696_v31 = vpop.permute.xlu0 %1695 }
 0x113   : > { %v1698_v33 = vpop.permute.xlu1 %1697 }
 0x114   : > { %v1718_v34 = vsel %vm1709_vm7, %v1696_v31, %v1698_v33 }
 0x115   : > { %2545 = vmatmul.mubr.msk.bf16.vlgmr.msra.gmra.mxu0 %vm271_vm0, %v2542_v8  ;;  %2653 = vmatmul.mubr.msk.bf16.vlgmr.msra.gmra.mxu1 %vm271_vm0, %v2542_v8 }
 0x116   : > { %1753 = vmatprep.subr.bf16.mxu0 %v1718_v34  ;;  %v1694_v11 = vpop.permute.xlu0 %1693  ;;  %1773 = vmatprep.mubr.bf16.mxu0 %v2710_v1 }
 0x117   : > { %v1717_v36 = vsel %vm1709_vm7, %v1694_v11, %v1696_v31  ;;  %v1680_v6 = vpop.permute.xlu1 %1679  ;;  %1814 = vmatprep.mubr.bf16.mxu1 %v2710_v1 }
 0x118   : > { %1754 = vmatpush1.bf16.msra.mxu0 %v1717_v36 }
 0x11a   : > { %v1682_v12 = vpop.permute.xlu0 %1681 }
 0x11b   : > { %v1700_v37 = vpop.permute.xlu1 %1699  ;;  %v1711_v38 = vsel %vm1709_vm7, %v1680_v6, %v1682_v12 }
 0x11c   : > { %1755 = vmatprep.subr.bf16.mxu0 %v1711_v38  ;;  %v1719_v41 = vsel %vm1709_vm7, %v1698_v33, %v1700_v37 }
 0x11e   : > { %v1702_v39 = vpop.permute.xlu0 %1701 }
 0x11f   : > { %v1678_v10 = vpop.permute.xlu1 %1677  ;;  %v1720_v16 = vsel %vm1709_vm7, %v1700_v37, %v1702_v39 }
 0x120   : > { %v1710_v42 = vsel %vm1709_vm7, %v1678_v10, %v1680_v6  ;;  %1794 = vmatprep.subr.bf16.mxu1 %v1720_v16 }
 0x121   : > { %1756 = vmatpush1.bf16.msra.mxu0 %v1710_v42  ;;  %1795 = vmatpush1.bf16.msra.mxu1 %v1719_v41 }
 0x122   : > { %v1684_v43 = vpop.permute.xlu0 %1683 }
 0x123   : > { %v1712_v44 = vsel %vm1709_vm7, %v1682_v12, %v1684_v43  ;;  %v1686_v46 = vpop.permute.xlu1 %1685 }
 0x124   : > { %2564 = vmatmul.mubr.msk.bf16.vlgmr.msra.gmra.mxu0 %vm271_vm0, %v2547_v25  ;;  %v1713_v47 = vsel %vm1709_vm7, %v1684_v43, %v1686_v46 }
 0x125   : > { %1796 = vmatprep.subr.bf16.mxu1 %v1713_v47  ;;  %1855 = vmatprep.mubr.bf16.mxu0 %v2710_v1 }
 0x126   : > { %1797 = vmatpush1.bf16.msra.mxu1 %v1712_v44  ;;  %v1704_v48 = vpop.permute.xlu0 %1703 }
 0x127   : > { %v1721_v49 = vsel %vm1709_vm7, %v1702_v39, %v1704_v48  ;;  %v1706_v50 = vpop.permute.xlu1 %1705  ;;  %2656 = vmatprep.subr.bf16.mxu1 %v2712_v24 }
 0x128   : > { %v1722_v51 = vsel %vm1709_vm7, %v1704_v48, %v1706_v50 }
 0x129   : > { %2565 = vmatmul.mubr.msk.bf16.vlgmr.msra.gmra.mxu1 %vm271_vm0, %v2547_v25  ;;  %1835 = vmatprep.subr.bf16.mxu0 %v1722_v51 }
 0x12a   : > { %1836 = vmatpush1.bf16.msra.mxu0 %v1721_v49  ;;  %v1688_v20 = vpop.permute.xlu0 %1687  ;;  %2660 = vmatprep.mubr.msk.bf16.mxu1 %vm2713_vm1, %v2712_v24 }
 0x12b   : > { %v1714_v53 = vsel %vm1709_vm7, %v1686_v46, %v1688_v20  ;;  %v1690_v54 = vpop.permute.xlu1 %1689 }
 0x12c   : > { %v1715_v55 = vsel %vm1709_vm7, %v1688_v20, %v1690_v54 }
 0x12d   : > { %1837 = vmatprep.subr.bf16.mxu0 %v1715_v55 }
 0x12e   : > { %1838 = vmatpush1.bf16.msra.mxu0 %v1714_v53  ;;  %v1708_v29 = vpop.permute.xlu0 %1707 }
 0x12f   : > { %v1723_v35 = vsel %vm1709_vm7, %v1706_v50, %v1708_v29  ;;  %v1932_v57 = vpop.permute.xlu1 %1931  ;;  %v2573_v29 = vld [vmem:[%s3307_s1 + $0x8] sm:$0x1] }
 0x130   : > { %2657 = vmatpush3.bf16.msra.mxu1 %v1723_v35 }
 0x131   : > { %2566 = vmatmul.mubr.msk.bf16.vlgmr.msra.gmra.mxu0 %vm271_vm0, %v2547_v25  ;;  %2658 = vmatprep.subr.bf16.mxu1 %v2712_v24 }
 0x132   : > { %v1934_v59 = vpop.permute.xlu0 %1933  ;;  %2009 = vmatprep.mubr.bf16.mxu0 %v2710_v1 }
 0x133   : > { %v1692_v60 = vpop.permute.xlu1 %1691  ;;  %v1954_v61 = vsel %vm1945_vm8, %v1932_v57, %v1934_v59 }
 0x134   : > { %v1716_v62 = vsel %vm1709_vm7, %v1690_v54, %v1692_v60  ;;  %1989 = vmatprep.subr.bf16.mxu0 %v1954_v61 }
 0x135   : > { %2659 = vmatpush3.bf16.msra.mxu1 %v1716_v62 }
 0x136   : > { %v1930_v63 = vpop.permute.xlu0 %1929 }
 0x137   : > { %v1953_v0 = vsel %vm1945_vm8, %v1930_v63, %v1932_v57  ;;  %v1916_v2 = vpop.permute.xlu1 %1915 }
 0x138   : > { %2661 = vmatmul.mubr.msk.bf16.vlgmr.msra.gmra.mxu1 %vm271_vm0, %v2547_v25  ;;  %1990 = vmatpush1.bf16.msra.mxu0 %v1953_v0 }
 0x139   : > { %2050 = vmatprep.mubr.bf16.mxu1 %v2710_v1 }
 0x13a   : > { %v1918_v3 = vpop.permute.xlu0 %1917 }
 0x13b   : > { %v1936_v40 = vpop.permute.xlu1 %1935  ;;  %v1947_v4 = vsel %vm1945_vm8, %v1916_v2, %v1918_v3 }
 0x13c   : > { %1991 = vmatprep.subr.bf16.mxu0 %v1947_v4  ;;  %v1955_v9 = vsel %vm1945_vm8, %v1934_v59, %v1936_v40 }
 0x13e   : > { %v1938_v45 = vpop.permute.xlu0 %1937 }
 0x13f   : > { %v1914_v7 = vpop.permute.xlu1 %1913  ;;  %v1956_v8 = vsel %vm1945_vm8, %v1936_v40, %v1938_v45 }
 0x140   : > { %v1946_v13 = vsel %vm1945_vm8, %v1914_v7, %v1916_v2  ;;  %2030 = vmatprep.subr.bf16.mxu1 %v1956_v8 }
 0x141   : > { %1992 = vmatpush1.bf16.msra.mxu0 %v1946_v13  ;;  %2031 = vmatpush1.bf16.msra.mxu1 %v1955_v9 }
 0x142   : > { %v1920_v17 = vpop.permute.xlu0 %1919 }
 0x143   : > { %v1948_v18 = vsel %vm1945_vm8, %v1918_v3, %v1920_v17  ;;  %v1922_v21 = vpop.permute.xlu1 %1921 }
 0x144   : > { %2569 = vmatmul.mubr.msk.bf16.vlgmr.msra.gmra.mxu0 %vm271_vm0, %v2568_v14  ;;  %v1949_v22 = vsel %vm1945_vm8, %v1920_v17, %v1922_v21 }
 0x145   : > { %2032 = vmatprep.subr.bf16.mxu1 %v1949_v22  ;;  %2091 = vmatprep.mubr.bf16.mxu0 %v2710_v1 }
 0x146   : > { %2033 = vmatpush1.bf16.msra.mxu1 %v1948_v18  ;;  %v1940_v23 = vpop.permute.xlu0 %1939 }
 0x147   : > { %v1957_v27 = vsel %vm1945_vm8, %v1938_v45, %v1940_v23  ;;  %v1942_v5 = vpop.permute.xlu1 %1941  ;;  %2664 = vmatprep.subr.bf16.mxu1 %v2712_v24 }
 0x148   : > { %v1958_v28 = vsel %vm1945_vm8, %v1940_v23, %v1942_v5 }
 0x149   : > { %2570 = vmatmul.mubr.msk.bf16.vlgmr.msra.gmra.mxu1 %vm271_vm0, %v2568_v14  ;;  %2071 = vmatprep.subr.bf16.mxu0 %v1958_v28 }
 0x14a   : > { %2072 = vmatpush1.bf16.msra.mxu0 %v1957_v27  ;;  %v1924_v30 = vpop.permute.xlu0 %1923  ;;  %2668 = vmatprep.mubr.msk.bf16.mxu1 %vm2713_vm1, %v2712_v24 }
 0x14b   : > { %v1950_v31 = vsel %vm1945_vm8, %v1922_v21, %v1924_v30  ;;  %v1926_v33 = vpop.permute.xlu1 %1925 }
 0x14c   : > { %v1951_v34 = vsel %vm1945_vm8, %v1924_v30, %v1926_v33 }
 0x14d   : > { %2073 = vmatprep.subr.bf16.mxu0 %v1951_v34 }
 0x14e   : > { %2074 = vmatpush1.bf16.msra.mxu0 %v1950_v31  ;;  %v1944_v11 = vpop.permute.xlu0 %1943 }
 0x14f   : > { %v1959_v36 = vsel %vm1945_vm8, %v1942_v5, %v1944_v11  ;;  %v2168_v6 = vpop.permute.xlu1 %2167  ;;  %v178_v5 = vlaneseq }
 0x150   : > { %2665 = vmatpush3.bf16.msra.mxu1 %v1959_v36 }
 0x151   : > { %2571 = vmatmul.mubr.msk.bf16.vlgmr.msra.gmra.mxu0 %vm271_vm0, %v2568_v14  ;;  %2666 = vmatprep.subr.bf16.mxu1 %v2712_v24  ;;  %v3276_v31 = vshrl.u32 %v178_v5, 7  ;;  %vm2441_vm10 = vcmp.lt.s32.totalorder %v178_v5, 840 }
 0x152   : > { %v2170_v12 = vpop.permute.xlu0 %2169  ;;  %2245 = vmatprep.mubr.bf16.mxu0 %v2710_v1 }
 0x153   : > { %v1928_v37 = vpop.permute.xlu1 %1927  ;;  %v2190_v38 = vsel %vm2181_vm9, %v2168_v6, %v2170_v12  ;;  %v180_v11 = vsub.s32 0, %v3276_v31 }
 0x154   : > { %v1952_v39 = vsel %vm1945_vm8, %v1926_v33, %v1928_v37  ;;  %2225 = vmatprep.subr.bf16.mxu0 %v2190_v38 }
 0x155   : > { %2667 = vmatpush3.bf16.msra.mxu1 %v1952_v39 }
 0x156   : > { %v2166_v10 = vpop.permute.xlu0 %2165 }
 0x157   : > { %v2189_v16 = vsel %vm2181_vm9, %v2166_v10, %v2168_v6  ;;  %v2152_v41 = vpop.permute.xlu1 %2151 }
 0x158   : > { %2669 = vmatmul.mubr.msk.bf16.vlgmr.msra.gmra.mxu1 %vm271_vm0, %v2568_v14  ;;  %2226 = vmatpush1.bf16.msra.mxu0 %v2189_v16 }
 0x159   : > { %2286 = vmatprep.mubr.bf16.mxu1 %v2710_v1  ;;  %v3244_v42 = vpop.f32.mrf.mxu0 }
 0x15a   : > { %v2154_v25 = vpop.permute.xlu0 %2153 }
 0x15b   : > { %v2172_v43 = vpop.permute.xlu1 %2171  ;;  %v2183_v44 = vsel %vm2181_vm9, %v2152_v41, %v2154_v25  ;;  %v3247_v46 = vpop.f32.mrf.mxu0 }
 0x15c   : > { %2227 = vmatprep.subr.bf16.mxu0 %v2183_v44  ;;  %v2191_v53 = vsel %vm2181_vm9, %v2170_v12, %v2172_v43 }
 0x15d   : > { %v543_v47 = vpop.f32.mrf.mxu0 }
 0x15e   : > { %v2174_v48 = vpop.permute.xlu0 %2173  ;;  %v3249_v49 = vpop.f32.mrf.mxu1 }
 0x15f   : > { %v2150_v50 = vpop.permute.xlu1 %2149  ;;  %v2192_v51 = vsel %vm2181_vm9, %v2172_v43, %v2174_v48  ;;  %v544_v20 = vpop.f32.mrf.mxu0 }
 0x160   : > { %v2182_v54 = vsel %vm2181_vm9, %v2150_v50, %v2152_v41  ;;  %2266 = vmatprep.subr.bf16.mxu1 %v2192_v51  ;;  %v3254_v55 = vpop.f32.mrf.mxu1 }
 0x161   : > { %2228 = vmatpush1.bf16.msra.mxu0 %v2182_v54  ;;  %2267 = vmatpush1.bf16.msra.mxu1 %v2191_v53 }
 0x162   : > { %v2156_v35 = vpop.permute.xlu0 %2155  ;;  %v584_v57 = vpop.f32.mrf.mxu1 }
 0x163   : > { %v2184_v59 = vsel %vm2181_vm9, %v2154_v25, %v2156_v35  ;;  %v2158_v60 = vpop.permute.xlu1 %2157 }
 0x164   : > { %2574 = vmatmul.mubr.msk.bf16.vlgmr.msra.gmra.mxu0 %vm271_vm0, %v2573_v29  ;;  %v2185_v61 = vsel %vm2181_vm9, %v2156_v35, %v2158_v60  ;;  %v585_v62 = vpop.f32.mrf.mxu1 }
 0x165   : > { %2268 = vmatprep.subr.bf16.mxu1 %v2185_v61  ;;  %2327 = vmatprep.mubr.bf16.mxu0 %v2710_v1  ;;  %v621_v63 = vpop.f32.mrf.mxu0 }
 0x166   : > { %2269 = vmatpush1.bf16.msra.mxu1 %v2184_v59  ;;  %v2176_v0 = vpop.permute.xlu0 %2175  ;;  %v662_v2 = vpop.f32.mrf.mxu1 }
 0x167   : > { %v2193_v3 = vsel %vm2181_vm9, %v2174_v48, %v2176_v0  ;;  %v2178_v40 = vpop.permute.xlu1 %2177  ;;  %2672 = vmatprep.subr.bf16.mxu1 %v2712_v24  ;;  %v623_v4 = vpop.f32.mrf.mxu0 }
 0x168   : > { %v2194_v45 = vsel %vm2181_vm9, %v2176_v0, %v2178_v40  ;;  %v2622_v7 = vpop.f32.mrf.mxu1 }
 0x169   : > { %2575 = vmatmul.mubr.msk.bf16.vlgmr.msra.gmra.mxu1 %vm271_vm0, %v2573_v29  ;;  %2307 = vmatprep.subr.bf16.mxu0 %v2194_v45  ;;  %v625_v8 = vpop.f32.mrf.mxu0 }
 0x16a   : > { %2308 = vmatpush1.bf16.msra.mxu0 %v2193_v3  ;;  %v2160_v9 = vpop.permute.xlu0 %2159  ;;  %2676 = vmatprep.mubr.msk.bf16.mxu1 %vm2713_vm1, %v2712_v24  ;;  %v665_v1 = vpop.f32.mrf.mxu1 }
 0x16b   : > { %v2186_v13 = vsel %vm2181_vm9, %v2158_v60, %v2160_v9  ;;  %v2162_v14 = vpop.permute.xlu1 %2161  ;;  %v626_v17 = vpop.f32.mrf.mxu0 }
 0x16c   : > { %v2187_v18 = vsel %vm2181_vm9, %v2160_v9, %v2162_v14  ;;  %v2623_v21 = vpop.f32.mrf.mxu1 }
 0x16d   : > { %2309 = vmatprep.subr.bf16.mxu0 %v2187_v18 }
 0x16e   : > { %2310 = vmatpush1.bf16.msra.mxu0 %v2186_v13  ;;  %v2180_v22 = vpop.permute.xlu0 %2179 }
 0x16f   : > { %v2195_v23 = vsel %vm2181_vm9, %v2178_v40, %v2180_v22  ;;  %v2164_v27 = vpop.permute.xlu1 %2163 }
 0x170   : > { %2673 = vmatpush3.bf16.msra.mxu1 %v2195_v23  ;;  %v2188_v28 = vsel %vm2181_vm9, %v2162_v14, %v2164_v27 }
 0x171   : > { %2576 = vmatmul.mubr.msk.bf16.vlgmr.msra.gmra.mxu0 %vm271_vm0, %v2573_v29  ;;  %2674 = vmatprep.subr.bf16.mxu1 %v2712_v24 }
 0x173   : > { %v769_v30 = vpop.f32.mrf.mxu0 }
 0x174   : > { %2675 = vmatpush3.bf16.msra.mxu1 %v2188_v28 }
 0x175   : > { %v771_v33 = vpop.f32.mrf.mxu0 }
 0x177   : > { %2677 = vmatmul.mubr.msk.bf16.vlgmr.msra.gmra.mxu1 %vm271_vm0, %v2573_v29  ;;  %v773_v34 = vpop.f32.mrf.mxu0 }
 0x179   : > { %v774_v36 = vpop.f32.mrf.mxu0 }
 0x17a   : > { %v810_v6 = vpop.f32.mrf.mxu1 }
 0x17b   : > { %v176_v12 = vpop.permute.xlu0 %175 }
 0x17c   : > { %v812_v37 = vpop.f32.mrf.mxu1  ;;  %v181_v38 = vrot.slane %v176_v12, %v180_v11 }
 0x17e   : > { %v814_v39 = vpop.f32.mrf.mxu1  ;;  %v442_v24 = vadd.f32 %v3148_v26, %v181_v38  ;;  %v443_v10 = vadd.f32 %v3154_v56, %v181_v38  ;;  %v444_v16 = vadd.f32 %v3160_v58, %v181_v38  ;;  %v438_v41 = vadd.f32 %v3124_v19, %v181_v38 }
 0x17f   : > { %v439_v25 = vadd.f32 %v3131_v15, %v181_v38  ;;  %v440_v43 = vadd.f32 %v3135_v32, %v181_v38  ;;  %v441_v44 = vadd.f32 %v3141_v52, %v181_v38 }
 0x180   : > { %v815_v47 = vpop.f32.mrf.mxu1  ;;  %v672_v48 = vadd.f32 %v621_v63, %v442_v24  ;;  %v673_v50 = vadd.f32 %v623_v4, %v443_v10  ;;  %v674_v51 = vadd.f32 %v662_v2, %v444_v16  ;;  %v668_v20 = vadd.f32 %v3244_v42, %v438_v41 }
 0x181   : > { %v851_v53 = vpop.f32.mrf.mxu0  ;;  %v669_v26 = vadd.f32 %v3247_v46, %v439_v25  ;;  %v670_v56 = vadd.f32 %v3249_v49, %v440_v43  ;;  %v671_v58 = vadd.f32 %v3254_v55, %v441_v44 }
 0x182   : > { %v892_v19 = vpop.f32.mrf.mxu1  ;;  %v902_v54 = vadd.f32 %v851_v53, %v672_v48  ;;  %v898_v15 = vadd.f32 %v769_v30, %v668_v20 }
 0x183   : > { %v853_v29 = vpop.f32.mrf.mxu0  ;;  %v904_v32 = vadd.f32 %v892_v19, %v674_v51  ;;  %v899_v35 = vadd.f32 %v771_v33, %v669_v26  ;;  %v900_v52 = vadd.f32 %v810_v6, %v670_v56  ;;  %v901_v57 = vadd.f32 %v812_v37, %v671_v58 }
 0x184   : > { %v2630_v59 = vpop.f32.mrf.mxu1  ;;  %v903_v60 = vadd.f32 %v853_v29, %v673_v50 }
 0x185   : > { %v855_v61 = vpop.f32.mrf.mxu0 }
 0x186   : > { %v895_v62 = vpop.f32.mrf.mxu1 }
 0x187   : > { %v856_v42 = vpop.f32.mrf.mxu0 }
 0x188   : > { %v2631_v63 = vpop.f32.mrf.mxu1 }
 0x18f   : > { %v999_v0 = vpop.f32.mrf.mxu0 }
 0x190   : > { %v1128_v46 = vadd.f32 %v999_v0, %v898_v15 }
 0x191   : > { %v1001_v2 = vpop.f32.mrf.mxu0 }
 0x192   : > { %v1129_v49 = vadd.f32 %v1001_v2, %v899_v35 }
 0x193   : > { %v1003_v3 = vpop.f32.mrf.mxu0 }
 0x195   : > { %v1004_v55 = vpop.f32.mrf.mxu0 }
 0x196   : > { %v1040_v40 = vpop.f32.mrf.mxu1 }
 0x197   : > { %v1130_v4 = vadd.f32 %v1040_v40, %v900_v52 }
 0x198   : > { %v1042_v45 = vpop.f32.mrf.mxu1 }
 0x199   : > { %v1131_v7 = vadd.f32 %v1042_v45, %v901_v57 }
 0x19a   : > { %v1044_v8 = vpop.f32.mrf.mxu1 }
 0x19c   : > { %v1045_v9 = vpop.f32.mrf.mxu1 }
 0x19d   : > { %v1081_v1 = vpop.f32.mrf.mxu0 }
 0x19e   : > { %v1132_v13 = vadd.f32 %v1081_v1, %v902_v54  ;;  %v1122_v14 = vpop.f32.mrf.mxu1 }
 0x19f   : > { %v1083_v17 = vpop.f32.mrf.mxu0  ;;  %v1134_v18 = vadd.f32 %v1122_v14, %v904_v32 }
 0x1a0   : > { %v1133_v21 = vadd.f32 %v1083_v17, %v903_v60  ;;  %v2638_v22 = vpop.f32.mrf.mxu1 }
 0x1a1   : > { %v1085_v23 = vpop.f32.mrf.mxu0 }
 0x1a2   : > { %v1125_v27 = vpop.f32.mrf.mxu1 }
 0x1a3   : > { %v1086_v28 = vpop.f32.mrf.mxu0 }
 0x1a4   : > { %v2639_v30 = vpop.f32.mrf.mxu1 }
 0x1ab   : > { %v1229_v33 = vpop.f32.mrf.mxu0 }
 0x1ac   : > { %v1358_v34 = vadd.f32 %v1229_v33, %v1128_v46 }
 0x1ad   : > { %v1231_v11 = vpop.f32.mrf.mxu0 }
 0x1ae   : > { %v1359_v36 = vadd.f32 %v1231_v11, %v1129_v49 }
 0x1af   : > { %v1233_v6 = vpop.f32.mrf.mxu0 }
 0x1b1   : > { %v1234_v12 = vpop.f32.mrf.mxu0 }
 0x1b2   : > { %v1270_v37 = vpop.f32.mrf.mxu1 }
 0x1b3   : > { %v1360_v38 = vadd.f32 %v1270_v37, %v1130_v4 }
 0x1b4   : > { %v1272_v39 = vpop.f32.mrf.mxu1 }
 0x1b5   : > { %v1361_v24 = vadd.f32 %v1272_v39, %v1131_v7 }
 0x1b6   : > { %v1274_v10 = vpop.f32.mrf.mxu1 }
 0x1b8   : > { %v1275_v16 = vpop.f32.mrf.mxu1 }
 0x1b9   : > { %v1311_v41 = vpop.f32.mrf.mxu0 }
 0x1ba   : > { %v1362_v25 = vadd.f32 %v1311_v41, %v1132_v13  ;;  %v1352_v43 = vpop.f32.mrf.mxu1 }
 0x1bb   : > { %v1313_v44 = vpop.f32.mrf.mxu0  ;;  %v1364_v47 = vadd.f32 %v1352_v43, %v1134_v18 }
 0x1bc   : > { %v1363_v48 = vadd.f32 %v1313_v44, %v1133_v21  ;;  %v2646_v50 = vpop.f32.mrf.mxu1 }
 0x1bd   : > { %v1315_v51 = vpop.f32.mrf.mxu0 }
 0x1be   : > { %v1355_v20 = vpop.f32.mrf.mxu1 }
 0x1bf   : > { %v1316_v53 = vpop.f32.mrf.mxu0 }
 0x1c0   : > { %v2647_v26 = vpop.f32.mrf.mxu1 }
 0x1c1   : > { %v2721_v26 = vmov 1966171168  }
 0x1c7   : > { %v1459_v56 = vpop.f32.mrf.mxu0 }
 0x1c8   : > { %v1588_v58 = vadd.f32 %v1459_v56, %v1358_v34  ;;  %v2394_v56 = vunpack.c.l.s4 %v2721_v26 }
 0x1c9   : > { %v1461_v19 = vpop.f32.mrf.mxu0 }
 0x1ca   : > { %v1589_v54 = vadd.f32 %v1461_v19, %v1359_v36 }
 0x1cb   : > { %v1463_v15 = vpop.f32.mrf.mxu0 }
 0x1cd   : > { %v1500_v29 = vpop.f32.mrf.mxu1  ;;  %v1464_v32 = vpop.f32.mrf.mxu0 }
 0x1ce   : > { %v1590_v35 = vadd.f32 %v1500_v29, %v1360_v38  ;;  %v2395_v32 = vunpack.c.0.s8 %v2394_v56 }
 0x1cf   : > { %v1502_v52 = vpop.f32.mrf.mxu1 }
 0x1d0   : > { %v1591_v57 = vadd.f32 %v1502_v52, %v1361_v24 }
 0x1d1   : > { %v1504_v59 = vpop.f32.mrf.mxu1 }
 0x1d3   : > { %v1505_v60 = vpop.f32.mrf.mxu1 }
 0x1d5   : > { %v1541_v61 = vpop.f32.mrf.mxu0  ;;  %v1582_v62 = vpop.f32.mrf.mxu1 }
 0x1d6   : > { %v1592_v42 = vadd.f32 %v1541_v61, %v1362_v25  ;;  %v3291_v63 = vadd.f32 %v1582_v62, %v1364_v47 }
 0x1d7   : > { %v1543_v0 = vpop.f32.mrf.mxu0  ;;  %v2654_v46 = vpop.f32.mrf.mxu1 }
 0x1d8   : > { %v3293_v2 = vadd.f32 %v1543_v0, %v1363_v48 }
 0x1d9   : > { %v1545_v49 = vpop.f32.mrf.mxu0  ;;  %v1585_v3 = vpop.f32.mrf.mxu1 }
 0x1db   : > { %v1546_v55 = vpop.f32.mrf.mxu0  ;;  %v2655_v40 = vpop.f32.mrf.mxu1 }
 0x1e4   : > { %v1775_v4 = vpop.f32.mrf.mxu0 }
 0x1e5   : > { %v1904_v45 = vadd.f32 %v1775_v4, %v1588_v58 }
 0x1e6   : > { %v1777_v7 = vpop.f32.mrf.mxu0 }
 0x1e7   : > { %v1905_v8 = vadd.f32 %v1777_v7, %v1589_v54 }
 0x1e8   : > { %v1779_v9 = vpop.f32.mrf.mxu0 }
 0x1e9   : > { %v1816_v1 = vpop.f32.mrf.mxu1 }
 0x1ea   : > { %v1906_v13 = vadd.f32 %v1816_v1, %v1590_v35  ;;  %v1780_v14 = vpop.f32.mrf.mxu0 }
 0x1eb   : > { %v1818_v17 = vpop.f32.mrf.mxu1 }
 0x1ec   : > { %v1907_v18 = vadd.f32 %v1818_v17, %v1591_v57 }
 0x1ed   : > { %v1820_v21 = vpop.f32.mrf.mxu1 }
 0x1ef   : > { %v1821_v22 = vpop.f32.mrf.mxu1 }
 0x1f1   : > { %v1857_v23 = vpop.f32.mrf.mxu0 }
 0x1f2   : > { %v1908_v27 = vadd.f32 %v1857_v23, %v1592_v42  ;;  %v2398_v42 = vsub.s32 %v2395_v32, %v3276_v31 }
 0x1f3   : > { %v1859_v28 = vpop.f32.mrf.mxu0 }
 0x1f4   : > { %v1909_v40 = vadd.f32 %v1859_v28, %v3293_v2 }
 0x1f5   : > { %v1861_v30 = vpop.f32.mrf.mxu0 }
 0x1f7   : > { %v1862_v33 = vpop.f32.mrf.mxu0 }
 0x1f8   : > { %v1898_v34 = vpop.f32.mrf.mxu1 }
 0x1f9   : > { %v1910_v14 = vadd.f32 %v1898_v34, %v3291_v63 }
 0x1fa   : > { %v2662_v11 = vpop.f32.mrf.mxu1 }
 0x1fc   : > { %v1901_v36 = vpop.f32.mrf.mxu1 }
 0x1fe   : > { %v2663_v6 = vpop.f32.mrf.mxu1 }
 0x204   : > { %v2011_v12 = vpop.f32.mrf.mxu0 }
 0x205   : > { %v2140_v58 = vadd.f32 %v2011_v12, %v1904_v45 }
 0x206   : > { %v2013_v37 = vpop.f32.mrf.mxu0 }
 0x207   : > { %v2141_v19 = vadd.f32 %v2013_v37, %v1905_v8 }
 0x208   : > { %v2015_v38 = vpop.f32.mrf.mxu0 }
 0x209   : > { %v2052_v39 = vpop.f32.mrf.mxu1 }
 0x20a   : > { %v2016_v24 = vpop.f32.mrf.mxu0  ;;  %v2142_v59 = vadd.f32 %v2052_v39, %v1906_v13 }
 0x20b   : > { %v2054_v10 = vpop.f32.mrf.mxu1 }
 0x20c   : > { %v2143_v60 = vadd.f32 %v2054_v10, %v1907_v18 }
 0x20d   : > { %v2056_v16 = vpop.f32.mrf.mxu1 }
 0x20f   : > { %v2057_v41 = vpop.f32.mrf.mxu1 }
 0x211   : > { %v2093_v25 = vpop.f32.mrf.mxu0 }
 0x212   : > { %v2144_v8 = vadd.f32 %v2093_v25, %v1908_v27 }
 0x213   : > { %v2095_v43 = vpop.f32.mrf.mxu0 }
 0x214   : > { %v2145_v9 = vadd.f32 %v2095_v43, %v1909_v40 }
 0x215   : > { %v2097_v44 = vpop.f32.mrf.mxu0 }
 0x217   : > { %v2098_v47 = vpop.f32.mrf.mxu0 }
 0x218   : > { %v2134_v48 = vpop.f32.mrf.mxu1 }
 0x219   : > { %v2146_v21 = vadd.f32 %v2134_v48, %v1910_v14 }
 0x21a   : > { %v2670_v50 = vpop.f32.mrf.mxu1 }
 0x21c   : > { %v2137_v51 = vpop.f32.mrf.mxu1 }
 0x21e   : > { %v2671_v20 = vpop.f32.mrf.mxu1 }
 0x224   : > { %v2247_v53 = vpop.f32.mrf.mxu0 }
 0x225   : > { %v2376_v15 = vadd.f32 %v2247_v53, %v2140_v58 }
 0x226   : > { %v2249_v54 = vpop.f32.mrf.mxu0 }
 0x227   : > { %v2377_v29 = vadd.f32 %v2249_v54, %v2141_v19 }
 0x228   : > { %v2251_v35 = vpop.f32.mrf.mxu0 }
 0x229   : > { %v2390_v52 = vcombine.low %v2376_v15, %v2377_v29  ;;  %v2288_v57 = vpop.f32.mrf.mxu1 }
 0x22a   : > { %v2252_v61 = vpop.f32.mrf.mxu0  ;;  %v2378_v0 = vadd.f32 %v2288_v57, %v2142_v59 }
 0x22b   : > { %v2290_v62 = vpop.f32.mrf.mxu1  ;;  %v2399_v4 = vrot.slane %v2390_v52, %v2398_v42 }
 0x22c   : > { %v2379_v46 = vadd.f32 %v2290_v62, %v2143_v60 }
 0x22d   : > { %v2292_v49 = vpop.f32.mrf.mxu1 }
 0x22e   : > { %v2391_v3 = vcombine.low %v2378_v0, %v2379_v46 }
 0x22f   : > { %v2293_v55 = vpop.f32.mrf.mxu1 }
 0x230   : > { %v2406_v45 = vrot.slane %v2391_v3, %v2398_v42 }
 0x231   : > { %v2329_v7 = vpop.f32.mrf.mxu0 }
 0x232   : > { %v2421_v1 = vcombine.low %v2399_v4, %v2406_v45  ;;  %v2380_v17 = vadd.f32 %v2329_v7, %v2144_v8 }
 0x233   : > { %v2331_v13 = vpop.f32.mrf.mxu0 }
 0x234   : > { %v2381_v18 = vadd.f32 %v2331_v13, %v2145_v9  ;;  %v2429_v12 = vrot.slane %v2421_v1, %v2398_v42 }
 0x235   : > { %v2333_v31 = vpop.f32.mrf.mxu0 }
 0x236   : > { %v2392_v22 = vcombine.low %v2380_v17, %v2381_v18 }
 0x237   : > { %v2334_v23 = vpop.f32.mrf.mxu0  ;;  %v2370_v30 = vpop.f32.mrf.mxu1 }
 0x238   : > { %v2382_v33 = vadd.f32 %v2370_v30, %v2146_v21  ;;  %v2413_v2 = vrot.slane %v2392_v22, %v2398_v42 }
 0x239   : > { %v2678_v11 = vpop.f32.mrf.mxu1 }
 0x23a   : > { %v2420_v28 = vrot.slane %v2382_v33, %v2398_v42 }
 0x23b   : > { %v2373_v36 = vpop.f32.mrf.mxu1 }
 0x23c   : > { %v2422_v27 = vcombine.low %v2413_v2, %v2420_v28 }
 0x23d   : > { %v2679_v6 = vpop.f32.mrf.mxu1 }
 0x23e   : > { %v2436_v37 = vrot.slane %v2422_v27, %v2398_v42 }
 0x240   : > { %v2437_v63 = vcombine.low %v2429_v12, %v2436_v37 }
 0x242   : > { %2443 = vst.msk [vmem:[%s170_s22] sm:$0x7f] %vm2441_vm10, %v2437_v63 }
 0x243 PF: > { %s15_s14 = sadd.s32 1, %s2708_s14  }
 0x244   : > { %p12_p4 = scmp.ge.s32.totalorder %s15_s14, 4  }
 0x246   :  { %14 = sbr.rel (!%p12_p4) target bundleno = 3 (0x3), region = 70 }

</bundles_post_ra>
